<compile_context>
chip_gen: v5e
topology: v5e:2x2
jax: 0.10.0
libtpu: 0.0.40
codegen_flags: <defaults>
</compile_context>

<pallas_src>
import jax
import jax.numpy as jnp
from jax.experimental import pallas as pl
from jax.experimental.pallas import tpu as pltpu

# Original layer widths and activations.
DIMS = [1024, 512, 256, 128, 256, 512, 1024]
ACTS = ["relu", "relu", None, "relu", "relu", "sigmoid"]
# After folding the activation-free 256->128->256 bottleneck into one 256x256 layer.
FUSED_DIMS = [1024, 512, 256, 256, 512, 1024]


def _round_up(x, m):
    return ((x + m - 1) // m) * m


def _autoencoder_kernel(x_ref, w1, b1, w2, b2, w34, b34, w5, b5, w6, b6, o_ref):
    """One batch tile of the fused 5-matmul MLP; all weights VMEM-resident.

    Weights and the streamed activations are bf16 (MXU operands); accumulation and all
    elementwise math (bias add, ReLU, sigmoid) run in f32.
    """
    ws = (w1, w2, w34, w5, w6)
    bs = (b1, b2, b34, b5, b6)
    h = x_ref[...]                                                     # bf16, straight to MXU
    n = len(ws)
    for idx, (w, b) in enumerate(zip(ws, bs)):
        y = jnp.dot(h, w[...], preferred_element_type=jnp.float32)    # MXU, f32 accumulate
        y = y + b[...]                                                 # f32 bias (VPU)
        if idx < n - 1:
            h = jnp.maximum(y, 0.0).astype(jnp.bfloat16)               # ReLU, bf16 for next dot
        else:
            h = jax.nn.sigmoid(y)                                      # final sigmoid (f32, EUP)
    o_ref[...] = h.astype(o_ref.dtype)


def _fold_and_flatten(params, weight_dtype):
    """Precompose the activation-free bottleneck (L3, L4) and flatten to [W, b, ...]."""
    (w1, b1), (w2, b2), (w3, b3), (w4, b4), (w5, b5), (w6, b6) = params
    w34 = jnp.dot(w3.astype(jnp.float32), w4.astype(jnp.float32))              # (256, 256)
    b34 = jnp.dot(b3.astype(jnp.float32), w4.astype(jnp.float32)) + b4.astype(jnp.float32)
    fused = [(w1, b1), (w2, b2), (w34, b34), (w5, b5), (w6, b6)]
    flat = []
    for w, b in fused:
        flat.append(w.astype(weight_dtype))    # bf16 MXU operand
        flat.append(b.astype(jnp.float32))     # f32 VPU operand
    return flat


def _weight_spec_kwargs():
    """pipeline_mode=pl.Buffered(1) for constant-index weight blocks, if supported."""
    try:
        mode = pl.Buffered(1)
        pl.BlockSpec((8, 128), lambda i: (0, 0), pipeline_mode=mode)   # construction-time probe
    except (AttributeError, TypeError):
        return {}
    return {"pipeline_mode": mode}


def _default_batch_tile():
    """1024 on 128 MiB-VMEM parts (v5e/v6e), 512 on 64 MiB-per-core v7x."""
    try:
        kind = jax.devices()[0].device_kind.lower()
    except (IndexError, RuntimeError):
        return 512
    return 512 if "v7" in kind else 1024


def _vmem_limit_bytes(bt, param_bytes, out_itemsize, single_buffer_weights):
    """Right-size the scoped VMEM request from the actual kernel footprint."""
    in_tiles = 2 * bt * DIMS[0] * 2                    # bf16 x tile, double buffered
    out_tiles = 2 * bt * DIMS[-1] * out_itemsize       # output tile, double buffered
    weights = param_bytes * (1 if single_buffer_weights else 2)
    temps = bt * (DIMS[0] + DIMS[-1] + 512) * 4        # live f32 layer outputs (generous)
    total = in_tiles + out_tiles + weights + temps + (8 << 20)   # + compiler scratch headroom
    return int(max(total, 24 << 20))


def drug_discovery_forward(x, params, *, batch_tile=None, weight_dtype=jnp.bfloat16,
                           out_dtype=jnp.float32):
    """x: [B, 1024]. params: list of 6 (W [in, out], b [1, out]) float32 pairs.

    Pass out_dtype=jnp.bfloat16 to also halve the output writeback stream if the caller
    tolerates bf16 reconstructions (sigmoid output in [0, 1] loses very little).
    """
    B, d_in = x.shape
    assert d_in == DIMS[0]

    flat_params = _fold_and_flatten(params, weight_dtype)
    param_bytes = sum(int(p.nbytes) for p in flat_params)

    # Stream activations in bf16: cast once here, feed the first MXU dot directly.
    x = x.astype(jnp.bfloat16)

    # Tile selection: chip-dependent cap, multiple of 16, and never larger than ceil(B/2)
    # (rounded up to 16) so the 'parallel' grid axis has >=2 steps whenever B > 16
    # (keeps both v7x TensorCores busy; negligible cost on single-TC v5e/v6e).
    bt_cap = batch_tile if batch_tile is not None else _default_batch_tile()
    half = _round_up(max(1, -(-B // 2)), 16)
    bt = max(16, min(bt_cap, half))

    pad = (-B) % bt
    if pad:
        x = jnp.pad(x, ((0, pad), (0, 0)))
    Bp = B + pad

    out_itemsize = jnp.dtype(out_dtype).itemsize
    flops = 2 * Bp * sum(FUSED_DIMS[i] * FUSED_DIMS[i + 1] for i in range(len(FUSED_DIMS) - 1))
    cost = pl.CostEstimate(
        flops=flops,
        transcendentals=Bp * DIMS[-1],   # final sigmoid over the 1024-wide output
        bytes_accessed=int(x.nbytes) + Bp * DIMS[-1] * out_itemsize + param_bytes,
    )

    weight_kwargs = _weight_spec_kwargs()

    def run(single_buffer_weights):
        w_kwargs = weight_kwargs if single_buffer_weights else {}
        in_specs = [pl.BlockSpec((bt, DIMS[0]), lambda i: (i, 0))]
        for p in flat_params:
            # Constant index_map: weights/biases are fetched once and stay VMEM-resident.
            in_specs.append(pl.BlockSpec(p.shape, lambda i: (0, 0), **w_kwargs))
        out_spec = pl.BlockSpec((bt, DIMS[-1]), lambda i: (i, 0))
        return pl.pallas_call(
            _autoencoder_kernel,
            out_shape=jax.ShapeDtypeStruct((Bp, DIMS[-1]), out_dtype),
            grid_spec=pltpu.PrefetchScalarGridSpec(
                num_scalar_prefetch=0,
                grid=(Bp // bt,),
                in_specs=in_specs,
                out_specs=out_spec,
            ),
            compiler_params=pltpu.CompilerParams(
                dimension_semantics=("parallel",),
                vmem_limit_bytes=_vmem_limit_bytes(
                    bt, param_bytes, out_itemsize, single_buffer_weights),
            ),
            cost_estimate=cost,
        )(x, *flat_params)

    if weight_kwargs:
        try:
            out = run(single_buffer_weights=True)
        except (ValueError, NotImplementedError, pltpu.LoweringException):
            # Narrow fallback: only the single-buffered attempt is retried. If Buffered(1)
            # on constant weight blocks is rejected by this Mosaic build, rerun with default
            # double buffering (identical semantics, ~2.6 MiB extra VMEM). Errors on the
            # default path propagate unmodified.
            out = run(single_buffer_weights=False)
    else:
        out = run(single_buffer_weights=False)

    return out[:B] if pad else out


def init_params(key):
    """Deterministic init mimicking PyTorch nn.Linear default (U[-1/sqrt(fan_in), +])."""
    params = []
    for i in range(len(DIMS) - 1):
        fan_in, fan_out = DIMS[i], DIMS[i + 1]
        key, kw, kb = jax.random.split(key, 3)
        bound = 1.0 / jnp.sqrt(jnp.float32(fan_in))
        # Stored as [in, out] (already transposed vs. torch's [out, in]).
        w = jax.random.uniform(kw, (fan_in, fan_out), jnp.float32, -bound, bound)
        b = jax.random.uniform(kb, (1, fan_out), jnp.float32, -bound, bound)
        params.append((w, b))
    return params


def reference_forward(x, params):
    """Pure-JAX full-f32, unfused reference (ground truth up to bf16 quantization)."""
    h = x.astype(jnp.float32)
    for (w, b), act in zip(params, ACTS):
        h = jnp.dot(h, w.astype(jnp.float32),
                    preferred_element_type=jnp.float32,
                    precision=jax.lax.Precision.HIGHEST) + b.astype(jnp.float32)
        if act == "relu":
            h = jnp.maximum(h, 0.0)
        elif act == "sigmoid":
            h = jax.nn.sigmoid(h)
    return h


def reference_forward_matched(x, params):
    """Pure-JAX reference mirroring the kernel numerics exactly:
    bf16 x/weights, folded bottleneck, f32 accumulation, bf16 inter-layer activations."""
    flat = _fold_and_flatten(params, jnp.bfloat16)
    h = x.astype(jnp.bfloat16)
    n_layers = len(flat) // 2
    for i in range(n_layers):
        w, b = flat[2 * i], flat[2 * i + 1]
        y = jnp.dot(h, w, preferred_element_type=jnp.float32) + b
        if i < n_layers - 1:
            h = jnp.maximum(y, 0.0).astype(jnp.bfloat16)
        else:
            h = jax.nn.sigmoid(y)
    return h


if __name__ == "__main__":
    key = jax.random.PRNGKey(0)
    key, kx = jax.random.split(key)

    # Small test shapes: 128 fingerprints x 1024 features (feature width is fixed by the
    # module). The tile clamp gives a 2-step 'parallel' grid, so both v7x TCs get a tile.
    B = 128
    x = jax.random.normal(kx, (B, DIMS[0]), jnp.float32)
    params = init_params(key)

    out = drug_discovery_forward(x, params)
    out = jax.block_until_ready(out)
    assert out.shape == (B, DIMS[-1])
    assert out.dtype == jnp.float32

    # Tight check vs. a JAX reference that mirrors the kernel math exactly.
    ref_matched = reference_forward_matched(x, params)
    assert jnp.allclose(out, ref_matched, atol=5e-3, rtol=5e-3), \
        "mismatch vs bf16-matched JAX reference"

    # Loose check vs. the unfused full-f32 reference (only bf16 quantization error).
    ref_f32 = reference_forward(x, params)
    assert jnp.allclose(out, ref_f32, atol=3e-2, rtol=3e-2), \
        "mismatch vs f32 JAX reference"

    print("KERNEL_OK")
</pallas_src>

<mosaic_0001>
module attributes {stable_mosaic.version = 11 : i64} {
  func.func @_autoencoder_kernel(%arg0: i32, %arg1: memref<64x1024xbf16, #tpu.memory_space<vmem>>, %arg2: memref<1024x512xbf16, #tpu.memory_space<vmem>>, %arg3: memref<1x512xf32, #tpu.memory_space<vmem>>, %arg4: memref<512x256xbf16, #tpu.memory_space<vmem>>, %arg5: memref<1x256xf32, #tpu.memory_space<vmem>>, %arg6: memref<256x256xbf16, #tpu.memory_space<vmem>>, %arg7: memref<1x256xf32, #tpu.memory_space<vmem>>, %arg8: memref<256x512xbf16, #tpu.memory_space<vmem>>, %arg9: memref<1x512xf32, #tpu.memory_space<vmem>>, %arg10: memref<512x1024xbf16, #tpu.memory_space<vmem>>, %arg11: memref<1x1024xf32, #tpu.memory_space<vmem>>, %arg12: memref<64x1024xf32, #tpu.memory_space<vmem>>) attributes {dimension_semantics = [#tpu.dimension_semantics<parallel>], iteration_bounds = array<i64: 2>, scalar_prefetch = 0 : i64, scratch_operands = 0 : i64, tpu.core_type = #tpu.core_type<tc>, window_params = [{transform_indices = @transform_0, window_bounds = array<i64: 64, 1024>}, {pipeline_mode = #tpu.pipeline_mode<synchronous>, transform_indices = @transform_1, window_bounds = array<i64: 1024, 512>}, {pipeline_mode = #tpu.pipeline_mode<synchronous>, transform_indices = @transform_2, window_bounds = array<i64: 1, 512>}, {pipeline_mode = #tpu.pipeline_mode<synchronous>, transform_indices = @transform_3, window_bounds = array<i64: 512, 256>}, {pipeline_mode = #tpu.pipeline_mode<synchronous>, transform_indices = @transform_4, window_bounds = array<i64: 1, 256>}, {pipeline_mode = #tpu.pipeline_mode<synchronous>, transform_indices = @transform_5, window_bounds = array<i64: 256, 256>}, {pipeline_mode = #tpu.pipeline_mode<synchronous>, transform_indices = @transform_6, window_bounds = array<i64: 1, 256>}, {pipeline_mode = #tpu.pipeline_mode<synchronous>, transform_indices = @transform_7, window_bounds = array<i64: 256, 512>}, {pipeline_mode = #tpu.pipeline_mode<synchronous>, transform_indices = @transform_8, window_bounds = array<i64: 1, 512>}, {pipeline_mode = #tpu.pipeline_mode<synchronous>, transform_indices = @transform_9, window_bounds = array<i64: 512, 1024>}, {pipeline_mode = #tpu.pipeline_mode<synchronous>, transform_indices = @transform_10, window_bounds = array<i64: 1, 1024>}, {transform_indices = @transform_11, window_bounds = array<i64: 64, 1024>}]} {
    %c0 = arith.constant 0 : index
    %c0_0 = arith.constant 0 : index
    %0 = vector.load %arg1[%c0, %c0_0] : memref<64x1024xbf16, #tpu.memory_space<vmem>>, vector<64x1024xbf16>
    %c0_1 = arith.constant 0 : index
    %c0_2 = arith.constant 0 : index
    %1 = vector.load %arg2[%c0_1, %c0_2] : memref<1024x512xbf16, #tpu.memory_space<vmem>>, vector<1024x512xbf16>
    %cst = arith.constant dense<0.000000e+00> : vector<64x512xf32>
    %2 = tpu.matmul %0, %1, %cst {dimension_numbers = #tpu.dot_dimension_numbers<[1], [0], [0], [1], [0, 0, 1, 1], [], []>} : vector<64x1024xbf16>, vector<1024x512xbf16>, vector<64x512xf32> -> vector<64x512xf32>
    %c0_3 = arith.constant 0 : index
    %c0_4 = arith.constant 0 : index
    %3 = vector.load %arg3[%c0_3, %c0_4] : memref<1x512xf32, #tpu.memory_space<vmem>>, vector<1x512xf32>
    %4 = vector.broadcast %3 : vector<1x512xf32> to vector<64x512xf32>
    %5 = arith.addf %2, %4 : vector<64x512xf32>
    %cst_5 = arith.constant 0.000000e+00 : f32
    %6 = vector.broadcast %cst_5 : f32 to vector<64x512xf32>
    %7 = arith.maximumf %5, %6 : vector<64x512xf32>
    %8 = arith.truncf %7 : vector<64x512xf32> to vector<64x512xbf16>
    %c0_6 = arith.constant 0 : index
    %c0_7 = arith.constant 0 : index
    %9 = vector.load %arg4[%c0_6, %c0_7] : memref<512x256xbf16, #tpu.memory_space<vmem>>, vector<512x256xbf16>
    %cst_8 = arith.constant dense<0.000000e+00> : vector<64x256xf32>
    %10 = tpu.matmul %8, %9, %cst_8 {dimension_numbers = #tpu.dot_dimension_numbers<[1], [0], [0], [1], [0, 0, 1, 1], [], []>} : vector<64x512xbf16>, vector<512x256xbf16>, vector<64x256xf32> -> vector<64x256xf32>
    %c0_9 = arith.constant 0 : index
    %c0_10 = arith.constant 0 : index
    %11 = vector.load %arg5[%c0_9, %c0_10] : memref<1x256xf32, #tpu.memory_space<vmem>>, vector<1x256xf32>
    %12 = vector.broadcast %11 : vector<1x256xf32> to vector<64x256xf32>
    %13 = arith.addf %10, %12 : vector<64x256xf32>
    %cst_11 = arith.constant 0.000000e+00 : f32
    %14 = vector.broadcast %cst_11 : f32 to vector<64x256xf32>
    %15 = arith.maximumf %13, %14 : vector<64x256xf32>
    %16 = arith.truncf %15 : vector<64x256xf32> to vector<64x256xbf16>
    %c0_12 = arith.constant 0 : index
    %c0_13 = arith.constant 0 : index
    %17 = vector.load %arg6[%c0_12, %c0_13] : memref<256x256xbf16, #tpu.memory_space<vmem>>, vector<256x256xbf16>
    %cst_14 = arith.constant dense<0.000000e+00> : vector<64x256xf32>
    %18 = tpu.matmul %16, %17, %cst_14 {dimension_numbers = #tpu.dot_dimension_numbers<[1], [0], [0], [1], [0, 0, 1, 1], [], []>} : vector<64x256xbf16>, vector<256x256xbf16>, vector<64x256xf32> -> vector<64x256xf32>
    %c0_15 = arith.constant 0 : index
    %c0_16 = arith.constant 0 : index
    %19 = vector.load %arg7[%c0_15, %c0_16] : memref<1x256xf32, #tpu.memory_space<vmem>>, vector<1x256xf32>
    %20 = vector.broadcast %19 : vector<1x256xf32> to vector<64x256xf32>
    %21 = arith.addf %18, %20 : vector<64x256xf32>
    %cst_17 = arith.constant 0.000000e+00 : f32
    %22 = vector.broadcast %cst_17 : f32 to vector<64x256xf32>
    %23 = arith.maximumf %21, %22 : vector<64x256xf32>
    %24 = arith.truncf %23 : vector<64x256xf32> to vector<64x256xbf16>
    %c0_18 = arith.constant 0 : index
    %c0_19 = arith.constant 0 : index
    %25 = vector.load %arg8[%c0_18, %c0_19] : memref<256x512xbf16, #tpu.memory_space<vmem>>, vector<256x512xbf16>
    %cst_20 = arith.constant dense<0.000000e+00> : vector<64x512xf32>
    %26 = tpu.matmul %24, %25, %cst_20 {dimension_numbers = #tpu.dot_dimension_numbers<[1], [0], [0], [1], [0, 0, 1, 1], [], []>} : vector<64x256xbf16>, vector<256x512xbf16>, vector<64x512xf32> -> vector<64x512xf32>
    %c0_21 = arith.constant 0 : index
    %c0_22 = arith.constant 0 : index
    %27 = vector.load %arg9[%c0_21, %c0_22] : memref<1x512xf32, #tpu.memory_space<vmem>>, vector<1x512xf32>
    %28 = vector.broadcast %27 : vector<1x512xf32> to vector<64x512xf32>
    %29 = arith.addf %26, %28 : vector<64x512xf32>
    %cst_23 = arith.constant 0.000000e+00 : f32
    %30 = vector.broadcast %cst_23 : f32 to vector<64x512xf32>
    %31 = arith.maximumf %29, %30 : vector<64x512xf32>
    %32 = arith.truncf %31 : vector<64x512xf32> to vector<64x512xbf16>
    %c0_24 = arith.constant 0 : index
    %c0_25 = arith.constant 0 : index
    %33 = vector.load %arg10[%c0_24, %c0_25] : memref<512x1024xbf16, #tpu.memory_space<vmem>>, vector<512x1024xbf16>
    %cst_26 = arith.constant dense<0.000000e+00> : vector<64x1024xf32>
    %34 = tpu.matmul %32, %33, %cst_26 {dimension_numbers = #tpu.dot_dimension_numbers<[1], [0], [0], [1], [0, 0, 1, 1], [], []>} : vector<64x512xbf16>, vector<512x1024xbf16>, vector<64x1024xf32> -> vector<64x1024xf32>
    %c0_27 = arith.constant 0 : index
    %c0_28 = arith.constant 0 : index
    %35 = vector.load %arg11[%c0_27, %c0_28] : memref<1x1024xf32, #tpu.memory_space<vmem>>, vector<1x1024xf32>
    %36 = vector.broadcast %35 : vector<1x1024xf32> to vector<64x1024xf32>
    %37 = arith.addf %34, %36 : vector<64x1024xf32>
    %38 = arith.negf %37 : vector<64x1024xf32>
    %39 = math.exp %38 : vector<64x1024xf32>
    %cst_29 = arith.constant 1.000000e+00 : f32
    %40 = vector.broadcast %cst_29 : f32 to vector<64x1024xf32>
    %41 = arith.addf %40, %39 : vector<64x1024xf32>
    %42 = arith.divf %40, %41 : vector<64x1024xf32>
    %c0_30 = arith.constant 0 : index
    %c0_31 = arith.constant 0 : index
    %43 = vector.load %arg12[%c0_30, %c0_31] : memref<64x1024xf32, #tpu.memory_space<vmem>>, vector<64x1024xf32>
    tpu.vector_store %arg12[%c0_30, %c0_31], %42 {strides = array<i32>} : memref<64x1024xf32, #tpu.memory_space<vmem>>, vector<64x1024xf32>,
    return
  }
  func.func @transform_0(%arg0: i32) -> (i32, i32) {
    %c0_i32 = arith.constant 0 : i32
    %c0_i32_0 = arith.constant 0 : i32
    return %arg0, %c0_i32 : i32, i32
  }
  func.func @transform_1(%arg0: i32) -> (i32, i32) {
    %c0_i32 = arith.constant 0 : i32
    %c0_i32_0 = arith.constant 0 : i32
    %c0_i32_1 = arith.constant 0 : i32
    return %c0_i32, %c0_i32_0 : i32, i32
  }
  func.func @transform_2(%arg0: i32) -> (i32, i32) {
    %c0_i32 = arith.constant 0 : i32
    %c0_i32_0 = arith.constant 0 : i32
    %c0_i32_1 = arith.constant 0 : i32
    return %c0_i32, %c0_i32_0 : i32, i32
  }
  func.func @transform_3(%arg0: i32) -> (i32, i32) {
    %c0_i32 = arith.constant 0 : i32
    %c0_i32_0 = arith.constant 0 : i32
    %c0_i32_1 = arith.constant 0 : i32
    return %c0_i32, %c0_i32_0 : i32, i32
  }
  func.func @transform_4(%arg0: i32) -> (i32, i32) {
    %c0_i32 = arith.constant 0 : i32
    %c0_i32_0 = arith.constant 0 : i32
    %c0_i32_1 = arith.constant 0 : i32
    return %c0_i32, %c0_i32_0 : i32, i32
  }
  func.func @transform_5(%arg0: i32) -> (i32, i32) {
    %c0_i32 = arith.constant 0 : i32
    %c0_i32_0 = arith.constant 0 : i32
    %c0_i32_1 = arith.constant 0 : i32
    return %c0_i32, %c0_i32_0 : i32, i32
  }
  func.func @transform_6(%arg0: i32) -> (i32, i32) {
    %c0_i32 = arith.constant 0 : i32
    %c0_i32_0 = arith.constant 0 : i32
    %c0_i32_1 = arith.constant 0 : i32
    return %c0_i32, %c0_i32_0 : i32, i32
  }
  func.func @transform_7(%arg0: i32) -> (i32, i32) {
    %c0_i32 = arith.constant 0 : i32
    %c0_i32_0 = arith.constant 0 : i32
    %c0_i32_1 = arith.constant 0 : i32
    return %c0_i32, %c0_i32_0 : i32, i32
  }
  func.func @transform_8(%arg0: i32) -> (i32, i32) {
    %c0_i32 = arith.constant 0 : i32
    %c0_i32_0 = arith.constant 0 : i32
    %c0_i32_1 = arith.constant 0 : i32
    return %c0_i32, %c0_i32_0 : i32, i32
  }
  func.func @transform_9(%arg0: i32) -> (i32, i32) {
    %c0_i32 = arith.constant 0 : i32
    %c0_i32_0 = arith.constant 0 : i32
    %c0_i32_1 = arith.constant 0 : i32
    return %c0_i32, %c0_i32_0 : i32, i32
  }
  func.func @transform_10(%arg0: i32) -> (i32, i32) {
    %c0_i32 = arith.constant 0 : i32
    %c0_i32_0 = arith.constant 0 : i32
    %c0_i32_1 = arith.constant 0 : i32
    return %c0_i32, %c0_i32_0 : i32, i32
  }
  func.func @transform_11(%arg0: i32) -> (i32, i32) {
    %c0_i32 = arith.constant 0 : i32
    %c0_i32_0 = arith.constant 0 : i32
    return %arg0, %c0_i32 : i32, i32
  }
}

</mosaic_0001>

<bundles_post_ra>
// kernel: tpu_custom_call.1
= control target key start
LH: loop header
LB: loop body
LE: loop exit
PB: predicated region body
PF: predicated region fallthrough
CT: control target
= control target key end

     0   :  { %s15408_s0 = inlined_call_operand.hbm [shape: bf16[128,1024], index: 0, kind: input, shape index: {}]   ;;  %s15409_s1 = inlined_call_operand.hbm [shape: bf16[1024,512], index: 1, kind: input, shape index: {}]   ;;  %s15410_s2 = inlined_call_operand.hbm [shape: f32[1,512], index: 2, kind: input, shape index: {}]   ;;  %s15411_s3 = inlined_call_operand.hbm [shape: bf16[512,256], index: 3, kind: input, shape index: {}]   ;;  %s15412_s4 = inlined_call_operand.hbm [shape: f32[1,256], index: 4, kind: input, shape index: {}]   ;;  %s15413_s5 = inlined_call_operand.hbm [shape: bf16[256,256], index: 5, kind: input, shape index: {}]   ;;  %s15414_s6 = inlined_call_operand.hbm [shape: f32[1,256], index: 6, kind: input, shape index: {}]   ;;  %s15415_s7 = inlined_call_operand.hbm [shape: bf16[256,512], index: 7, kind: input, shape index: {}]   ;;  %s15416_s8 = inlined_call_operand.hbm [shape: f32[1,512], index: 8, kind: input, shape index: {}]   ;;  %s15417_s9 = inlined_call_operand.hbm [shape: bf16[512,1024], index: 9, kind: input, shape index: {}]   ;;  %s15418_s10 = inlined_call_operand.vmem [shape: f32[1,1024], index: 10, kind: input, shape index: {}]   ;;  %s15419_s11 = inlined_call_operand.hbm [shape: f32[128,1024], index: 11, kind: output, shape index: {}]  }
   0x1   :  { %15427 = sst [smem:[#allocation32_spill]] %s15409_s1 }
   0x2   :  { %15428 = sst [smem:[#allocation33_spill]] %s15410_s2 }
   0x3   :  { %15429 = sst [smem:[#allocation34_spill]] %s15411_s3 }
   0x4   :  { %15430 = sst [smem:[#allocation35_spill]] %s15418_s10 }
   0x5   :  { %15431 = sst [smem:[#allocation36_spill]] %s15419_s11 }
   0x6   :  { %16 = vsyncpa [#allocation3], 0 }
   0x7   :  { %18 = vsyncpa [#allocation3 + $0x1], 0 }
   0x8   :  { %19 = vsyncpa [#allocation6], 0 }
   0x9   :  { %20 = vsyncpa [#allocation9], 0 }
   0xa   :  { %21 = vsyncpa [#allocation12], 0 }
   0xb   :  { %22 = vsyncpa [#allocation15], 0 }
   0xc   :  { %23 = vsyncpa [#allocation18], 0 }
   0xd   :  { %24 = vsyncpa [#allocation4], 0 }
   0xe   :  { %26 = vsyncpa [#allocation4 + $0x1], 0  ;;  %s13353_s17 = smov 0   ;;  %s13355_s18 = smov 0  }
   0xf   :  { %s13357_s19 = smov 0   ;;  %s13359_s20 = smov 0  }
  0x10 LB: > { %s15432_s1 = sld [smem:[#allocation32_spill]]  ;;  %s13377_s24 = sadd.s32 4294967295, %s13274_s20   ;;  %s13274_s20 = sphi %s13359_s20, %s15505_s20   ;;  %s13270_s19 = sphi %s13357_s19, %s15504_s19   ;;  %s13266_s18 = sphi %s13355_s18, %s15503_s18   ;;  %s13262_s17 = sphi %s13353_s17, %s15502_s17  }
  0x11   : > { %p8862_p0 = scmp.ge.s32.totalorder %s13274_s20, 1  ;;  %p53_p1 = scmp.eq.s32.totalorder %s13377_s24, 0 }
  0x12   : > { %p299_p2 = scmp.lt.s32.totalorder %s13274_s20, 3  ;;  %s13276_s26 = smov [#allocation5]  }
  0x13   : > { %s312_s27 = sshll.u32 %s13276_s26, 4  ;;  %s15435_s3 = sld [smem:[#allocation34_spill]]  ;;  %s313_s27 = int_to_ptr.vmem [resolvable:$true] %s312_s27 }
  0x14   : > { %p13382_p3 = pnand %p8862_p0, %p299_p2  ;;  %s13277_s13 = smov [#allocation8]  }
  0x15   : > { %s338_s14 = sshll.u32 %s13277_s13, 4  ;;  %s13278_s15 = smov 256   ;;  %s339_s14 = int_to_ptr.vmem [resolvable:$true] %s338_s14 }
  0x16   : > { %s310_s23 = sshll.u32 %s15432_s1, 4  ;;  %p12523_p4 = pneg %p13382_p3  ;;  %s311_s23 = int_to_ptr.hbm [resolvable:$true] %s310_s23 }
  0x17   : > { %s15433_s25 = scalar_select %p13382_p3, 1, 0 }
  0x18   : > { %p13394_p6 = pnand %p12523_p4, %p53_p1  ;;  %s13279_s16 = smov 16  }
  0x19   : > { %15434 = sst [smem:[#allocation27_spill]] %s15433_s25  ;;  %s336_s30 = sshll.u32 %s15435_s3, 4  ;;  %s337_s30 = int_to_ptr.hbm [resolvable:$true] %s336_s30 }
  0x1a   : > { %12526 = dma.hbm_to_vmem [thread:$0]  (!%p13394_p6), %s311_s23, 32768, %s313_s27, [#allocation6], %s13278_s15, %s13278_s15, %s13279_s16  }
  0x1b   : > { %s13280_s21 = smov 128   ;;  %s13281_s22 = smov 8  }
  0x1c   : > { %12532 = dma.hbm_to_vmem [thread:$0]  (!%p13394_p6), %s337_s30, 8192, %s339_s14, [#allocation9], %s13280_s21, %s13280_s21, %s13281_s22  }
  0x1d   : > { %s362_s29 = sshll.u32 %s15413_s5, 4  ;;  %s13282_s1 = smov [#allocation11]   ;;  %s363_s29 = int_to_ptr.hbm [resolvable:$true] %s362_s29 }
  0x1e   : > { %s364_s3 = sshll.u32 %s13282_s1, 4  ;;  %s388_s10 = sshll.u32 %s15415_s7, 4  ;;  %s365_s3 = int_to_ptr.vmem [resolvable:$true] %s364_s3  ;;  %s389_s10 = int_to_ptr.hbm [resolvable:$true] %s388_s10 }
  0x1f   : > { %12538 = dma.hbm_to_vmem [thread:$0]  (!%p13394_p6), %s363_s29, 4096, %s365_s3, [#allocation12], %s13280_s21, %s13280_s21, %s13281_s22  }
  0x20   : > { %s13283_s23 = smov [#allocation14]   ;;  %s15437_s2 = sld [smem:[#allocation33_spill]] }
  0x21   : > { %s390_s27 = sshll.u32 %s13283_s23, 4  ;;  %s351_s28 = sshll.u32 %s15412_s4, 4  ;;  %s391_s27 = int_to_ptr.vmem [resolvable:$true] %s390_s27  ;;  %s352_s28 = int_to_ptr.hbm [resolvable:$true] %s351_s28 }
  0x22   : > { %12544 = dma.hbm_to_vmem [thread:$0]  (!%p13394_p6), %s389_s10, 8192, %s391_s27, [#allocation15], %s13278_s15, %s13278_s15, %s13279_s16  }
  0x23   : > { %s13284_s11 = smov [#allocation7]   ;;  %s13285_s3 = smov [#allocation10]  }
  0x24   : > { %s327_s13 = sshll.u32 %s13284_s11, 4  ;;  %s353_s21 = sshll.u32 %s13285_s3, 4  ;;  %s328_s13 = int_to_ptr.vmem [resolvable:$true] %s327_s13  ;;  %s354_s21 = int_to_ptr.vmem [resolvable:$true] %s353_s21 }
  0x25   : > { %s377_s29 = sshll.u32 %s15414_s6, 4  ;;  %s403_s16 = sshll.u32 %s15416_s8, 4  ;;  %s378_s29 = int_to_ptr.hbm [resolvable:$true] %s377_s29  ;;  %s404_s16 = int_to_ptr.hbm [resolvable:$true] %s403_s16 }
  0x26   : > { %s325_s14 = sshll.u32 %s15437_s2, 4  ;;  %s13286_s23 = smov [#allocation13]   ;;  %s326_s14 = int_to_ptr.hbm [resolvable:$true] %s325_s14 }
  0x27   : > { %12529 = dma.hbm_to_vmem [thread:$0]  (!%p13394_p6), %s326_s14, 64, %s328_s13, [#allocation6]  }
  0x28   : > { %12535 = dma.hbm_to_vmem [thread:$0]  (!%p13394_p6), %s352_s28, 32, %s354_s21, [#allocation9]  }
  0x29   : > { %s379_s27 = sshll.u32 %s13286_s23, 4  ;;  %s13287_s30 = smov [#allocation16]   ;;  %s380_s27 = int_to_ptr.vmem [resolvable:$true] %s379_s27 }
  0x2a   : > { %12541 = dma.hbm_to_vmem [thread:$0]  (!%p13394_p6), %s378_s29, 32, %s380_s27, [#allocation12]  }
  0x2b   : > { %s405_s14 = sshll.u32 %s13287_s30, 4  ;;  %s414_s28 = sshll.u32 %s15417_s9, 4  ;;  %s406_s14 = int_to_ptr.vmem [resolvable:$true] %s405_s14  ;;  %s415_s28 = int_to_ptr.hbm [resolvable:$true] %s414_s28 }
  0x2c   : > { %12547 = dma.hbm_to_vmem [thread:$0]  (!%p13394_p6), %s404_s16, 64, %s406_s14, [#allocation15]  }
  0x2d   : > { %s13288_s11 = smov [#allocation17]   ;;  %s15423_s3 = smov 512  }
  0x2e   : > { %s416_s13 = sshll.u32 %s13288_s11, 4  ;;  %s15424_s21 = smov 32   ;;  %s417_s13 = int_to_ptr.vmem [resolvable:$true] %s416_s13 }
  0x2f   : > { %12550 = dma.hbm_to_vmem [thread:$0]  (!%p13394_p6), %s415_s28, 32768, %s417_s13, [#allocation18], %s15423_s3, %s15423_s3, %s15424_s21  }
  0x30   : > { %s8861_s25 = sadd.s32 4294967294, %s13274_s20   ;;  %s13442_s22 = sadd.s32 1, %s13274_s20  }
  0x31   : > { %s39_s29 = sadd.s32 1, %s13270_s19  ;;  %s36_s10 = ssub.s32 %s13274_s20, %s13442_s22 }
  0x32   : > { %p46_p7 = scmp.ne.s32.totalorder %s13270_s19, %s13266_s18  ;;  %p37_p8 = scmp.eq.s32.totalorder %s36_s10, 0 }
  0x33   : > { %p47_p9 = scmp.eq.s32.totalorder %s13274_s20, 0  ;;  %p52_p10 = scmp.ne.s32.totalorder %s13266_s18, %s13262_s17 }
  0x34   : > { %p286_p11 = scmp.eq.s32.totalorder %s13377_s24, 1  ;;  %p292_p0 = scmp.eq.s32.totalorder %s8861_s25, 1 }
  0x35   : > { %s13454_s15 = scalar_select %p37_p8, %s13270_s19, %s39_s29  }
  0x36   : > { %p13458_p12 = por %p53_p1, %p52_p10  ;;  %p13462_p13 = por %p286_p11, %p46_p7 }
  0x37   : > { %p48_p2 = por %p47_p9, %p46_p7  ;;  %s433_s23 = sand.u32 1, %s13270_s19  }
  0x38   : > { %p13467_p4 = por %p292_p0, %p52_p10  ;;  %p12568_p6 = scmp.lt.s32.totalorder %s13274_s20, 2 }
  0x39   : > { %s8873_s30 = sshll.u32 %s433_s23, 8  ;;  %s11776_s14 = sshll.u32 %s13274_s20, 8 }
  0x3a   : > { %s443_s28 = scalar_lea.hbm %s15408_s0, %s11776_s14  ;;  %s437_s13 = scalar_lea.vmem [#allocation2], %s8873_s30 }
  0x3b   : > { %s444_s11 = sshll.u32 %s443_s28, 4  ;;  %s446_s29 = sshll.u32 %s437_s13, 4  ;;  %s445_s11 = int_to_ptr.hbm [resolvable:$true] %s444_s11  ;;  %s447_s29 = int_to_ptr.vmem [resolvable:$true] %s446_s29 }
  0x3c   : > { %p13476_p8 = pnand %p12568_p6, %p48_p2  ;;  %s434_s10 = scalar_lea.sflag [#allocation3], %s433_s23 }
  0x3d   : > { %s13158_s3 = sshra.s32 %s445_s11, 4  ;;  %s13165_s30 = scalar_lea.hbm %s15408_s0, 512  ;;  %s13159_s3 = int_to_ptr.hbm [resolvable:$true] %s13158_s3 }
  0x3e   : > { %s13160_s21 = scalar_lea.hbm %s13159_s3, 256  ;;  %p13162_p9 = pneg %p13476_p8 }
  0x3f   : > { %p13161_p7 = scmp.ne.s32.totalorder %s13159_s3, %s13160_s21  ;;  %p13166_p0 = scmp.lt.s32.totalorder %s13159_s3, %s15408_s0 }
  0x40   : > { %p13167_p2 = scmp.lt.s32.totalorder %s13165_s30, %s13160_s21 }
  0x41   : > { %p13163_p10 = pnand %p13162_p9, %p13161_p7 }
  0x42   : > { %p13168_p6 = por %p13167_p2, %p13166_p0 }
  0x43   : > { %p13164_p11 = pneg %p13163_p10 }
  0x45   : > { %p13169_p5 = pnand %p13168_p6, %p13164_p11 }
  0x47   : > { %13172 = shalt.err (!%p13169_p5)
}
  0x48   : > { %s15442_s23 = smov 32   ;;  %s15443_s13 = smov 512  }
  0x49   : > { %12554 = dma.hbm_to_vmem [thread:$0]  (!%p13476_p8), %s445_s11, 4096, %s447_s29, %s434_s10, %s15443_s13, %s15443_s13, %s15442_s23  }
  0x4a   : > { %458 = sbr.rel (%p13382_p3) target bundleno = 1963 (0x7ab), region = 64 }
  0x4f   : > { %s13496_s14 = sand.u32 1, %s13266_s18  }
  0x50   : > { %s8878_s3 = sshll.u32 %s13496_s14, 8  ;;  %s461_s21 = scalar_lea.sflag [#allocation3], %s13496_s14 }
  0x51   : > { %s13500_s1 = scalar_lea.vmem [#allocation2], %s8878_s3 }
  0x52   : > { %13233 = dma.done.wait (%p13458_p12), %s461_s21, 4096  }
  0x53   : > { %13235 = vsyncadd (%p13458_p12), %s461_s21, 4294963200 }
  0x54   : > { %13237 = dma.done.wait (%p53_p1), [#allocation6], 32832  }
  0x55   : > { %13239 = vsyncadd (%p53_p1), [#allocation6], 4294934464 }
  0x56   : > { %13241 = dma.done.wait (%p53_p1), [#allocation9], 8224  }
  0x57   : > { %13243 = vsyncadd (%p53_p1), [#allocation9], 4294959072 }
  0x58   : > { %13245 = dma.done.wait (%p53_p1), [#allocation12], 4128  }
  0x59   : > { %13247 = vsyncadd (%p53_p1), [#allocation12], 4294963168 }
  0x5a   : > { %13249 = dma.done.wait (%p53_p1), [#allocation15], 8256  }
  0x5b   : > { %13251 = vsyncadd (%p53_p1), [#allocation15], 4294959040 }
  0x5c   : > { %13253 = dma.done.wait (%p53_p1), [#allocation18], 32768  }
  0x5d   : > { %13255 = vsyncadd (%p53_p1), [#allocation18], 4294934528  ;;  %v9131_v0 = vld [vmem:[#allocation5 + $0xe0] sm:$0xf]  ;;  %v11839_v1 = vld [vmem:[#allocation5 + $0xec] sm:$0xf0] }
  0x5e   : > { %v9259_v2 = vld [vmem:[#allocation5 + $0x1e0] sm:$0xf]  ;;  %v9132_v3 = vor.u32 %v11839_v1, %v9131_v0  ;;  %v11871_v4 = vld [vmem:[#allocation5 + $0x1ec] sm:$0xf0]  ;;  %s15449_s11 = sld [smem:[#allocation35_spill]]  ;;  %s8888_s29 = sshll.u32 %s13496_s14, 9 }
  0x5f   : > { %v9387_v5 = vld [vmem:[#allocation5 + $0x2e0] sm:$0xf]  ;;  %v11903_v6 = vld [vmem:[#allocation5 + $0x2ec] sm:$0xf0]  ;;  %v9260_v7 = vor.u32 %v11871_v4, %v9259_v2  ;;  %s14368_s25 = scalar_lea.vmem [#allocation19], %s8888_s29  ;;  %s12482_s3 = sshll.u32 %s13377_s24, 9 }
  0x60   : > { %v9388_v8 = vor.u32 %v11903_v6, %v9387_v5  ;;  %v9515_v9 = vld [vmem:[#allocation5 + $0x3e0] sm:$0xf]  ;;  %v11935_v10 = vld [vmem:[#allocation5 + $0x3ec] sm:$0xf0]  ;;  %2289 = vmatpush.bf16.msra.mxu0 %v9132_v3  ;;  %s15500_s2 = sld [smem:[#allocation36_spill]]  ;;  %s8699_s24 = sshll.u32 %s14368_s25, 4  ;;  %s8700_s24 = int_to_ptr.vmem [resolvable:$true] %s8699_s24 }
  0x61   : > { %v9115_v11 = vld [vmem:[#allocation5 + $0xc0] sm:$0xf]  ;;  %v9516_v12 = vor.u32 %v11935_v10, %v9515_v9  ;;  %v11835_v13 = vld [vmem:[#allocation5 + $0xcc] sm:$0xf0]  ;;  %2318 = vmatpush.bf16.msra.mxu1 %v9260_v7  ;;  %s8686_s10 = scalar_lea.sflag [#allocation4], %s13496_s14 }
  0x62   : > { %v9243_v14 = vld [vmem:[#allocation5 + $0x1c0] sm:$0xf]  ;;  %v11867_v15 = vld [vmem:[#allocation5 + $0x1cc] sm:$0xf0]  ;;  %2347 = vmatpush.bf16.msra.mxu2 %v9388_v8  ;;  %v9116_v16 = vor.u32 %v11835_v13, %v9115_v11 }
  0x63   : > { %v9244_v17 = vor.u32 %v11867_v15, %v9243_v14  ;;  %v9371_v18 = vld [vmem:[#allocation5 + $0x2c0] sm:$0xf]  ;;  %v11899_v19 = vld [vmem:[#allocation5 + $0x2cc] sm:$0xf0]  ;;  %2376 = vmatpush.bf16.msra.mxu3 %v9516_v12 }
  0x64   : > { %v9499_v20 = vld [vmem:[#allocation5 + $0x3c0] sm:$0xf]  ;;  %v9372_v21 = vor.u32 %v11899_v19, %v9371_v18  ;;  %v11931_v22 = vld [vmem:[#allocation5 + $0x3cc] sm:$0xf0]  ;;  %2290 = vmatpush.bf16.msra.mxu0 %v9116_v16 }
  0x65   : > { %v9099_v23 = vld [vmem:[#allocation5 + $0xa0] sm:$0xf]  ;;  %v11831_v24 = vld [vmem:[#allocation5 + $0xac] sm:$0xf0]  ;;  %v9500_v25 = vor.u32 %v11931_v22, %v9499_v20  ;;  %2319 = vmatpush.bf16.msra.mxu1 %v9244_v17 }
  0x66   : > { %v9227_v26 = vld [vmem:[#allocation5 + $0x1a0] sm:$0xf]  ;;  %v11863_v27 = vld [vmem:[#allocation5 + $0x1ac] sm:$0xf0]  ;;  %v9100_v29 = vor.u32 %v11831_v24, %v9099_v23  ;;  %2348 = vmatpush.bf16.msra.mxu2 %v9372_v21  ;;  %s8698_s12 = scalar_lea.hbm %s15500_s2, %s12482_s3  ;;  %s13208_s13 = scalar_lea.hbm %s15500_s2, 1024 }
  0x67   : > { %v9355_v28 = vld [vmem:[#allocation5 + $0x2a0] sm:$0xf]  ;;  %v11895_v30 = vld [vmem:[#allocation5 + $0x2ac] sm:$0xf0]  ;;  %v9228_v33 = vor.u32 %v11863_v27, %v9227_v26  ;;  %2377 = vmatpush.bf16.msra.mxu3 %v9500_v25  ;;  %s8701_s29 = sshll.u32 %s8698_s12, 4  ;;  %s8702_s29 = int_to_ptr.hbm [resolvable:$true] %s8701_s29 }
  0x68   : > { %v9483_v31 = vld [vmem:[#allocation5 + $0x3a0] sm:$0xf]  ;;  %v11927_v32 = vld [vmem:[#allocation5 + $0x3ac] sm:$0xf0]  ;;  %v9356_v34 = vor.u32 %v11895_v30, %v9355_v28  ;;  %2291 = vmatpush.bf16.msra.mxu0 %v9100_v29  ;;  %v11777_v30 = vld [vmem:[%s13500_s1 + $0x4] sm:$0xf] }
  0x69   : > { %v9083_v35 = vld [vmem:[#allocation5 + $0x80] sm:$0xf]  ;;  %v11827_v36 = vld [vmem:[#allocation5 + $0x8c] sm:$0xf0]  ;;  %v9484_v38 = vor.u32 %v11927_v32, %v9483_v31  ;;  %2320 = vmatpush.bf16.msra.mxu1 %v9228_v33  ;;  %v8893_v31 = vld [vmem:[%s13500_s1 + $0x20] sm:$0xf0] }
  0x6a   : > { %v9211_v37 = vld [vmem:[#allocation5 + $0x180] sm:$0xf]  ;;  %v11859_v39 = vld [vmem:[#allocation5 + $0x18c] sm:$0xf0]  ;;  %v9084_v44 = vor.u32 %v11827_v36, %v9083_v35  ;;  %2349 = vmatpush.bf16.msra.mxu2 %v9356_v34  ;;  %v8899_v35 = vld [vmem:[%s13500_s1 + $0x8] sm:$0xf] }
  0x6b   : > { %v9339_v40 = vld [vmem:[#allocation5 + $0x280] sm:$0xf]  ;;  %v11891_v41 = vld [vmem:[#allocation5 + $0x28c] sm:$0xf0]  ;;  %v9212_v45 = vor.u32 %v11859_v39, %v9211_v37  ;;  %2378 = vmatpush.bf16.msra.mxu3 %v9484_v38  ;;  %s13202_s30 = sshra.s32 %s8702_s29, 4  ;;  %s13203_s30 = int_to_ptr.hbm [resolvable:$true] %s13202_s30 }
  0x6c   : > { %v9467_v42 = vld [vmem:[#allocation5 + $0x380] sm:$0xf]  ;;  %v11923_v43 = vld [vmem:[#allocation5 + $0x38c] sm:$0xf0]  ;;  %v9340_v46 = vor.u32 %v11891_v41, %v9339_v40  ;;  %2292 = vmatpush.bf16.msra.mxu0 %v9084_v44  ;;  %v11782_v40 = vld [vmem:[%s13500_s1 + $0x24] sm:$0xf0]  ;;  %p13209_p12 = scmp.lt.s32.totalorder %s13203_s30, %s15500_s2 }
  0x6d   : > { %v9067_v47 = vld [vmem:[#allocation5 + $0x60] sm:$0xf]  ;;  %v11823_v48 = vld [vmem:[#allocation5 + $0x6c] sm:$0xf0]  ;;  %v9468_v50 = vor.u32 %v11923_v43, %v9467_v42  ;;  %2321 = vmatpush.bf16.msra.mxu1 %v9212_v45  ;;  %v11778_v41 = vld [vmem:[%s13500_s1 + $0xc] sm:$0xf] }
  0x6e   : > { %v9195_v49 = vld [vmem:[#allocation5 + $0x160] sm:$0xf]  ;;  %v11855_v51 = vld [vmem:[#allocation5 + $0x16c] sm:$0xf0]  ;;  %v9068_v56 = vor.u32 %v11823_v48, %v9067_v47  ;;  %2350 = vmatpush.bf16.msra.mxu2 %v9340_v46  ;;  %v8901_v42 = vld [vmem:[%s13500_s1 + $0x28] sm:$0xf0] }
  0x6f   : > { %v9323_v52 = vld [vmem:[#allocation5 + $0x260] sm:$0xf]  ;;  %v11887_v53 = vld [vmem:[#allocation5 + $0x26c] sm:$0xf0]  ;;  %v9196_v57 = vor.u32 %v11855_v51, %v9195_v49  ;;  %2379 = vmatpush.bf16.msra.mxu3 %v9468_v50  ;;  %s13204_s26 = scalar_lea.hbm %s13203_s30, 512 }
  0x70   : > { %v9451_v54 = vld [vmem:[#allocation5 + $0x360] sm:$0xf]  ;;  %v11919_v55 = vld [vmem:[#allocation5 + $0x36c] sm:$0xf0]  ;;  %v9324_v58 = vor.u32 %v11887_v53, %v9323_v52  ;;  %2293 = vmatpush.bf16.msra.mxu0 %v9068_v56  ;;  %v13536_v53 = vor.u32 %v11777_v30, %v8893_v31  ;;  %p13205_p1 = scmp.ne.s32.totalorder %s13203_s30, %s13204_s26  ;;  %p13210_p8 = scmp.lt.s32.totalorder %s13208_s13, %s13204_s26 }
  0x71   : > { %v9051_v59 = vld [vmem:[#allocation5 + $0x40] sm:$0xf]  ;;  %v11819_v60 = vld [vmem:[#allocation5 + $0x4c] sm:$0xf0]  ;;  %v9452_v62 = vor.u32 %v11919_v55, %v9451_v54  ;;  %2322 = vmatpush.bf16.msra.mxu1 %v9196_v57  ;;  %v13538_v54 = vor.u32 %v11782_v40, %v8899_v35  ;;  %v13540_v57 = vor.u32 %v11778_v41, %v8901_v42  ;;  %v11790_v35 = vld [vmem:[%s13500_s1 + $0x64] sm:$0xf0] }
  0x72   : > { %v9179_v61 = vld [vmem:[#allocation5 + $0x140] sm:$0xf]  ;;  %v11851_v63 = vld [vmem:[#allocation5 + $0x14c] sm:$0xf0]  ;;  %v9052_v4 = vor.u32 %v11819_v60, %v9051_v59  ;;  %2351 = vmatpush.bf16.msra.mxu2 %v9324_v58  ;;  %p13206_p3 = pnand %p13205_p1, %p13462_p13  ;;  %p13211_p7 = por %p13210_p8, %p13209_p12 }
  0x73   : > { %v9307_v0 = vld [vmem:[#allocation5 + $0x240] sm:$0xf]  ;;  %v11883_v1 = vld [vmem:[#allocation5 + $0x24c] sm:$0xf0]  ;;  %v9180_v5 = vor.u32 %v11851_v63, %v9179_v61  ;;  %2380 = vmatpush.bf16.msra.mxu3 %v9452_v62 }
  0x74   : > { %v9435_v2 = vld [vmem:[#allocation5 + $0x340] sm:$0xf]  ;;  %v11915_v3 = vld [vmem:[#allocation5 + $0x34c] sm:$0xf0]  ;;  %v9308_v6 = vor.u32 %v11883_v1, %v9307_v0  ;;  %2294 = vmatpush.bf16.msra.mxu0 %v9052_v4  ;;  %p13207_p5 = pneg %p13206_p3 }
  0x75   : > { %v9035_v7 = vld [vmem:[#allocation5 + $0x20] sm:$0xf]  ;;  %v11815_v8 = vld [vmem:[#allocation5 + $0x2c] sm:$0xf0]  ;;  %v9436_v10 = vor.u32 %v11915_v3, %v9435_v2  ;;  %2323 = vmatpush.bf16.msra.mxu1 %v9180_v5 }
  0x76   : > { %v9163_v9 = vld [vmem:[#allocation5 + $0x120] sm:$0xf]  ;;  %v11847_v11 = vld [vmem:[#allocation5 + $0x12c] sm:$0xf0]  ;;  %v9036_v17 = vor.u32 %v11815_v8, %v9035_v7  ;;  %2352 = vmatpush.bf16.msra.mxu2 %v9308_v6  ;;  %p13212_p9 = pnand %p13211_p7, %p13207_p5 }
  0x77   : > { %v9291_v12 = vld [vmem:[#allocation5 + $0x220] sm:$0xf]  ;;  %v11879_v13 = vld [vmem:[#allocation5 + $0x22c] sm:$0xf0]  ;;  %v9164_v21 = vor.u32 %v11847_v11, %v9163_v9  ;;  %2381 = vmatpush.bf16.msra.mxu3 %v9436_v10 }
  0x78   : > { %v9419_v14 = vld [vmem:[#allocation5 + $0x320] sm:$0xf]  ;;  %v11911_v15 = vld [vmem:[#allocation5 + $0x32c] sm:$0xf0]  ;;  %v9292_v22 = vor.u32 %v11879_v13, %v9291_v12  ;;  %2295 = vmatpush.bf16.msra.mxu0 %v9036_v17 }
  0x79   : > { %v9019_v16 = vld [vmem:[#allocation5] sm:$0xf]  ;;  %v11811_v18 = vld [vmem:[#allocation5 + $0xc] sm:$0xf0]  ;;  %v9420_v26 = vor.u32 %v11911_v15, %v9419_v14  ;;  %2324 = vmatpush.bf16.msra.mxu1 %v9164_v21 }
  0x7a   : > { %v9147_v19 = vld [vmem:[#allocation5 + $0x100] sm:$0xf]  ;;  %v11843_v20 = vld [vmem:[#allocation5 + $0x10c] sm:$0xf0]  ;;  %v9020_v34 = vor.u32 %v11811_v18, %v9019_v16  ;;  %2353 = vmatpush.bf16.msra.mxu2 %v9292_v22 }
  0x7b   : > { %v9275_v23 = vld [vmem:[#allocation5 + $0x200] sm:$0xf]  ;;  %v11875_v24 = vld [vmem:[#allocation5 + $0x20c] sm:$0xf0]  ;;  %v9148_v38 = vor.u32 %v11843_v20, %v9147_v19  ;;  %2382 = vmatpush.bf16.msra.mxu3 %v9420_v26  ;;  %v11785_v26 = vld [vmem:[%s13500_s1 + $0x44] sm:$0xf] }
  0x7c   : > { %v9403_v25 = vld [vmem:[#allocation5 + $0x300] sm:$0xf]  ;;  %v11907_v27 = vld [vmem:[#allocation5 + $0x30c] sm:$0xf0]  ;;  %v9276_v39 = vor.u32 %v11875_v24, %v9275_v23  ;;  %2296 = vmatpush.bf16.msra.mxu0 %v9020_v34 }
  0x7d   : > { %v8891_v28 = vld [vmem:[%s13500_s1] sm:$0xf]  ;;  %v12031_v33 = vld [vmem:[#allocation5 + $0x6ec] sm:$0xf0]  ;;  %v9404_v43 = vor.u32 %v11907_v27, %v9403_v25  ;;  %2325 = vmatpush.bf16.msra.mxu1 %v9148_v38  ;;  %v8925_v27 = vld [vmem:[%s13500_s1 + $0x60] sm:$0xf0] }
  0x7e   : > { %v11781_v29 = vld [vmem:[%s13500_s1 + $0x1c] sm:$0xf0]  ;;  %v12063_v37 = vld [vmem:[#allocation5 + $0x7ec] sm:$0xf0]  ;;  %2354 = vmatpush.bf16.msra.mxu2 %v9276_v39 }
  0x7f   : > { %v9899_v32 = vld [vmem:[#allocation5 + $0x6e0] sm:$0xf]  ;;  %v11967_v46 = vld [vmem:[#allocation5 + $0x4ec] sm:$0xf0]  ;;  %v13534_v48 = vor.u32 %v11781_v29, %v8891_v28  ;;  %2383 = vmatpush.bf16.msra.mxu3 %v9404_v43 }
  0x80   : > { %v10027_v36 = vld [vmem:[#allocation5 + $0x7e0] sm:$0xf]  ;;  %v9900_v44 = vor.u32 %v12031_v33, %v9899_v32  ;;  %v11999_v50 = vld [vmem:[#allocation5 + $0x5ec] sm:$0xf0]  ;;  %2326 = vmatmul.bf16.vlgmr.msra.gmra.mxu1 %v13536_v53  ;;  %v8931_v32 = vld [vmem:[%s13500_s1 + $0x48] sm:$0xf] }
  0x81   : > { %v9643_v45 = vld [vmem:[#allocation5 + $0x4e0] sm:$0xf]  ;;  %v10028_v49 = vor.u32 %v12063_v37, %v10027_v36  ;;  %v12027_v52 = vld [vmem:[#allocation5 + $0x6cc] sm:$0xf0]  ;;  %2297 = vmatmul.bf16.vlgmr.msra.gmra.mxu0 %v13534_v48  ;;  %2355 = vmatmul.bf16.vlgmr.msra.gmra.mxu2 %v13538_v54  ;;  %v11786_v36 = vld [vmem:[%s13500_s1 + $0x4c] sm:$0xf] }
  0x82   : > { %v9771_v47 = vld [vmem:[#allocation5 + $0x5e0] sm:$0xf]  ;;  %v12059_v56 = vld [vmem:[#allocation5 + $0x7cc] sm:$0xf0]  ;;  %v9644_v58 = vor.u32 %v11967_v46, %v9643_v45  ;;  %2463 = vmatpush.bf16.msrb.mxu2 %v9900_v44  ;;  %2384 = vmatmul.bf16.vlgmr.msra.gmra.mxu3 %v13540_v57  ;;  %v8933_v37 = vld [vmem:[%s13500_s1 + $0x68] sm:$0xf0] }
  0x83   : > { %v9883_v51 = vld [vmem:[#allocation5 + $0x6c0] sm:$0xf]  ;;  %v9772_v59 = vor.u32 %v11999_v50, %v9771_v47  ;;  %v11963_v62 = vld [vmem:[#allocation5 + $0x4cc] sm:$0xf0]  ;;  %2492 = vmatpush.bf16.msrb.mxu3 %v10028_v49  ;;  %v13556_v50 = vor.u32 %v11785_v26, %v8925_v27 }
  0x84   : > { %v10011_v55 = vld [vmem:[#allocation5 + $0x7c0] sm:$0xf]  ;;  %v9884_v60 = vor.u32 %v12027_v52, %v9883_v51  ;;  %v11995_v1 = vld [vmem:[#allocation5 + $0x5cc] sm:$0xf0]  ;;  %2405 = vmatpush.bf16.msrb.mxu0 %v9644_v58  ;;  %v13558_v51 = vor.u32 %v11790_v35, %v8931_v32 }
  0x85   : > { %v9627_v61 = vld [vmem:[#allocation5 + $0x4c0] sm:$0xf]  ;;  %v10012_v0 = vor.u32 %v12059_v56, %v10011_v55  ;;  %v12023_v3 = vld [vmem:[#allocation5 + $0x6ac] sm:$0xf0]  ;;  %2434 = vmatpush.bf16.msrb.mxu1 %v9772_v59  ;;  %v13560_v56 = vor.u32 %v11786_v36, %v8933_v37 }
  0x86   : > { %v9755_v63 = vld [vmem:[#allocation5 + $0x5c0] sm:$0xf]  ;;  %v12055_v5 = vld [vmem:[#allocation5 + $0x7ac] sm:$0xf0]  ;;  %v9628_v6 = vor.u32 %v11963_v62, %v9627_v61  ;;  %2464 = vmatpush.bf16.msrb.mxu2 %v9884_v60 }
  0x87   : > { %v9867_v2 = vld [vmem:[#allocation5 + $0x6a0] sm:$0xf]  ;;  %v9756_v7 = vor.u32 %v11995_v1, %v9755_v63  ;;  %v11959_v10 = vld [vmem:[#allocation5 + $0x4ac] sm:$0xf0]  ;;  %2493 = vmatpush.bf16.msrb.mxu3 %v10012_v0 }
  0x88   : > { %v9995_v4 = vld [vmem:[#allocation5 + $0x7a0] sm:$0xf]  ;;  %v9868_v8 = vor.u32 %v12023_v3, %v9867_v2  ;;  %v11991_v13 = vld [vmem:[#allocation5 + $0x5ac] sm:$0xf0]  ;;  %2406 = vmatpush.bf16.msrb.mxu0 %v9628_v6 }
  0x89   : > { %v9611_v9 = vld [vmem:[#allocation5 + $0x4a0] sm:$0xf]  ;;  %v9996_v12 = vor.u32 %v12055_v5, %v9995_v4  ;;  %v12019_v15 = vld [vmem:[#allocation5 + $0x68c] sm:$0xf0]  ;;  %2435 = vmatpush.bf16.msrb.mxu1 %v9756_v7 }
  0x8a   : > { %v9739_v11 = vld [vmem:[#allocation5 + $0x5a0] sm:$0xf]  ;;  %v12051_v17 = vld [vmem:[#allocation5 + $0x78c] sm:$0xf0]  ;;  %v9612_v18 = vor.u32 %v11959_v10, %v9611_v9  ;;  %2465 = vmatpush.bf16.msrb.mxu2 %v9868_v8 }
  0x8b   : > { %v9851_v14 = vld [vmem:[#allocation5 + $0x680] sm:$0xf]  ;;  %v9740_v21 = vor.u32 %v11991_v13, %v9739_v11  ;;  %v11955_v24 = vld [vmem:[#allocation5 + $0x48c] sm:$0xf0]  ;;  %2494 = vmatpush.bf16.msrb.mxu3 %v9996_v12 }
  0x8c   : > { %v9979_v16 = vld [vmem:[#allocation5 + $0x780] sm:$0xf]  ;;  %v9852_v22 = vor.u32 %v12019_v15, %v9851_v14  ;;  %v11987_v29 = vld [vmem:[#allocation5 + $0x58c] sm:$0xf0]  ;;  %2407 = vmatpush.bf16.msrb.mxu0 %v9612_v18 }
  0x8d   : > { %v8923_v19 = vld [vmem:[%s13500_s1 + $0x40] sm:$0xf]  ;;  %v9980_v28 = vor.u32 %v12051_v17, %v9979_v16  ;;  %v12015_v31 = vld [vmem:[#allocation5 + $0x66c] sm:$0xf0]  ;;  %2436 = vmatpush.bf16.msrb.mxu1 %v9740_v21 }
  0x8e   : > { %v11789_v20 = vld [vmem:[%s13500_s1 + $0x5c] sm:$0xf0]  ;;  %v12047_v34 = vld [vmem:[#allocation5 + $0x76c] sm:$0xf0]  ;;  %2466 = vmatpush.bf16.msrb.mxu2 %v9852_v22 }
  0x8f   : > { %v9595_v23 = vld [vmem:[#allocation5 + $0x480] sm:$0xf]  ;;  %v11951_v42 = vld [vmem:[#allocation5 + $0x46c] sm:$0xf0]  ;;  %v13554_v44 = vor.u32 %v11789_v20, %v8923_v19  ;;  %2495 = vmatpush.bf16.msrb.mxu3 %v9980_v28  ;;  %v11793_v28 = vld [vmem:[%s13500_s1 + $0x84] sm:$0xf] }
  0x90   : > { %v9723_v25 = vld [vmem:[#allocation5 + $0x580] sm:$0xf]  ;;  %v9596_v38 = vor.u32 %v11955_v24, %v9595_v23  ;;  %v11983_v46 = vld [vmem:[#allocation5 + $0x56c] sm:$0xf0]  ;;  %2331 = vmatmul.bf16.gmra.mxu1 %v13556_v50 }
  0x91   : > { %v9835_v30 = vld [vmem:[#allocation5 + $0x660] sm:$0xf]  ;;  %v9724_v39 = vor.u32 %v11987_v29, %v9723_v25  ;;  %v12011_v49 = vld [vmem:[#allocation5 + $0x64c] sm:$0xf0]  ;;  %2302 = vmatmul.bf16.gmra.mxu0 %v13554_v44  ;;  %2360 = vmatmul.bf16.gmra.mxu2 %v13558_v51  ;;  %v8957_v29 = vld [vmem:[%s13500_s1 + $0xa0] sm:$0xf0] }
  0x92   : > { %v9963_v33 = vld [vmem:[#allocation5 + $0x760] sm:$0xf]  ;;  %v9836_v40 = vor.u32 %v12015_v31, %v9835_v30  ;;  %v12043_v55 = vld [vmem:[#allocation5 + $0x74c] sm:$0xf0]  ;;  %2408 = vmatpush.bf16.msrb.mxu0 %v9596_v38  ;;  %2389 = vmatmul.bf16.gmra.mxu3 %v13560_v56  ;;  %v8963_v30 = vld [vmem:[%s13500_s1 + $0x88] sm:$0xf]  ;;  %v13576_v37 = vor.u32 %v11793_v28, %v8957_v29 }
  0x93   : > { %v9579_v41 = vld [vmem:[#allocation5 + $0x460] sm:$0xf]  ;;  %v9964_v45 = vor.u32 %v12047_v34, %v9963_v33  ;;  %2437 = vmatpush.bf16.msrb.mxu1 %v9724_v39  ;;  %v11947_v62 = vld [vmem:[#allocation5 + $0x44c] sm:$0xf0]  ;;  %v11798_v31 = vld [vmem:[%s13500_s1 + $0xa4] sm:$0xf0] }
  0x94   : > { %v9707_v43 = vld [vmem:[#allocation5 + $0x560] sm:$0xf]  ;;  %v9580_v58 = vor.u32 %v11951_v42, %v9579_v41  ;;  %2467 = vmatpush.bf16.msrb.mxu2 %v9836_v40  ;;  %v11979_v1 = vld [vmem:[#allocation5 + $0x54c] sm:$0xf0]  ;;  %v11794_v33 = vld [vmem:[%s13500_s1 + $0x8c] sm:$0xf]  ;;  %v13578_v38 = vor.u32 %v11798_v31, %v8963_v30 }
  0x95   : > { %v9819_v47 = vld [vmem:[#allocation5 + $0x640] sm:$0xf]  ;;  %v9708_v59 = vor.u32 %v11983_v46, %v9707_v43  ;;  %2496 = vmatpush.bf16.msrb.mxu3 %v9964_v45  ;;  %v12007_v4 = vld [vmem:[#allocation5 + $0x62c] sm:$0xf0]  ;;  %v8965_v34 = vld [vmem:[%s13500_s1 + $0xa8] sm:$0xf0] }
  0x96   : > { %v9947_v52 = vld [vmem:[#allocation5 + $0x740] sm:$0xf]  ;;  %v9820_v60 = vor.u32 %v12011_v49, %v9819_v47  ;;  %2409 = vmatpush.bf16.msrb.mxu0 %v9580_v58  ;;  %v11943_v8 = vld [vmem:[#allocation5 + $0x42c] sm:$0xf0]  ;;  %v13580_v39 = vor.u32 %v11794_v33, %v8965_v34  ;;  %v11901_v40 = vld [vmem:[#allocation5 + $0x2e4] sm:$0xf] }
  0x97   : > { %v9563_v61 = vld [vmem:[#allocation5 + $0x440] sm:$0xf]  ;;  %v9948_v63 = vor.u32 %v12043_v55, %v9947_v52  ;;  %2438 = vmatpush.bf16.msrb.mxu1 %v9708_v59  ;;  %v12039_v10 = vld [vmem:[#allocation5 + $0x72c] sm:$0xf0]  ;;  %v9389_v41 = vld [vmem:[#allocation5 + $0x2f0] sm:$0xf0] }
  0x98   : > { %v9691_v0 = vld [vmem:[#allocation5 + $0x540] sm:$0xf]  ;;  %v9564_v2 = vor.u32 %v11947_v62, %v9563_v61  ;;  %2468 = vmatpush.bf16.msrb.mxu2 %v9820_v60  ;;  %v11975_v13 = vld [vmem:[#allocation5 + $0x52c] sm:$0xf0]  ;;  %v11837_v42 = vld [vmem:[#allocation5 + $0xe4] sm:$0xf]  ;;  %v9392_v43 = vor.u32 %v11901_v40, %v9389_v41 }
  0x99   : > { %v9803_v3 = vld [vmem:[#allocation5 + $0x620] sm:$0xf]  ;;  %v9692_v6 = vor.u32 %v11979_v1, %v9691_v0  ;;  %2497 = vmatpush.bf16.msrb.mxu3 %v9948_v63  ;;  %v12003_v15 = vld [vmem:[#allocation5 + $0x60c] sm:$0xf0]  ;;  %v9133_v45 = vld [vmem:[#allocation5 + $0xf0] sm:$0xf0] }
  0x9a   : > { %v9547_v5 = vld [vmem:[#allocation5 + $0x420] sm:$0xf]  ;;  %v9804_v7 = vor.u32 %v12007_v4, %v9803_v3  ;;  %2410 = vmatpush.bf16.msrb.mxu0 %v9564_v2  ;;  %v12035_v18 = vld [vmem:[#allocation5 + $0x70c] sm:$0xf0]  ;;  %v11933_v46 = vld [vmem:[#allocation5 + $0x3e4] sm:$0xf]  ;;  %v9136_v49 = vor.u32 %v11837_v42, %v9133_v45 }
  0x9b   : > { %v9931_v9 = vld [vmem:[#allocation5 + $0x720] sm:$0xf]  ;;  %v9548_v16 = vor.u32 %v11943_v8, %v9547_v5  ;;  %2439 = vmatpush.bf16.msrb.mxu1 %v9692_v6  ;;  %v11939_v22 = vld [vmem:[#allocation5 + $0x40c] sm:$0xf0]  ;;  %v9517_v47 = vld [vmem:[#allocation5 + $0x3f0] sm:$0xf0] }
  0x9c   : > { %v9932_v11 = vor.u32 %v12039_v10, %v9931_v9  ;;  %v9675_v12 = vld [vmem:[#allocation5 + $0x520] sm:$0xf]  ;;  %2469 = vmatpush.bf16.msrb.mxu2 %v9804_v7  ;;  %v11971_v25 = vld [vmem:[#allocation5 + $0x50c] sm:$0xf0]  ;;  %v9520_v52 = vor.u32 %v11933_v46, %v9517_v47  ;;  %v11869_v55 = vld [vmem:[#allocation5 + $0x1e4] sm:$0xf] }
  0x9d   : > { %v9787_v14 = vld [vmem:[#allocation5 + $0x600] sm:$0xf]  ;;  %v9676_v19 = vor.u32 %v11975_v13, %v9675_v12  ;;  %v9261_v58 = vld [vmem:[#allocation5 + $0x1f0] sm:$0xf0]  ;;  %v11897_v59 = vld [vmem:[#allocation5 + $0x2c4] sm:$0xf] }
  0x9e   : > { %v9915_v17 = vld [vmem:[#allocation5 + $0x700] sm:$0xf]  ;;  %v9788_v20 = vor.u32 %v12003_v15, %v9787_v14  ;;  %2498 = vmatpush.bf16.msrb.mxu3 %v9932_v11  ;;  %2411 = vmatpush.bf16.msrb.mxu0 %v9548_v16  ;;  %v9264_v60 = vor.u32 %v11869_v55, %v9261_v58  ;;  %v9373_v61 = vld [vmem:[#allocation5 + $0x2d0] sm:$0xf0]  ;;  %v11833_v62 = vld [vmem:[#allocation5 + $0xc4] sm:$0xf] }
  0x9f   : > { %v9531_v21 = vld [vmem:[#allocation5 + $0x400] sm:$0xf]  ;;  %v9916_v23 = vor.u32 %v12035_v18, %v9915_v17  ;;  %2440 = vmatpush.bf16.msrb.mxu1 %v9676_v19  ;;  %v9117_v63 = vld [vmem:[#allocation5 + $0xd0] sm:$0xf0]  ;;  %v9376_v0 = vor.u32 %v11897_v59, %v9373_v61  ;;  %v11929_v2 = vld [vmem:[#allocation5 + $0x3c4] sm:$0xf] }
  0xa0   : > { %v9659_v24 = vld [vmem:[#allocation5 + $0x500] sm:$0xf]  ;;  %v9532_v32 = vor.u32 %v11939_v22, %v9531_v21  ;;  %2470 = vmatpush.bf16.msrb.mxu2 %v9788_v20  ;;  %2336 = vmatmul.bf16.gmra.mxu1 %v13576_v37  ;;  %v9120_v1 = vor.u32 %v11833_v62, %v9117_v63  ;;  %v9501_v3 = vld [vmem:[#allocation5 + $0x3d0] sm:$0xf0]  ;;  %v11865_v4 = vld [vmem:[#allocation5 + $0x1c4] sm:$0xf] }
  0xa1   : > { %v8955_v26 = vld [vmem:[%s13500_s1 + $0x80] sm:$0xf]  ;;  %v9660_v35 = vor.u32 %v11971_v25, %v9659_v24  ;;  %2365 = vmatmul.bf16.gmra.mxu2 %v13578_v38  ;;  %v9504_v5 = vor.u32 %v11929_v2, %v9501_v3  ;;  %v9245_v6 = vld [vmem:[#allocation5 + $0x1d0] sm:$0xf0]  ;;  %v11801_v10 = vld [vmem:[%s13500_s1 + $0xc4] sm:$0xf] }
  0xa2   : > { %v11797_v27 = vld [vmem:[%s13500_s1 + $0x9c] sm:$0xf0]  ;;  %2499 = vmatpush.bf16.msrb.mxu3 %v9916_v23  ;;  %2412 = vmatpush.bf16.msrb.mxu0 %v9532_v32  ;;  %v9248_v7 = vor.u32 %v11865_v4, %v9245_v6  ;;  %v8989_v11 = vld [vmem:[%s13500_s1 + $0xe0] sm:$0xf0]  ;;  %v8995_v12 = vld [vmem:[%s13500_s1 + $0xc8] sm:$0xf] }
  0xa3   : > { %v13574_v36 = vor.u32 %v11797_v27, %v8955_v26  ;;  %2441 = vmatpush.bf16.msrb.mxu1 %v9660_v35  ;;  %2394 = vmatmul.bf16.gmra.mxu3 %v13580_v39  ;;  %v8987_v8 = vld [vmem:[%s13500_s1 + $0xc0] sm:$0xf]  ;;  %v11806_v13 = vld [vmem:[%s13500_s1 + $0xe4] sm:$0xf0]  ;;  %v11802_v14 = vld [vmem:[%s13500_s1 + $0xcc] sm:$0xf]  ;;  %v13596_v17 = vor.u32 %v11801_v10, %v8989_v11 }
  0xa4   : > { %2579 = vmatpush.bf16.msra.mxu2 %v9392_v43  ;;  %v11805_v9 = vld [vmem:[%s13500_s1 + $0xdc] sm:$0xf0]  ;;  %v8997_v15 = vld [vmem:[%s13500_s1 + $0xe8] sm:$0xf0]  ;;  %v13598_v18 = vor.u32 %v11806_v13, %v8995_v12  ;;  %v11893_v20 = vld [vmem:[#allocation5 + $0x2a4] sm:$0xf] }
  0xa5   : > { %2307 = vmatmul.bf16.gmra.mxu0 %v13574_v36  ;;  %v13594_v16 = vor.u32 %v11805_v9, %v8987_v8  ;;  %v13600_v19 = vor.u32 %v11802_v14, %v8997_v15  ;;  %v9357_v21 = vld [vmem:[#allocation5 + $0x2b0] sm:$0xf0]  ;;  %v11829_v22 = vld [vmem:[#allocation5 + $0xa4] sm:$0xf]  ;;  %v11783_v55 = vld [vmem:[%s13500_s1 + $0x2c] sm:$0xf0] }
  0xa6   : > { %2521 = vmatpush.bf16.msra.mxu0 %v9136_v49  ;;  %2608 = vmatpush.bf16.msra.mxu3 %v9520_v52  ;;  %v9360_v23 = vor.u32 %v11893_v20, %v9357_v21  ;;  %v9101_v24 = vld [vmem:[#allocation5 + $0xb0] sm:$0xf0]  ;;  %v11925_v25 = vld [vmem:[#allocation5 + $0x3a4] sm:$0xf]  ;;  %v8907_v52 = vld [vmem:[%s13500_s1 + $0x10] sm:$0xf] }
  0xa7   : > { %2550 = vmatpush.bf16.msra.mxu1 %v9264_v60  ;;  %v9485_v26 = vld [vmem:[#allocation5 + $0x3b0] sm:$0xf0]  ;;  %v9104_v27 = vor.u32 %v11829_v22, %v9101_v24  ;;  %v11861_v29 = vld [vmem:[#allocation5 + $0x1a4] sm:$0xf]  ;;  %v8915_v60 = vld [vmem:[%s13500_s1 + $0x18] sm:$0xf] }
  0xa8   : > { %2580 = vmatpush.bf16.msra.mxu2 %v9376_v0  ;;  %v9488_v28 = vor.u32 %v11925_v25, %v9485_v26  ;;  %v9229_v30 = vld [vmem:[#allocation5 + $0x1b0] sm:$0xf0]  ;;  %v11889_v31 = vld [vmem:[#allocation5 + $0x284] sm:$0xf]  ;;  %v11784_v61 = vld [vmem:[%s13500_s1 + $0x34] sm:$0xf0]  ;;  %v13614_v0 = vor.u32 %v11783_v55, %v8907_v52 }
  0xa9   : > { %v9232_v32 = vor.u32 %v11861_v29, %v9229_v30  ;;  %v9341_v33 = vld [vmem:[#allocation5 + $0x290] sm:$0xf0]  ;;  %v11825_v34 = vld [vmem:[#allocation5 + $0x84] sm:$0xf]  ;;  %v11780_v62 = vld [vmem:[%s13500_s1 + $0x1c] sm:$0xf]  ;;  %v13618_v2 = vor.u32 %v11784_v61, %v8915_v60 }
  0xaa   : > { %2522 = vmatpush.bf16.msra.mxu0 %v9120_v1  ;;  %2609 = vmatpush.bf16.msra.mxu3 %v9504_v5  ;;  %v9085_v35 = vld [vmem:[#allocation5 + $0x90] sm:$0xf0]  ;;  %v9344_v40 = vor.u32 %v11889_v31, %v9341_v33  ;;  %v11921_v42 = vld [vmem:[#allocation5 + $0x384] sm:$0xf]  ;;  %v8917_v63 = vld [vmem:[%s13500_s1 + $0x38] sm:$0xf0] }
  0xab   : > { %2551 = vmatpush.bf16.msra.mxu1 %v9248_v7  ;;  %v9088_v41 = vor.u32 %v11825_v34, %v9085_v35  ;;  %v9469_v43 = vld [vmem:[#allocation5 + $0x390] sm:$0xf0]  ;;  %v11857_v45 = vld [vmem:[#allocation5 + $0x184] sm:$0xf]  ;;  %v13620_v3 = vor.u32 %v11780_v62, %v8917_v63  ;;  %v11791_v33 = vld [vmem:[%s13500_s1 + $0x6c] sm:$0xf0] }
  0xac   : > { %2581 = vmatpush.bf16.msra.mxu2 %v9360_v23  ;;  %v9472_v46 = vor.u32 %v11921_v42, %v9469_v43  ;;  %v9213_v47 = vld [vmem:[#allocation5 + $0x190] sm:$0xf0]  ;;  %v11885_v4 = vld [vmem:[#allocation5 + $0x264] sm:$0xf]  ;;  %v11788_v42 = vld [vmem:[%s13500_s1 + $0x5c] sm:$0xf] }
  0xad   : > { %v9216_v49 = vor.u32 %v11857_v45, %v9213_v47  ;;  %v11779_v58 = vld [vmem:[%s13500_s1 + $0x14] sm:$0xf]  ;;  %v11821_v6 = vld [vmem:[#allocation5 + $0x64] sm:$0xf]  ;;  %v8949_v43 = vld [vmem:[%s13500_s1 + $0x78] sm:$0xf0] }
  0xae   : > { %2523 = vmatpush.bf16.msra.mxu0 %v9104_v27  ;;  %2610 = vmatpush.bf16.msra.mxu3 %v9488_v28  ;;  %v8909_v59 = vld [vmem:[%s13500_s1 + $0x30] sm:$0xf0]  ;;  %v11917_v9 = vld [vmem:[#allocation5 + $0x364] sm:$0xf] }
  0xaf   : > { %2552 = vmatpush.bf16.msra.mxu1 %v9232_v32  ;;  %v13616_v1 = vor.u32 %v11779_v58, %v8909_v59  ;;  %v9325_v5 = vld [vmem:[#allocation5 + $0x270] sm:$0xf0]  ;;  %v11853_v13 = vld [vmem:[#allocation5 + $0x164] sm:$0xf]  ;;  %v8939_v32 = vld [vmem:[%s13500_s1 + $0x50] sm:$0xf] }
  0xb0   : > { %2341 = vmatmul.bf16.gmra.mxu1 %v13596_v17  ;;  %2582 = vmatpush.bf16.msra.mxu2 %v9344_v40  ;;  %v9328_v7 = vor.u32 %v11885_v4, %v9325_v5  ;;  %v9069_v8 = vld [vmem:[#allocation5 + $0x70] sm:$0xf0]  ;;  %v11881_v15 = vld [vmem:[#allocation5 + $0x244] sm:$0xf]  ;;  %v8947_v40 = vld [vmem:[%s13500_s1 + $0x58] sm:$0xf]  ;;  %v13634_v45 = vor.u32 %v11791_v33, %v8939_v32 }
  0xb1   : > { %2370 = vmatmul.bf16.gmra.mxu2 %v13598_v18  ;;  %v9453_v10 = vld [vmem:[#allocation5 + $0x370] sm:$0xf0]  ;;  %v9072_v11 = vor.u32 %v11821_v6, %v9069_v8  ;;  %v11817_v22 = vld [vmem:[#allocation5 + $0x44] sm:$0xf] }
  0xb2   : > { %2524 = vmatpush.bf16.msra.mxu0 %v9088_v41  ;;  %2611 = vmatpush.bf16.msra.mxu3 %v9472_v46  ;;  %v9456_v12 = vor.u32 %v11917_v9, %v9453_v10  ;;  %v9197_v14 = vld [vmem:[#allocation5 + $0x170] sm:$0xf0]  ;;  %v11913_v26 = vld [vmem:[#allocation5 + $0x344] sm:$0xf]  ;;  %v11792_v41 = vld [vmem:[%s13500_s1 + $0x74] sm:$0xf0] }
  0xb3   : > { %2399 = vmatmul.bf16.gmra.mxu3 %v13600_v19  ;;  %2553 = vmatpush.bf16.msra.mxu1 %v9216_v49  ;;  %v9200_v20 = vor.u32 %v11853_v13, %v9197_v14  ;;  %v9309_v21 = vld [vmem:[#allocation5 + $0x250] sm:$0xf0]  ;;  %v11849_v28 = vld [vmem:[#allocation5 + $0x144] sm:$0xf]  ;;  %v13638_v47 = vor.u32 %v11792_v41, %v8947_v40  ;;  %v13640_v49 = vor.u32 %v11788_v42, %v8949_v43 }
  0xb4   : > { %2583 = vmatpush.bf16.msra.mxu2 %v9328_v7  ;;  %v9053_v23 = vld [vmem:[#allocation5 + $0x50] sm:$0xf0]  ;;  %v9312_v24 = vor.u32 %v11881_v15, %v9309_v21  ;;  %v11877_v52 = vld [vmem:[#allocation5 + $0x224] sm:$0xf] }
  0xb5   : > { %2312 = vmatmul.bf16.gmra.mxu0 %v13594_v16  ;;  %v9056_v25 = vor.u32 %v11817_v22, %v9053_v23  ;;  %v9437_v27 = vld [vmem:[#allocation5 + $0x350] sm:$0xf0]  ;;  %v11813_v58 = vld [vmem:[#allocation5 + $0x24] sm:$0xf] }
  0xb6   : > { %2525 = vmatpush.bf16.msra.mxu0 %v9072_v11  ;;  %2612 = vmatpush.bf16.msra.mxu3 %v9456_v12  ;;  %v9440_v29 = vor.u32 %v11913_v26, %v9437_v27  ;;  %v9181_v30 = vld [vmem:[#allocation5 + $0x150] sm:$0xf0]  ;;  %v11909_v61 = vld [vmem:[#allocation5 + $0x324] sm:$0xf] }
  0xb7   : > { %2554 = vmatpush.bf16.msra.mxu1 %v9200_v20  ;;  %v9184_v31 = vor.u32 %v11849_v28, %v9181_v30  ;;  %v11787_v34 = vld [vmem:[%s13500_s1 + $0x54] sm:$0xf]  ;;  %v11845_v5 = vld [vmem:[#allocation5 + $0x124] sm:$0xf]  ;;  %v8979_v28 = vld [vmem:[%s13500_s1 + $0x98] sm:$0xf] }
  0xb8   : > { %2584 = vmatpush.bf16.msra.mxu2 %v9312_v24  ;;  %v8941_v35 = vld [vmem:[%s13500_s1 + $0x70] sm:$0xf0]  ;;  %v11873_v7 = vld [vmem:[#allocation5 + $0x204] sm:$0xf]  ;;  %v8971_v24 = vld [vmem:[%s13500_s1 + $0x90] sm:$0xf] }
  0xb9   : > { %v13636_v46 = vor.u32 %v11787_v34, %v8941_v35  ;;  %v9293_v55 = vld [vmem:[#allocation5 + $0x230] sm:$0xf0]  ;;  %v11809_v10 = vld [vmem:[#allocation5 + $0x4] sm:$0xf]  ;;  %v11796_v30 = vld [vmem:[%s13500_s1 + $0x9c] sm:$0xf] }
  0xba   : > { %2526 = vmatpush.bf16.msra.mxu0 %v9056_v25  ;;  %2613 = vmatpush.bf16.msra.mxu3 %v9440_v29  ;;  %v9296_v59 = vor.u32 %v11877_v52, %v9293_v55  ;;  %v9037_v60 = vld [vmem:[#allocation5 + $0x30] sm:$0xf0]  ;;  %v11905_v14 = vld [vmem:[#allocation5 + $0x304] sm:$0xf]  ;;  %v11799_v25 = vld [vmem:[%s13500_s1 + $0xac] sm:$0xf0] }
  0xbb   : > { %2555 = vmatpush.bf16.msra.mxu1 %v9184_v31  ;;  %v9421_v62 = vld [vmem:[#allocation5 + $0x330] sm:$0xf0]  ;;  %v9040_v63 = vor.u32 %v11813_v58, %v9037_v60  ;;  %v11841_v20 = vld [vmem:[#allocation5 + $0x104] sm:$0xf]  ;;  %v11800_v29 = vld [vmem:[%s13500_s1 + $0xb4] sm:$0xf0]  ;;  %v13654_v32 = vor.u32 %v11799_v25, %v8971_v24 }
  0xbc   : > { %v9424_v4 = vor.u32 %v11909_v61, %v9421_v62  ;;  %v9165_v6 = vld [vmem:[#allocation5 + $0x130] sm:$0xf0]  ;;  %2585 = vmatpush.bf16.msra.mxu2 %v9296_v59  ;;  %v8981_v31 = vld [vmem:[%s13500_s1 + $0xb8] sm:$0xf0]  ;;  %v13658_v34 = vor.u32 %v11800_v29, %v8979_v28  ;;  %v12029_v40 = vld [vmem:[#allocation5 + $0x6e4] sm:$0xf] }
  0xbd   : > { %v9168_v8 = vor.u32 %v11845_v5, %v9165_v6  ;;  %v9277_v9 = vld [vmem:[#allocation5 + $0x210] sm:$0xf0]  ;;  %v13660_v35 = vor.u32 %v11796_v30, %v8981_v31  ;;  %v11965_v42 = vld [vmem:[#allocation5 + $0x4e4] sm:$0xf]  ;;  %v9003_v61 = vld [vmem:[%s13500_s1 + $0xd0] sm:$0xf] }
  0xbe   : > { %v9021_v11 = vld [vmem:[#allocation5 + $0x10] sm:$0xf0]  ;;  %2527 = vmatpush.bf16.msra.mxu0 %v9040_v63  ;;  %2614 = vmatpush.bf16.msra.mxu3 %v9424_v4  ;;  %v9280_v12 = vor.u32 %v11873_v7, %v9277_v9  ;;  %v12061_v55 = vld [vmem:[#allocation5 + $0x7e4] sm:$0xf]  ;;  %v11807_v62 = vld [vmem:[%s13500_s1 + $0xec] sm:$0xf0] }
  0xbf   : > { %v9024_v13 = vor.u32 %v11809_v10, %v9021_v11  ;;  %v9405_v15 = vld [vmem:[#allocation5 + $0x310] sm:$0xf0]  ;;  %2556 = vmatpush.bf16.msra.mxu1 %v9168_v8  ;;  %v11997_v63 = vld [vmem:[#allocation5 + $0x5e4] sm:$0xf]  ;;  %v9013_v24 = vld [vmem:[%s13500_s1 + $0xf8] sm:$0xf0]  ;;  %v13674_v25 = vor.u32 %v11807_v62, %v9003_v61 }
  0xc0   : > { %2442 = vmatmul.bf16.vlgmr.msrb.gmra.mxu1 %v13616_v1  ;;  %v9408_v21 = vor.u32 %v11905_v14, %v9405_v15  ;;  %v9149_v22 = vld [vmem:[#allocation5 + $0x110] sm:$0xf0]  ;;  %2586 = vmatpush.bf16.msra.mxu2 %v9280_v12  ;;  %v12025_v7 = vld [vmem:[#allocation5 + $0x6c4] sm:$0xf]  ;;  %v9011_v15 = vld [vmem:[%s13500_s1 + $0xd8] sm:$0xf] }
  0xc1   : > { %2471 = vmatmul.bf16.vlgmr.msrb.gmra.mxu2 %v13618_v2  ;;  %v9152_v23 = vor.u32 %v11841_v20, %v9149_v22  ;;  %v11795_v26 = vld [vmem:[%s13500_s1 + $0x94] sm:$0xf]  ;;  %v11961_v9 = vld [vmem:[#allocation5 + $0x4c4] sm:$0xf]  ;;  %v11808_v20 = vld [vmem:[%s13500_s1 + $0xf4] sm:$0xf0] }
  0xc2   : > { %v8973_v27 = vld [vmem:[%s13500_s1 + $0xb0] sm:$0xf0]  ;;  %2528 = vmatpush.bf16.msra.mxu0 %v9024_v13  ;;  %2615 = vmatpush.bf16.msra.mxu3 %v9408_v21  ;;  %v12057_v12 = vld [vmem:[#allocation5 + $0x7c4] sm:$0xf]  ;;  %v13686_v61 = vld [vmem:[#allocation7] sm:$0xf] }
  0xc3   : > { %2500 = vmatmul.bf16.vlgmr.msrb.gmra.mxu3 %v13620_v3  ;;  %2557 = vmatpush.bf16.msra.mxu1 %v9152_v23  ;;  %v13656_v33 = vor.u32 %v11795_v26, %v8973_v27  ;;  %v9901_v41 = vld [vmem:[#allocation5 + $0x6f0] sm:$0xf0]  ;;  %v11804_v23 = vld [vmem:[%s13500_s1 + $0xdc] sm:$0xf]  ;;  %v13678_v27 = vor.u32 %v11808_v20, %v9011_v15  ;;  %v11993_v29 = vld [vmem:[#allocation5 + $0x5c4] sm:$0xf] }
  0xc4   : > { %v9904_v43 = vor.u32 %v12029_v40, %v9901_v41  ;;  %v9645_v52 = vld [vmem:[#allocation5 + $0x4f0] sm:$0xf0]  ;;  %v13680_v28 = vor.u32 %v11804_v23, %v9013_v24  ;;  %v12021_v40 = vld [vmem:[#allocation5 + $0x6a4] sm:$0xf] }
  0xc5   : > { %2413 = vmatmul.bf16.vlgmr.msrb.gmra.mxu0 %v13614_v0  ;;  %v10029_v58 = vld [vmem:[#allocation5 + $0x7f0] sm:$0xf0]  ;;  %v9648_v59 = vor.u32 %v11965_v42, %v9645_v52  ;;  %v11957_v42 = vld [vmem:[#allocation5 + $0x4a4] sm:$0xf] }
  0xc6   : > { %v10032_v60 = vor.u32 %v12061_v55, %v10029_v58  ;;  %2695 = vmatpush.bf16.msrb.mxu2 %v9904_v43  ;;  %v9773_v4 = vld [vmem:[#allocation5 + $0x5f0] sm:$0xf0]  ;;  %v12053_v55 = vld [vmem:[#allocation5 + $0x7a4] sm:$0xf] }
  0xc7   : > { %2637 = vmatpush.bf16.msrb.mxu0 %v9648_v59  ;;  %v11803_v5 = vld [vmem:[%s13500_s1 + $0xd4] sm:$0xf]  ;;  %v9776_v6 = vor.u32 %v11997_v63, %v9773_v4  ;;  %v11989_v62 = vld [vmem:[#allocation5 + $0x5a4] sm:$0xf] }
  0xc8   : > { %2724 = vmatpush.bf16.msrb.mxu3 %v10032_v60  ;;  %v9885_v8 = vld [vmem:[#allocation5 + $0x6d0] sm:$0xf0] }
  0xc9   : > { %v9888_v10 = vor.u32 %v12025_v7, %v9885_v8  ;;  %v9629_v11 = vld [vmem:[#allocation5 + $0x4d0] sm:$0xf0]  ;;  %2666 = vmatpush.bf16.msrb.mxu1 %v9776_v6  ;;  %v11953_v7 = vld [vmem:[#allocation5 + $0x484] sm:$0xf] }
  0xca   : > { %v10013_v13 = vld [vmem:[#allocation5 + $0x7d0] sm:$0xf0]  ;;  %v9632_v21 = vor.u32 %v11961_v9, %v9629_v11 }
  0xcb   : > { %v9005_v14 = vld [vmem:[%s13500_s1 + $0xf0] sm:$0xf0]  ;;  %v10016_v22 = vor.u32 %v12057_v12, %v10013_v13  ;;  %2696 = vmatpush.bf16.msrb.mxu2 %v9888_v10  ;;  %v12049_v10 = vld [vmem:[#allocation5 + $0x784] sm:$0xf]  ;;  %v13689_v12 = vperm.slane %v13686_v61, 0 }
  0xcc   : > { %2638 = vmatpush.bf16.msrb.mxu0 %v9632_v21  ;;  %v13676_v26 = vor.u32 %v11803_v5, %v9005_v14  ;;  %v9757_v30 = vld [vmem:[#allocation5 + $0x5d0] sm:$0xf0]  ;;  %v12017_v5 = vld [vmem:[#allocation5 + $0x684] sm:$0xf] }
  0xcd   : > { %2725 = vmatpush.bf16.msrb.mxu3 %v10016_v22  ;;  %v9760_v31 = vor.u32 %v11993_v29, %v9757_v30  ;;  %v9869_v41 = vld [vmem:[#allocation5 + $0x6b0] sm:$0xf0]  ;;  %v11985_v22 = vld [vmem:[#allocation5 + $0x584] sm:$0xf] }
  0xce   : > { %v9872_v43 = vor.u32 %v12021_v40, %v9869_v41  ;;  %v9613_v52 = vld [vmem:[#allocation5 + $0x4b0] sm:$0xf0]  ;;  %v12013_v30 = vld [vmem:[#allocation5 + $0x664] sm:$0xf] }
  0xcf   : > { %2667 = vmatpush.bf16.msrb.mxu1 %v9760_v31  ;;  %v9997_v58 = vld [vmem:[#allocation5 + $0x7b0] sm:$0xf0]  ;;  %v9616_v59 = vor.u32 %v11957_v42, %v9613_v52  ;;  %v11949_v40 = vld [vmem:[#allocation5 + $0x464] sm:$0xf] }
  0xd0   : > { %2447 = vmatmul.bf16.gmra.mxu1 %v13636_v46  ;;  %v10000_v60 = vor.u32 %v12053_v55, %v9997_v58  ;;  %2697 = vmatpush.bf16.msrb.mxu2 %v9872_v43  ;;  %v9741_v63 = vld [vmem:[#allocation5 + $0x5b0] sm:$0xf0]  ;;  %v12045_v43 = vld [vmem:[#allocation5 + $0x764] sm:$0xf] }
  0xd1   : > { %2476 = vmatmul.bf16.gmra.mxu2 %v13638_v47  ;;  %2639 = vmatpush.bf16.msrb.mxu0 %v9616_v59  ;;  %v9744_v4 = vor.u32 %v11989_v62, %v9741_v63  ;;  %v9853_v6 = vld [vmem:[#allocation5 + $0x690] sm:$0xf0] }
  0xd2   : > { %2726 = vmatpush.bf16.msrb.mxu3 %v10000_v60  ;;  %v9856_v8 = vor.u32 %v12017_v5, %v9853_v6  ;;  %v9597_v9 = vld [vmem:[#allocation5 + $0x490] sm:$0xf0] }
  0xd3   : > { %2505 = vmatmul.bf16.gmra.mxu3 %v13640_v49  ;;  %v9981_v11 = vld [vmem:[#allocation5 + $0x790] sm:$0xf0]  ;;  %2668 = vmatpush.bf16.msrb.mxu1 %v9744_v4  ;;  %v9600_v13 = vor.u32 %v11953_v7, %v9597_v9  ;;  %v11981_v7 = vld [vmem:[#allocation5 + $0x564] sm:$0xf] }
  0xd4   : > { %v9984_v14 = vor.u32 %v12049_v10, %v9981_v11  ;;  %2698 = vmatpush.bf16.msrb.mxu2 %v9856_v8  ;;  %v9725_v23 = vld [vmem:[#allocation5 + $0x590] sm:$0xf0]  ;;  %v12009_v11 = vld [vmem:[#allocation5 + $0x644] sm:$0xf] }
  0xd5   : > { %2418 = vmatmul.bf16.gmra.mxu0 %v13634_v45  ;;  %v9728_v29 = vor.u32 %v11985_v22, %v9725_v23  ;;  %v9837_v31 = vld [vmem:[#allocation5 + $0x670] sm:$0xf0] }
  0xd6   : > { %2640 = vmatpush.bf16.msrb.mxu0 %v9600_v13  ;;  %2727 = vmatpush.bf16.msrb.mxu3 %v9984_v14  ;;  %v9840_v41 = vor.u32 %v12013_v30, %v9837_v31  ;;  %v9581_v42 = vld [vmem:[#allocation5 + $0x470] sm:$0xf0]  ;;  %v11945_v14 = vld [vmem:[#allocation5 + $0x444] sm:$0xf] }
  0xd7   : > { %2669 = vmatpush.bf16.msrb.mxu1 %v9728_v29  ;;  %v9965_v52 = vld [vmem:[#allocation5 + $0x770] sm:$0xf0]  ;;  %v9584_v58 = vor.u32 %v11949_v40, %v9581_v42 }
  0xd8   : > { %v9968_v59 = vor.u32 %v12045_v43, %v9965_v52  ;;  %2699 = vmatpush.bf16.msrb.mxu2 %v9840_v41  ;;  %v9709_v8 = vld [vmem:[#allocation5 + $0x570] sm:$0xf0]  ;;  %v11977_v52 = vld [vmem:[#allocation5 + $0x544] sm:$0xf] }
  0xd9   : > { %v9712_v10 = vor.u32 %v11981_v7, %v9709_v8  ;;  %v9821_v13 = vld [vmem:[#allocation5 + $0x650] sm:$0xf0]  ;;  %v12037_v7 = vld [vmem:[#allocation5 + $0x724] sm:$0xf] }
  0xda   : > { %2641 = vmatpush.bf16.msrb.mxu0 %v9584_v58  ;;  %2728 = vmatpush.bf16.msrb.mxu3 %v9968_v59  ;;  %v9949_v22 = vld [vmem:[#allocation5 + $0x750] sm:$0xf0] }
  0xdb   : > { %2670 = vmatpush.bf16.msrb.mxu1 %v9712_v10  ;;  %v9933_v8 = vld [vmem:[#allocation5 + $0x730] sm:$0xf0] }
  0xe0   : > { %2452 = vmatmul.bf16.gmra.mxu1 %v13656_v33 }
  0xe1   : > { %2481 = vmatmul.bf16.gmra.mxu2 %v13658_v34 }
  0xe3   : > { %2510 = vmatmul.bf16.gmra.mxu3 %v13660_v35 }
  0xe5   : > { %2423 = vmatmul.bf16.gmra.mxu0 %v13654_v32 }
  0xf0   : > { %2457 = vmatmul.bf16.gmra.mxu1 %v13676_v26 }
  0xf1   : > { %2486 = vmatmul.bf16.gmra.mxu2 %v13678_v27 }
  0xf3   : > { %2515 = vmatmul.bf16.gmra.mxu3 %v13680_v28 }
  0xf5   : > { %2428 = vmatmul.bf16.gmra.mxu0 %v13674_v25 }
  0xfd   : > { %v2327_v21 = vpop.f32.mrf.mxu1 }
  0xfe   : > { %v2298_v15 = vpop.f32.mrf.mxu0 }
  0xff   : > { %v2299_v20 = vadd.f32 %v2298_v15, %v13689_v12  ;;  %v9824_v15 = vor.u32 %v12009_v11, %v9821_v13  ;;  %v9936_v11 = vor.u32 %v12037_v7, %v9933_v8 }
 0x100   : > { %2558 = vmatmul.bf16.vlgmr.msra.gmra.mxu1 %v13536_v53 }
 0x101   : > { %v2328_v24 = vadd.f32 %v2327_v21, %v2299_v20  ;;  %2587 = vmatmul.bf16.vlgmr.msra.gmra.mxu2 %v13538_v54  ;;  %v9565_v20 = vld [vmem:[#allocation5 + $0x450] sm:$0xf0]  ;;  %v12041_v21 = vld [vmem:[#allocation5 + $0x744] sm:$0xf] }
 0x102   : > { %v9568_v23 = vor.u32 %v11945_v14, %v9565_v20  ;;  %2700 = vmatpush.bf16.msrb.mxu2 %v9824_v15 }
 0x103   : > { %2616 = vmatmul.bf16.vlgmr.msra.gmra.mxu3 %v13540_v57 }
 0x104   : > { %v2356_v55 = vpop.f32.mrf.mxu2  ;;  %2642 = vmatpush.bf16.msrb.mxu0 %v9568_v23  ;;  %v11973_v23 = vld [vmem:[#allocation5 + $0x524] sm:$0xf] }
 0x105   : > { %2529 = vmatmul.bf16.vlgmr.msra.gmra.mxu0 %v13534_v48  ;;  %v2357_v60 = vadd.f32 %v2356_v55, %v2328_v24  ;;  %v2385_v62 = vpop.f32.mrf.mxu3  ;;  %v2329_v5 = vpop.f32.mrf.mxu1  ;;  %v9952_v24 = vor.u32 %v12041_v21, %v9949_v22  ;;  %v9693_v55 = vld [vmem:[#allocation5 + $0x550] sm:$0xf0] }
 0x106   : > { %v2300_v63 = vpop.f32.mrf.mxu0  ;;  %v9696_v59 = vor.u32 %v11977_v52, %v9693_v55  ;;  %v9533_v52 = vld [vmem:[#allocation5 + $0x410] sm:$0xf0]  ;;  %v12033_v55 = vld [vmem:[#allocation5 + $0x704] sm:$0xf] }
 0x107   : > { %v2301_v4 = vadd.f32 %v2300_v63, %v13689_v12  ;;  %v13697_v6 = vadd.f32 %v2385_v62, %v2357_v60  ;;  %2729 = vmatpush.bf16.msrb.mxu3 %v9952_v24  ;;  %v12005_v60 = vld [vmem:[#allocation5 + $0x624] sm:$0xf]  ;;  %v9805_v62 = vld [vmem:[#allocation5 + $0x630] sm:$0xf0] }
 0x108   : > { %2671 = vmatpush.bf16.msrb.mxu1 %v9696_v59  ;;  %v11941_v63 = vld [vmem:[#allocation5 + $0x424] sm:$0xf]  ;;  %v9677_v24 = vld [vmem:[#allocation5 + $0x530] sm:$0xf0] }
 0x109   : > { %v2330_v9 = vadd.f32 %v2329_v5, %v2301_v4  ;;  %v9808_v4 = vor.u32 %v12005_v60, %v9805_v62  ;;  %v9549_v5 = vld [vmem:[#allocation5 + $0x430] sm:$0xf0] }
 0x10a   : > { %v9552_v10 = vor.u32 %v11941_v63, %v9549_v5  ;;  %v11969_v63 = vld [vmem:[#allocation5 + $0x504] sm:$0xf] }
 0x10b   : > { %2701 = vmatpush.bf16.msrb.mxu2 %v9808_v4  ;;  %2730 = vmatpush.bf16.msrb.mxu3 %v9936_v11  ;;  %v9661_v4 = vld [vmem:[#allocation5 + $0x510] sm:$0xf0] }
 0x10c   : > { %v2358_v29 = vpop.f32.mrf.mxu2  ;;  %2643 = vmatpush.bf16.msrb.mxu0 %v9552_v10 }
 0x10d   : > { %v2359_v30 = vadd.f32 %v2358_v29, %v2330_v9  ;;  %v2387_v31 = vpop.f32.mrf.mxu3  ;;  %v2332_v42 = vpop.f32.mrf.mxu1 }
 0x10e   : > { %v2303_v40 = vpop.f32.mrf.mxu0 }
 0x10f   : > { %v2304_v41 = vadd.f32 %v2303_v40, %v13689_v12  ;;  %v13700_v43 = vadd.f32 %v2387_v31, %v2359_v30  ;;  %v9680_v30 = vor.u32 %v11973_v23, %v9677_v24  ;;  %v12001_v31 = vld [vmem:[#allocation5 + $0x604] sm:$0xf]  ;;  %v9789_v40 = vld [vmem:[#allocation5 + $0x610] sm:$0xf0]  ;;  %v11840_v24 = vld [vmem:[#allocation5 + $0xf4] sm:$0xf0] }
 0x110   : > { %2563 = vmatmul.bf16.gmra.mxu1 %v13556_v50 }
 0x111   : > { %v2333_v58 = vadd.f32 %v2332_v42, %v2304_v41  ;;  %2592 = vmatmul.bf16.gmra.mxu2 %v13558_v51  ;;  %v11937_v41 = vld [vmem:[#allocation5 + $0x404] sm:$0xf]  ;;  %v9792_v42 = vor.u32 %v12001_v31, %v9789_v40  ;;  %2672 = vmatpush.bf16.msrb.mxu1 %v9680_v30  ;;  %v11936_v30 = vld [vmem:[#allocation5 + $0x3f4] sm:$0xf0] }
 0x112   : > { %v9536_v59 = vor.u32 %v11937_v41, %v9533_v52 }
 0x113   : > { %2621 = vmatmul.bf16.gmra.mxu3 %v13560_v56  ;;  %2702 = vmatpush.bf16.msrb.mxu2 %v9792_v42 }
 0x114   : > { %v2361_v9 = vpop.f32.mrf.mxu2  ;;  %2644 = vmatpush.bf16.msrb.mxu0 %v9536_v59 }
 0x115   : > { %2534 = vmatmul.bf16.gmra.mxu0 %v13554_v44  ;;  %v2362_v13 = vadd.f32 %v2361_v9, %v2333_v58  ;;  %v2390_v14 = vpop.f32.mrf.mxu3  ;;  %v2334_v21 = vpop.f32.mrf.mxu1  ;;  %v9917_v58 = vld [vmem:[#allocation5 + $0x710] sm:$0xf0]  ;;  %v9664_v9 = vor.u32 %v11969_v63, %v9661_v4  ;;  %v9267_v63 = vld [vmem:[#allocation5 + $0x1e8] sm:$0xf]  ;;  %v11872_v4 = vld [vmem:[#allocation5 + $0x1f4] sm:$0xf0] }
 0x116   : > { %v2305_v15 = vpop.f32.mrf.mxu0  ;;  %v9920_v60 = vor.u32 %v12033_v55, %v9917_v58 }
 0x117   : > { %v2306_v20 = vadd.f32 %v2305_v15, %v13689_v12  ;;  %v13707_v22 = vadd.f32 %v2390_v14, %v2362_v13  ;;  %2673 = vmatpush.bf16.msrb.mxu1 %v9664_v9  ;;  %v9395_v15 = vld [vmem:[#allocation5 + $0x2e8] sm:$0xf] }
 0x118   : > { %2731 = vmatpush.bf16.msrb.mxu3 %v9920_v60  ;;  %v9123_v9 = vld [vmem:[#allocation5 + $0xc8] sm:$0xf] }
 0x119   : > { %v2335_v29 = vadd.f32 %v2334_v21, %v2306_v20  ;;  %v11904_v20 = vld [vmem:[#allocation5 + $0x2f4] sm:$0xf0]  ;;  %v9139_v21 = vld [vmem:[#allocation5 + $0xe8] sm:$0xf] }
 0x11a   : > { %v9396_v23 = vor.u32 %v11904_v20, %v9395_v15  ;;  %v9140_v40 = vor.u32 %v11840_v24, %v9139_v21  ;;  %v9507_v15 = vld [vmem:[#allocation5 + $0x3c8] sm:$0xf]  ;;  %v11932_v20 = vld [vmem:[#allocation5 + $0x3d4] sm:$0xf0] }
 0x11c   : > { %v2363_v62 = vpop.f32.mrf.mxu2  ;;  %2811 = vmatpush.bf16.msra.mxu2 %v9396_v23  ;;  %2753 = vmatpush.bf16.msra.mxu0 %v9140_v40  ;;  %v9508_v23 = vor.u32 %v11932_v20, %v9507_v15  ;;  %v11928_v15 = vld [vmem:[#allocation5 + $0x3b4] sm:$0xf0] }
 0x11d   : > { %v2364_v5 = vadd.f32 %v2363_v62, %v2335_v29  ;;  %v2392_v7 = vpop.f32.mrf.mxu3  ;;  %v2337_v11 = vpop.f32.mrf.mxu1  ;;  %v9523_v29 = vld [vmem:[#allocation5 + $0x3e8] sm:$0xf] }
 0x11e   : > { %v9524_v41 = vor.u32 %v11936_v30, %v9523_v29 }
 0x11f   : > { %v13710_v13 = vadd.f32 %v2392_v7, %v2364_v5  ;;  %v9379_v5 = vld [vmem:[#allocation5 + $0x2c8] sm:$0xf]  ;;  %v9268_v7 = vor.u32 %v11872_v4, %v9267_v63  ;;  %v11896_v63 = vld [vmem:[#allocation5 + $0x2b4] sm:$0xf0] }
 0x120   : > { %2568 = vmatmul.bf16.gmra.mxu1 %v13576_v37  ;;  %2840 = vmatpush.bf16.msra.mxu3 %v9524_v41  ;;  %v9107_v4 = vld [vmem:[#allocation5 + $0xa8] sm:$0xf] }
 0x121   : > { %2597 = vmatmul.bf16.gmra.mxu2 %v13578_v38  ;;  %2782 = vmatpush.bf16.msra.mxu1 %v9268_v7 }
 0x122   : > { %v2308_v8 = vpop.f32.mrf.mxu0 }
 0x123   : > { %v2309_v10 = vadd.f32 %v2308_v8, %v13689_v12  ;;  %2626 = vmatmul.bf16.gmra.mxu3 %v13580_v39  ;;  %v11900_v8 = vld [vmem:[#allocation5 + $0x2d4] sm:$0xf0] }
 0x124   : > { %v2366_v31 = vpop.f32.mrf.mxu2  ;;  %2841 = vmatpush.bf16.msra.mxu3 %v9508_v23 }
 0x125   : > { %v2338_v14 = vadd.f32 %v2337_v11, %v2309_v10  ;;  %2539 = vmatmul.bf16.gmra.mxu0 %v13574_v36  ;;  %v2339_v59 = vpop.f32.mrf.mxu1  ;;  %v11836_v10 = vld [vmem:[#allocation5 + $0xd4] sm:$0xf0]  ;;  %v9380_v11 = vor.u32 %v11900_v8, %v9379_v5 }
 0x126   : > { %v2395_v52 = vpop.f32.mrf.mxu3  ;;  %v11832_v5 = vld [vmem:[#allocation5 + $0xb4] sm:$0xf0] }
 0x127   : > { %v2367_v42 = vadd.f32 %v2366_v31, %v2338_v14  ;;  %v9124_v14 = vor.u32 %v11836_v10, %v9123_v9  ;;  %2812 = vmatpush.bf16.msra.mxu2 %v9380_v11  ;;  %v9108_v11 = vor.u32 %v11832_v5, %v9107_v4  ;;  %v9475_v4 = vld [vmem:[#allocation5 + $0x388] sm:$0xf] }
 0x129   : > { %v13717_v60 = vadd.f32 %v2395_v52, %v2367_v42  ;;  %2754 = vmatpush.bf16.msra.mxu0 %v9124_v14  ;;  %v9251_v52 = vld [vmem:[#allocation5 + $0x1c8] sm:$0xf] }
 0x12a   : > { %v2310_v55 = vpop.f32.mrf.mxu0  ;;  %v9491_v14 = vld [vmem:[#allocation5 + $0x3a8] sm:$0xf] }
 0x12b   : > { %v2311_v58 = vadd.f32 %v2310_v55, %v13689_v12  ;;  %v11868_v55 = vld [vmem:[#allocation5 + $0x1d4] sm:$0xf0]  ;;  %v9492_v23 = vor.u32 %v11928_v15, %v9491_v14 }
 0x12c   : > { %v2368_v21 = vpop.f32.mrf.mxu2 }
 0x12d   : > { %v2340_v62 = vadd.f32 %v2339_v59, %v2311_v58  ;;  %v2342_v40 = vpop.f32.mrf.mxu1  ;;  %v9363_v58 = vld [vmem:[#allocation5 + $0x2a8] sm:$0xf]  ;;  %2755 = vmatpush.bf16.msra.mxu0 %v9108_v11  ;;  %2842 = vmatpush.bf16.msra.mxu3 %v9492_v23 }
 0x12e   : > { %v2397_v29 = vpop.f32.mrf.mxu3  ;;  %v9364_v10 = vor.u32 %v11896_v63, %v9363_v58  ;;  %v11828_v58 = vld [vmem:[#allocation5 + $0x94] sm:$0xf0] }
 0x12f   : > { %v2369_v24 = vadd.f32 %v2368_v21, %v2340_v62  ;;  %v9252_v62 = vor.u32 %v11868_v55, %v9251_v52  ;;  %v11892_v52 = vld [vmem:[#allocation5 + $0x294] sm:$0xf0]  ;;  %v9091_v55 = vld [vmem:[#allocation5 + $0x88] sm:$0xf] }
 0x130   : > { %2573 = vmatmul.bf16.gmra.mxu1 %v13596_v17  ;;  %2813 = vmatpush.bf16.msra.mxu2 %v9364_v10  ;;  %v9092_v63 = vor.u32 %v11828_v58, %v9091_v55 }
 0x131   : > { %v13720_v41 = vadd.f32 %v2397_v29, %v2369_v24  ;;  %2602 = vmatmul.bf16.gmra.mxu2 %v13598_v18  ;;  %2783 = vmatpush.bf16.msra.mxu1 %v9252_v62 }
 0x132   : > { %v2313_v30 = vpop.f32.mrf.mxu0  ;;  %2756 = vmatpush.bf16.msra.mxu0 %v9092_v63 }
 0x133   : > { %v2314_v31 = vadd.f32 %v2313_v30, %v13689_v12  ;;  %2631 = vmatmul.bf16.gmra.mxu3 %v13600_v19  ;;  %v9235_v30 = vld [vmem:[#allocation5 + $0x1a8] sm:$0xf] }
 0x134   : > { %v2371_v59 = vpop.f32.mrf.mxu2 }
 0x135   : > { %v2343_v42 = vadd.f32 %v2342_v40, %v2314_v31  ;;  %2544 = vmatmul.bf16.gmra.mxu0 %v13594_v16  ;;  %v2344_v21 = vpop.f32.mrf.mxu1  ;;  %v11864_v31 = vld [vmem:[#allocation5 + $0x1b4] sm:$0xf0]  ;;  %v9347_v40 = vld [vmem:[#allocation5 + $0x288] sm:$0xf] }
 0x136   : > { %v2400_v8 = vpop.f32.mrf.mxu3 }
 0x137   : > { %v2372_v7 = vadd.f32 %v2371_v59, %v2343_v42  ;;  %v9236_v42 = vor.u32 %v11864_v31, %v9235_v30  ;;  %v9348_v59 = vor.u32 %v11892_v52, %v9347_v40  ;;  %v11888_v30 = vld [vmem:[#allocation5 + $0x274] sm:$0xf0]  ;;  %v9075_v31 = vld [vmem:[#allocation5 + $0x68] sm:$0xf] }
 0x138   : > { %v11824_v40 = vld [vmem:[#allocation5 + $0x74] sm:$0xf0] }
 0x139   : > { %v13727_v24 = vadd.f32 %v2400_v8, %v2372_v7  ;;  %2784 = vmatpush.bf16.msra.mxu1 %v9236_v42  ;;  %2814 = vmatpush.bf16.msra.mxu2 %v9348_v59  ;;  %v9459_v42 = vld [vmem:[#allocation5 + $0x368] sm:$0xf]  ;;  %v11920_v52 = vld [vmem:[#allocation5 + $0x374] sm:$0xf0]  ;;  %v9076_v58 = vor.u32 %v11824_v40, %v9075_v31 }
 0x13a   : > { %v2315_v9 = vpop.f32.mrf.mxu0  ;;  %v9460_v59 = vor.u32 %v11920_v52, %v9459_v42  ;;  %v9443_v31 = vld [vmem:[#allocation5 + $0x348] sm:$0xf] }
 0x13b   : > { %v2316_v20 = vadd.f32 %v2315_v9, %v13689_v12  ;;  %v11924_v12 = vld [vmem:[#allocation5 + $0x394] sm:$0xf0]  ;;  %2757 = vmatpush.bf16.msra.mxu0 %v9076_v58 }
 0x13c   : > { %v2373_v5 = vpop.f32.mrf.mxu2  ;;  %v9476_v62 = vor.u32 %v11924_v12, %v9475_v4 }
 0x13d   : > { %v2345_v29 = vadd.f32 %v2344_v21, %v2316_v20  ;;  %v2443_v11 = vpop.f32.mrf.mxu1  ;;  %v9219_v20 = vld [vmem:[#allocation5 + $0x188] sm:$0xf]  ;;  %v11860_v21 = vld [vmem:[#allocation5 + $0x194] sm:$0xf0] }
 0x13e   : > { %v2402_v8 = vpop.f32.mrf.mxu3  ;;  %2843 = vmatpush.bf16.msra.mxu3 %v9476_v62  ;;  %v9220_v23 = vor.u32 %v11860_v21, %v9219_v20  ;;  %v9315_v20 = vld [vmem:[#allocation5 + $0x248] sm:$0xf]  ;;  %v11884_v21 = vld [vmem:[#allocation5 + $0x254] sm:$0xf0] }
 0x13f   : > { %v2374_v7 = vadd.f32 %v2373_v5, %v2345_v29  ;;  %v9331_v29 = vld [vmem:[#allocation5 + $0x268] sm:$0xf] }
 0x140   : > { %2674 = vmatmul.bf16.vlgmr.msrb.gmra.mxu1 %v13616_v1 }
 0x141   : > { %v13730_v14 = vadd.f32 %v2402_v8, %v2374_v7  ;;  %2703 = vmatmul.bf16.vlgmr.msrb.gmra.mxu2 %v13618_v2  ;;  %2785 = vmatpush.bf16.msra.mxu1 %v9220_v23  ;;  %v9316_v23 = vor.u32 %v11884_v21, %v9315_v20 }
 0x142   : > { %v2414_v9 = vpop.f32.mrf.mxu0  ;;  %2844 = vmatpush.bf16.msra.mxu3 %v9460_v59 }
 0x143   : > { %v2415_v10 = vadd.f32 %v2414_v9, %v13697_v6  ;;  %2732 = vmatmul.bf16.vlgmr.msrb.gmra.mxu3 %v13620_v3  ;;  %v9332_v6 = vor.u32 %v11888_v30, %v9331_v29  ;;  %v9203_v9 = vld [vmem:[#allocation5 + $0x168] sm:$0xf]  ;;  %v11820_v30 = vld [vmem:[#allocation5 + $0x54] sm:$0xf0] }
 0x144   : > { %v2472_v55 = vpop.f32.mrf.mxu2  ;;  %v9059_v29 = vld [vmem:[#allocation5 + $0x48] sm:$0xf] }
 0x145   : > { %v2444_v15 = vadd.f32 %v2443_v11, %v2415_v10  ;;  %2645 = vmatmul.bf16.vlgmr.msrb.gmra.mxu0 %v13614_v0  ;;  %2815 = vmatpush.bf16.msra.mxu2 %v9332_v6  ;;  %v2445_v62 = vpop.f32.mrf.mxu1  ;;  %v11856_v10 = vld [vmem:[#allocation5 + $0x174] sm:$0xf0]  ;;  %v9060_v6 = vor.u32 %v11820_v30, %v9059_v29 }
 0x146   : > { %v2501_v4 = vpop.f32.mrf.mxu3  ;;  %v9204_v11 = vor.u32 %v11856_v10, %v9203_v9  ;;  %v9299_v10 = vld [vmem:[#allocation5 + $0x228] sm:$0xf]  ;;  %v11816_v29 = vld [vmem:[#allocation5 + $0x34] sm:$0xf0] }
 0x147   : > { %v2473_v63 = vadd.f32 %v2472_v55, %v2444_v15  ;;  %v11916_v15 = vld [vmem:[#allocation5 + $0x354] sm:$0xf0]  ;;  %2758 = vmatpush.bf16.msra.mxu0 %v9060_v6 }
 0x148   : > { %2786 = vmatpush.bf16.msra.mxu1 %v9204_v11  ;;  %v9444_v42 = vor.u32 %v11916_v15, %v9443_v31  ;;  %v9043_v11 = vld [vmem:[#allocation5 + $0x28] sm:$0xf]  ;;  %v11912_v30 = vld [vmem:[#allocation5 + $0x334] sm:$0xf0] }
 0x149   : > { %v2502_v7 = vadd.f32 %v2501_v4, %v2473_v63  ;;  %2816 = vmatpush.bf16.msra.mxu2 %v9316_v23  ;;  %v9427_v23 = vld [vmem:[#allocation5 + $0x328] sm:$0xf]  ;;  %v9044_v31 = vor.u32 %v11816_v29, %v9043_v11  ;;  %v11908_v11 = vld [vmem:[#allocation5 + $0x314] sm:$0xf0] }
 0x14a   : > { %v2416_v12 = vpop.f32.mrf.mxu0  ;;  %2845 = vmatpush.bf16.msra.mxu3 %v9444_v42  ;;  %v9428_v15 = vor.u32 %v11912_v30, %v9427_v23  ;;  %v9155_v29 = vld [vmem:[#allocation5 + $0x108] sm:$0xf]  ;;  %v11844_v23 = vld [vmem:[#allocation5 + $0x114] sm:$0xf0] }
 0x14b   : > { %v2417_v5 = vadd.f32 %v2416_v12, %v13700_v43  ;;  %v3217_v12 = vmax.f32 %v2502_v7, 0.0  ;;  %2759 = vmatpush.bf16.msra.mxu0 %v9044_v31 }
 0x14c   : > { %v2474_v40 = vpop.f32.mrf.mxu2 }
 0x14d   : > { %v2446_v8 = vadd.f32 %v2445_v62, %v2417_v5  ;;  %v2448_v59 = vpop.f32.mrf.mxu1  ;;  %v9187_v62 = vld [vmem:[#allocation5 + $0x148] sm:$0xf] }
 0x14e   : > { %v2503_v52 = vpop.f32.mrf.mxu3  ;;  %2846 = vmatpush.bf16.msra.mxu3 %v9428_v15  ;;  %v9156_v15 = vor.u32 %v11844_v23, %v9155_v29 }
 0x14f   : > { %v2475_v43 = vadd.f32 %v2474_v40, %v2446_v8  ;;  %v11852_v8 = vld [vmem:[#allocation5 + $0x154] sm:$0xf0] }
 0x150   : > { %2679 = vmatmul.bf16.gmra.mxu1 %v13636_v46  ;;  %v9188_v9 = vor.u32 %v11852_v8, %v9187_v62  ;;  %v11876_v62 = vld [vmem:[#allocation5 + $0x214] sm:$0xf0] }
 0x151   : > { %v2504_v63 = vadd.f32 %v2503_v52, %v2475_v43  ;;  %2708 = vmatmul.bf16.gmra.mxu2 %v13638_v47 }
 0x152   : > { %v2419_v55 = vpop.f32.mrf.mxu0  ;;  %2787 = vmatpush.bf16.msra.mxu1 %v9188_v9  ;;  %v9027_v9 = vld [vmem:[#allocation5 + $0x8] sm:$0xf] }
 0x153   : > { %v2420_v58 = vadd.f32 %v2419_v55, %v13707_v22  ;;  %v3221_v5 = vmax.f32 %v2504_v63, 0.0  ;;  %2737 = vmatmul.bf16.gmra.mxu3 %v13640_v49  ;;  %v11880_v22 = vld [vmem:[#allocation5 + $0x234] sm:$0xf0] }
 0x154   : > { %v9300_v21 = vor.u32 %v11880_v22, %v9299_v10  ;;  %v2477_v7 = vpop.f32.mrf.mxu2  ;;  %v11848_v63 = vld [vmem:[#allocation5 + $0x134] sm:$0xf0]  ;;  %v9411_v22 = vld [vmem:[#allocation5 + $0x308] sm:$0xf] }
 0x155   : > { %v2449_v4 = vadd.f32 %v2448_v59, %v2420_v58  ;;  %2650 = vmatmul.bf16.gmra.mxu0 %v13634_v45  ;;  %v13742_v20 = vpack.c.bf16 %v3221_v5, %v3217_v12  ;;  %v2450_v52 = vpop.f32.mrf.mxu1  ;;  %v9171_v59 = vld [vmem:[#allocation5 + $0x128] sm:$0xf]  ;;  %v11812_v10 = vld [vmem:[#allocation5 + $0x14] sm:$0xf0] }
 0x156   : > { %v2506_v6 = vpop.f32.mrf.mxu3  ;;  %2817 = vmatpush.bf16.msra.mxu2 %v9300_v21  ;;  %v9172_v12 = vor.u32 %v11848_v63, %v9171_v59  ;;  %v9283_v5 = vld [vmem:[#allocation5 + $0x208] sm:$0xf]  ;;  %v12032_v63 = vld [vmem:[#allocation5 + $0x6f4] sm:$0xf0] }
 0x157   : > { %v2478_v40 = vadd.f32 %v2477_v7, %v2449_v4  ;;  %v9284_v8 = vor.u32 %v11876_v62, %v9283_v5  ;;  %v9028_v4 = vor.u32 %v11812_v10, %v9027_v9  ;;  %v10035_v62 = vld [vmem:[#allocation5 + $0x7e8] sm:$0xf] }
 0x158   : > { %2788 = vmatpush.bf16.msra.mxu1 %v9172_v12  ;;  %v9651_v12 = vld [vmem:[#allocation5 + $0x4e8] sm:$0xf] }
 0x159   : > { %v2507_v55 = vadd.f32 %v2506_v6, %v2478_v40  ;;  %2760 = vmatpush.bf16.msra.mxu0 %v9028_v4 }
 0x15a   : > { %v2421_v42 = vpop.f32.mrf.mxu0  ;;  %2818 = vmatpush.bf16.msra.mxu2 %v9284_v8  ;;  %v12064_v8 = vld [vmem:[#allocation5 + $0x7f4] sm:$0xf0] }
 0x15b   : > { %v2422_v43 = vadd.f32 %v2421_v42, %v13710_v13  ;;  %v9412_v13 = vor.u32 %v11908_v11, %v9411_v22  ;;  %v10036_v4 = vor.u32 %v12064_v8, %v10035_v62 }
 0x15c   : > { %v2479_v21 = vpop.f32.mrf.mxu2  ;;  %2789 = vmatpush.bf16.msra.mxu1 %v9156_v15 }
 0x15d   : > { %v2451_v58 = vadd.f32 %v2450_v52, %v2422_v43  ;;  %v2453_v6 = vpop.f32.mrf.mxu1  ;;  %2847 = vmatpush.bf16.msra.mxu3 %v9412_v13  ;;  %v3225_v52 = vmax.f32 %v2507_v55, 0.0 }
 0x15e   : > { %v2508_v7 = vpop.f32.mrf.mxu3 }
 0x15f   : > { %v2480_v30 = vadd.f32 %v2479_v21, %v2451_v58  ;;  %v9907_v58 = vld [vmem:[#allocation5 + $0x6e8] sm:$0xf] }
 0x160   : > { %2684 = vmatmul.bf16.gmra.mxu1 %v13656_v33  ;;  %v9908_v5 = vor.u32 %v12032_v63, %v9907_v58  ;;  %v10019_v58 = vld [vmem:[#allocation5 + $0x7c8] sm:$0xf]  ;;  %v12060_v63 = vld [vmem:[#allocation5 + $0x7d4] sm:$0xf0] }
 0x161   : > { %v2509_v42 = vadd.f32 %v2508_v7, %v2480_v30  ;;  %2713 = vmatmul.bf16.gmra.mxu2 %v13658_v34  ;;  %2956 = vmatpush.bf16.msrb.mxu3 %v10036_v4  ;;  %v9779_v30 = vld [vmem:[#allocation5 + $0x5e8] sm:$0xf]  ;;  %v12000_v7 = vld [vmem:[#allocation5 + $0x5f4] sm:$0xf0] }
 0x162   : > { %v2424_v31 = vpop.f32.mrf.mxu0  ;;  %2927 = vmatpush.bf16.msrb.mxu2 %v9908_v5  ;;  %v9780_v15 = vor.u32 %v12000_v7, %v9779_v30  ;;  %v9763_v4 = vld [vmem:[#allocation5 + $0x5c8] sm:$0xf]  ;;  %v12024_v7 = vld [vmem:[#allocation5 + $0x6b4] sm:$0xf0] }
 0x163   : > { %v2425_v40 = vadd.f32 %v2424_v31, %v13717_v60  ;;  %v3229_v59 = vmax.f32 %v2509_v42, 0.0  ;;  %2742 = vmatmul.bf16.gmra.mxu3 %v13660_v35  ;;  %v11968_v60 = vld [vmem:[#allocation5 + $0x4f4] sm:$0xf0]  ;;  %v9635_v42 = vld [vmem:[#allocation5 + $0x4c8] sm:$0xf] }
 0x164   : > { %v2482_v10 = vpop.f32.mrf.mxu2  ;;  %v9652_v22 = vor.u32 %v11968_v60, %v9651_v12  ;;  %2898 = vmatpush.bf16.msrb.mxu1 %v9780_v15  ;;  %v10020_v12 = vor.u32 %v12060_v63, %v10019_v58  ;;  %v9875_v30 = vld [vmem:[#allocation5 + $0x6a8] sm:$0xf]  ;;  %v11960_v15 = vld [vmem:[#allocation5 + $0x4b4] sm:$0xf0] }
 0x165   : > { %v2454_v43 = vadd.f32 %v2453_v6, %v2425_v40  ;;  %2655 = vmatmul.bf16.gmra.mxu0 %v13654_v32  ;;  %v13750_v9 = vpack.c.bf16 %v3229_v59, %v3225_v52  ;;  %v2455_v29 = vpop.f32.mrf.mxu1  ;;  %v9891_v40 = vld [vmem:[#allocation5 + $0x6c8] sm:$0xf]  ;;  %v12028_v6 = vld [vmem:[#allocation5 + $0x6d4] sm:$0xf0] }
 0x166   : > { %v2511_v11 = vpop.f32.mrf.mxu3  ;;  %2869 = vmatpush.bf16.msrb.mxu0 %v9652_v22  ;;  %v9892_v52 = vor.u32 %v12028_v6, %v9891_v40  ;;  %v11964_v59 = vld [vmem:[#allocation5 + $0x4d4] sm:$0xf0]  ;;  %2957 = vmatpush.bf16.msrb.mxu3 %v10020_v12  ;;  %v10003_v40 = vld [vmem:[#allocation5 + $0x7a8] sm:$0xf] }
 0x167   : > { %v2483_v55 = vadd.f32 %v2482_v10, %v2454_v43  ;;  %v9636_v43 = vor.u32 %v11964_v59, %v9635_v42  ;;  %v12056_v6 = vld [vmem:[#allocation5 + $0x7b4] sm:$0xf0] }
 0x168   : > { %2928 = vmatpush.bf16.msrb.mxu2 %v9892_v52 }
 0x169   : > { %v2512_v23 = vadd.f32 %v2511_v11, %v2483_v55  ;;  %v11996_v55 = vld [vmem:[#allocation5 + $0x5d4] sm:$0xf0] }
 0x16a   : > { %v2426_v21 = vpop.f32.mrf.mxu0  ;;  %2870 = vmatpush.bf16.msrb.mxu0 %v9636_v43 }
 0x16b   : > { %v2427_v13 = vadd.f32 %v2426_v21, %v13720_v41  ;;  %v9764_v21 = vor.u32 %v11996_v55, %v9763_v4  ;;  %v12020_v4 = vld [vmem:[#allocation5 + $0x694] sm:$0xf0]  ;;  %v9603_v55 = vld [vmem:[#allocation5 + $0x488] sm:$0xf] }
 0x16c   : > { %v2484_v41 = vpop.f32.mrf.mxu2 }
 0x16d   : > { %v2456_v31 = vadd.f32 %v2455_v29, %v2427_v13  ;;  %v2458_v10 = vpop.f32.mrf.mxu1  ;;  %v3233_v13 = vmax.f32 %v2512_v23, 0.0  ;;  %2899 = vmatpush.bf16.msrb.mxu1 %v9764_v21  ;;  %v10004_v23 = vor.u32 %v12056_v6, %v10003_v40 }
 0x16e   : > { %v2513_v60 = vpop.f32.mrf.mxu3 }
 0x16f   : > { %v2485_v5 = vadd.f32 %v2484_v41, %v2456_v31  ;;  %v9876_v31 = vor.u32 %v12024_v7, %v9875_v30  ;;  %2958 = vmatpush.bf16.msrb.mxu3 %v10004_v23  ;;  %v9731_v23 = vld [vmem:[#allocation5 + $0x588] sm:$0xf] }
 0x170   : > { %2689 = vmatmul.bf16.gmra.mxu1 %v13676_v26 }
 0x171   : > { %v2514_v22 = vadd.f32 %v2513_v60, %v2485_v5  ;;  %2718 = vmatmul.bf16.gmra.mxu2 %v13678_v27  ;;  %v9747_v60 = vld [vmem:[#allocation5 + $0x5a8] sm:$0xf] }
 0x172   : > { %v2429_v62 = vpop.f32.mrf.mxu0  ;;  %2929 = vmatpush.bf16.msrb.mxu2 %v9876_v31 }
 0x173   : > { %v2430_v8 = vadd.f32 %v2429_v62, %v13727_v24  ;;  %v3237_v29 = vmax.f32 %v2514_v22, 0.0  ;;  %2747 = vmatmul.bf16.gmra.mxu3 %v13680_v28  ;;  %v9619_v24 = vld [vmem:[#allocation5 + $0x4a8] sm:$0xf]  ;;  %v11992_v62 = vld [vmem:[#allocation5 + $0x5b4] sm:$0xf0] }
 0x174   : > { %v2487_v52 = vpop.f32.mrf.mxu2  ;;  %v9620_v59 = vor.u32 %v11960_v15, %v9619_v24  ;;  %v9859_v22 = vld [vmem:[#allocation5 + $0x688] sm:$0xf] }
 0x175   : > { %v2459_v11 = vadd.f32 %v2458_v10, %v2430_v8  ;;  %2660 = vmatmul.bf16.gmra.mxu0 %v13674_v25  ;;  %v13758_v42 = vpack.c.bf16 %v3237_v29, %v3233_v13  ;;  %v2460_v41 = vpop.f32.mrf.mxu1  ;;  %v9748_v10 = vor.u32 %v11992_v62, %v9747_v60  ;;  %v9860_v21 = vor.u32 %v12020_v4, %v9859_v22  ;;  %v11956_v13 = vld [vmem:[#allocation5 + $0x494] sm:$0xf0]  ;;  %v9987_v29 = vld [vmem:[#allocation5 + $0x788] sm:$0xf] }
 0x176   : > { %v2516_v43 = vpop.f32.mrf.mxu3  ;;  %2871 = vmatpush.bf16.msrb.mxu0 %v9620_v59  ;;  %v9604_v30 = vor.u32 %v11956_v13, %v9603_v55  ;;  %v12016_v60 = vld [vmem:[#allocation5 + $0x674] sm:$0xf0]  ;;  %v9587_v62 = vld [vmem:[#allocation5 + $0x468] sm:$0xf] }
 0x177   : > { %15445 = vst [vmem:[#allocation28_spill] sm:$0xff] %v13758_v42  ;;  %v2488_v58 = vadd.f32 %v2487_v52, %v2459_v11  ;;  %v13762_v11 = vperm.slane %v13686_v61, 1  ;;  %2900 = vmatpush.bf16.msrb.mxu1 %v9748_v10  ;;  %2930 = vmatpush.bf16.msrb.mxu2 %v9860_v21  ;;  %v11952_v10 = vld [vmem:[#allocation5 + $0x474] sm:$0xf0]  ;;  %v9971_v22 = vld [vmem:[#allocation5 + $0x768] sm:$0xf] }
 0x178   : > { %v12048_v4 = vld [vmem:[#allocation5 + $0x774] sm:$0xf0]  ;;  %v9588_v13 = vor.u32 %v11952_v10, %v9587_v62  ;;  %v11922_v42 = vld [vmem:[#allocation5 + $0x38c] sm:$0xf] }
 0x179   : > { %v2517_v5 = vadd.f32 %v2516_v43, %v2488_v58  ;;  %v11988_v58 = vld [vmem:[#allocation5 + $0x594] sm:$0xf0] }
 0x17a   : > { %v2431_v63 = vpop.f32.mrf.mxu0  ;;  %2872 = vmatpush.bf16.msrb.mxu0 %v9604_v30  ;;  %v9732_v61 = vor.u32 %v11988_v58, %v9731_v23  ;;  %v12012_v23 = vld [vmem:[#allocation5 + $0x654] sm:$0xf0]  ;;  %v9571_v58 = vld [vmem:[#allocation5 + $0x448] sm:$0xf] }
 0x17b   : > { %v2432_v12 = vadd.f32 %v2431_v63, %v13730_v14  ;;  %v12052_v14 = vld [vmem:[#allocation5 + $0x794] sm:$0xf0]  ;;  %v3241_v63 = vmax.f32 %v2517_v5, 0.0  ;;  %v9972_v5 = vor.u32 %v12048_v4, %v9971_v22 }
 0x17c   : > { %v9988_v7 = vor.u32 %v12052_v14, %v9987_v29  ;;  %v2489_v24 = vpop.f32.mrf.mxu2  ;;  %2901 = vmatpush.bf16.msrb.mxu1 %v9732_v61 }
 0x17d   : > { %v2461_v8 = vadd.f32 %v2460_v41, %v2432_v12  ;;  %v2559_v52 = vpop.f32.mrf.mxu1  ;;  %v9843_v41 = vld [vmem:[#allocation5 + $0x668] sm:$0xf] }
 0x17e   : > { %v2518_v15 = vpop.f32.mrf.mxu3  ;;  %2959 = vmatpush.bf16.msrb.mxu3 %v9988_v7  ;;  %2873 = vmatpush.bf16.msrb.mxu0 %v9588_v13 }
 0x17f   : > { %v2490_v31 = vadd.f32 %v2489_v24, %v2461_v8  ;;  %v9844_v8 = vor.u32 %v12016_v60, %v9843_v41 }
 0x180   : > { %2790 = vmatmul.bf16.vlgmr.msra.gmra.mxu1 %v13536_v53 }
 0x181   : > { %v2519_v59 = vadd.f32 %v2518_v15, %v2490_v31  ;;  %2819 = vmatmul.bf16.vlgmr.msra.gmra.mxu2 %v13538_v54  ;;  %v9715_v15 = vld [vmem:[#allocation5 + $0x568] sm:$0xf] }
 0x182   : > { %v2530_v40 = vpop.f32.mrf.mxu0  ;;  %2931 = vmatpush.bf16.msrb.mxu2 %v9844_v8  ;;  %2960 = vmatpush.bf16.msrb.mxu3 %v9972_v5  ;;  %v9699_v5 = vld [vmem:[#allocation5 + $0x548] sm:$0xf] }
 0x183   : > { %v2531_v6 = vadd.f32 %v2530_v40, %v13762_v11  ;;  %v3245_v12 = vmax.f32 %v2519_v59, 0.0  ;;  %2848 = vmatmul.bf16.vlgmr.msra.gmra.mxu3 %v13540_v57  ;;  %v11984_v40 = vld [vmem:[#allocation5 + $0x574] sm:$0xf0]  ;;  %v9827_v59 = vld [vmem:[#allocation5 + $0x648] sm:$0xf] }
 0x184   : > { %v2588_v21 = vpop.f32.mrf.mxu2  ;;  %v9828_v61 = vor.u32 %v12012_v23, %v9827_v59  ;;  %v12040_v59 = vld [vmem:[#allocation5 + $0x734] sm:$0xf0] }
 0x185   : > { %v2560_v43 = vadd.f32 %v2559_v52, %v2531_v6  ;;  %2761 = vmatmul.bf16.vlgmr.msra.gmra.mxu0 %v13534_v48  ;;  %v13769_v55 = vpack.c.bf16 %v3245_v12, %v3241_v63  ;;  %v2561_v24 = vpop.f32.mrf.mxu1  ;;  %v9716_v52 = vor.u32 %v11984_v40, %v9715_v15  ;;  %v11948_v63 = vld [vmem:[#allocation5 + $0x454] sm:$0xf0]  ;;  %v9555_v15 = vld [vmem:[#allocation5 + $0x428] sm:$0xf] }
 0x186   : > { %v2617_v30 = vpop.f32.mrf.mxu3  ;;  %v12044_v12 = vld [vmem:[#allocation5 + $0x754] sm:$0xf0]  ;;  %v9572_v41 = vor.u32 %v11948_v63, %v9571_v58  ;;  %2932 = vmatpush.bf16.msrb.mxu2 %v9828_v61 }
 0x187   : > { %15446 = vst [vmem:[#allocation29_spill] sm:$0xff] %v13769_v55  ;;  %v2589_v29 = vadd.f32 %v2588_v21, %v2560_v43  ;;  %v9955_v43 = vld [vmem:[#allocation5 + $0x748] sm:$0xf]  ;;  %2902 = vmatpush.bf16.msrb.mxu1 %v9716_v52  ;;  %v9349_v55 = vld [vmem:[#allocation5 + $0x298] sm:$0xf0] }
 0x188   : > { %v9956_v60 = vor.u32 %v12044_v12, %v9955_v43  ;;  %2874 = vmatpush.bf16.msrb.mxu0 %v9572_v41  ;;  %v9939_v52 = vld [vmem:[#allocation5 + $0x728] sm:$0xf] }
 0x189   : > { %v13772_v31 = vadd.f32 %v2617_v30, %v2589_v29  ;;  %v11980_v29 = vld [vmem:[#allocation5 + $0x554] sm:$0xf0]  ;;  %v9940_v61 = vor.u32 %v12040_v59, %v9939_v52  ;;  %v9667_v52 = vld [vmem:[#allocation5 + $0x508] sm:$0xf] }
 0x18a   : > { %v2532_v14 = vpop.f32.mrf.mxu0  ;;  %2961 = vmatpush.bf16.msrb.mxu3 %v9956_v60  ;;  %v11972_v59 = vld [vmem:[#allocation5 + $0x514] sm:$0xf0] }
 0x18b   : > { %v2533_v7 = vadd.f32 %v2532_v14, %v13762_v11  ;;  %v9700_v14 = vor.u32 %v11980_v29, %v9699_v5  ;;  %v12004_v5 = vld [vmem:[#allocation5 + $0x614] sm:$0xf0]  ;;  %v9539_v29 = vld [vmem:[#allocation5 + $0x408] sm:$0xf] }
 0x18c   : > { %v2590_v62 = vpop.f32.mrf.mxu2 }
 0x18d   : > { %v2562_v6 = vadd.f32 %v2561_v24, %v2533_v7  ;;  %v2564_v21 = vpop.f32.mrf.mxu1  ;;  %2903 = vmatpush.bf16.msrb.mxu1 %v9700_v14  ;;  %v9811_v7 = vld [vmem:[#allocation5 + $0x628] sm:$0xf]  ;;  %v12008_v24 = vld [vmem:[#allocation5 + $0x634] sm:$0xf0] }
 0x18e   : > { %v2619_v10 = vpop.f32.mrf.mxu3  ;;  %v9812_v40 = vor.u32 %v12008_v24, %v9811_v7  ;;  %2962 = vmatpush.bf16.msrb.mxu3 %v9940_v61  ;;  %v11940_v7 = vld [vmem:[#allocation5 + $0x414] sm:$0xf0] }
 0x18f   : > { %v2591_v8 = vadd.f32 %v2590_v62, %v2562_v6  ;;  %v11944_v6 = vld [vmem:[#allocation5 + $0x434] sm:$0xf0] }
 0x190   : > { %2795 = vmatmul.bf16.gmra.mxu1 %v13556_v50  ;;  %v9556_v58 = vor.u32 %v11944_v6, %v9555_v15  ;;  %2933 = vmatpush.bf16.msrb.mxu2 %v9812_v40  ;;  %v12036_v24 = vld [vmem:[#allocation5 + $0x714] sm:$0xf0]  ;;  %v9540_v15 = vor.u32 %v11940_v7, %v9539_v29  ;;  %v9525_v29 = vld [vmem:[#allocation5 + $0x3f8] sm:$0xf0] }
 0x191   : > { %v13775_v13 = vadd.f32 %v2619_v10, %v2591_v8  ;;  %2824 = vmatmul.bf16.gmra.mxu2 %v13558_v51  ;;  %v9683_v8 = vld [vmem:[#allocation5 + $0x528] sm:$0xf]  ;;  %v11976_v10 = vld [vmem:[#allocation5 + $0x534] sm:$0xf0] }
 0x192   : > { %v2535_v22 = vpop.f32.mrf.mxu0  ;;  %2875 = vmatpush.bf16.msrb.mxu0 %v9556_v58 }
 0x193   : > { %v2536_v4 = vadd.f32 %v2535_v22, %v13762_v11  ;;  %2853 = vmatmul.bf16.gmra.mxu3 %v13560_v56 }
 0x194   : > { %v2593_v23 = vpop.f32.mrf.mxu2 }
 0x195   : > { %v2565_v30 = vadd.f32 %v2564_v21, %v2536_v4  ;;  %2766 = vmatmul.bf16.gmra.mxu0 %v13554_v44  ;;  %v2566_v60 = vpop.f32.mrf.mxu1  ;;  %v9684_v4 = vor.u32 %v11976_v10, %v9683_v8  ;;  %v9795_v21 = vld [vmem:[#allocation5 + $0x608] sm:$0xf]  ;;  %v11902_v8 = vld [vmem:[#allocation5 + $0x2ec] sm:$0xf]  ;;  %v9397_v10 = vld [vmem:[#allocation5 + $0x2f8] sm:$0xf0] }
 0x196   : > { %v2622_v43 = vpop.f32.mrf.mxu3  ;;  %v9796_v14 = vor.u32 %v12004_v5, %v9795_v21  ;;  %2876 = vmatpush.bf16.msrb.mxu0 %v9540_v15  ;;  %v9141_v21 = vld [vmem:[#allocation5 + $0xf8] sm:$0xf0]  ;;  %v11934_v5 = vld [vmem:[#allocation5 + $0x3ec] sm:$0xf] }
 0x197   : > { %v2594_v63 = vadd.f32 %v2593_v23, %v2565_v30  ;;  %v9923_v30 = vld [vmem:[#allocation5 + $0x708] sm:$0xf]  ;;  %2904 = vmatpush.bf16.msrb.mxu1 %v9684_v4  ;;  %v9400_v4 = vor.u32 %v11902_v8, %v9397_v10  ;;  %v11834_v8 = vld [vmem:[#allocation5 + $0xcc] sm:$0xf]  ;;  %v9125_v10 = vld [vmem:[#allocation5 + $0xd8] sm:$0xf0] }
 0x198   : > { %v9924_v40 = vor.u32 %v12036_v24, %v9923_v30  ;;  %2934 = vmatpush.bf16.msrb.mxu2 %v9796_v14  ;;  %v9528_v30 = vor.u32 %v11934_v5, %v9525_v29  ;;  %v9509_v5 = vld [vmem:[#allocation5 + $0x3d8] sm:$0xf0] }
 0x199   : > { %v13782_v62 = vadd.f32 %v2622_v43, %v2594_v63  ;;  %v9668_v63 = vor.u32 %v11972_v59, %v9667_v52 }
 0x19a   : > { %v2537_v12 = vpop.f32.mrf.mxu0  ;;  %2963 = vmatpush.bf16.msrb.mxu3 %v9924_v40 }
 0x19b   : > { %v2538_v41 = vadd.f32 %v2537_v12, %v13762_v11  ;;  %2905 = vmatpush.bf16.msrb.mxu1 %v9668_v63  ;;  %v11898_v63 = vld [vmem:[#allocation5 + $0x2cc] sm:$0xf] }
 0x19c   : > { %v2595_v6 = vpop.f32.mrf.mxu2  ;;  %3043 = vmatpush.bf16.msra.mxu2 %v9400_v4 }
 0x19d   : > { %v2567_v22 = vadd.f32 %v2566_v60, %v2538_v41  ;;  %v2569_v12 = vpop.f32.mrf.mxu1 }
 0x19e   : > { %v2624_v58 = vpop.f32.mrf.mxu3  ;;  %3072 = vmatpush.bf16.msra.mxu3 %v9528_v30 }
 0x19f   : > { %v2596_v23 = vadd.f32 %v2595_v6, %v2567_v22  ;;  %v11838_v22 = vld [vmem:[#allocation5 + $0xec] sm:$0xf] }
 0x1a0   : > { %2800 = vmatmul.bf16.gmra.mxu1 %v13576_v37  ;;  %v9144_v7 = vor.u32 %v11838_v22, %v9141_v21  ;;  %v11930_v21 = vld [vmem:[#allocation5 + $0x3cc] sm:$0xf] }
 0x1a1   : > { %v13785_v41 = vadd.f32 %v2624_v58, %v2596_v23  ;;  %2829 = vmatmul.bf16.gmra.mxu2 %v13578_v38  ;;  %v11870_v58 = vld [vmem:[#allocation5 + $0x1ec] sm:$0xf]  ;;  %v9512_v29 = vor.u32 %v11930_v21, %v9509_v5 }
 0x1a2   : > { %v2540_v61 = vpop.f32.mrf.mxu0  ;;  %2985 = vmatpush.bf16.msra.mxu0 %v9144_v7 }
 0x1a3   : > { %v2541_v43 = vadd.f32 %v2540_v61, %v13762_v11  ;;  %2858 = vmatmul.bf16.gmra.mxu3 %v13580_v39  ;;  %v9269_v61 = vld [vmem:[#allocation5 + $0x1f8] sm:$0xf0] }
 0x1a4   : > { %v2598_v14 = vpop.f32.mrf.mxu2  ;;  %3073 = vmatpush.bf16.msra.mxu3 %v9512_v29  ;;  %v9493_v29 = vld [vmem:[#allocation5 + $0x3b8] sm:$0xf0] }
 0x1a5   : > { %v2570_v60 = vadd.f32 %v2569_v12, %v2541_v43  ;;  %2771 = vmatmul.bf16.gmra.mxu0 %v13574_v36  ;;  %v2571_v52 = vpop.f32.mrf.mxu1  ;;  %v9272_v43 = vor.u32 %v11870_v58, %v9269_v61  ;;  %v9381_v12 = vld [vmem:[#allocation5 + $0x2d8] sm:$0xf0]  ;;  %v11894_v58 = vld [vmem:[#allocation5 + $0x2ac] sm:$0xf] }
 0x1a6   : > { %v2627_v15 = vpop.f32.mrf.mxu3  ;;  %v9384_v22 = vor.u32 %v11898_v63, %v9381_v12  ;;  %v11830_v12 = vld [vmem:[#allocation5 + $0xac] sm:$0xf] }
 0x1a7   : > { %v2599_v24 = vadd.f32 %v2598_v14, %v2570_v60  ;;  %v9128_v60 = vor.u32 %v11834_v8, %v9125_v10  ;;  %3014 = vmatpush.bf16.msra.mxu1 %v9272_v43  ;;  %v9365_v43 = vld [vmem:[#allocation5 + $0x2b8] sm:$0xf0] }
 0x1a8   : > { %3044 = vmatpush.bf16.msra.mxu2 %v9384_v22  ;;  %v9109_v8 = vld [vmem:[#allocation5 + $0xb8] sm:$0xf0]  ;;  %v9368_v21 = vor.u32 %v11894_v58, %v9365_v43  ;;  %v11826_v58 = vld [vmem:[#allocation5 + $0x8c] sm:$0xf] }
 0x1a9   : > { %v13792_v59 = vadd.f32 %v2627_v15, %v2599_v24  ;;  %2986 = vmatpush.bf16.msra.mxu0 %v9128_v60  ;;  %v9112_v5 = vor.u32 %v11830_v12, %v9109_v8  ;;  %v9093_v43 = vld [vmem:[#allocation5 + $0x98] sm:$0xf0] }
 0x1aa   : > { %v2542_v40 = vpop.f32.mrf.mxu0  ;;  %v9096_v8 = vor.u32 %v11826_v58, %v9093_v43 }
 0x1ab   : > { %v2543_v6 = vadd.f32 %v2542_v40, %v13762_v11 }
 0x1ac   : > { %v2600_v4 = vpop.f32.mrf.mxu2  ;;  %3045 = vmatpush.bf16.msra.mxu2 %v9368_v21 }
 0x1ad   : > { %v2572_v23 = vadd.f32 %v2571_v52, %v2543_v6  ;;  %v2574_v15 = vpop.f32.mrf.mxu1  ;;  %v11866_v52 = vld [vmem:[#allocation5 + $0x1cc] sm:$0xf]  ;;  %2987 = vmatpush.bf16.msra.mxu0 %v9112_v5 }
 0x1ae   : > { %v2629_v7 = vpop.f32.mrf.mxu3 }
 0x1af   : > { %v2601_v14 = vadd.f32 %v2600_v4, %v2572_v23  ;;  %v9253_v23 = vld [vmem:[#allocation5 + $0x1d8] sm:$0xf0]  ;;  %v11926_v4 = vld [vmem:[#allocation5 + $0x3ac] sm:$0xf] }
 0x1b0   : > { %2805 = vmatmul.bf16.gmra.mxu1 %v13596_v17  ;;  %v9256_v63 = vor.u32 %v11866_v52, %v9253_v23  ;;  %v11862_v52 = vld [vmem:[#allocation5 + $0x1ac] sm:$0xf]  ;;  %v9237_v23 = vld [vmem:[#allocation5 + $0x1b8] sm:$0xf0] }
 0x1b1   : > { %v13795_v40 = vadd.f32 %v2629_v7, %v2601_v14  ;;  %2834 = vmatmul.bf16.gmra.mxu2 %v13598_v18  ;;  %2988 = vmatpush.bf16.msra.mxu0 %v9096_v8 }
 0x1b2   : > { %v2545_v30 = vpop.f32.mrf.mxu0  ;;  %3015 = vmatpush.bf16.msra.mxu1 %v9256_v63 }
 0x1b3   : > { %v2546_v24 = vadd.f32 %v2545_v30, %v13762_v11  ;;  %2863 = vmatmul.bf16.gmra.mxu3 %v13600_v19  ;;  %v9496_v30 = vor.u32 %v11926_v4, %v9493_v29 }
 0x1b4   : > { %v2603_v61 = vpop.f32.mrf.mxu2 }
 0x1b5   : > { %v2575_v6 = vadd.f32 %v2574_v15, %v2546_v24  ;;  %2776 = vmatmul.bf16.gmra.mxu0 %v13594_v16  ;;  %v2576_v7 = vpop.f32.mrf.mxu1  ;;  %3074 = vmatpush.bf16.msra.mxu3 %v9496_v30  ;;  %v11886_v30 = vld [vmem:[#allocation5 + $0x26c] sm:$0xf] }
 0x1b6   : > { %v2632_v22 = vpop.f32.mrf.mxu3 }
 0x1b7   : > { %v2604_v10 = vadd.f32 %v2603_v61, %v2575_v6  ;;  %v11890_v6 = vld [vmem:[#allocation5 + $0x28c] sm:$0xf]  ;;  %v9240_v61 = vor.u32 %v11862_v52, %v9237_v23  ;;  %v9077_v23 = vld [vmem:[#allocation5 + $0x78] sm:$0xf0] }
 0x1b8   : > { %v9352_v12 = vor.u32 %v11890_v6, %v9349_v55  ;;  %v11858_v55 = vld [vmem:[#allocation5 + $0x18c] sm:$0xf] }
 0x1b9   : > { %v13802_v24 = vadd.f32 %v2632_v22, %v2604_v10  ;;  %3016 = vmatpush.bf16.msra.mxu1 %v9240_v61  ;;  %v11822_v52 = vld [vmem:[#allocation5 + $0x6c] sm:$0xf]  ;;  %v9461_v61 = vld [vmem:[#allocation5 + $0x378] sm:$0xf0] }
 0x1ba   : > { %v2547_v60 = vpop.f32.mrf.mxu0  ;;  %3046 = vmatpush.bf16.msra.mxu2 %v9352_v12  ;;  %v11918_v6 = vld [vmem:[#allocation5 + $0x36c] sm:$0xf]  ;;  %v9080_v43 = vor.u32 %v11822_v52, %v9077_v23  ;;  %v9061_v52 = vld [vmem:[#allocation5 + $0x58] sm:$0xf0] }
 0x1bb   : > { %v2548_v14 = vadd.f32 %v2547_v60, %v13762_v11  ;;  %v9477_v11 = vld [vmem:[#allocation5 + $0x398] sm:$0xf0]  ;;  %v9464_v12 = vor.u32 %v11918_v6, %v9461_v61  ;;  %v11914_v23 = vld [vmem:[#allocation5 + $0x34c] sm:$0xf] }
 0x1bc   : > { %v2605_v60 = vpop.f32.mrf.mxu2  ;;  %v9480_v63 = vor.u32 %v11922_v42, %v9477_v11  ;;  %v9221_v42 = vld [vmem:[#allocation5 + $0x198] sm:$0xf0]  ;;  %2989 = vmatpush.bf16.msra.mxu0 %v9080_v43 }
 0x1bd   : > { %v2577_v15 = vadd.f32 %v2576_v7, %v2548_v14  ;;  %v2675_v4 = vpop.f32.mrf.mxu1  ;;  %v9224_v7 = vor.u32 %v11858_v55, %v9221_v42  ;;  %v11882_v42 = vld [vmem:[#allocation5 + $0x24c] sm:$0xf] }
 0x1be   : > { %v2634_v22 = vpop.f32.mrf.mxu3  ;;  %3075 = vmatpush.bf16.msra.mxu3 %v9480_v63 }
 0x1bf   : > { %v2606_v10 = vadd.f32 %v2605_v60, %v2577_v15  ;;  %v9333_v15 = vld [vmem:[#allocation5 + $0x278] sm:$0xf0]  ;;  %3017 = vmatpush.bf16.msra.mxu1 %v9224_v7 }
 0x1c0   : > { %2906 = vmatmul.bf16.vlgmr.msrb.gmra.mxu1 %v13616_v1 }
 0x1c1   : > { %v13805_v29 = vadd.f32 %v2634_v22, %v2606_v10  ;;  %2935 = vmatmul.bf16.vlgmr.msrb.gmra.mxu2 %v13618_v2 }
 0x1c2   : > { %v2646_v21 = vpop.f32.mrf.mxu0  ;;  %3076 = vmatpush.bf16.msra.mxu3 %v9464_v12 }
 0x1c3   : > { %v2647_v5 = vadd.f32 %v2646_v21, %v13772_v31  ;;  %2964 = vmatmul.bf16.vlgmr.msrb.gmra.mxu3 %v13620_v3  ;;  %v9336_v31 = vor.u32 %v11886_v30, %v9333_v15  ;;  %v9317_v30 = vld [vmem:[#allocation5 + $0x258] sm:$0xf0]  ;;  %v11818_v15 = vld [vmem:[#allocation5 + $0x4c] sm:$0xf] }
 0x1c4   : > { %v2704_v58 = vpop.f32.mrf.mxu2  ;;  %v9320_v7 = vor.u32 %v11882_v42, %v9317_v30  ;;  %v11814_v42 = vld [vmem:[#allocation5 + $0x2c] sm:$0xf] }
 0x1c5   : > { %v2676_v14 = vadd.f32 %v2675_v4, %v2647_v5  ;;  %2877 = vmatmul.bf16.vlgmr.msrb.gmra.mxu0 %v13614_v0  ;;  %3047 = vmatpush.bf16.msra.mxu2 %v9336_v31  ;;  %v2677_v10 = vpop.f32.mrf.mxu1  ;;  %v11854_v5 = vld [vmem:[#allocation5 + $0x16c] sm:$0xf]  ;;  %v9205_v4 = vld [vmem:[#allocation5 + $0x178] sm:$0xf0]  ;;  %v9064_v31 = vor.u32 %v11818_v15, %v9061_v52 }
 0x1c6   : > { %v2733_v11 = vpop.f32.mrf.mxu3  ;;  %v9208_v55 = vor.u32 %v11854_v5, %v9205_v4  ;;  %v11850_v5 = vld [vmem:[#allocation5 + $0x14c] sm:$0xf] }
 0x1c7   : > { %v2705_v8 = vadd.f32 %v2704_v58, %v2676_v14  ;;  %v9445_v14 = vld [vmem:[#allocation5 + $0x358] sm:$0xf0]  ;;  %2990 = vmatpush.bf16.msra.mxu0 %v9064_v31  ;;  %v11910_v52 = vld [vmem:[#allocation5 + $0x32c] sm:$0xf] }
 0x1c8   : > { %3018 = vmatpush.bf16.msra.mxu1 %v9208_v55  ;;  %v9448_v61 = vor.u32 %v11914_v23, %v9445_v14  ;;  %v11878_v55 = vld [vmem:[#allocation5 + $0x22c] sm:$0xf]  ;;  %v9429_v23 = vld [vmem:[#allocation5 + $0x338] sm:$0xf0] }
 0x1c9   : > { %v2734_v22 = vadd.f32 %v2733_v11, %v2705_v8  ;;  %3048 = vmatpush.bf16.msra.mxu2 %v9320_v7  ;;  %v9045_v7 = vld [vmem:[#allocation5 + $0x38] sm:$0xf0] }
 0x1ca   : > { %v2648_v60 = vpop.f32.mrf.mxu0  ;;  %3077 = vmatpush.bf16.msra.mxu3 %v9448_v61  ;;  %v9048_v14 = vor.u32 %v11814_v42, %v9045_v7  ;;  %v11906_v42 = vld [vmem:[#allocation5 + $0x30c] sm:$0xf]  ;;  %v9413_v7 = vld [vmem:[#allocation5 + $0x318] sm:$0xf0] }
 0x1cb   : > { %v2649_v63 = vadd.f32 %v2648_v60, %v13775_v13 }
 0x1cc   : > { %v2706_v6 = vpop.f32.mrf.mxu2  ;;  %2991 = vmatpush.bf16.msra.mxu0 %v9048_v14 }
 0x1cd   : > { %v2678_v21 = vadd.f32 %v2677_v10, %v2649_v63  ;;  %v2680_v8 = vpop.f32.mrf.mxu1  ;;  %v3218_v63 = vmax.f32 %v2734_v22, 0.0 }
 0x1ce   : > { %v2735_v58 = vpop.f32.mrf.mxu3 }
 0x1cf   : > { %v2707_v13 = vadd.f32 %v2706_v6, %v2678_v21  ;;  %v9189_v21 = vld [vmem:[#allocation5 + $0x158] sm:$0xf0]  ;;  %v9432_v6 = vor.u32 %v11910_v52, %v9429_v23  ;;  %v11842_v52 = vld [vmem:[#allocation5 + $0x10c] sm:$0xf] }
 0x1d0   : > { %2911 = vmatmul.bf16.gmra.mxu1 %v13636_v46  ;;  %v9192_v4 = vor.u32 %v11850_v5, %v9189_v21  ;;  %v11874_v5 = vld [vmem:[#allocation5 + $0x20c] sm:$0xf]  ;;  %v9285_v21 = vld [vmem:[#allocation5 + $0x218] sm:$0xf0] }
 0x1d1   : > { %v2736_v11 = vadd.f32 %v2735_v58, %v2707_v13  ;;  %2940 = vmatmul.bf16.gmra.mxu2 %v13638_v47  ;;  %3078 = vmatpush.bf16.msra.mxu3 %v9432_v6  ;;  %v9157_v23 = vld [vmem:[#allocation5 + $0x118] sm:$0xf0] }
 0x1d2   : > { %v2651_v43 = vpop.f32.mrf.mxu0  ;;  %3019 = vmatpush.bf16.msra.mxu1 %v9192_v4  ;;  %v11810_v4 = vld [vmem:[#allocation5 + $0xc] sm:$0xf] }
 0x1d3   : > { %v2652_v12 = vadd.f32 %v2651_v43, %v13782_v62  ;;  %v3222_v10 = vmax.f32 %v2736_v11, 0.0  ;;  %2969 = vmatmul.bf16.gmra.mxu3 %v13640_v49  ;;  %v9301_v62 = vld [vmem:[#allocation5 + $0x238] sm:$0xf0]  ;;  %v11846_v11 = vld [vmem:[#allocation5 + $0x12c] sm:$0xf] }
 0x1d4   : > { %v9304_v15 = vor.u32 %v11878_v55, %v9301_v62  ;;  %v2709_v22 = vpop.f32.mrf.mxu2  ;;  %v9288_v55 = vor.u32 %v11874_v5, %v9285_v21  ;;  %v9029_v62 = vld [vmem:[#allocation5 + $0x18] sm:$0xf0]  ;;  %v11966_v5 = vld [vmem:[#allocation5 + $0x4ec] sm:$0xf] }
 0x1d5   : > { %v2681_v60 = vadd.f32 %v2680_v8, %v2652_v12  ;;  %2882 = vmatmul.bf16.gmra.mxu0 %v13634_v45  ;;  %v13817_v30 = vpack.c.bf16 %v3222_v10, %v3218_v63  ;;  %v2682_v43 = vpop.f32.mrf.mxu1  ;;  %v9173_v63 = vld [vmem:[#allocation5 + $0x138] sm:$0xf0] }
 0x1d6   : > { %v2738_v61 = vpop.f32.mrf.mxu3  ;;  %3049 = vmatpush.bf16.msra.mxu2 %v9304_v15  ;;  %v9176_v10 = vor.u32 %v11846_v11, %v9173_v63 }
 0x1d7   : > { %v2710_v31 = vadd.f32 %v2709_v22, %v2681_v60  ;;  %v9032_v60 = vor.u32 %v11810_v4, %v9029_v62  ;;  %v10037_v4 = vld [vmem:[#allocation5 + $0x7f8] sm:$0xf0] }
 0x1d8   : > { %3020 = vmatpush.bf16.msra.mxu1 %v9176_v10  ;;  %v9909_v10 = vld [vmem:[#allocation5 + $0x6f8] sm:$0xf0] }
 0x1d9   : > { %v2739_v12 = vadd.f32 %v2738_v61, %v2710_v31  ;;  %2992 = vmatpush.bf16.msra.mxu0 %v9032_v60  ;;  %v9160_v31 = vor.u32 %v11842_v52, %v9157_v23 }
 0x1da   : > { %v2653_v13 = vpop.f32.mrf.mxu0  ;;  %3050 = vmatpush.bf16.msra.mxu2 %v9288_v55  ;;  %v12062_v55 = vld [vmem:[#allocation5 + $0x7ec] sm:$0xf] }
 0x1db   : > { %v2654_v58 = vadd.f32 %v2653_v13, %v13785_v41  ;;  %v9416_v41 = vor.u32 %v11906_v42, %v9413_v7  ;;  %v3226_v11 = vmax.f32 %v2739_v12, 0.0  ;;  %v10040_v7 = vor.u32 %v12062_v55, %v10037_v4 }
 0x1dc   : > { %v2711_v15 = vpop.f32.mrf.mxu2  ;;  %3021 = vmatpush.bf16.msra.mxu1 %v9160_v31 }
 0x1dd   : > { %v2683_v8 = vadd.f32 %v2682_v43, %v2654_v58  ;;  %v2685_v13 = vpop.f32.mrf.mxu1  ;;  %3079 = vmatpush.bf16.msra.mxu3 %v9416_v41 }
 0x1de   : > { %v2740_v14 = vpop.f32.mrf.mxu3 }
 0x1df   : > { %v2712_v22 = vadd.f32 %v2711_v15, %v2683_v8  ;;  %v12030_v8 = vld [vmem:[#allocation5 + $0x6ec] sm:$0xf] }
 0x1e0   : > { %2916 = vmatmul.bf16.gmra.mxu1 %v13656_v33  ;;  %v9912_v21 = vor.u32 %v12030_v8, %v9909_v10  ;;  %v9637_v8 = vld [vmem:[#allocation5 + $0x4d8] sm:$0xf0]  ;;  %v12058_v10 = vld [vmem:[#allocation5 + $0x7cc] sm:$0xf] }
 0x1e1   : > { %v2741_v58 = vadd.f32 %v2740_v14, %v2712_v22  ;;  %2945 = vmatmul.bf16.gmra.mxu2 %v13658_v34  ;;  %3188 = vmatpush.bf16.msrb.mxu3 %v10040_v7  ;;  %v11998_v14 = vld [vmem:[#allocation5 + $0x5ec] sm:$0xf] }
 0x1e2   : > { %v2656_v6 = vpop.f32.mrf.mxu0  ;;  %3159 = vmatpush.bf16.msrb.mxu2 %v9912_v21 }
 0x1e3   : > { %v2657_v61 = vadd.f32 %v2656_v6, %v13792_v59  ;;  %v3230_v63 = vmax.f32 %v2741_v58, 0.0  ;;  %2974 = vmatmul.bf16.gmra.mxu3 %v13660_v35  ;;  %v9653_v59 = vld [vmem:[#allocation5 + $0x4f8] sm:$0xf0] }
 0x1e4   : > { %v2714_v42 = vpop.f32.mrf.mxu2  ;;  %v9656_v60 = vor.u32 %v11966_v5, %v9653_v59  ;;  %v9781_v6 = vld [vmem:[#allocation5 + $0x5f8] sm:$0xf0] }
 0x1e5   : > { %v2686_v43 = vadd.f32 %v2685_v13, %v2657_v61  ;;  %2887 = vmatmul.bf16.gmra.mxu0 %v13654_v32  ;;  %v13825_v62 = vpack.c.bf16 %v3230_v63, %v3226_v11  ;;  %v2687_v23 = vpop.f32.mrf.mxu1  ;;  %v9784_v61 = vor.u32 %v11998_v14, %v9781_v6  ;;  %v12026_v13 = vld [vmem:[#allocation5 + $0x6cc] sm:$0xf]  ;;  %v9893_v58 = vld [vmem:[#allocation5 + $0x6d8] sm:$0xf0] }
 0x1e6   : > { %v2743_v15 = vpop.f32.mrf.mxu3  ;;  %3101 = vmatpush.bf16.msrb.mxu0 %v9656_v60  ;;  %v11962_v11 = vld [vmem:[#allocation5 + $0x4cc] sm:$0xf]  ;;  %v9896_v63 = vor.u32 %v12026_v13, %v9893_v58  ;;  %v10021_v5 = vld [vmem:[#allocation5 + $0x7d8] sm:$0xf0] }
 0x1e7   : > { %v2715_v12 = vadd.f32 %v2714_v42, %v2686_v43  ;;  %3130 = vmatpush.bf16.msrb.mxu1 %v9784_v61  ;;  %v9640_v43 = vor.u32 %v11962_v11, %v9637_v8  ;;  %v10024_v21 = vor.u32 %v12058_v10, %v10021_v5  ;;  %v12022_v6 = vld [vmem:[#allocation5 + $0x6ac] sm:$0xf]  ;;  %v9621_v13 = vld [vmem:[#allocation5 + $0x4b8] sm:$0xf0] }
 0x1e8   : > { %3160 = vmatpush.bf16.msrb.mxu2 %v9896_v63  ;;  %v12054_v58 = vld [vmem:[#allocation5 + $0x7ac] sm:$0xf]  ;;  %v10005_v11 = vld [vmem:[#allocation5 + $0x7b8] sm:$0xf0] }
 0x1e9   : > { %v2744_v22 = vadd.f32 %v2743_v15, %v2715_v12  ;;  %3189 = vmatpush.bf16.msrb.mxu3 %v10024_v21  ;;  %v11994_v12 = vld [vmem:[#allocation5 + $0x5cc] sm:$0xf]  ;;  %v9765_v15 = vld [vmem:[#allocation5 + $0x5d8] sm:$0xf0] }
 0x1ea   : > { %v2658_v41 = vpop.f32.mrf.mxu0  ;;  %3102 = vmatpush.bf16.msrb.mxu0 %v9640_v43 }
 0x1eb   : > { %v2659_v52 = vadd.f32 %v2658_v41, %v13795_v40 }
 0x1ec   : > { %v2716_v40 = vpop.f32.mrf.mxu2 }
 0x1ed   : > { %v2688_v31 = vadd.f32 %v2687_v23, %v2659_v52  ;;  %v2690_v60 = vpop.f32.mrf.mxu1  ;;  %v9768_v52 = vor.u32 %v11994_v12, %v9765_v15  ;;  %v3234_v23 = vmax.f32 %v2744_v22, 0.0  ;;  %v10008_v22 = vor.u32 %v12054_v58, %v10005_v11  ;;  %v12018_v12 = vld [vmem:[#allocation5 + $0x68c] sm:$0xf]  ;;  %v9861_v15 = vld [vmem:[#allocation5 + $0x698] sm:$0xf0] }
 0x1ee   : > { %v2745_v55 = vpop.f32.mrf.mxu3 }
 0x1ef   : > { %v2717_v59 = vadd.f32 %v2716_v40, %v2688_v31  ;;  %3131 = vmatpush.bf16.msrb.mxu1 %v9768_v52  ;;  %v9877_v31 = vld [vmem:[#allocation5 + $0x6b8] sm:$0xf0]  ;;  %3190 = vmatpush.bf16.msrb.mxu3 %v10008_v22  ;;  %v11954_v52 = vld [vmem:[#allocation5 + $0x48c] sm:$0xf] }
 0x1f0   : > { %2921 = vmatmul.bf16.gmra.mxu1 %v13676_v26  ;;  %v9880_v61 = vor.u32 %v12022_v6, %v9877_v31  ;;  %v12050_v6 = vld [vmem:[#allocation5 + $0x78c] sm:$0xf] }
 0x1f1   : > { %v2746_v7 = vadd.f32 %v2745_v55, %v2717_v59  ;;  %2950 = vmatmul.bf16.gmra.mxu2 %v13678_v27 }
 0x1f2   : > { %v2661_v4 = vpop.f32.mrf.mxu0  ;;  %3161 = vmatpush.bf16.msrb.mxu2 %v9880_v61 }
 0x1f3   : > { %v2662_v42 = vadd.f32 %v2661_v4, %v13802_v24  ;;  %v3238_v14 = vmax.f32 %v2746_v7, 0.0  ;;  %2979 = vmatmul.bf16.gmra.mxu3 %v13680_v28  ;;  %v11958_v24 = vld [vmem:[#allocation5 + $0x4ac] sm:$0xf] }
 0x1f4   : > { %v2719_v8 = vpop.f32.mrf.mxu2  ;;  %v9624_v10 = vor.u32 %v11958_v24, %v9621_v13  ;;  %v11990_v4 = vld [vmem:[#allocation5 + $0x5ac] sm:$0xf]  ;;  %v9989_v24 = vld [vmem:[#allocation5 + $0x798] sm:$0xf0] }
 0x1f5   : > { %v2691_v41 = vadd.f32 %v2690_v60, %v2662_v42  ;;  %2892 = vmatmul.bf16.gmra.mxu0 %v13674_v25  ;;  %v13833_v63 = vpack.c.bf16 %v3238_v14, %v3234_v23  ;;  %v2692_v59 = vpop.f32.mrf.mxu1  ;;  %v9749_v42 = vld [vmem:[#allocation5 + $0x5b8] sm:$0xf0]  ;;  %v9864_v23 = vor.u32 %v12018_v12, %v9861_v15  ;;  %v9992_v61 = vor.u32 %v12050_v6, %v9989_v24  ;;  %v11950_v12 = vld [vmem:[#allocation5 + $0x46c] sm:$0xf] }
 0x1f6   : > { %v2748_v5 = vpop.f32.mrf.mxu3  ;;  %3103 = vmatpush.bf16.msrb.mxu0 %v9624_v10  ;;  %v9752_v7 = vor.u32 %v11990_v4, %v9749_v42  ;;  %v9605_v14 = vld [vmem:[#allocation5 + $0x498] sm:$0xf0] }
 0x1f7   : > { %v2720_v43 = vadd.f32 %v2719_v8, %v2691_v41  ;;  %v13836_v41 = vld [vmem:[#allocation7] sm:$0xf]  ;;  %3162 = vmatpush.bf16.msrb.mxu2 %v9864_v23  ;;  %3191 = vmatpush.bf16.msrb.mxu3 %v9992_v61  ;;  %v12046_v23 = vld [vmem:[#allocation5 + $0x76c] sm:$0xf] }
 0x1f8   : > { %v13839_v31 = vperm.slane %v13836_v41, 2  ;;  %3132 = vmatpush.bf16.msrb.mxu1 %v9752_v7  ;;  %v9845_v7 = vld [vmem:[#allocation5 + $0x678] sm:$0xf0] }
 0x1f9   : > { %v2749_v55 = vadd.f32 %v2748_v5, %v2720_v43  ;;  %v11986_v5 = vld [vmem:[#allocation5 + $0x58c] sm:$0xf] }
 0x1fa   : > { %v2663_v21 = vpop.f32.mrf.mxu0 }
 0x1fb   : > { %v2664_v40 = vadd.f32 %v2663_v21, %v13805_v29  ;;  %v9608_v29 = vor.u32 %v11954_v52, %v9605_v14  ;;  %v9733_v21 = vld [vmem:[#allocation5 + $0x598] sm:$0xf0]  ;;  %v3242_v4 = vmax.f32 %v2749_v55, 0.0 }
 0x1fc   : > { %v2721_v13 = vpop.f32.mrf.mxu2  ;;  %v9589_v52 = vld [vmem:[#allocation5 + $0x478] sm:$0xf0] }
 0x1fd   : > { %v2693_v60 = vadd.f32 %v2692_v59, %v2664_v40  ;;  %3104 = vmatpush.bf16.msrb.mxu0 %v9608_v29  ;;  %v2791_v22 = vpop.f32.mrf.mxu1  ;;  %v9736_v59 = vor.u32 %v11986_v5, %v9733_v21  ;;  %v9973_v14 = vld [vmem:[#allocation5 + $0x778] sm:$0xf0]  ;;  %v9592_v29 = vor.u32 %v11950_v12, %v9589_v52  ;;  %v11946_v5 = vld [vmem:[#allocation5 + $0x44c] sm:$0xf] }
 0x1fe   : > { %v2750_v11 = vpop.f32.mrf.mxu3  ;;  %v9976_v55 = vor.u32 %v12046_v23, %v9973_v14 }
 0x1ff   : > { %v2722_v58 = vadd.f32 %v2721_v13, %v2693_v60  ;;  %3133 = vmatpush.bf16.msrb.mxu1 %v9736_v59  ;;  %v12014_v60 = vld [vmem:[#allocation5 + $0x66c] sm:$0xf]  ;;  %v9573_v59 = vld [vmem:[#allocation5 + $0x458] sm:$0xf0] }
 0x200   : > { %3022 = vmatmul.bf16.vlgmr.msra.gmra.mxu1 %v13536_v53  ;;  %v9848_v15 = vor.u32 %v12014_v60, %v9845_v7  ;;  %3192 = vmatpush.bf16.msrb.mxu3 %v9976_v55  ;;  %v9701_v55 = vld [vmem:[#allocation5 + $0x558] sm:$0xf0] }
 0x201   : > { %v2751_v43 = vadd.f32 %v2750_v11, %v2722_v58  ;;  %3051 = vmatmul.bf16.vlgmr.msra.gmra.mxu2 %v13538_v54  ;;  %3105 = vmatpush.bf16.msrb.mxu0 %v9592_v29  ;;  %v11982_v58 = vld [vmem:[#allocation5 + $0x56c] sm:$0xf]  ;;  %v9717_v11 = vld [vmem:[#allocation5 + $0x578] sm:$0xf0] }
 0x202   : > { %v2762_v8 = vpop.f32.mrf.mxu0  ;;  %3163 = vmatpush.bf16.msrb.mxu2 %v9848_v15  ;;  %v11978_v29 = vld [vmem:[#allocation5 + $0x54c] sm:$0xf] }
 0x203   : > { %v2763_v10 = vadd.f32 %v2762_v8, %v13839_v31  ;;  %v3246_v42 = vmax.f32 %v2751_v43, 0.0  ;;  %3080 = vmatmul.bf16.vlgmr.msra.gmra.mxu3 %v13540_v57  ;;  %v9829_v43 = vld [vmem:[#allocation5 + $0x658] sm:$0xf0] }
 0x205   : > { %v2792_v40 = vadd.f32 %v2791_v22, %v2763_v10  ;;  %2993 = vmatmul.bf16.vlgmr.msra.gmra.mxu0 %v13534_v48  ;;  %v13846_v6 = vpack.c.bf16 %v3246_v42, %v3242_v4  ;;  %v2820_v48 = vpop.f32.mrf.mxu2  ;;  %v2793_v57 = vpop.f32.mrf.mxu1  ;;  %v9720_v10 = vor.u32 %v11982_v58, %v9717_v11  ;;  %v12010_v22 = vld [vmem:[#allocation5 + $0x64c] sm:$0xf]  ;;  %v9957_v4 = vld [vmem:[#allocation5 + $0x758] sm:$0xf0]  ;;  %v9576_v42 = vor.u32 %v11946_v5, %v9573_v59 }
 0x206   : > { %v2849_v61 = vpop.f32.mrf.mxu3  ;;  %v9832_v21 = vor.u32 %v12010_v22, %v9829_v43  ;;  %v9557_v11 = vld [vmem:[#allocation5 + $0x438] sm:$0xf0] }
 0x207   : > { %v2821_v24 = vadd.f32 %v2820_v48, %v2792_v40  ;;  %v12042_v40 = vld [vmem:[#allocation5 + $0x74c] sm:$0xf]  ;;  %3134 = vmatpush.bf16.msrb.mxu1 %v9720_v10  ;;  %3106 = vmatpush.bf16.msrb.mxu0 %v9576_v42  ;;  %v9941_v10 = vld [vmem:[#allocation5 + $0x738] sm:$0xf0] }
 0x208   : > { %v9960_v60 = vor.u32 %v12042_v40, %v9957_v4  ;;  %3164 = vmatpush.bf16.msrb.mxu2 %v9832_v21  ;;  %v11974_v40 = vld [vmem:[#allocation5 + $0x52c] sm:$0xf]  ;;  %v9685_v4 = vld [vmem:[#allocation5 + $0x538] sm:$0xf0] }
 0x209   : > { %v13849_v13 = vadd.f32 %v2849_v61, %v2821_v24  ;;  %v9704_v61 = vor.u32 %v11978_v29, %v9701_v55  ;;  %v9925_v29 = vld [vmem:[#allocation5 + $0x718] sm:$0xf0] }
 0x20a   : > { %v2764_v53 = vpop.f32.mrf.mxu0  ;;  %3193 = vmatpush.bf16.msrb.mxu3 %v9960_v60  ;;  %v9688_v60 = vor.u32 %v11974_v40, %v9685_v4 }
 0x20b   : > { %v2765_v54 = vadd.f32 %v2764_v53, %v13839_v31  ;;  %3135 = vmatpush.bf16.msrb.mxu1 %v9704_v61  ;;  %v12006_v53 = vld [vmem:[#allocation5 + $0x62c] sm:$0xf] }
 0x20d   : > { %v2794_v8 = vadd.f32 %v2793_v57, %v2765_v54  ;;  %v2822_v7 = vpop.f32.mrf.mxu2  ;;  %v2796_v14 = vpop.f32.mrf.mxu1  ;;  %v9813_v54 = vld [vmem:[#allocation5 + $0x638] sm:$0xf0]  ;;  %v11942_v57 = vld [vmem:[#allocation5 + $0x42c] sm:$0xf] }
 0x20e   : > { %v2851_v15 = vpop.f32.mrf.mxu3  ;;  %v9816_v58 = vor.u32 %v12006_v53, %v9813_v54  ;;  %v9560_v43 = vor.u32 %v11942_v57, %v9557_v11  ;;  %v11970_v53 = vld [vmem:[#allocation5 + $0x50c] sm:$0xf]  ;;  %v9669_v54 = vld [vmem:[#allocation5 + $0x518] sm:$0xf0] }
 0x20f   : > { %v2823_v12 = vadd.f32 %v2822_v7, %v2794_v8  ;;  %v12038_v8 = vld [vmem:[#allocation5 + $0x72c] sm:$0xf]  ;;  %3136 = vmatpush.bf16.msrb.mxu1 %v9688_v60 }
 0x210   : > { %3027 = vmatmul.bf16.gmra.mxu1 %v13556_v50  ;;  %v9944_v5 = vor.u32 %v12038_v8, %v9941_v10  ;;  %3165 = vmatpush.bf16.msrb.mxu2 %v9816_v58  ;;  %v12002_v7 = vld [vmem:[#allocation5 + $0x60c] sm:$0xf]  ;;  %v9672_v8 = vor.u32 %v11970_v53, %v9669_v54 }
 0x211   : > { %v13852_v48 = vadd.f32 %v2851_v15, %v2823_v12  ;;  %3056 = vmatmul.bf16.gmra.mxu2 %v13558_v51  ;;  %3107 = vmatpush.bf16.msrb.mxu0 %v9560_v43  ;;  %v9797_v12 = vld [vmem:[#allocation5 + $0x618] sm:$0xf0]  ;;  %v11938_v15 = vld [vmem:[#allocation5 + $0x40c] sm:$0xf] }
 0x212   : > { %v2767_v52 = vpop.f32.mrf.mxu0  ;;  %3194 = vmatpush.bf16.msrb.mxu3 %v9944_v5 }
 0x213   : > { %v2768_v23 = vadd.f32 %v2767_v52, %v13839_v31  ;;  %3085 = vmatmul.bf16.gmra.mxu3 %v13560_v56  ;;  %v9800_v52 = vor.u32 %v12002_v7, %v9797_v12  ;;  %3137 = vmatpush.bf16.msrb.mxu1 %v9672_v8  ;;  %v10163_v8 = vld [vmem:[#allocation8 + $0xf0] sm:$0xf] }
 0x215   : > { %v2797_v24 = vadd.f32 %v2796_v14, %v2768_v23  ;;  %2998 = vmatmul.bf16.gmra.mxu0 %v13554_v44  ;;  %v2825_v22 = vpop.f32.mrf.mxu2  ;;  %v2798_v51 = vpop.f32.mrf.mxu1  ;;  %v9541_v23 = vld [vmem:[#allocation5 + $0x418] sm:$0xf0]  ;;  %v12034_v14 = vld [vmem:[#allocation5 + $0x70c] sm:$0xf]  ;;  %3166 = vmatpush.bf16.msrb.mxu2 %v9800_v52 }
 0x216   : > { %v2854_v44 = vpop.f32.mrf.mxu3  ;;  %v9544_v55 = vor.u32 %v11938_v15, %v9541_v23 }
 0x217   : > { %v2826_v21 = vadd.f32 %v2825_v22, %v2797_v24  ;;  %v9928_v24 = vor.u32 %v12034_v14, %v9925_v29 }
 0x218   : > { %3108 = vmatpush.bf16.msrb.mxu0 %v9544_v55 }
 0x219   : > { %v13859_v56 = vadd.f32 %v2854_v44, %v2826_v21  ;;  %3195 = vmatpush.bf16.msrb.mxu3 %v9928_v24 }
 0x21a   : > { %v2769_v59 = vpop.f32.mrf.mxu0 }
 0x21b   : > { %v2770_v50 = vadd.f32 %v2769_v59, %v13839_v31 }
 0x21d   : > { %v2799_v42 = vadd.f32 %v2798_v51, %v2770_v50  ;;  %v2827_v61 = vpop.f32.mrf.mxu2  ;;  %v2801_v22 = vpop.f32.mrf.mxu1 }
 0x21e   : > { %v2856_v58 = vpop.f32.mrf.mxu3 }
 0x21f   : > { %v2828_v57 = vadd.f32 %v2827_v61, %v2799_v42 }
 0x220   : > { %3032 = vmatmul.bf16.gmra.mxu1 %v13576_v37 }
 0x221   : > { %v13862_v43 = vadd.f32 %v2856_v58, %v2828_v57  ;;  %3061 = vmatmul.bf16.gmra.mxu2 %v13578_v38 }
 0x222   : > { %v2772_v11 = vpop.f32.mrf.mxu0 }
 0x223   : > { %v2773_v10 = vadd.f32 %v2772_v11, %v13839_v31  ;;  %3090 = vmatmul.bf16.gmra.mxu3 %v13580_v39 }
 0x225   : > { %v2802_v5 = vadd.f32 %v2801_v22, %v2773_v10  ;;  %3003 = vmatmul.bf16.gmra.mxu0 %v13574_v36  ;;  %v2830_v21 = vpop.f32.mrf.mxu2  ;;  %v2803_v40 = vpop.f32.mrf.mxu1  ;;  %v12096_v10 = vld [vmem:[#allocation8 + $0xf4] sm:$0xf0]  ;;  %v10227_v22 = vld [vmem:[#allocation8 + $0x170] sm:$0xf] }
 0x226   : > { %v2859_v59 = vpop.f32.mrf.mxu3 }
 0x227   : > { %v2831_v44 = vadd.f32 %v2830_v21, %v2802_v5  ;;  %v12112_v5 = vld [vmem:[#allocation8 + $0x174] sm:$0xf0]  ;;  %v10164_v21 = vor.u32 %v12096_v10, %v10163_v8 }
 0x229   : > { %v13869_v4 = vadd.f32 %v2859_v59, %v2831_v44  ;;  %v10228_v44 = vor.u32 %v12112_v5, %v10227_v22  ;;  %3684 = vmatpush.bf16.msra.mxu1 %v10164_v21  ;;  %v12090_v5 = vld [vmem:[#allocation8 + $0xc4] sm:$0xf0]  ;;  %v10203_v21 = vld [vmem:[#allocation8 + $0x140] sm:$0xf] }
 0x22a   : > { %v2774_v50 = vpop.f32.mrf.mxu0 }
 0x22b   : > { %v2775_v51 = vadd.f32 %v2774_v50, %v13839_v31  ;;  %3713 = vmatpush.bf16.msra.mxu2 %v10228_v44  ;;  %v12106_v44 = vld [vmem:[#allocation8 + $0x144] sm:$0xf0] }
 0x22d   : > { %v2804_v42 = vadd.f32 %v2803_v40, %v2775_v51  ;;  %v2832_v60 = vpop.f32.mrf.mxu2  ;;  %v2806_v15 = vpop.f32.mrf.mxu1  ;;  %v12078_v51 = vld [vmem:[#allocation8 + $0x64] sm:$0xf0]  ;;  %v10155_v40 = vld [vmem:[#allocation8 + $0xe0] sm:$0xf] }
 0x22e   : > { %v2861_v12 = vpop.f32.mrf.mxu3 }
 0x22f   : > { %v2833_v7 = vadd.f32 %v2832_v60, %v2804_v42  ;;  %v12094_v60 = vld [vmem:[#allocation8 + $0xe4] sm:$0xf0] }
 0x230   : > { %3037 = vmatmul.bf16.gmra.mxu1 %v13596_v17 }
 0x231   : > { %v13872_v38 = vadd.f32 %v2861_v12, %v2833_v7  ;;  %3066 = vmatmul.bf16.gmra.mxu2 %v13598_v18  ;;  %v10099_v18 = vld [vmem:[#allocation8 + $0x70] sm:$0xf]  ;;  %v10219_v7 = vld [vmem:[#allocation8 + $0x160] sm:$0xf]  ;;  %v12110_v12 = vld [vmem:[#allocation8 + $0x164] sm:$0xf0] }
 0x232   : > { %v2777_v36 = vpop.f32.mrf.mxu0 }
 0x233   : > { %v2778_v37 = vadd.f32 %v2777_v36, %v13839_v31  ;;  %3095 = vmatmul.bf16.gmra.mxu3 %v13600_v19  ;;  %v12080_v19 = vld [vmem:[#allocation8 + $0x74] sm:$0xf0] }
 0x235   : > { %v2807_v39 = vadd.f32 %v2806_v15, %v2778_v37  ;;  %3008 = vmatmul.bf16.gmra.mxu0 %v13594_v16  ;;  %v2835_v52 = vpop.f32.mrf.mxu2  ;;  %v2808_v24 = vpop.f32.mrf.mxu1  ;;  %v10156_v37 = vor.u32 %v12094_v60, %v10155_v40  ;;  %v10067_v40 = vld [vmem:[#allocation8 + $0x30] sm:$0xf] }
 0x236   : > { %v2864_v14 = vpop.f32.mrf.mxu3 }
 0x237   : > { %v2836_v23 = vadd.f32 %v2835_v52, %v2807_v39  ;;  %3685 = vmatpush.bf16.msra.mxu1 %v10156_v37  ;;  %v12076_v52 = vld [vmem:[#allocation8 + $0x54] sm:$0xf0] }
 0x239   : > { %v13879_v61 = vadd.f32 %v2864_v14, %v2836_v23  ;;  %v10147_v23 = vld [vmem:[#allocation8 + $0xd0] sm:$0xf] }
 0x23a   : > { %v2779_v29 = vpop.f32.mrf.mxu0 }
 0x23b   : > { %v2780_v55 = vadd.f32 %v2779_v29, %v13839_v31  ;;  %v10100_v31 = vor.u32 %v12080_v19, %v10099_v18  ;;  %v12074_v18 = vld [vmem:[#allocation8 + $0x44] sm:$0xf0] }
 0x23d   : > { %v2809_v53 = vadd.f32 %v2808_v24, %v2780_v55  ;;  %v2837_v54 = vpop.f32.mrf.mxu2  ;;  %v2907_v11 = vpop.f32.mrf.mxu1  ;;  %3655 = vmatpush.bf16.msra.mxu0 %v10100_v31  ;;  %v12092_v55 = vld [vmem:[#allocation8 + $0xd4] sm:$0xf0]  ;;  %v10211_v24 = vld [vmem:[#allocation8 + $0x150] sm:$0xf] }
 0x23e   : > { %v2866_v58 = vpop.f32.mrf.mxu3 }
 0x23f   : > { %v2838_v57 = vadd.f32 %v2837_v54, %v2809_v53  ;;  %v10148_v53 = vor.u32 %v12092_v55, %v10147_v23  ;;  %v12108_v54 = vld [vmem:[#allocation8 + $0x154] sm:$0xf0]  ;;  %v10123_v23 = vld [vmem:[#allocation8 + $0xa0] sm:$0xf]  ;;  %v12086_v55 = vld [vmem:[#allocation8 + $0xa4] sm:$0xf0] }
 0x240   : > { %3138 = vmatmul.bf16.vlgmr.msrb.gmra.mxu1 %v13616_v1 }
 0x241   : > { %v13881_v17 = vadd.f32 %v2866_v58, %v2838_v57  ;;  %3167 = vmatmul.bf16.vlgmr.msrb.gmra.mxu2 %v13618_v2  ;;  %v10212_v58 = vor.u32 %v12108_v54, %v10211_v24  ;;  %3686 = vmatpush.bf16.msra.mxu1 %v10148_v53  ;;  %v10187_v24 = vld [vmem:[#allocation8 + $0x120] sm:$0xf]  ;;  %v10124_v54 = vor.u32 %v12086_v55, %v10123_v23 }
 0x242   : > { %v2878_v16 = vpop.f32.mrf.mxu0 }
 0x243   : > { %3196 = vmatmul.bf16.vlgmr.msrb.gmra.mxu3 %v13620_v3  ;;  %v2879_v59 = vadd.f32 %v2878_v16, %v13849_v13  ;;  %v10220_v3 = vor.u32 %v12110_v12, %v10219_v7  ;;  %v10083_v13 = vld [vmem:[#allocation8 + $0x50] sm:$0xf]  ;;  %v12088_v12 = vld [vmem:[#allocation8 + $0xb4] sm:$0xf0] }
 0x244   : > { %v10084_v29 = vor.u32 %v12076_v52, %v10083_v13  ;;  %v10059_v52 = vld [vmem:[#allocation8 + $0x20] sm:$0xf] }
 0x245   : > { %3109 = vmatmul.bf16.vlgmr.msrb.gmra.mxu0 %v13614_v0  ;;  %v2936_v50 = vpop.f32.mrf.mxu2  ;;  %v10091_v0 = vld [vmem:[#allocation8 + $0x60] sm:$0xf]  ;;  %v2909_v36 = vpop.f32.mrf.mxu1  ;;  %v2908_v15 = vadd.f32 %v2907_v11, %v2879_v59  ;;  %3714 = vmatpush.bf16.msra.mxu2 %v10220_v3  ;;  %v12104_v3 = vld [vmem:[#allocation8 + $0x134] sm:$0xf0] }
 0x246   : > { %v2965_v1 = vpop.f32.mrf.mxu3  ;;  %v10092_v2 = vor.u32 %v12078_v51, %v10091_v0  ;;  %v10075_v11 = vld [vmem:[#allocation8 + $0x40] sm:$0xf]  ;;  %v10204_v0 = vor.u32 %v12106_v44, %v10203_v21 }
 0x247   : > { %v2937_v14 = vadd.f32 %v2936_v50, %v2908_v15  ;;  %v10076_v22 = vor.u32 %v12074_v18, %v10075_v11  ;;  %v12068_v11 = vld [vmem:[#allocation8 + $0x14] sm:$0xf0]  ;;  %v10115_v18 = vld [vmem:[#allocation8 + $0x90] sm:$0xf] }
 0x248   : > { %3656 = vmatpush.bf16.msra.mxu0 %v10092_v2  ;;  %v10131_v2 = vld [vmem:[#allocation8 + $0xb0] sm:$0xf] }
 0x249   : > { %v2966_v19 = vadd.f32 %v2965_v1, %v2937_v14  ;;  %3715 = vmatpush.bf16.msra.mxu2 %v10212_v58  ;;  %v10132_v37 = vor.u32 %v12088_v12, %v10131_v2 }
 0x24a   : > { %v2880_v42 = vpop.f32.mrf.mxu0 }
 0x24b   : > { %v2881_v39 = vadd.f32 %v2880_v42, %v13852_v48  ;;  %v10139_v48 = vld [vmem:[#allocation8 + $0xc0] sm:$0xf]  ;;  %v12072_v42 = vld [vmem:[#allocation8 + $0x34] sm:$0xf0]  ;;  %v3219_v1 = vmax.f32 %v2966_v19, 0.0 }
 0x24c   : > { %3657 = vmatpush.bf16.msra.mxu0 %v10084_v29  ;;  %v10140_v50 = vor.u32 %v12090_v5, %v10139_v48  ;;  %v10068_v7 = vor.u32 %v12072_v42, %v10067_v40 }
 0x24d   : > { %v2910_v57 = vadd.f32 %v2909_v36, %v2881_v39  ;;  %v2938_v16 = vpop.f32.mrf.mxu2  ;;  %v2912_v59 = vpop.f32.mrf.mxu1  ;;  %v10195_v36 = vld [vmem:[#allocation8 + $0x130] sm:$0xf]  ;;  %3716 = vmatpush.bf16.msra.mxu2 %v10204_v0 }
 0x24e   : > { %v2967_v31 = vpop.f32.mrf.mxu3  ;;  %3687 = vmatpush.bf16.msra.mxu1 %v10140_v50  ;;  %v10196_v39 = vor.u32 %v12104_v3, %v10195_v36  ;;  %v12066_v50 = vld [vmem:[#allocation8 + $0x4] sm:$0xf0] }
 0x24f   : > { %v2939_v8 = vadd.f32 %v2938_v16, %v2910_v57  ;;  %v10051_v16 = vld [vmem:[#allocation8 + $0x10] sm:$0xf] }
 0x250   : > { %3658 = vmatpush.bf16.msra.mxu0 %v10076_v22  ;;  %3143 = vmatmul.bf16.gmra.mxu1 %v13636_v46  ;;  %v12070_v46 = vld [vmem:[#allocation8 + $0x24] sm:$0xf0]  ;;  %v10052_v19 = vor.u32 %v12068_v11, %v10051_v16  ;;  %v12100_v22 = vld [vmem:[#allocation8 + $0x114] sm:$0xf0] }
 0x251   : > { %v2968_v51 = vadd.f32 %v2967_v31, %v2939_v8  ;;  %3172 = vmatmul.bf16.gmra.mxu2 %v13638_v47  ;;  %v10060_v29 = vor.u32 %v12070_v46, %v10059_v52  ;;  %v12084_v8 = vld [vmem:[#allocation8 + $0x94] sm:$0xf0]  ;;  %v10179_v31 = vld [vmem:[#allocation8 + $0x110] sm:$0xf] }
 0x252   : > { %v2883_v10 = vpop.f32.mrf.mxu0  ;;  %3688 = vmatpush.bf16.msra.mxu1 %v10132_v37  ;;  %3717 = vmatpush.bf16.msra.mxu2 %v10196_v39  ;;  %v10180_v21 = vor.u32 %v12100_v22, %v10179_v31  ;;  %v12128_v31 = vld [vmem:[#allocation8 + $0x1f4] sm:$0xf0] }
 0x253   : > { %v3223_v60 = vmax.f32 %v2968_v51, 0.0  ;;  %3201 = vmatmul.bf16.gmra.mxu3 %v13640_v49  ;;  %v12102_v49 = vld [vmem:[#allocation8 + $0x124] sm:$0xf0] }
 0x254   : > { %3659 = vmatpush.bf16.msra.mxu0 %v10068_v7  ;;  %v10188_v57 = vor.u32 %v12102_v49, %v10187_v24  ;;  %v12098_v7 = vld [vmem:[#allocation8 + $0x104] sm:$0xf0] }
 0x255   : > { %3114 = vmatmul.bf16.gmra.mxu0 %v13634_v45  ;;  %v13893_v15 = vpack.c.bf16 %v3223_v60, %v3219_v1  ;;  %v2884_v45 = vadd.f32 %v2883_v10, %v13859_v56  ;;  %v2941_v13 = vpop.f32.mrf.mxu2  ;;  %v2914_v53 = vpop.f32.mrf.mxu1  ;;  %v10116_v10 = vor.u32 %v12084_v8, %v10115_v18  ;;  %v12082_v1 = vld [vmem:[#allocation8 + $0x84] sm:$0xf0]  ;;  %v10171_v60 = vld [vmem:[#allocation8 + $0x100] sm:$0xf] }
 0x256   : > { %v2970_v47 = vpop.f32.mrf.mxu3  ;;  %3689 = vmatpush.bf16.msra.mxu1 %v10124_v54  ;;  %3718 = vmatpush.bf16.msra.mxu2 %v10188_v57  ;;  %v10172_v37 = vor.u32 %v12098_v7, %v10171_v60 }
 0x257   : > { %v2913_v58 = vadd.f32 %v2912_v59, %v2884_v45  ;;  %v10043_v59 = vld [vmem:[#allocation8] sm:$0xf] }
 0x258   : > { %3660 = vmatpush.bf16.msra.mxu0 %v10060_v29  ;;  %v10044_v2 = vor.u32 %v12066_v50, %v10043_v59 }
 0x259   : > { %v2942_v48 = vadd.f32 %v2941_v13, %v2913_v58 }
 0x25a   : > { %v2885_v14 = vpop.f32.mrf.mxu0  ;;  %3690 = vmatpush.bf16.msra.mxu1 %v10116_v10  ;;  %3719 = vmatpush.bf16.msra.mxu2 %v10180_v21 }
 0x25b   : > { %v2886_v56 = vadd.f32 %v2885_v14, %v13862_v43  ;;  %v10107_v43 = vld [vmem:[#allocation8 + $0x80] sm:$0xf]  ;;  %v2971_v0 = vadd.f32 %v2970_v47, %v2942_v48 }
 0x25c   : > { %3661 = vmatpush.bf16.msra.mxu0 %v10052_v19  ;;  %v10108_v36 = vor.u32 %v12082_v1, %v10107_v43 }
 0x25d   : > { %v2915_v5 = vadd.f32 %v2914_v53, %v2886_v56  ;;  %v2943_v44 = vpop.f32.mrf.mxu2  ;;  %v2917_v12 = vpop.f32.mrf.mxu1  ;;  %v3227_v45 = vmax.f32 %v2971_v0, 0.0  ;;  %v10283_v0 = vld [vmem:[#allocation8 + $0x1e0] sm:$0xf] }
 0x25e   : > { %v2972_v40 = vpop.f32.mrf.mxu3  ;;  %3691 = vmatpush.bf16.msra.mxu1 %v10108_v36  ;;  %3720 = vmatpush.bf16.msra.mxu2 %v10172_v37  ;;  %v12111_v36 = vld [vmem:[#allocation8 + $0x174] sm:$0xf] }
 0x25f   : > { %v2944_v51 = vadd.f32 %v2943_v44, %v2915_v5 }
 0x260   : > { %3662 = vmatpush.bf16.msra.mxu0 %v10044_v2  ;;  %3148 = vmatmul.bf16.gmra.mxu1 %v13656_v33  ;;  %v12095_v2 = vld [vmem:[#allocation8 + $0xf4] sm:$0xf] }
 0x261   : > { %v2973_v3 = vadd.f32 %v2972_v40, %v2944_v51  ;;  %3177 = vmatmul.bf16.gmra.mxu2 %v13658_v34 }
 0x262   : > { %v2888_v42 = vpop.f32.mrf.mxu0 }
 0x263   : > { %v3231_v39 = vmax.f32 %v2973_v3, 0.0  ;;  %3206 = vmatmul.bf16.gmra.mxu3 %v13660_v35  ;;  %v2889_v13 = vadd.f32 %v2888_v42, %v13869_v4  ;;  %v12079_v42 = vld [vmem:[#allocation8 + $0x74] sm:$0xf]  ;;  %v10229_v3 = vld [vmem:[#allocation8 + $0x178] sm:$0xf0] }
 0x265   : > { %3119 = vmatmul.bf16.gmra.mxu0 %v13654_v32  ;;  %v13902_v52 = vpack.c.bf16 %v3231_v39, %v3227_v45  ;;  %v2946_v46 = vpop.f32.mrf.mxu2  ;;  %v2919_v14 = vpop.f32.mrf.mxu1  ;;  %v2918_v29 = vadd.f32 %v2917_v12, %v2889_v13  ;;  %v10165_v12 = vld [vmem:[#allocation8 + $0xf8] sm:$0xf0]  ;;  %v10232_v45 = vor.u32 %v12111_v36, %v10229_v3 }
 0x266   : > { %v2975_v23 = vpop.f32.mrf.mxu3  ;;  %v10168_v37 = vor.u32 %v12095_v2, %v10165_v12  ;;  %v10133_v36 = vld [vmem:[#allocation8 + $0xb8] sm:$0xf0] }
 0x267   : > { %v2947_v55 = vadd.f32 %v2946_v46, %v2918_v29  ;;  %v12077_v46 = vld [vmem:[#allocation8 + $0x64] sm:$0xf]  ;;  %3829 = vmatpush.bf16.msrb.mxu2 %v10232_v45  ;;  %v10197_v3 = vld [vmem:[#allocation8 + $0x138] sm:$0xf0] }
 0x268   : > { %3800 = vmatpush.bf16.msrb.mxu1 %v10168_v37  ;;  %v12103_v37 = vld [vmem:[#allocation8 + $0x134] sm:$0xf] }
 0x269   : > { %v2976_v33 = vadd.f32 %v2975_v23, %v2947_v55  ;;  %v10093_v23 = vld [vmem:[#allocation8 + $0x68] sm:$0xf0] }
 0x26a   : > { %v2890_v47 = vpop.f32.mrf.mxu0  ;;  %v10096_v55 = vor.u32 %v12077_v46, %v10093_v23  ;;  %v12069_v23 = vld [vmem:[#allocation8 + $0x24] sm:$0xf] }
 0x26b   : > { %v2891_v32 = vadd.f32 %v2890_v47, %v13872_v38  ;;  %v3235_v4 = vmax.f32 %v2976_v33, 0.0  ;;  %v12093_v47 = vld [vmem:[#allocation8 + $0xe4] sm:$0xf]  ;;  %v10221_v33 = vld [vmem:[#allocation8 + $0x168] sm:$0xf0] }
 0x26d   : > { %v2920_v24 = vadd.f32 %v2919_v14, %v2891_v32  ;;  %v2948_v49 = vpop.f32.mrf.mxu2  ;;  %v2922_v35 = vpop.f32.mrf.mxu1 }
 0x26e   : > { %v2977_v34 = vpop.f32.mrf.mxu3 }
 0x26f   : > { %v2949_v53 = vadd.f32 %v2948_v49, %v2920_v24  ;;  %v10157_v24 = vld [vmem:[#allocation8 + $0xe8] sm:$0xf0]  ;;  %v12109_v49 = vld [vmem:[#allocation8 + $0x164] sm:$0xf] }
 0x270   : > { %3153 = vmatmul.bf16.gmra.mxu1 %v13676_v26  ;;  %v13914_v26 = vperm.slane %v13836_v41, 3  ;;  %v10101_v41 = vld [vmem:[#allocation8 + $0x78] sm:$0xf0] }
 0x271   : > { %v2978_v57 = vadd.f32 %v2977_v34, %v2949_v53  ;;  %3182 = vmatmul.bf16.gmra.mxu2 %v13678_v27  ;;  %v10104_v7 = vor.u32 %v12079_v42, %v10101_v41  ;;  %v10160_v34 = vor.u32 %v12093_v47, %v10157_v24  ;;  %v12122_v42 = vld [vmem:[#allocation8 + $0x1c4] sm:$0xf0]  ;;  %v10061_v47 = vld [vmem:[#allocation8 + $0x28] sm:$0xf0] }
 0x272   : > { %v2893_v54 = vpop.f32.mrf.mxu0 }
 0x273   : > { %v3239_v58 = vmax.f32 %v2978_v57, 0.0  ;;  %3211 = vmatmul.bf16.gmra.mxu3 %v13680_v28  ;;  %v2894_v38 = vadd.f32 %v2893_v54, %v13879_v61  ;;  %3771 = vmatpush.bf16.msrb.mxu0 %v10104_v7  ;;  %v10224_v54 = vor.u32 %v12109_v49, %v10221_v33  ;;  %v10275_v57 = vld [vmem:[#allocation8 + $0x1d0] sm:$0xf]  ;;  %v12087_v7 = vld [vmem:[#allocation8 + $0xb4] sm:$0xf]  ;;  %v10064_v49 = vor.u32 %v12069_v23, %v10061_v47 }
 0x274   : > { %3801 = vmatpush.bf16.msrb.mxu1 %v10160_v34  ;;  %v10136_v45 = vor.u32 %v12087_v7, %v10133_v36  ;;  %v10125_v33 = vld [vmem:[#allocation8 + $0xa8] sm:$0xf0]  ;;  %v12101_v34 = vld [vmem:[#allocation8 + $0x124] sm:$0xf]  ;;  %v10251_v7 = vld [vmem:[#allocation8 + $0x1a0] sm:$0xf] }
 0x275   : > { %3124 = vmatmul.bf16.gmra.mxu0 %v13674_v25  ;;  %v13910_v56 = vpack.c.bf16 %v3239_v58, %v3235_v4  ;;  %v2951_v16 = vpop.f32.mrf.mxu2  ;;  %v2924_v48 = vpop.f32.mrf.mxu1  ;;  %v2923_v19 = vadd.f32 %v2922_v35, %v2894_v38  ;;  %v10291_v25 = vld [vmem:[#allocation8 + $0x1f0] sm:$0xf]  ;;  %v12124_v4 = vld [vmem:[#allocation8 + $0x1d4] sm:$0xf0]  ;;  %v12075_v38 = vld [vmem:[#allocation8 + $0x54] sm:$0xf]  ;;  %3830 = vmatpush.bf16.msrb.mxu2 %v10224_v54 }
 0x276   : > { %v2980_v11 = vpop.f32.mrf.mxu3  ;;  %v10292_v10 = vor.u32 %v12128_v31, %v10291_v25  ;;  %v10276_v58 = vor.u32 %v12124_v4, %v10275_v57  ;;  %v10189_v54 = vld [vmem:[#allocation8 + $0x128] sm:$0xf0] }
 0x277   : > { %v2952_v22 = vadd.f32 %v2951_v16, %v2923_v19  ;;  %3772 = vmatpush.bf16.msrb.mxu0 %v10096_v55  ;;  %v10085_v16 = vld [vmem:[#allocation8 + $0x58] sm:$0xf0]  ;;  %v12107_v19 = vld [vmem:[#allocation8 + $0x154] sm:$0xf] }
 0x278   : > { %3742 = vmatpush.bf16.msra.mxu3 %v10292_v10 }
 0x279   : > { %v2981_v61 = vadd.f32 %v2980_v11, %v2952_v22  ;;  %v12091_v11 = vld [vmem:[#allocation8 + $0xd4] sm:$0xf]  ;;  %v12073_v22 = vld [vmem:[#allocation8 + $0x44] sm:$0xf] }
 0x27a   : > { %v2895_v18 = vpop.f32.mrf.mxu0 }
 0x27b   : > { %v2896_v8 = vadd.f32 %v2895_v18, %v13881_v17  ;;  %v12126_v17 = vld [vmem:[#allocation8 + $0x1e4] sm:$0xf0]  ;;  %v3243_v1 = vmax.f32 %v2981_v61, 0.0  ;;  %v10088_v18 = vor.u32 %v12075_v38, %v10085_v16  ;;  %v10259_v16 = vld [vmem:[#allocation8 + $0x1b0] sm:$0xf] }
 0x27c   : > { %v10284_v40 = vor.u32 %v12126_v17, %v10283_v0 }
 0x27d   : > { %v2925_v27 = vadd.f32 %v2924_v48, %v2896_v8  ;;  %v2953_v28 = vpop.f32.mrf.mxu2  ;;  %v3023_v50 = vpop.f32.mrf.mxu1  ;;  %v10149_v48 = vld [vmem:[#allocation8 + $0xd8] sm:$0xf0]  ;;  %3773 = vmatpush.bf16.msrb.mxu0 %v10088_v18 }
 0x27e   : > { %v2982_v21 = vpop.f32.mrf.mxu3  ;;  %3743 = vmatpush.bf16.msra.mxu3 %v10284_v40  ;;  %v10213_v8 = vld [vmem:[#allocation8 + $0x158] sm:$0xf0]  ;;  %v10152_v25 = vor.u32 %v12091_v11, %v10149_v48  ;;  %v10267_v40 = vld [vmem:[#allocation8 + $0x1c0] sm:$0xf]  ;;  %v12120_v11 = vld [vmem:[#allocation8 + $0x1b4] sm:$0xf0] }
 0x27f   : > { %v2954_v5 = vadd.f32 %v2953_v28, %v2925_v27  ;;  %v10216_v31 = vor.u32 %v12107_v19, %v10213_v8  ;;  %v10077_v27 = vld [vmem:[#allocation8 + $0x48] sm:$0xf0]  ;;  %v12089_v28 = vld [vmem:[#allocation8 + $0xc4] sm:$0xf]  ;;  %v10268_v2 = vor.u32 %v12122_v42, %v10267_v40  ;;  %v10260_v18 = vor.u32 %v12120_v11, %v10259_v16  ;;  %v12067_v48 = vld [vmem:[#allocation8 + $0x14] sm:$0xf] }
 0x280   : > { %3692 = vmatmul.bf16.vlgmr.msra.gmra.mxu1 %v13817_v30  ;;  %v10053_v19 = vld [vmem:[#allocation8 + $0x18] sm:$0xf0]  ;;  %v12083_v8 = vld [vmem:[#allocation8 + $0x94] sm:$0xf]  ;;  %v12097_v40 = vld [vmem:[#allocation8 + $0x104] sm:$0xf] }
 0x281   : > { %v2983_v43 = vadd.f32 %v2982_v21, %v2954_v5  ;;  %3721 = vmatmul.bf16.vlgmr.msra.gmra.mxu2 %v13893_v15  ;;  %3802 = vmatpush.bf16.msrb.mxu1 %v10152_v25  ;;  %v10080_v21 = vor.u32 %v12073_v22, %v10077_v27  ;;  %v10056_v25 = vor.u32 %v12067_v48, %v10053_v19  ;;  %v12099_v22 = vld [vmem:[#allocation8 + $0x114] sm:$0xf]  ;;  %v10181_v27 = vld [vmem:[#allocation8 + $0x118] sm:$0xf0]  ;;  %v10173_v42 = vld [vmem:[#allocation8 + $0x108] sm:$0xf0] }
 0x282   : > { %v2994_v44 = vpop.f32.mrf.mxu0  ;;  %3744 = vmatpush.bf16.msra.mxu3 %v10276_v58  ;;  %3831 = vmatpush.bf16.msrb.mxu2 %v10216_v31  ;;  %v10192_v58 = vor.u32 %v12101_v34, %v10189_v54  ;;  %v10117_v31 = vld [vmem:[#allocation8 + $0x98] sm:$0xf0]  ;;  %v15448_v11 = vld [vmem:[#allocation29_spill] sm:$0xff]  ;;  %v12114_v48 = vld [vmem:[#allocation8 + $0x184] sm:$0xf0] }
 0x283   : > { %v2995_v59 = vadd.f32 %v2994_v44, %v13914_v26  ;;  %v3247_v60 = vmax.f32 %v2983_v43, 0.0  ;;  %v10141_v44 = vld [vmem:[#allocation8 + $0xc8] sm:$0xf0]  ;;  %3774 = vmatpush.bf16.msrb.mxu0 %v10080_v21 }
 0x284   : > { %v10144_v17 = vor.u32 %v12089_v28, %v10141_v44  ;;  %v10120_v28 = vor.u32 %v12083_v8, %v10117_v31  ;;  %v12065_v44 = vld [vmem:[#allocation8 + $0x4] sm:$0xf] }
 0x285   : > { %v3024_v51 = vadd.f32 %v3023_v50, %v2995_v59  ;;  %3663 = vmatmul.bf16.vlgmr.msra.gmra.mxu0 %v13742_v20  ;;  %v13920_v39 = vpack.c.bf16 %v3247_v60, %v3243_v1  ;;  %v3052_v13 = vpop.f32.mrf.mxu2  ;;  %v13924_v53 = vpop.f32.mrf.mxu1  ;;  %v12105_v59 = vld [vmem:[#allocation8 + $0x144] sm:$0xf]  ;;  %v10205_v50 = vld [vmem:[#allocation8 + $0x148] sm:$0xf0]  ;;  %v12071_v1 = vld [vmem:[#allocation8 + $0x34] sm:$0xf] }
 0x286   : > { %v3081_v29 = vpop.f32.mrf.mxu3  ;;  %3803 = vmatpush.bf16.msrb.mxu1 %v10144_v17  ;;  %v10069_v60 = vld [vmem:[#allocation8 + $0x38] sm:$0xf0]  ;;  %3745 = vmatpush.bf16.msra.mxu3 %v10268_v2 }
 0x287   : > { %v3053_v14 = vadd.f32 %v3052_v13, %v3024_v51  ;;  %v10208_v51 = vor.u32 %v12105_v59, %v10205_v50  ;;  %v10072_v12 = vor.u32 %v12071_v1, %v10069_v60  ;;  %v10200_v13 = vor.u32 %v12103_v37, %v10197_v3  ;;  %v10045_v59 = vld [vmem:[#allocation8 + $0x8] sm:$0xf0]  ;;  %v12081_v50 = vld [vmem:[#allocation8 + $0x84] sm:$0xf] }
 0x288   : > { %v10048_v17 = vor.u32 %v12065_v44, %v10045_v59  ;;  %v10176_v60 = vor.u32 %v12097_v40, %v10173_v42  ;;  %v15447_v37 = vld [vmem:[#allocation28_spill] sm:$0xff]  ;;  %v10293_v44 = vld [vmem:[#allocation8 + $0x1f8] sm:$0xf0] }
 0x289   : > { %v13926_v35 = vadd.f32 %v3081_v29, %v3053_v14  ;;  %3832 = vmatpush.bf16.msrb.mxu2 %v10208_v51  ;;  %3775 = vmatpush.bf16.msrb.mxu0 %v10072_v12  ;;  %v12085_v14 = vld [vmem:[#allocation8 + $0xa4] sm:$0xf]  ;;  %v10109_v51 = vld [vmem:[#allocation8 + $0x88] sm:$0xf0]  ;;  %v12118_v12 = vld [vmem:[#allocation8 + $0x1a4] sm:$0xf0] }
 0x28a   : > { %v13922_v32 = vpop.f32.mrf.mxu0  ;;  %3804 = vmatpush.bf16.msrb.mxu1 %v10136_v45  ;;  %v10128_v4 = vor.u32 %v12085_v14, %v10125_v33  ;;  %3746 = vmatpush.bf16.msra.mxu3 %v10260_v18  ;;  %v10112_v1 = vor.u32 %v12081_v50, %v10109_v51  ;;  %v10252_v3 = vor.u32 %v12118_v12, %v10251_v7  ;;  %v10235_v18 = vld [vmem:[#allocation8 + $0x180] sm:$0xf] }
 0x28b   : > { %v10236_v19 = vor.u32 %v12114_v48, %v10235_v18  ;;  %v2997_v50 = vadd.f32 %v13922_v32, %v13914_v26 }
 0x28d   : > { %v13928_v10 = vpop.f32.mrf.mxu2  ;;  %v3028_v0 = vpop.f32.mrf.mxu1  ;;  %3833 = vmatpush.bf16.msrb.mxu2 %v10200_v13  ;;  %3776 = vmatpush.bf16.msrb.mxu0 %v10064_v49  ;;  %v3026_v42 = vadd.f32 %v13924_v53, %v2997_v50 }
 0x28e   : > { %v13930_v61 = vpop.f32.mrf.mxu3  ;;  %3805 = vmatpush.bf16.msrb.mxu1 %v10128_v4  ;;  %3747 = vmatpush.bf16.msra.mxu3 %v10252_v3 }
 0x290   : > { %3697 = vmatmul.bf16.gmra.mxu1 %v13825_v62 }
 0x291   : > { %3726 = vmatmul.bf16.gmra.mxu2 %v13902_v52  ;;  %3777 = vmatpush.bf16.msrb.mxu0 %v10056_v25 }
 0x292   : > { %v2999_v5 = vpop.f32.mrf.mxu0  ;;  %3834 = vmatpush.bf16.msrb.mxu2 %v10192_v58  ;;  %3806 = vmatpush.bf16.msrb.mxu1 %v10120_v28 }
 0x293   : > { %v3000_v43 = vadd.f32 %v2999_v5, %v13914_v26  ;;  %v10184_v5 = vor.u32 %v12099_v22, %v10181_v27 }
 0x295   : > { %v3029_v41 = vadd.f32 %v3028_v0, %v3000_v43  ;;  %3668 = vmatmul.bf16.gmra.mxu0 %v13750_v9  ;;  %v3057_v46 = vpop.f32.mrf.mxu2  ;;  %v13938_v57 = vpop.f32.mrf.mxu1 }
 0x296   : > { %v3086_v55 = vpop.f32.mrf.mxu3  ;;  %3835 = vmatpush.bf16.msrb.mxu2 %v10184_v5  ;;  %3778 = vmatpush.bf16.msrb.mxu0 %v10048_v17  ;;  %v12127_v5 = vld [vmem:[#allocation8 + $0x1f4] sm:$0xf] }
 0x297   : > { %v3058_v29 = vadd.f32 %v3057_v46, %v3029_v41  ;;  %3807 = vmatpush.bf16.msrb.mxu1 %v10112_v1  ;;  %v10296_v59 = vor.u32 %v12127_v5, %v10293_v44  ;;  %v10285_v1 = vld [vmem:[#allocation8 + $0x1e8] sm:$0xf0] }
 0x299   : > { %v13940_v38 = vadd.f32 %v3086_v55, %v3058_v29  ;;  %v10243_v29 = vld [vmem:[#allocation8 + $0x190] sm:$0xf]  ;;  %v12116_v55 = vld [vmem:[#allocation8 + $0x194] sm:$0xf0] }
 0x29a   : > { %v13936_v24 = vpop.f32.mrf.mxu0  ;;  %3836 = vmatpush.bf16.msrb.mxu2 %v10176_v60  ;;  %v10244_v49 = vor.u32 %v12116_v55, %v10243_v29 }
 0x29c   : > { %3748 = vmatpush.bf16.msra.mxu3 %v10244_v49 }
 0x29d   : > { %v13942_v21 = vpop.f32.mrf.mxu2  ;;  %v3033_v2 = vpop.f32.mrf.mxu1 }
 0x29e   : > { %v13944_v43 = vpop.f32.mrf.mxu3 }
 0x2a0   : > { %3702 = vmatmul.bf16.gmra.mxu1 %v13833_v63  ;;  %3749 = vmatpush.bf16.msra.mxu3 %v10236_v19 }
 0x2a1   : > { %3731 = vmatmul.bf16.gmra.mxu2 %v13910_v56 }
 0x2a2   : > { %v3004_v0 = vpop.f32.mrf.mxu0 }
 0x2a3   : > { %v3005_v41 = vadd.f32 %v3004_v0, %v13914_v26 }
 0x2a4   : > { %3858 = vmatpush.bf16.msrb.mxu3 %v10296_v59 }
 0x2a5   : > { %v3034_v36 = vadd.f32 %v3033_v2, %v3005_v41  ;;  %3673 = vmatmul.bf16.gmra.mxu0 %v15447_v37  ;;  %v3062_v45 = vpop.f32.mrf.mxu2  ;;  %v13952_v47 = vpop.f32.mrf.mxu1  ;;  %v3055_v41 = vadd.f32 %v13928_v10, %v3026_v42  ;;  %v12125_v2 = vld [vmem:[#allocation8 + $0x1e4] sm:$0xf]  ;;  %v12123_v10 = vld [vmem:[#allocation8 + $0x1d4] sm:$0xf] }
 0x2a6   : > { %v3091_v46 = vpop.f32.mrf.mxu3  ;;  %v10288_v32 = vor.u32 %v12125_v2, %v10285_v1 }
 0x2a7   : > { %v3063_v13 = vadd.f32 %v3062_v45, %v3034_v36  ;;  %v3084_v12 = vadd.f32 %v13930_v61, %v3055_v41 }
 0x2a8   : > { %3859 = vmatpush.bf16.msrb.mxu3 %v10288_v32 }
 0x2a9   : > { %v13954_v14 = vadd.f32 %v3091_v46, %v3063_v13  ;;  %v10277_v46 = vld [vmem:[#allocation8 + $0x1d8] sm:$0xf0] }
 0x2aa   : > { %v13950_v23 = vpop.f32.mrf.mxu0 }
 0x2ab   : > { %v3007_v41 = vadd.f32 %v13950_v23, %v13914_v26  ;;  %v12117_v23 = vld [vmem:[#allocation8 + $0x1a4] sm:$0xf] }
 0x2ad   : > { %v13956_v33 = vpop.f32.mrf.mxu2  ;;  %v3038_v58 = vpop.f32.mrf.mxu1 }
 0x2ae   : > { %v13958_v34 = vpop.f32.mrf.mxu3 }
 0x2b0   : > { %3707 = vmatmul.bf16.gmra.mxu1 %v13846_v6 }
 0x2b1   : > { %3736 = vmatmul.bf16.gmra.mxu2 %v13920_v39 }
 0x2b2   : > { %v3009_v54 = vpop.f32.mrf.mxu0 }
 0x2b3   : > { %v3010_v4 = vadd.f32 %v3009_v54, %v13914_v26 }
 0x2b5   : > { %v3039_v16 = vadd.f32 %v3038_v58, %v3010_v4  ;;  %3678 = vmatmul.bf16.gmra.mxu0 %v15448_v11  ;;  %v3067_v8 = vpop.f32.mrf.mxu2  ;;  %v13966_v27 = vpop.f32.mrf.mxu1 }
 0x2b6   : > { %v3096_v31 = vpop.f32.mrf.mxu3 }
 0x2b7   : > { %v3068_v25 = vadd.f32 %v3067_v8, %v3039_v16  ;;  %v10269_v8 = vld [vmem:[#allocation8 + $0x1c8] sm:$0xf0] }
 0x2b9   : > { %v13968_v28 = vadd.f32 %v3096_v31, %v3068_v25 }
 0x2ba   : > { %v13964_v22 = vpop.f32.mrf.mxu0 }
 0x2bd   : > { %v13972_v0 = vpop.f32.mrf.mxu2  ;;  %v3139_v40 = vpop.f32.mrf.mxu1 }
 0x2be   : > { %v13974_v17 = vpop.f32.mrf.mxu3 }
 0x2c0   : > { %3808 = vmatmul.bf16.vlgmr.msrb.gmra.mxu1 %v13817_v30  ;;  %v10280_v30 = vor.u32 %v12123_v10, %v10277_v46 }
 0x2c1   : > { %3837 = vmatmul.bf16.vlgmr.msrb.gmra.mxu2 %v13893_v15  ;;  %v3002_v15 = vadd.f32 %v13936_v24, %v13914_v26  ;;  %v12121_v24 = vld [vmem:[#allocation8 + $0x1c4] sm:$0xf] }
 0x2c2   : > { %v3110_v51 = vpop.f32.mrf.mxu0  ;;  %3860 = vmatpush.bf16.msrb.mxu3 %v10280_v30  ;;  %v10272_v25 = vor.u32 %v12121_v24, %v10269_v8 }
 0x2c3   : > { %v3111_v60 = vadd.f32 %v3110_v51, %v13926_v35  ;;  %v3031_v58 = vadd.f32 %v13938_v57, %v3002_v15 }
 0x2c5   : > { %3779 = vmatmul.bf16.vlgmr.msrb.gmra.mxu0 %v13742_v20  ;;  %v3168_v7 = vpop.f32.mrf.mxu2  ;;  %v3141_v53 = vpop.f32.mrf.mxu1  ;;  %v3140_v45 = vadd.f32 %v3139_v40, %v3111_v60  ;;  %v3060_v18 = vadd.f32 %v13942_v21, %v3031_v58  ;;  %v10261_v40 = vld [vmem:[#allocation8 + $0x1b8] sm:$0xf0] }
 0x2c6   : > { %v3197_v36 = vpop.f32.mrf.mxu3  ;;  %3861 = vmatpush.bf16.msrb.mxu3 %v10272_v25 }
 0x2c7   : > { %v3169_v13 = vadd.f32 %v3168_v7, %v3140_v45  ;;  %v3089_v57 = vadd.f32 %v13944_v43, %v3060_v18  ;;  %v12113_v18 = vld [vmem:[#allocation8 + $0x184] sm:$0xf] }
 0x2c9   : > { %v3198_v35 = vadd.f32 %v3197_v36, %v3169_v13 }
 0x2ca   : > { %v3112_v3 = vpop.f32.mrf.mxu0 }
 0x2cb   : > { %v3113_v20 = vadd.f32 %v3112_v3, %v3084_v12  ;;  %v3220_v48 = vmax.f32 %v3198_v35, 0.0  ;;  %v3036_v12 = vadd.f32 %v13952_v47, %v3007_v41 }
 0x2cd   : > { %v3142_v29 = vadd.f32 %v3141_v53, %v3113_v20  ;;  %v3170_v55 = vpop.f32.mrf.mxu2  ;;  %v3144_v61 = vpop.f32.mrf.mxu1  ;;  %v3065_v3 = vadd.f32 %v13956_v33, %v3036_v12  ;;  %v10253_v20 = vld [vmem:[#allocation8 + $0x1a8] sm:$0xf0]  ;;  %v12115_v33 = vld [vmem:[#allocation8 + $0x194] sm:$0xf] }
 0x2ce   : > { %v3199_v54 = vpop.f32.mrf.mxu3  ;;  %v10256_v13 = vor.u32 %v12117_v23, %v10253_v20  ;;  %v12142_v12 = vld [vmem:[#allocation11 + $0x64] sm:$0xf0]  ;;  %v10339_v23 = vld [vmem:[#allocation11 + $0x50] sm:$0xf]  ;;  %v12140_v20 = vld [vmem:[#allocation11 + $0x54] sm:$0xf0] }
 0x2cf   : > { %v3171_v49 = vadd.f32 %v3170_v55, %v3142_v29  ;;  %v3094_v47 = vadd.f32 %v13958_v34, %v3065_v3  ;;  %v10245_v29 = vld [vmem:[#allocation8 + $0x198] sm:$0xf0] }
 0x2d0   : > { %3813 = vmatmul.bf16.gmra.mxu1 %v13825_v62  ;;  %v10248_v35 = vor.u32 %v12115_v33, %v10245_v29  ;;  %v10333_v29 = vld [vmem:[#allocation11 + $0x48] sm:$0xf0] }
 0x2d1   : > { %v3200_v16 = vadd.f32 %v3199_v54, %v3171_v49  ;;  %3842 = vmatmul.bf16.gmra.mxu2 %v13902_v52  ;;  %v12119_v52 = vld [vmem:[#allocation8 + $0x1b4] sm:$0xf]  ;;  %v3012_v54 = vadd.f32 %v13964_v22, %v13914_v26 }
 0x2d2   : > { %v3115_v4 = vpop.f32.mrf.mxu0  ;;  %v10264_v42 = vor.u32 %v12119_v52, %v10261_v40 }
 0x2d3   : > { %v3224_v19 = vmax.f32 %v3200_v16, 0.0  ;;  %v3116_v5 = vadd.f32 %v3115_v4, %v13940_v38  ;;  %v3041_v24 = vadd.f32 %v13966_v27, %v3012_v54  ;;  %v12135_v54 = vld [vmem:[#allocation11 + $0x34] sm:$0xf] }
 0x2d4   : > { %3862 = vmatpush.bf16.msrb.mxu3 %v10264_v42 }
 0x2d5   : > { %3784 = vmatmul.bf16.gmra.mxu0 %v13750_v9  ;;  %v13990_v31 = vpack.c.bf16 %v3224_v19, %v3220_v48  ;;  %v3173_v44 = vpop.f32.mrf.mxu2  ;;  %v3146_v59 = vpop.f32.mrf.mxu1  ;;  %v3145_v50 = vadd.f32 %v3144_v61, %v3116_v5  ;;  %v10237_v48 = vld [vmem:[#allocation8 + $0x188] sm:$0xf0]  ;;  %v3070_v5 = vadd.f32 %v13972_v0, %v3041_v24 }
 0x2d6   : > { %v3202_v9 = vpop.f32.mrf.mxu3  ;;  %v10240_v19 = vor.u32 %v12113_v18, %v10237_v48  ;;  %v12133_v18 = vld [vmem:[#allocation11 + $0x24] sm:$0xf] }
 0x2d7   : > { %3750 = vmatmul.bf16.vlgmr.msra.gmra.mxu3 %v13990_v31  ;;  %v3174_v51 = vadd.f32 %v3173_v44, %v3145_v50 }
 0x2d8   : > { %3863 = vmatpush.bf16.msrb.mxu3 %v10256_v13  ;;  %v10340_v13 = vor.u32 %v12140_v20, %v10339_v23  ;;  %v12155_v20 = vld [vmem:[#allocation11 + $0xd4] sm:$0xf] }
 0x2d9   : > { %v3203_v1 = vadd.f32 %v3202_v9, %v3174_v51 }
 0x2da   : > { %v3117_v21 = vpop.f32.mrf.mxu0 }
 0x2db   : > { %v3118_v62 = vadd.f32 %v3117_v21, %v3089_v57  ;;  %v3228_v53 = vmax.f32 %v3203_v1, 0.0  ;;  %v3099_v21 = vadd.f32 %v13974_v17, %v3070_v5  ;;  %v10355_v17 = vld [vmem:[#allocation11 + $0x70] sm:$0xf]  ;;  %v12143_v1 = vld [vmem:[#allocation11 + $0x74] sm:$0xf] }
 0x2dc   : > { %3864 = vmatpush.bf16.msrb.mxu3 %v10248_v35  ;;  %v12131_v5 = vld [vmem:[#allocation11 + $0x14] sm:$0xf] }
 0x2dd   : > { %v3147_v2 = vadd.f32 %v3146_v59, %v3118_v62  ;;  %v3175_v38 = vpop.f32.mrf.mxu2  ;;  %v3149_v7 = vpop.f32.mrf.mxu1 }
 0x2de   : > { %v3204_v43 = vpop.f32.mrf.mxu3 }
 0x2df   : > { %v3176_v32 = vadd.f32 %v3175_v38, %v3147_v2  ;;  %v12144_v38 = vld [vmem:[#allocation11 + $0x74] sm:$0xf0] }
 0x2e0   : > { %3818 = vmatmul.bf16.gmra.mxu1 %v13833_v63  ;;  %3865 = vmatpush.bf16.msrb.mxu3 %v10240_v19  ;;  %v10317_v19 = vld [vmem:[#allocation11 + $0x28] sm:$0xf0] }
 0x2e1   : > { %v3205_v36 = vadd.f32 %v3204_v43, %v3176_v32  ;;  %3847 = vmatmul.bf16.gmra.mxu2 %v13910_v56  ;;  %v10356_v32 = vor.u32 %v12144_v38, %v10355_v17  ;;  %v10357_v43 = vld [vmem:[#allocation11 + $0x78] sm:$0xf0]  ;;  %v10320_v24 = vor.u32 %v12133_v18, %v10317_v19  ;;  %v10395_v18 = vld [vmem:[#allocation11 + $0xc0] sm:$0xf] }
 0x2e2   : > { %v3120_v60 = vpop.f32.mrf.mxu0  ;;  %v14028_v38 = vld [vmem:[#allocation10] sm:$0x3] }
 0x2e3   : > { %v3232_v45 = vmax.f32 %v3205_v36, 0.0  ;;  %v3121_v10 = vadd.f32 %v3120_v60, %v13954_v14  ;;  %v10360_v60 = vor.u32 %v12143_v1, %v10357_v43  ;;  %4109 = vmatpush.bf16.msra.mxu0 %v10356_v32  ;;  %v12141_v36 = vld [vmem:[#allocation11 + $0x64] sm:$0xf]  ;;  %v10413_v32 = vld [vmem:[#allocation11 + $0xe8] sm:$0xf0]  ;;  %v14031_v43 = vperm.slane %v14028_v38, 0 }
 0x2e4   : > { %v12157_v1 = vld [vmem:[#allocation11 + $0xe4] sm:$0xf] }
 0x2e5   : > { %3789 = vmatmul.bf16.gmra.mxu0 %v15447_v37  ;;  %v3256_v46 = vpack.c.bf16 %v3232_v45, %v3228_v53  ;;  %v3178_v30 = vpop.f32.mrf.mxu2  ;;  %v3151_v55 = vpop.f32.mrf.mxu1  ;;  %v3150_v63 = vadd.f32 %v3149_v7, %v3121_v10  ;;  %4167 = vmatpush.bf16.msra.mxu2 %v10360_v60  ;;  %v10347_v7 = vld [vmem:[#allocation11 + $0x60] sm:$0xf]  ;;  %v10349_v53 = vld [vmem:[#allocation11 + $0x68] sm:$0xf0]  ;;  %v10341_v10 = vld [vmem:[#allocation11 + $0x58] sm:$0xf0] }
 0x2e6   : > { %v3207_v15 = vpop.f32.mrf.mxu3  ;;  %v10348_v3 = vor.u32 %v12142_v12, %v10347_v7  ;;  %v10352_v45 = vor.u32 %v12141_v36, %v10349_v53  ;;  %v10411_v7 = vld [vmem:[#allocation11 + $0xe0] sm:$0xf]  ;;  %v12158_v12 = vld [vmem:[#allocation11 + $0xe4] sm:$0xf0] }
 0x2e7   : > { %3755 = vmatmul.bf16.gmra.mxu3 %v3256_v46  ;;  %v3179_v56 = vadd.f32 %v3178_v30, %v3150_v63 }
 0x2e8   : > { %4110 = vmatpush.bf16.msra.mxu0 %v10348_v3  ;;  %v10412_v3 = vor.u32 %v12158_v12, %v10411_v7  ;;  %v12150_v7 = vld [vmem:[#allocation11 + $0xa4] sm:$0xf0] }
 0x2e9   : > { %v3208_v61 = vadd.f32 %v3207_v15, %v3179_v56  ;;  %4168 = vmatpush.bf16.msra.mxu2 %v10352_v45  ;;  %v12138_v15 = vld [vmem:[#allocation11 + $0x44] sm:$0xf0]  ;;  %v12136_v56 = vld [vmem:[#allocation11 + $0x34] sm:$0xf0] }
 0x2ea   : > { %v3122_v37 = vpop.f32.mrf.mxu0 }
 0x2eb   : > { %v3123_v49 = vadd.f32 %v3122_v37, %v3094_v47  ;;  %v3236_v44 = vmax.f32 %v3208_v61, 0.0  ;;  %v10331_v47 = vld [vmem:[#allocation11 + $0x40] sm:$0xf]  ;;  %v12137_v37 = vld [vmem:[#allocation11 + $0x44] sm:$0xf] }
 0x2ec   : > { %4111 = vmatpush.bf16.msra.mxu0 %v10340_v13  ;;  %v10332_v33 = vor.u32 %v12138_v15, %v10331_v47  ;;  %v10403_v47 = vld [vmem:[#allocation11 + $0xd0] sm:$0xf]  ;;  %v12156_v15 = vld [vmem:[#allocation11 + $0xd4] sm:$0xf0] }
 0x2ed   : > { %v3152_v14 = vadd.f32 %v3151_v55, %v3123_v49  ;;  %v3180_v4 = vpop.f32.mrf.mxu2  ;;  %v3154_v25 = vpop.f32.mrf.mxu1  ;;  %v10336_v55 = vor.u32 %v12137_v37, %v10333_v29  ;;  %v10323_v49 = vld [vmem:[#allocation11 + $0x30] sm:$0xf]  ;;  %v10404_v37 = vor.u32 %v12156_v15, %v10403_v47  ;;  %v12148_v47 = vld [vmem:[#allocation11 + $0x94] sm:$0xf0] }
 0x2ee   : > { %v3209_v16 = vpop.f32.mrf.mxu3 }
 0x2ef   : > { %v3181_v58 = vadd.f32 %v3180_v4, %v3152_v14  ;;  %v10324_v14 = vor.u32 %v12136_v56, %v10323_v49  ;;  %v10325_v4 = vld [vmem:[#allocation11 + $0x38] sm:$0xf0]  ;;  %v10397_v49 = vld [vmem:[#allocation11 + $0xc8] sm:$0xf0] }
 0x2f0   : > { %3823 = vmatmul.bf16.gmra.mxu1 %v13846_v6  ;;  %4112 = vmatpush.bf16.msra.mxu0 %v10332_v33  ;;  %v10328_v61 = vor.u32 %v12135_v54, %v10325_v4 }
 0x2f1   : > { %v3210_v8 = vadd.f32 %v3209_v16, %v3181_v58  ;;  %3852 = vmatmul.bf16.gmra.mxu2 %v13920_v39  ;;  %v10315_v16 = vld [vmem:[#allocation11 + $0x20] sm:$0xf] }
 0x2f2   : > { %v3125_v34 = vpop.f32.mrf.mxu0 }
 0x2f3   : > { %v3240_v26 = vmax.f32 %v3210_v8, 0.0  ;;  %v3126_v22 = vadd.f32 %v3125_v34, %v13968_v28  ;;  %v12134_v34 = vld [vmem:[#allocation11 + $0x24] sm:$0xf0]  ;;  %v10307_v8 = vld [vmem:[#allocation11 + $0x10] sm:$0xf] }
 0x2f4   : > { %4113 = vmatpush.bf16.msra.mxu0 %v10324_v14  ;;  %v10316_v48 = vor.u32 %v12134_v34, %v10315_v16 }
 0x2f5   : > { %3794 = vmatmul.bf16.gmra.mxu0 %v15448_v11  ;;  %v3260_v57 = vpack.c.bf16 %v3240_v26, %v3236_v44  ;;  %v3183_v9 = vpop.f32.mrf.mxu2  ;;  %v3155_v50 = vadd.f32 %v3154_v25, %v3126_v22  ;;  %v3156_v51 = vpop.f32.mrf.mxu1  ;;  %v12132_v25 = vld [vmem:[#allocation11 + $0x14] sm:$0xf0]  ;;  %v10309_v22 = vld [vmem:[#allocation11 + $0x18] sm:$0xf0] }
 0x2f6   : > { %v3212_v27 = vpop.f32.mrf.mxu3  ;;  %v10308_v26 = vor.u32 %v12132_v25, %v10307_v8  ;;  %v12151_v25 = vld [vmem:[#allocation11 + $0xb4] sm:$0xf] }
 0x2f7   : > { %3760 = vmatmul.bf16.gmra.mxu3 %v3260_v57  ;;  %v3184_v62 = vadd.f32 %v3183_v9, %v3155_v50  ;;  %v10312_v9 = vor.u32 %v12131_v5, %v10309_v22  ;;  %v10389_v5 = vld [vmem:[#allocation11 + $0xb8] sm:$0xf0] }
 0x2f8   : > { %4114 = vmatpush.bf16.msra.mxu0 %v10316_v48  ;;  %v12154_v48 = vld [vmem:[#allocation11 + $0xc4] sm:$0xf0]  ;;  %v10392_v22 = vor.u32 %v12151_v25, %v10389_v5 }
 0x2f9   : > { %v3213_v40 = vadd.f32 %v3212_v27, %v3184_v62  ;;  %v12130_v27 = vld [vmem:[#allocation11 + $0x4] sm:$0xf0] }
 0x2fa   : > { %v3127_v59 = vpop.f32.mrf.mxu0 }
 0x2fb   : > { %v3128_v11 = vadd.f32 %v3127_v59, %v3099_v21  ;;  %v3244_v39 = vmax.f32 %v3213_v40, 0.0  ;;  %v10299_v21 = vld [vmem:[#allocation11] sm:$0xf]  ;;  %v12129_v59 = vld [vmem:[#allocation11 + $0x4] sm:$0xf] }
 0x2fc   : > { %4115 = vmatpush.bf16.msra.mxu0 %v10308_v26  ;;  %v10300_v50 = vor.u32 %v12130_v27, %v10299_v21  ;;  %v10387_v21 = vld [vmem:[#allocation11 + $0xb0] sm:$0xf]  ;;  %v12152_v27 = vld [vmem:[#allocation11 + $0xb4] sm:$0xf0] }
 0x2fd   : > { %v3157_v0 = vadd.f32 %v3156_v51, %v3128_v11  ;;  %v3185_v52 = vpop.f32.mrf.mxu2  ;;  %v14019_v35 = vpop.f32.mrf.mxu1  ;;  %v10301_v11 = vld [vmem:[#allocation11 + $0x8] sm:$0xf0] }
 0x2fe   : > { %v3214_v6 = vpop.f32.mrf.mxu3  ;;  %v10304_v51 = vor.u32 %v12129_v59, %v10301_v11  ;;  %v12149_v11 = vld [vmem:[#allocation11 + $0xa4] sm:$0xf] }
 0x2ff   : > { %v3186_v42 = vadd.f32 %v3185_v52, %v3157_v0  ;;  %v12159_v0 = vld [vmem:[#allocation11 + $0xf4] sm:$0xf]  ;;  %v10421_v52 = vld [vmem:[#allocation11 + $0xf8] sm:$0xf0] }
 0x300   : > { %4116 = vmatpush.bf16.msra.mxu0 %v10300_v50  ;;  %v10388_v50 = vor.u32 %v12152_v27, %v10387_v21 }
 0x301   : > { %v3215_v41 = vadd.f32 %v3214_v6, %v3186_v42  ;;  %v10424_v42 = vor.u32 %v12159_v0, %v10421_v52 }
 0x303   : > { %v3248_v2 = vmax.f32 %v3215_v41, 0.0  ;;  %4196 = vmatpush.bf16.msra.mxu3 %v10424_v42  ;;  %v10419_v41 = vld [vmem:[#allocation11 + $0xf0] sm:$0xf] }
 0x305   : > { %v14013_v28 = vpack.c.bf16 %v3248_v2, %v3244_v39  ;;  %v14021_v63 = vpop.f32.mrf.mxu2  ;;  %v3695_v44 = vpop.f32.mrf.mxu1  ;;  %v12160_v39 = vld [vmem:[#allocation11 + $0xf4] sm:$0xf0] }
 0x306   : > { %v10420_v2 = vor.u32 %v12160_v39, %v10419_v41 }
 0x307   : > { %3765 = vmatmul.bf16.gmra.mxu3 %v14013_v28 }
 0x308   : > { %4138 = vmatpush.bf16.msra.mxu1 %v10420_v2 }
 0x30c   : > { %4139 = vmatpush.bf16.msra.mxu1 %v10412_v3 }
 0x30d   : > { %v14024_v40 = vpop.f32.mrf.mxu1 }
 0x310   : > { %4140 = vmatpush.bf16.msra.mxu1 %v10404_v37 }
 0x315   : > { %v3700_v60 = vpop.f32.mrf.mxu1 }
 0x317   : > { %3866 = vmatmul.bf16.vlgmr.msrb.gmra.mxu3 %v13990_v31  ;;  %v12139_v31 = vld [vmem:[#allocation11 + $0x54] sm:$0xf] }
 0x318   : > { %v10344_v30 = vor.u32 %v12139_v31, %v10341_v10  ;;  %v10405_v31 = vld [vmem:[#allocation11 + $0xd8] sm:$0xf0] }
 0x319   : > { %v10408_v10 = vor.u32 %v12155_v20, %v10405_v31 }
 0x31a   : > { %4169 = vmatpush.bf16.msra.mxu2 %v10344_v30 }
 0x31e   : > { %4170 = vmatpush.bf16.msra.mxu2 %v10336_v55  ;;  %v14040_v55 = vpop.f32.mrf.mxu1 }
 0x322   : > { %4171 = vmatpush.bf16.msra.mxu2 %v10328_v61 }
 0x326   : > { %4172 = vmatpush.bf16.msra.mxu2 %v10320_v24  ;;  %v3705_v8 = vpop.f32.mrf.mxu1 }
 0x327   : > { %3871 = vmatmul.bf16.gmra.mxu3 %v3256_v46  ;;  %v14017_v46 = vpop.f32.mrf.mxu0 }
 0x328   : > { %v3665_v53 = vadd.f32 %v14017_v46, %v14031_v43  ;;  %v12153_v46 = vld [vmem:[#allocation11 + $0xc4] sm:$0xf] }
 0x329   : > { %v10400_v54 = vor.u32 %v12153_v46, %v10397_v49 }
 0x32a   : > { %4173 = vmatpush.bf16.msra.mxu2 %v10312_v9  ;;  %v3694_v30 = vadd.f32 %v14019_v35, %v3665_v53 }
 0x32c   : > { %v3723_v33 = vadd.f32 %v14021_v63, %v3694_v30  ;;  %v10396_v63 = vor.u32 %v12154_v48, %v10395_v18  ;;  %v10371_v30 = vld [vmem:[#allocation11 + $0x90] sm:$0xf] }
 0x32d   : > { %v10372_v37 = vor.u32 %v12148_v47, %v10371_v30 }
 0x32e   : > { %4174 = vmatpush.bf16.msra.mxu2 %v10304_v51  ;;  %4141 = vmatpush.bf16.msra.mxu1 %v10396_v63  ;;  %v10381_v51 = vld [vmem:[#allocation11 + $0xa8] sm:$0xf0]  ;;  %v3708_v2 = vpop.f32.mrf.mxu1 }
 0x32f   : > { %v3666_v58 = vpop.f32.mrf.mxu0  ;;  %v10384_v52 = vor.u32 %v12149_v11, %v10381_v51  ;;  %v14056_v11 = vperm.slane %v14028_v38, 1 }
 0x330   : > { %v3667_v13 = vadd.f32 %v3666_v58, %v14031_v43 }
 0x332   : > { %v3696_v29 = vadd.f32 %v3695_v44, %v3667_v13  ;;  %4142 = vmatpush.bf16.msra.mxu1 %v10388_v50 }
 0x337   : > { %3876 = vmatmul.bf16.gmra.mxu3 %v3260_v57  ;;  %v3724_v57 = vpop.f32.mrf.mxu2  ;;  %v3669_v62 = vpop.f32.mrf.mxu0 }
 0x338   : > { %v3725_v14 = vadd.f32 %v3724_v57, %v3696_v29  ;;  %v3670_v24 = vadd.f32 %v3669_v62, %v14031_v43  ;;  %v10365_v29 = vld [vmem:[#allocation11 + $0x88] sm:$0xf0] }
 0x33a   : > { %v3699_v9 = vadd.f32 %v14024_v40, %v3670_v24 }
 0x33f   : > { %v14026_v6 = vpop.f32.mrf.mxu2  ;;  %v3671_v17 = vpop.f32.mrf.mxu0 }
 0x340   : > { %v3672_v57 = vadd.f32 %v3671_v17, %v14031_v43  ;;  %v3728_v62 = vadd.f32 %v14026_v6, %v3699_v9 }
 0x342   : > { %v3701_v0 = vadd.f32 %v3700_v60, %v3672_v57  ;;  %v12147_v60 = vld [vmem:[#allocation11 + $0x94] sm:$0xf] }
 0x347   : > { %3881 = vmatmul.bf16.gmra.mxu3 %v14013_v28  ;;  %v10416_v28 = vor.u32 %v12157_v1, %v10413_v32  ;;  %v3729_v36 = vpop.f32.mrf.mxu2  ;;  %v14035_v45 = vpop.f32.mrf.mxu0 }
 0x348   : > { %v3730_v42 = vadd.f32 %v3729_v36, %v3701_v0  ;;  %v3675_v6 = vadd.f32 %v14035_v45, %v14031_v43  ;;  %v10373_v36 = vld [vmem:[#allocation11 + $0x98] sm:$0xf0] }
 0x349   : > { %4197 = vmatpush.bf16.msra.mxu3 %v10416_v28  ;;  %v10379_v28 = vld [vmem:[#allocation11 + $0xa0] sm:$0xf]  ;;  %v10376_v20 = vor.u32 %v12147_v60, %v10373_v36 }
 0x34a   : > { %v10380_v12 = vor.u32 %v12150_v7, %v10379_v28  ;;  %v3704_v13 = vadd.f32 %v14040_v55, %v3675_v6  ;;  %v12146_v55 = vld [vmem:[#allocation11 + $0x84] sm:$0xf0] }
 0x34c   : > { %4143 = vmatpush.bf16.msra.mxu1 %v10380_v12 }
 0x34d   : > { %4198 = vmatpush.bf16.msra.mxu3 %v10408_v10  ;;  %v3710_v10 = vpop.f32.mrf.mxu1 }
 0x34f   : > { %v14042_v56 = vpop.f32.mrf.mxu2  ;;  %v3676_v58 = vpop.f32.mrf.mxu0 }
 0x350   : > { %v3677_v31 = vadd.f32 %v3676_v58, %v14031_v43  ;;  %v3733_v45 = vadd.f32 %v14042_v56, %v3704_v13  ;;  %4144 = vmatpush.bf16.msra.mxu1 %v10372_v37  ;;  %v10363_v58 = vld [vmem:[#allocation11 + $0x80] sm:$0xf] }
 0x351   : > { %4199 = vmatpush.bf16.msra.mxu3 %v10400_v54  ;;  %v10364_v18 = vor.u32 %v12146_v55, %v10363_v58 }
 0x352   : > { %v3706_v46 = vadd.f32 %v3705_v8, %v3677_v31 }
 0x354   : > { %4145 = vmatpush.bf16.msra.mxu1 %v10364_v18 }
 0x355   : > { %4200 = vmatpush.bf16.msra.mxu3 %v10392_v22  ;;  %v3809_v48 = vpop.f32.mrf.mxu1 }
 0x357   : > { %v3734_v44 = vpop.f32.mrf.mxu2  ;;  %v3679_v59 = vpop.f32.mrf.mxu0 }
 0x358   : > { %v3735_v54 = vadd.f32 %v3734_v44, %v3706_v46  ;;  %v3680_v56 = vadd.f32 %v3679_v59, %v14031_v43 }
 0x359   : > { %4201 = vmatpush.bf16.msra.mxu3 %v10384_v52 }
 0x35a   : > { %v3751_v23 = vpop.f32.mrf.mxu3  ;;  %v3709_v5 = vadd.f32 %v3708_v2, %v3680_v56 }
 0x35b   : > { %v3752_v4 = vadd.f32 %v3751_v23, %v3723_v33  ;;  %v12145_v33 = vld [vmem:[#allocation11 + $0x84] sm:$0xf] }
 0x35c   : > { %v10368_v49 = vor.u32 %v12145_v33, %v10365_v29 }
 0x35d   : > { %v3887_v16 = vmax.f32 %v3752_v4, 0.0  ;;  %4202 = vmatpush.bf16.msra.mxu3 %v10376_v20  ;;  %v3811_v57 = vpop.f32.mrf.mxu1 }
 0x35f   : > { %v3737_v1 = vpop.f32.mrf.mxu2  ;;  %v3681_v53 = vpop.f32.mrf.mxu0 }
 0x360   : > { %v3682_v8 = vadd.f32 %v3681_v53, %v14031_v43  ;;  %v3738_v44 = vadd.f32 %v3737_v1, %v3709_v5 }
 0x361   : > { %4203 = vmatpush.bf16.msra.mxu3 %v10368_v49 }
 0x362   : > { %v3753_v61 = vpop.f32.mrf.mxu3 }
 0x363   : > { %v3754_v35 = vadd.f32 %v3753_v61, %v3725_v14 }
 0x365   : > { %v3889_v34 = vmax.f32 %v3754_v35, 0.0 }
 0x367   : > { %v3903_v19 = vpack.c.bf16 %v3889_v34, %v3887_v16  ;;  %v3739_v15 = vpop.f32.mrf.mxu2  ;;  %v3780_v4 = vpop.f32.mrf.mxu0 }
 0x368   : > { %v3781_v52 = vadd.f32 %v3780_v4, %v14056_v11 }
 0x369   : > { %4117 = vmatmul.bf16.vlgmr.msra.gmra.mxu0 %v3903_v19  ;;  %4175 = vmatmul.bf16.vlgmr.msra.gmra.mxu2 %v3903_v19 }
 0x36a   : > { %v3756_v26 = vpop.f32.mrf.mxu3  ;;  %v3810_v2 = vadd.f32 %v3809_v48, %v3781_v52 }
 0x36b   : > { %v3757_v41 = vadd.f32 %v3756_v26, %v3728_v62  ;;  %v3711_v26 = vadd.f32 %v3710_v10, %v3682_v8 }
 0x36d   : > { %v3891_v32 = vmax.f32 %v3757_v41, 0.0  ;;  %v3740_v22 = vadd.f32 %v3739_v15, %v3711_v26  ;;  %v3814_v41 = vpop.f32.mrf.mxu1 }
 0x36f   : > { %v3838_v19 = vpop.f32.mrf.mxu2  ;;  %v3782_v25 = vpop.f32.mrf.mxu0 }
 0x372   : > { %v3758_v39 = vpop.f32.mrf.mxu3 }
 0x373   : > { %v3759_v17 = vadd.f32 %v3758_v39, %v3730_v42  ;;  %v3783_v42 = vadd.f32 %v3782_v25, %v14056_v11 }
 0x375   : > { %v3893_v40 = vmax.f32 %v3759_v17, 0.0  ;;  %v3839_v17 = vadd.f32 %v3838_v19, %v3810_v2  ;;  %v3812_v1 = vadd.f32 %v3811_v57, %v3783_v42  ;;  %v3816_v12 = vpop.f32.mrf.mxu1 }
 0x377   : > { %v3905_v3 = vpack.c.bf16 %v3893_v40, %v3891_v32  ;;  %v3840_v21 = vpop.f32.mrf.mxu2  ;;  %v3785_v62 = vpop.f32.mrf.mxu0 }
 0x378   : > { %v3841_v40 = vadd.f32 %v3840_v21, %v3812_v1  ;;  %v3786_v36 = vadd.f32 %v3785_v62, %v14056_v11  ;;  %v10541_v1 = vld [vmem:[#allocation14 + $0xf0] sm:$0xf0] }
 0x379   : > { %4122 = vmatmul.bf16.gmra.mxu0 %v3905_v3  ;;  %4180 = vmatmul.bf16.gmra.mxu2 %v3905_v3 }
 0x37a   : > { %v3761_v23 = vpop.f32.mrf.mxu3  ;;  %v3815_v13 = vadd.f32 %v3814_v41, %v3786_v36  ;;  %v10525_v36 = vld [vmem:[#allocation14 + $0xd0] sm:$0xf0] }
 0x37b   : > { %v3762_v14 = vadd.f32 %v3761_v23, %v3733_v45 }
 0x37d   : > { %v3895_v16 = vmax.f32 %v3762_v14, 0.0  ;;  %v3819_v47 = vpop.f32.mrf.mxu1 }
 0x37f   : > { %v3843_v39 = vpop.f32.mrf.mxu2  ;;  %v3787_v32 = vpop.f32.mrf.mxu0 }
 0x380   : > { %v3788_v31 = vadd.f32 %v3787_v32, %v14056_v11  ;;  %v3844_v10 = vadd.f32 %v3843_v39, %v3815_v13  ;;  %v12221_v32 = vld [vmem:[#allocation14 + $0x1e4] sm:$0xf] }
 0x382   : > { %v3763_v61 = vpop.f32.mrf.mxu3  ;;  %v3817_v30 = vadd.f32 %v3816_v12, %v3788_v31 }
 0x383   : > { %v3764_v35 = vadd.f32 %v3763_v61, %v3735_v54 }
 0x385   : > { %v3897_v34 = vmax.f32 %v3764_v35, 0.0  ;;  %v3821_v61 = vpop.f32.mrf.mxu1 }
 0x387   : > { %v3907_v63 = vpack.c.bf16 %v3897_v34, %v3895_v16  ;;  %v3845_v6 = vpop.f32.mrf.mxu2  ;;  %v3790_v23 = vpop.f32.mrf.mxu0 }
 0x388   : > { %v3846_v37 = vadd.f32 %v3845_v6, %v3817_v30  ;;  %v3791_v4 = vadd.f32 %v3790_v23, %v14056_v11  ;;  %v12185_v6 = vld [vmem:[#allocation14 + $0xc4] sm:$0xf]  ;;  %v12187_v30 = vld [vmem:[#allocation14 + $0xcc] sm:$0xf0] }
 0x389   : > { %4127 = vmatmul.bf16.gmra.mxu0 %v3907_v63  ;;  %4185 = vmatmul.bf16.gmra.mxu2 %v3907_v63  ;;  %v12217_v23 = vld [vmem:[#allocation14 + $0x1c4] sm:$0xf]  ;;  %v10528_v31 = vor.u32 %v12185_v6, %v10525_v36  ;;  %v10573_v6 = vld [vmem:[#allocation14 + $0x130] sm:$0xf0] }
 0x38a   : > { %v3766_v24 = vpop.f32.mrf.mxu3  ;;  %v3820_v16 = vadd.f32 %v3819_v47, %v3791_v4  ;;  %v10507_v4 = vld [vmem:[#allocation14 + $0xa0] sm:$0xf] }
 0x38b   : > { %v3767_v9 = vadd.f32 %v3766_v24, %v3738_v44 }
 0x38d   : > { %v3899_v51 = vmax.f32 %v3767_v9, 0.0  ;;  %v3824_v8 = vpop.f32.mrf.mxu1 }
 0x38f   : > { %v3848_v15 = vpop.f32.mrf.mxu2  ;;  %v3792_v46 = vpop.f32.mrf.mxu0 }
 0x390   : > { %v3793_v55 = vadd.f32 %v3792_v46, %v14056_v11  ;;  %v3849_v18 = vadd.f32 %v3848_v15, %v3820_v16  ;;  %v10651_v15 = vld [vmem:[#allocation14 + $0x1c0] sm:$0xf]  ;;  %v12213_v46 = vld [vmem:[#allocation14 + $0x1a4] sm:$0xf] }
 0x391   : > { %v12177_v16 = vld [vmem:[#allocation14 + $0x84] sm:$0xf] }
 0x392   : > { %v3768_v27 = vpop.f32.mrf.mxu3  ;;  %v3822_v48 = vadd.f32 %v3821_v61, %v3793_v55  ;;  %v12183_v61 = vld [vmem:[#allocation14 + $0xac] sm:$0xf0] }
 0x393   : > { %v3769_v50 = vadd.f32 %v3768_v27, %v3740_v22  ;;  %v12215_v55 = vld [vmem:[#allocation14 + $0x1ac] sm:$0xf0] }
 0x395   : > { %v3901_v59 = vmax.f32 %v3769_v50, 0.0  ;;  %v3826_v50 = vpop.f32.mrf.mxu1 }
 0x397   : > { %v3909_v0 = vpack.c.bf16 %v3901_v59, %v3899_v51  ;;  %v3850_v35 = vpop.f32.mrf.mxu2  ;;  %v3795_v34 = vpop.f32.mrf.mxu0 }
 0x398   : > { %v3851_v63 = vadd.f32 %v3850_v35, %v3822_v48  ;;  %v3796_v57 = vadd.f32 %v3795_v34, %v14056_v11  ;;  %v10508_v35 = vor.u32 %v12183_v61, %v10507_v4  ;;  %v12209_v48 = vld [vmem:[#allocation14 + $0x184] sm:$0xf]  ;;  %v10555_v4 = vld [vmem:[#allocation14 + $0x100] sm:$0xf]  ;;  %v12195_v61 = vld [vmem:[#allocation14 + $0x10c] sm:$0xf0] }
 0x399   : > { %4132 = vmatmul.bf16.gmra.mxu0 %v3909_v0  ;;  %4190 = vmatmul.bf16.gmra.mxu2 %v3909_v0 }
 0x39a   : > { %v3867_v43 = vpop.f32.mrf.mxu3  ;;  %v3825_v27 = vadd.f32 %v3824_v8, %v3796_v57  ;;  %v12179_v8 = vld [vmem:[#allocation14 + $0x8c] sm:$0xf0]  ;;  %v10477_v57 = vld [vmem:[#allocation14 + $0x70] sm:$0xf0] }
 0x39b   : > { %v3868_v38 = vadd.f32 %v3867_v43, %v3839_v17  ;;  %v12189_v17 = vld [vmem:[#allocation14 + $0xe4] sm:$0xf] }
 0x39d   : > { %v3888_v3 = vmax.f32 %v3868_v38, 0.0  ;;  %v10669_v38 = vld [vmem:[#allocation14 + $0x1f0] sm:$0xf0] }
 0x39f   : > { %v3853_v25 = vpop.f32.mrf.mxu2  ;;  %v3797_v22 = vpop.f32.mrf.mxu0 }
 0x3a0   : > { %v3798_v21 = vadd.f32 %v3797_v22, %v14056_v11  ;;  %v3854_v59 = vadd.f32 %v3853_v25, %v3825_v27  ;;  %v10672_v11 = vor.u32 %v12221_v32, %v10669_v38  ;;  %v10459_v32 = vld [vmem:[#allocation14 + $0x40] sm:$0xf] }
 0x3a2   : > { %v3869_v28 = vpop.f32.mrf.mxu3  ;;  %v3827_v62 = vadd.f32 %v3826_v50, %v3798_v21  ;;  %4730 = vmatpush.bf16.msrb.mxu3 %v10672_v11  ;;  %v10605_v21 = vld [vmem:[#allocation14 + $0x170] sm:$0xf0]  ;;  %v10587_v11 = vld [vmem:[#allocation14 + $0x140] sm:$0xf] }
 0x3a3   : > { %v3870_v7 = vadd.f32 %v3869_v28, %v3841_v40  ;;  %v10544_v40 = vor.u32 %v12189_v17, %v10541_v1  ;;  %v10539_v28 = vld [vmem:[#allocation14 + $0xe0] sm:$0xf] }
 0x3a5   : > { %v3890_v53 = vmax.f32 %v3870_v7, 0.0  ;;  %4701 = vmatpush.bf16.msrb.mxu2 %v10544_v40  ;;  %v12191_v7 = vld [vmem:[#allocation14 + $0xec] sm:$0xf0] }
 0x3a6   : > { %v10540_v12 = vor.u32 %v12191_v7, %v10539_v28  ;;  %v12171_v40 = vld [vmem:[#allocation14 + $0x4c] sm:$0xf0]  ;;  %v12165_v7 = vld [vmem:[#allocation14 + $0x24] sm:$0xf] }
 0x3a7   : > { %v3904_v60 = vpack.c.bf16 %v3890_v53, %v3888_v3  ;;  %v3855_v51 = vpop.f32.mrf.mxu2  ;;  %v10667_v3 = vld [vmem:[#allocation14 + $0x1e0] sm:$0xf]  ;;  %v12223_v53 = vld [vmem:[#allocation14 + $0x1ec] sm:$0xf0]  ;;  %v10460_v38 = vor.u32 %v12171_v40, %v10459_v32  ;;  %v10517_v32 = vld [vmem:[#allocation14 + $0xb8] sm:$0xf0] }
 0x3a8   : > { %v3856_v0 = vadd.f32 %v3855_v51, %v3827_v62  ;;  %4643 = vmatpush.bf16.msrb.mxu0 %v10540_v12  ;;  %v10475_v51 = vld [vmem:[#allocation14 + $0x60] sm:$0xf]  ;;  %v12203_v28 = vld [vmem:[#allocation14 + $0x14c] sm:$0xf0]  ;;  %v12214_v40 = vld [vmem:[#allocation14 + $0x1ac] sm:$0xf] }
 0x3a9   : > { %4146 = vmatmul.bf16.vlgmr.msra.gmra.mxu1 %v3904_v60  ;;  %4204 = vmatmul.bf16.vlgmr.msra.gmra.mxu3 %v3904_v60  ;;  %v10668_v60 = vor.u32 %v12223_v53, %v10667_v3  ;;  %v10588_v12 = vor.u32 %v12203_v28, %v10587_v11  ;;  %v10445_v3 = vld [vmem:[#allocation14 + $0x30] sm:$0xf0]  ;;  %v12197_v53 = vld [vmem:[#allocation14 + $0x124] sm:$0xf] }
 0x3aa   : > { %v3872_v20 = vpop.f32.mrf.mxu3  ;;  %4702 = vmatpush.bf16.msrb.mxu2 %v10528_v31  ;;  %v10576_v36 = vor.u32 %v12197_v53, %v10573_v6 }
 0x3ab   : > { %v3873_v33 = vadd.f32 %v3872_v20, %v3844_v10  ;;  %v10653_v20 = vld [vmem:[#allocation14 + $0x1d0] sm:$0xf0]  ;;  %4672 = vmatpush.bf16.msrb.mxu1 %v10668_v60  ;;  %v10523_v10 = vld [vmem:[#allocation14 + $0xc0] sm:$0xf]  ;;  %v10448_v60 = vor.u32 %v12165_v7, %v10445_v3 }
 0x3ac   : > { %v10656_v13 = vor.u32 %v12217_v23, %v10653_v20  ;;  %v10524_v47 = vor.u32 %v12187_v30, %v10523_v10  ;;  %v10443_v23 = vld [vmem:[#allocation14 + $0x20] sm:$0xf]  ;;  %v12167_v20 = vld [vmem:[#allocation14 + $0x2c] sm:$0xf0]  ;;  %v10429_v10 = vld [vmem:[#allocation14 + $0x10] sm:$0xf0] }
 0x3ad   : > { %v3892_v49 = vmax.f32 %v3873_v33, 0.0  ;;  %v12181_v33 = vld [vmem:[#allocation14 + $0xa4] sm:$0xf]  ;;  %v10444_v31 = vor.u32 %v12167_v20, %v10443_v23  ;;  %v10427_v30 = vld [vmem:[#allocation14] sm:$0xf] }
 0x3ae   : > { %4731 = vmatpush.bf16.msrb.mxu3 %v10656_v13  ;;  %4644 = vmatpush.bf16.msrb.mxu0 %v10524_v47  ;;  %v12161_v13 = vld [vmem:[#allocation14 + $0x4] sm:$0xf]  ;;  %v10515_v23 = vld [vmem:[#allocation14 + $0xa8] sm:$0xf]  ;;  %v12184_v20 = vld [vmem:[#allocation14 + $0xb4] sm:$0xf0] }
 0x3af   : > { %v10432_v47 = vor.u32 %v12161_v13, %v10429_v10 }
 0x3b2   : > { %v3874_v29 = vpop.f32.mrf.mxu3  ;;  %4645 = vmatpush.bf16.msrb.mxu0 %v10508_v35  ;;  %v10556_v35 = vor.u32 %v12195_v61, %v10555_v4  ;;  %v12210_v4 = vld [vmem:[#allocation14 + $0x18c] sm:$0xf]  ;;  %v10629_v61 = vld [vmem:[#allocation14 + $0x198] sm:$0xf0] }
 0x3b3   : > { %v3875_v45 = vadd.f32 %v3874_v29, %v3846_v37  ;;  %v12219_v37 = vld [vmem:[#allocation14 + $0x1cc] sm:$0xf0] }
 0x3b4   : > { %v10652_v29 = vor.u32 %v12219_v37, %v10651_v15  ;;  %v12163_v15 = vld [vmem:[#allocation14 + $0xc] sm:$0xf0]  ;;  %v10571_v37 = vld [vmem:[#allocation14 + $0x120] sm:$0xf] }
 0x3b5   : > { %v3894_v54 = vmax.f32 %v3875_v45, 0.0  ;;  %v10509_v45 = vld [vmem:[#allocation14 + $0xb0] sm:$0xf0] }
 0x3b6   : > { %4673 = vmatpush.bf16.msrb.mxu1 %v10652_v29  ;;  %v10428_v29 = vor.u32 %v12163_v15, %v10427_v30 }
 0x3b7   : > { %v3906_v14 = vpack.c.bf16 %v3894_v54, %v3892_v49  ;;  %v10637_v49 = vld [vmem:[#allocation14 + $0x1b0] sm:$0xf0]  ;;  %v10512_v54 = vor.u32 %v12181_v33, %v10509_v45  ;;  %v12199_v33 = vld [vmem:[#allocation14 + $0x12c] sm:$0xf0] }
 0x3b8   : > { %v10572_v45 = vor.u32 %v12199_v33, %v10571_v37 }
 0x3b9   : > { %4151 = vmatmul.bf16.gmra.mxu1 %v3906_v14  ;;  %4209 = vmatmul.bf16.gmra.mxu3 %v3906_v14  ;;  %v10640_v14 = vor.u32 %v12213_v46, %v10637_v49  ;;  %v12193_v46 = vld [vmem:[#allocation14 + $0x104] sm:$0xf]  ;;  %v10557_v49 = vld [vmem:[#allocation14 + $0x110] sm:$0xf0] }
 0x3ba   : > { %v3877_v58 = vpop.f32.mrf.mxu3  ;;  %4703 = vmatpush.bf16.msrb.mxu2 %v10512_v54 }
 0x3bb   : > { %v3878_v19 = vadd.f32 %v3877_v58, %v3849_v18  ;;  %4732 = vmatpush.bf16.msrb.mxu3 %v10640_v14  ;;  %v10635_v58 = vld [vmem:[#allocation14 + $0x1a0] sm:$0xf]  ;;  %v10493_v18 = vld [vmem:[#allocation14 + $0x90] sm:$0xf0]  ;;  %v10560_v14 = vor.u32 %v12193_v46, %v10557_v49  ;;  %v12178_v46 = vld [vmem:[#allocation14 + $0x8c] sm:$0xf] }
 0x3bc   : > { %v10636_v34 = vor.u32 %v12215_v55, %v10635_v58  ;;  %v12190_v58 = vld [vmem:[#allocation14 + $0xec] sm:$0xf]  ;;  %v10549_v55 = vld [vmem:[#allocation14 + $0xf8] sm:$0xf0] }
 0x3bd   : > { %v3896_v5 = vmax.f32 %v3878_v19, 0.0  ;;  %v10496_v19 = vor.u32 %v12177_v16, %v10493_v18  ;;  %v12222_v18 = vld [vmem:[#allocation14 + $0x1ec] sm:$0xf] }
 0x3be   : > { %4674 = vmatpush.bf16.msrb.mxu1 %v10636_v34  ;;  %v10552_v34 = vor.u32 %v12190_v58, %v10549_v55  ;;  %v10632_v55 = vor.u32 %v12210_v4, %v10629_v61  ;;  %v12166_v4 = vld [vmem:[#allocation14 + $0x2c] sm:$0xf]  ;;  %v10453_v61 = vld [vmem:[#allocation14 + $0x38] sm:$0xf0] }
 0x3bf   : > { %4704 = vmatpush.bf16.msrb.mxu2 %v10496_v19 }
 0x3c2   : > { %v3879_v56 = vpop.f32.mrf.mxu3 }
 0x3c3   : > { %v3880_v24 = vadd.f32 %v3879_v56, %v3851_v63  ;;  %v10621_v63 = vld [vmem:[#allocation14 + $0x190] sm:$0xf0] }
 0x3c4   : > { %v10624_v56 = vor.u32 %v12209_v48, %v10621_v63  ;;  %v10677_v48 = vld [vmem:[#allocation14 + $0x1f8] sm:$0xf0] }
 0x3c5   : > { %v3898_v44 = vmax.f32 %v3880_v24, 0.0  ;;  %v10491_v24 = vld [vmem:[#allocation14 + $0x80] sm:$0xf]  ;;  %v10680_v63 = vor.u32 %v12222_v18, %v10677_v48 }
 0x3c6   : > { %4733 = vmatpush.bf16.msrb.mxu3 %v10624_v56  ;;  %v10492_v25 = vor.u32 %v12179_v8, %v10491_v24  ;;  %v10547_v56 = vld [vmem:[#allocation14 + $0xe8] sm:$0xf]  ;;  %v12192_v24 = vld [vmem:[#allocation14 + $0xf4] sm:$0xf0] }
 0x3c7   : > { %v3908_v26 = vpack.c.bf16 %v3898_v44, %v3896_v5  ;;  %v10619_v5 = vld [vmem:[#allocation14 + $0x180] sm:$0xf]  ;;  %v12211_v44 = vld [vmem:[#allocation14 + $0x18c] sm:$0xf0]  ;;  %v10548_v8 = vor.u32 %v12192_v24, %v10547_v56  ;;  %v12180_v56 = vld [vmem:[#allocation14 + $0x94] sm:$0xf0] }
 0x3c8   : > { %4646 = vmatpush.bf16.msrb.mxu0 %v10492_v25  ;;  %v10620_v22 = vor.u32 %v12211_v44, %v10619_v5  ;;  %v3943_v25 = vld [vmem:[#allocation13] sm:$0x3]  ;;  %v10675_v5 = vld [vmem:[#allocation14 + $0x1e8] sm:$0xf]  ;;  %v12224_v44 = vld [vmem:[#allocation14 + $0x1f4] sm:$0xf0] }
 0x3c9   : > { %4156 = vmatmul.bf16.gmra.mxu1 %v3908_v26  ;;  %4214 = vmatmul.bf16.gmra.mxu3 %v3908_v26  ;;  %v12173_v26 = vld [vmem:[#allocation14 + $0x64] sm:$0xf] }
 0x3ca   : > { %v3882_v9 = vpop.f32.mrf.mxu3  ;;  %v10480_v27 = vor.u32 %v12173_v26, %v10477_v57  ;;  %4675 = vmatpush.bf16.msrb.mxu1 %v10620_v22  ;;  %v12186_v26 = vld [vmem:[#allocation14 + $0xcc] sm:$0xf]  ;;  %v10676_v57 = vor.u32 %v12224_v44, %v10675_v5 }
 0x3cb   : > { %v3883_v52 = vadd.f32 %v3882_v9, %v3854_v59  ;;  %v12205_v9 = vld [vmem:[#allocation14 + $0x164] sm:$0xf]  ;;  %v12175_v59 = vld [vmem:[#allocation14 + $0x6c] sm:$0xf0]  ;;  %v12174_v5 = vld [vmem:[#allocation14 + $0x6c] sm:$0xf] }
 0x3cc   : > { %v10608_v50 = vor.u32 %v12205_v9, %v10605_v21  ;;  %4705 = vmatpush.bf16.msrb.mxu2 %v10480_v27  ;;  %v10476_v62 = vor.u32 %v12175_v59, %v10475_v51  ;;  %v10533_v9 = vld [vmem:[#allocation14 + $0xd8] sm:$0xf0]  ;;  %v12218_v21 = vld [vmem:[#allocation14 + $0x1cc] sm:$0xf] }
 0x3cd   : > { %v3900_v41 = vmax.f32 %v3883_v52, 0.0  ;;  %v12207_v52 = vld [vmem:[#allocation14 + $0x16c] sm:$0xf0]  ;;  %v10661_v27 = vld [vmem:[#allocation14 + $0x1d8] sm:$0xf0] }
 0x3ce   : > { %4734 = vmatpush.bf16.msrb.mxu3 %v10608_v50  ;;  %4647 = vmatpush.bf16.msrb.mxu0 %v10476_v62  ;;  %v10536_v50 = vor.u32 %v12186_v26, %v10533_v9  ;;  %v10664_v51 = vor.u32 %v12218_v21, %v10661_v27  ;;  %v14066_v62 = vperm.slane %v3943_v25, 0  ;;  %v10613_v9 = vld [vmem:[#allocation14 + $0x178] sm:$0xf0] }
 0x3d2   : > { %v3884_v43 = vpop.f32.mrf.mxu3  ;;  %4648 = vmatpush.bf16.msrb.mxu0 %v10460_v38  ;;  %v10645_v38 = vld [vmem:[#allocation14 + $0x1b8] sm:$0xf0] }
 0x3d3   : > { %v3885_v42 = vadd.f32 %v3884_v43, %v3856_v0  ;;  %v10603_v0 = vld [vmem:[#allocation14 + $0x160] sm:$0xf]  ;;  %v12169_v43 = vld [vmem:[#allocation14 + $0x44] sm:$0xf]  ;;  %v10648_v7 = vor.u32 %v12214_v40, %v10645_v38 }
 0x3d5   : > { %v3902_v39 = vmax.f32 %v3885_v42, 0.0  ;;  %v10604_v42 = vor.u32 %v12207_v52, %v10603_v0  ;;  %v10531_v52 = vld [vmem:[#allocation14 + $0xc8] sm:$0xf] }
 0x3d6   : > { %4649 = vmatpush.bf16.msrb.mxu0 %v10444_v31  ;;  %v10516_v31 = vor.u32 %v12184_v20, %v10515_v23  ;;  %v12202_v23 = vld [vmem:[#allocation14 + $0x14c] sm:$0xf]  ;;  %v10597_v20 = vld [vmem:[#allocation14 + $0x158] sm:$0xf0] }
 0x3d7   : > { %v3910_v2 = vpack.c.bf16 %v3902_v39, %v3900_v41  ;;  %v10461_v41 = vld [vmem:[#allocation14 + $0x50] sm:$0xf0]  ;;  %v12201_v39 = vld [vmem:[#allocation14 + $0x144] sm:$0xf]  ;;  %4676 = vmatpush.bf16.msrb.mxu1 %v10604_v42 }
 0x3d8   : > { %v10464_v17 = vor.u32 %v12169_v43, %v10461_v41  ;;  %v12188_v43 = vld [vmem:[#allocation14 + $0xd4] sm:$0xf0]  ;;  %v10659_v41 = vld [vmem:[#allocation14 + $0x1c8] sm:$0xf] }
 0x3d9   : > { %4161 = vmatmul.bf16.gmra.mxu1 %v3910_v2  ;;  %4219 = vmatmul.bf16.gmra.mxu3 %v3910_v2  ;;  %v10589_v2 = vld [vmem:[#allocation14 + $0x150] sm:$0xf0]  ;;  %v10532_v42 = vor.u32 %v12188_v43, %v10531_v52 }
 0x3da   : > { %v10592_v1 = vor.u32 %v12201_v39, %v10589_v2  ;;  %4706 = vmatpush.bf16.msrb.mxu2 %v10464_v17  ;;  %4650 = vmatpush.bf16.msrb.mxu0 %v10428_v29  ;;  %v12220_v39 = vld [vmem:[#allocation14 + $0x1d4] sm:$0xf0]  ;;  %v12182_v2 = vld [vmem:[#allocation14 + $0xac] sm:$0xf]  ;;  %v10643_v29 = vld [vmem:[#allocation14 + $0x1a8] sm:$0xf] }
 0x3db   : > { %4677 = vmatpush.bf16.msrb.mxu1 %v10588_v12  ;;  %v10520_v28 = vor.u32 %v12182_v2, %v10517_v32  ;;  %v14071_v12 = vperm.slane %v3943_v25, 1  ;;  %v12212_v25 = vld [vmem:[#allocation14 + $0x194] sm:$0xf0] }
 0x3dc   : > { %4735 = vmatpush.bf16.msrb.mxu3 %v10592_v1  ;;  %v10660_v1 = vor.u32 %v12220_v39, %v10659_v41  ;;  %v12176_v41 = vld [vmem:[#allocation14 + $0x74] sm:$0xf0] }
 0x3de   : > { %4707 = vmatpush.bf16.msrb.mxu2 %v10448_v60  ;;  %4759 = vmatpush.bf16.msra.mxu0 %v10548_v8  ;;  %v10627_v8 = vld [vmem:[#allocation14 + $0x188] sm:$0xf] }
 0x3df   : > { %4678 = vmatpush.bf16.msrb.mxu1 %v10572_v45  ;;  %v12216_v45 = vld [vmem:[#allocation14 + $0x1b4] sm:$0xf0]  ;;  %v10628_v26 = vor.u32 %v12212_v25, %v10627_v8 }
 0x3e0   : > { %4736 = vmatpush.bf16.msrb.mxu3 %v10576_v36  ;;  %v12200_v8 = vld [vmem:[#allocation14 + $0x134] sm:$0xf0] }
 0x3e2   : > { %4708 = vmatpush.bf16.msrb.mxu2 %v10432_v47  ;;  %4760 = vmatpush.bf16.msra.mxu0 %v10532_v42  ;;  %v10483_v42 = vld [vmem:[#allocation14 + $0x68] sm:$0xf] }
 0x3e3   : > { %4679 = vmatpush.bf16.msrb.mxu1 %v10556_v35  ;;  %v10484_v39 = vor.u32 %v12176_v41, %v10483_v42 }
 0x3e4   : > { %4737 = vmatpush.bf16.msrb.mxu3 %v10560_v14  ;;  %v10501_v14 = vld [vmem:[#allocation14 + $0x98] sm:$0xf0] }
 0x3e5   : > { %v10504_v58 = vor.u32 %v12178_v46, %v10501_v14 }
 0x3e6   : > { %v4118_v54 = vpop.f32.mrf.mxu0  ;;  %4817 = vmatpush.bf16.msra.mxu2 %v10552_v34  ;;  %4761 = vmatpush.bf16.msra.mxu0 %v10516_v31 }
 0x3e7   : > { %4788 = vmatpush.bf16.msra.mxu1 %v10676_v57  ;;  %v4119_v17 = vadd.f32 %v4118_v54, %v14066_v62  ;;  %v10644_v54 = vor.u32 %v12216_v45, %v10643_v29  ;;  %v12206_v57 = vld [vmem:[#allocation14 + $0x16c] sm:$0xf]  ;;  %v12172_v29 = vld [vmem:[#allocation14 + $0x54] sm:$0xf0] }
 0x3e8   : > { %4846 = vmatpush.bf16.msra.mxu3 %v10680_v63 }
 0x3ea   : > { %4818 = vmatpush.bf16.msra.mxu2 %v10536_v50 }
 0x3eb   : > { %4789 = vmatpush.bf16.msra.mxu1 %v10660_v1 }
 0x3ec   : > { %v4176_v16 = vpop.f32.mrf.mxu2  ;;  %4847 = vmatpush.bf16.msra.mxu3 %v10664_v51  ;;  %v10616_v51 = vor.u32 %v12206_v57, %v10613_v9  ;;  %v10437_v57 = vld [vmem:[#allocation14 + $0x18] sm:$0xf0]  ;;  %v10435_v9 = vld [vmem:[#allocation14 + $0x8] sm:$0xf] }
 0x3ed   : > { %v4177_v13 = vadd.f32 %v4176_v16, %v14071_v12 }
 0x3ee   : > { %v4120_v19 = vpop.f32.mrf.mxu0  ;;  %4819 = vmatpush.bf16.msra.mxu2 %v10520_v28  ;;  %v10611_v28 = vld [vmem:[#allocation14 + $0x168] sm:$0xf] }
 0x3ef   : > { %v4121_v3 = vadd.f32 %v4120_v19, %v14066_v62  ;;  %4790 = vmatpush.bf16.msra.mxu1 %v10644_v54  ;;  %v10499_v19 = vld [vmem:[#allocation14 + $0x88] sm:$0xf]  ;;  %v12204_v54 = vld [vmem:[#allocation14 + $0x154] sm:$0xf0] }
 0x3f0   : > { %4848 = vmatpush.bf16.msra.mxu3 %v10648_v7  ;;  %v10500_v24 = vor.u32 %v12180_v56, %v10499_v19  ;;  %v12208_v7 = vld [vmem:[#allocation14 + $0x174] sm:$0xf0] }
 0x3f1   : > { %v12168_v56 = vld [vmem:[#allocation14 + $0x34] sm:$0xf0] }
 0x3f2   : > { %4820 = vmatpush.bf16.msra.mxu2 %v10504_v58  ;;  %4762 = vmatpush.bf16.msra.mxu0 %v10500_v24  ;;  %v10456_v58 = vor.u32 %v12166_v4, %v10453_v61  ;;  %v10579_v24 = vld [vmem:[#allocation14 + $0x128] sm:$0xf] }
 0x3f3   : > { %4791 = vmatpush.bf16.msra.mxu1 %v10628_v26  ;;  %v10580_v26 = vor.u32 %v12200_v8, %v10579_v24  ;;  %v10843_v24 = vld [vmem:[#allocation17 + $0x140] sm:$0xf] }
 0x3f4   : > { %v4178_v22 = vpop.f32.mrf.mxu2  ;;  %4849 = vmatpush.bf16.msra.mxu3 %v10632_v55  ;;  %v12198_v55 = vld [vmem:[#allocation14 + $0x12c] sm:$0xf] }
 0x3f5   : > { %v4179_v15 = vadd.f32 %v4178_v22, %v14071_v12  ;;  %v10485_v22 = vld [vmem:[#allocation14 + $0x78] sm:$0xf0] }
 0x3f6   : > { %v14068_v0 = vpop.f32.mrf.mxu0  ;;  %v10488_v50 = vor.u32 %v12174_v5, %v10485_v22  ;;  %4763 = vmatpush.bf16.msra.mxu0 %v10484_v39  ;;  %v12162_v22 = vld [vmem:[#allocation14 + $0xc] sm:$0xf] }
 0x3f7   : > { %v4124_v44 = vadd.f32 %v14068_v0, %v14066_v62 }
 0x3f8   : > { %4821 = vmatpush.bf16.msra.mxu2 %v10488_v50  ;;  %4850 = vmatpush.bf16.msra.mxu3 %v10616_v51  ;;  %v12164_v50 = vld [vmem:[#allocation14 + $0x14] sm:$0xf0]  ;;  %v12194_v51 = vld [vmem:[#allocation14 + $0x10c] sm:$0xf] }
 0x3f9   : > { %v10436_v42 = vor.u32 %v12164_v50, %v10435_v9  ;;  %v11099_v9 = vld [vmem:[#allocation17 + $0x340] sm:$0xf] }
 0x3fa   : > { %v12253_v50 = vld [vmem:[#allocation17 + $0xdc] sm:$0xf0] }
 0x3fc   : > { %v14074_v6 = vpop.f32.mrf.mxu2 }
 0x3fd   : > { %v4182_v2 = vadd.f32 %v14074_v6, %v14071_v12 }
 0x3fe   : > { %v4125_v47 = vpop.f32.mrf.mxu0 }
 0x404   : > { %v4183_v48 = vpop.f32.mrf.mxu2 }
 0x405   : > { %v4184_v40 = vadd.f32 %v4183_v48, %v14071_v12 }
 0x406   : > { %v4128_v21 = vpop.f32.mrf.mxu0 }
 0x40c   : > { %v14091_v32 = vpop.f32.mrf.mxu2 }
 0x40d   : > { %v4187_v41 = vadd.f32 %v14091_v32, %v14071_v12 }
 0x426   : > { %v4147_v59 = vpop.f32.mrf.mxu1 }
 0x427   : > { %v4148_v53 = vadd.f32 %v4147_v59, %v4119_v17  ;;  %v4126_v59 = vadd.f32 %v4125_v47, %v14066_v62 }
 0x429   : > { %v4225_v10 = vmax.f32 %v4148_v53, 0.0 }
 0x42c   : > { %v4205_v11 = vpop.f32.mrf.mxu3 }
 0x42d   : > { %v4206_v37 = vadd.f32 %v4205_v11, %v4177_v13  ;;  %v10600_v13 = vor.u32 %v12202_v23, %v10597_v20 }
 0x42e   : > { %v4149_v60 = vpop.f32.mrf.mxu1 }
 0x42f   : > { %v4150_v36 = vadd.f32 %v4149_v60, %v4121_v3  ;;  %v4226_v34 = vmax.f32 %v4206_v37, 0.0  ;;  %v12170_v3 = vld [vmem:[#allocation14 + $0x4c] sm:$0xf]  ;;  %v10612_v60 = vor.u32 %v12208_v7, %v10611_v28  ;;  %4851 = vmatpush.bf16.msra.mxu3 %v10600_v13  ;;  %v10467_v37 = vld [vmem:[#allocation14 + $0x48] sm:$0xf] }
 0x430   : > { %v10468_v46 = vor.u32 %v12172_v29, %v10467_v37  ;;  %v10563_v7 = vld [vmem:[#allocation14 + $0x108] sm:$0xf] }
 0x431   : > { %v4227_v30 = vmax.f32 %v4150_v36, 0.0  ;;  %v10469_v36 = vld [vmem:[#allocation14 + $0x58] sm:$0xf0]  ;;  %4792 = vmatpush.bf16.msra.mxu1 %v10612_v60 }
 0x432   : > { %v10472_v6 = vor.u32 %v12170_v3, %v10469_v36  ;;  %4764 = vmatpush.bf16.msra.mxu0 %v10468_v46  ;;  %v12196_v3 = vld [vmem:[#allocation14 + $0x114] sm:$0xf0] }
 0x433   : > { %v14078_v33 = vpack.c.bf16 %v4227_v30, %v4225_v10  ;;  %v4130_v10 = vpop.f32.mrf.mxu0  ;;  %v10564_v60 = vor.u32 %v12196_v3, %v10563_v7  ;;  %v12309_v7 = vld [vmem:[#allocation17 + $0x29c] sm:$0xf0] }
 0x434   : > { %v4207_v49 = vpop.f32.mrf.mxu3  ;;  %4822 = vmatpush.bf16.msra.mxu2 %v10472_v6  ;;  %v4131_v25 = vadd.f32 %v4130_v10, %v14066_v62 }
 0x435   : > { %v4208_v35 = vadd.f32 %v4207_v49, %v4179_v15  ;;  %4651 = vmatmul.bf16.vlgmr.msrb.gmra.mxu0 %v14078_v33  ;;  %4709 = vmatmul.bf16.vlgmr.msrb.gmra.mxu2 %v14078_v33  ;;  %v10595_v49 = vld [vmem:[#allocation14 + $0x148] sm:$0xf] }
 0x436   : > { %v4152_v16 = vpop.f32.mrf.mxu1  ;;  %v10596_v14 = vor.u32 %v12204_v54, %v10595_v49 }
 0x437   : > { %v4228_v18 = vmax.f32 %v4208_v35, 0.0  ;;  %v4153_v52 = vadd.f32 %v4152_v16, %v4124_v44  ;;  %v4129_v35 = vadd.f32 %v4128_v21, %v14066_v62  ;;  %v10581_v16 = vld [vmem:[#allocation14 + $0x138] sm:$0xf0] }
 0x438   : > { %4793 = vmatpush.bf16.msra.mxu1 %v10596_v14  ;;  %v10584_v19 = vor.u32 %v12198_v55, %v10581_v16  ;;  %4823 = vmatpush.bf16.msra.mxu2 %v10456_v58  ;;  %v12285_v16 = vld [vmem:[#allocation17 + $0x1dc] sm:$0xf0] }
 0x439   : > { %v14082_v63 = vpack.c.bf16 %v4228_v18, %v4226_v34  ;;  %v4229_v17 = vmax.f32 %v4153_v52, 0.0  ;;  %v10451_v34 = vld [vmem:[#allocation14 + $0x28] sm:$0xf]  ;;  %v4188_v18 = vpop.f32.mrf.mxu2 }
 0x43a   : > { %v10452_v44 = vor.u32 %v12168_v56, %v10451_v34  ;;  %4852 = vmatpush.bf16.msra.mxu3 %v10584_v19  ;;  %v12349_v56 = vld [vmem:[#allocation17 + $0x3dc] sm:$0xf0] }
 0x43b   : > { %4680 = vmatmul.bf16.vlgmr.msrb.gmra.mxu1 %v14082_v63  ;;  %4738 = vmatmul.bf16.vlgmr.msrb.gmra.mxu3 %v14082_v63 }
 0x43c   : > { %v4210_v27 = vpop.f32.mrf.mxu3  ;;  %4765 = vmatpush.bf16.msra.mxu0 %v10452_v44  ;;  %4794 = vmatpush.bf16.msra.mxu1 %v10580_v26  ;;  %v10811_v26 = vld [vmem:[#allocation17 + $0x100] sm:$0xf] }
 0x43d   : > { %v4211_v38 = vadd.f32 %v4210_v27, %v4182_v2  ;;  %v10440_v27 = vor.u32 %v12162_v22, %v10437_v57  ;;  %v12261_v22 = vld [vmem:[#allocation17 + $0x11c] sm:$0xf0] }
 0x43e   : > { %v4154_v43 = vpop.f32.mrf.mxu1  ;;  %v10812_v57 = vor.u32 %v12261_v22, %v10811_v26 }
 0x43f   : > { %v4155_v0 = vadd.f32 %v4154_v43, %v4126_v59  ;;  %v4230_v47 = vmax.f32 %v4211_v38, 0.0  ;;  %v10565_v59 = vld [vmem:[#allocation14 + $0x118] sm:$0xf0]  ;;  %4824 = vmatpush.bf16.msra.mxu2 %v10440_v27  ;;  %v10779_v27 = vld [vmem:[#allocation17 + $0xc0] sm:$0xf] }
 0x440   : > { %v10568_v43 = vor.u32 %v12194_v51, %v10565_v59  ;;  %4766 = vmatpush.bf16.msra.mxu0 %v10436_v42  ;;  %4795 = vmatpush.bf16.msra.mxu1 %v10564_v60  ;;  %v10780_v51 = vor.u32 %v12253_v50, %v10779_v27  ;;  %v11067_v59 = vld [vmem:[#allocation17 + $0x300] sm:$0xf] }
 0x441   : > { %v4231_v1 = vmax.f32 %v4155_v0, 0.0  ;;  %v4133_v0 = vpop.f32.mrf.mxu0  ;;  %v12245_v42 = vld [vmem:[#allocation17 + $0x9c] sm:$0xf0] }
 0x442   : > { %4853 = vmatpush.bf16.msra.mxu3 %v10568_v43  ;;  %v4134_v6 = vadd.f32 %v4133_v0, %v14066_v62  ;;  %v10747_v0 = vld [vmem:[#allocation17 + $0x80] sm:$0xf] }
 0x443   : > { %v14094_v11 = vpack.c.bf16 %v4231_v1, %v4229_v17  ;;  %v4189_v17 = vadd.f32 %v4188_v18, %v14071_v12  ;;  %v10875_v18 = vld [vmem:[#allocation17 + $0x180] sm:$0xf] }
 0x444   : > { %v4212_v53 = vpop.f32.mrf.mxu3 }
 0x445   : > { %v4213_v31 = vadd.f32 %v4212_v53, %v4184_v40  ;;  %4656 = vmatmul.bf16.gmra.mxu0 %v14094_v11  ;;  %4714 = vmatmul.bf16.gmra.mxu2 %v14094_v11  ;;  %v4191_v53 = vpop.f32.mrf.mxu2 }
 0x446   : > { %v4157_v30 = vpop.f32.mrf.mxu1  ;;  %v4192_v29 = vadd.f32 %v4191_v53, %v14071_v12  ;;  %v10683_v53 = vld [vmem:[#allocation17] sm:$0xf] }
 0x447   : > { %v4232_v15 = vmax.f32 %v4213_v31, 0.0  ;;  %v4158_v5 = vadd.f32 %v4157_v30, %v4129_v35 }
 0x449   : > { %v14098_v45 = vpack.c.bf16 %v4232_v15, %v4230_v47  ;;  %v4233_v39 = vmax.f32 %v4158_v5, 0.0  ;;  %v4135_v31 = vpop.f32.mrf.mxu0  ;;  %v12341_v5 = vld [vmem:[#allocation17 + $0x39c] sm:$0xf0] }
 0x44a   : > { %v4136_v10 = vadd.f32 %v4135_v31, %v14066_v62  ;;  %v10939_v31 = vld [vmem:[#allocation17 + $0x200] sm:$0xf] }
 0x44b   : > { %4685 = vmatmul.bf16.gmra.mxu1 %v14098_v45  ;;  %4743 = vmatmul.bf16.gmra.mxu3 %v14098_v45 }
 0x44c   : > { %v4215_v48 = vpop.f32.mrf.mxu3 }
 0x44d   : > { %v4216_v1 = vadd.f32 %v4215_v48, %v4187_v41  ;;  %v4193_v37 = vpop.f32.mrf.mxu2  ;;  %v12277_v48 = vld [vmem:[#allocation17 + $0x19c] sm:$0xf0]  ;;  %v10748_v41 = vor.u32 %v12245_v42, %v10747_v0 }
 0x44e   : > { %v4159_v21 = vpop.f32.mrf.mxu1  ;;  %v4194_v54 = vadd.f32 %v4193_v37, %v14071_v12  ;;  %v10907_v12 = vld [vmem:[#allocation17 + $0x1c0] sm:$0xf]  ;;  %v10876_v19 = vor.u32 %v12277_v48, %v10875_v18 }
 0x44f   : > { %v4160_v52 = vadd.f32 %v4159_v21, %v4131_v25  ;;  %v4234_v36 = vmax.f32 %v4216_v1, 0.0  ;;  %v10908_v34 = vor.u32 %v12285_v16, %v10907_v12  ;;  %v12333_v21 = vld [vmem:[#allocation17 + $0x35c] sm:$0xf0] }
 0x450   : > { %v10715_v1 = vld [vmem:[#allocation17 + $0x40] sm:$0xf] }
 0x451   : > { %v4235_v2 = vmax.f32 %v4160_v52, 0.0  ;;  %6477 = vmatpush.bf16.msrb.mxu0 %v10908_v34  ;;  %v12325_v52 = vld [vmem:[#allocation17 + $0x31c] sm:$0xf0] }
 0x452   : > { %v11068_v43 = vor.u32 %v12325_v52, %v11067_v59  ;;  %v12477_v37 = vld [vmem:[#allocation17 + $0x7dc] sm:$0xf0] }
 0x453   : > { %v14107_v40 = vpack.c.bf16 %v4235_v2, %v4233_v39  ;;  %v11035_v39 = vld [vmem:[#allocation17 + $0x2c0] sm:$0xf] }
 0x454   : > { %v4217_v38 = vpop.f32.mrf.mxu3  ;;  %v12317_v2 = vld [vmem:[#allocation17 + $0x2dc] sm:$0xf0] }
 0x455   : > { %v4218_v28 = vadd.f32 %v4217_v38, %v4189_v17  ;;  %4661 = vmatmul.bf16.gmra.mxu0 %v14107_v40  ;;  %4719 = vmatmul.bf16.gmra.mxu2 %v14107_v40  ;;  %v11036_v17 = vor.u32 %v12317_v2, %v11035_v39  ;;  %v11355_v34 = vld [vmem:[#allocation17 + $0x540] sm:$0xf]  ;;  %v10909_v39 = vld [vmem:[#allocation17 + $0x1e0] sm:$0xf0] }
 0x456   : > { %v4162_v32 = vpop.f32.mrf.mxu1  ;;  %6478 = vmatpush.bf16.msrb.mxu0 %v10876_v19  ;;  %v12397_v18 = vld [vmem:[#allocation17 + $0x55c] sm:$0xf0] }
 0x457   : > { %v4236_v23 = vmax.f32 %v4218_v28, 0.0  ;;  %v4163_v30 = vadd.f32 %v4162_v32, %v4134_v6  ;;  %v11003_v28 = vld [vmem:[#allocation17 + $0x280] sm:$0xf]  ;;  %v11356_v48 = vor.u32 %v12397_v18, %v11355_v34 }
 0x458   : > { %v11004_v3 = vor.u32 %v12309_v7, %v11003_v28  ;;  %v12229_v32 = vld [vmem:[#allocation17 + $0x1c] sm:$0xf0] }
 0x459   : > { %v14111_v20 = vpack.c.bf16 %v4236_v23, %v4234_v36  ;;  %v4237_v46 = vmax.f32 %v4163_v30, 0.0  ;;  %v10684_v60 = vor.u32 %v12229_v32, %v10683_v53  ;;  %v10971_v36 = vld [vmem:[#allocation17 + $0x240] sm:$0xf]  ;;  %v12273_v53 = vld [vmem:[#allocation17 + $0x184] sm:$0xf] }
 0x45a   : > { %v12301_v23 = vld [vmem:[#allocation17 + $0x25c] sm:$0xf0]  ;;  %v10877_v32 = vld [vmem:[#allocation17 + $0x1a0] sm:$0xf0] }
 0x45b   : > { %4690 = vmatmul.bf16.gmra.mxu1 %v14111_v20  ;;  %4748 = vmatmul.bf16.gmra.mxu3 %v14111_v20  ;;  %v12293_v6 = vld [vmem:[#allocation17 + $0x21c] sm:$0xf0] }
 0x45c   : > { %v4220_v13 = vpop.f32.mrf.mxu3  ;;  %v12413_v30 = vld [vmem:[#allocation17 + $0x5dc] sm:$0xf0] }
 0x45d   : > { %v4221_v14 = vadd.f32 %v4220_v13, %v4192_v29  ;;  %v10940_v13 = vor.u32 %v12293_v6, %v10939_v31  ;;  %v12389_v59 = vld [vmem:[#allocation17 + $0x51c] sm:$0xf0]  ;;  %v12345_v6 = vld [vmem:[#allocation17 + $0x3c4] sm:$0xf] }
 0x45e   : > { %v4164_v47 = vpop.f32.mrf.mxu1  ;;  %v11579_v52 = vld [vmem:[#allocation17 + $0x700] sm:$0xf] }
 0x45f   : > { %v4165_v15 = vadd.f32 %v4164_v47, %v4136_v10  ;;  %v4238_v62 = vmax.f32 %v4221_v14, 0.0  ;;  %v11419_v10 = vld [vmem:[#allocation17 + $0x5c0] sm:$0xf] }
 0x460   : > { %v11420_v47 = vor.u32 %v12413_v30, %v11419_v10  ;;  %v11643_v14 = vld [vmem:[#allocation17 + $0x780] sm:$0xf] }
 0x461   : > { %v4239_v49 = vmax.f32 %v4165_v15, 0.0  ;;  %v11675_v15 = vld [vmem:[#allocation17 + $0x7c0] sm:$0xf] }
 0x462   : > { %6535 = vmatpush.bf16.msrb.mxu2 %v11420_v47  ;;  %v11676_v29 = vor.u32 %v12477_v37, %v11675_v15  ;;  %v12453_v42 = vld [vmem:[#allocation17 + $0x71c] sm:$0xf0] }
 0x463   : > { %v14119_v4 = vpack.c.bf16 %v4239_v49, %v4237_v46  ;;  %v11387_v49 = vld [vmem:[#allocation17 + $0x580] sm:$0xf] }
 0x464   : > { %v4222_v61 = vpop.f32.mrf.mxu3  ;;  %6564 = vmatpush.bf16.msrb.mxu3 %v11676_v29  ;;  %v11547_v30 = vld [vmem:[#allocation17 + $0x6c0] sm:$0xf] }
 0x465   : > { %v4223_v35 = vadd.f32 %v4222_v61, %v4194_v54  ;;  %4666 = vmatmul.bf16.gmra.mxu0 %v14119_v4  ;;  %4724 = vmatmul.bf16.gmra.mxu2 %v14119_v4  ;;  %v12405_v54 = vld [vmem:[#allocation17 + $0x59c] sm:$0xf0] }
 0x466   : > { %v11388_v61 = vor.u32 %v12405_v54, %v11387_v49  ;;  %v12445_v47 = vld [vmem:[#allocation17 + $0x6dc] sm:$0xf0]  ;;  %v10845_v49 = vld [vmem:[#allocation17 + $0x160] sm:$0xf0] }
 0x467   : > { %v4240_v58 = vmax.f32 %v4223_v35, 0.0  ;;  %v12469_v35 = vld [vmem:[#allocation17 + $0x79c] sm:$0xf0]  ;;  %v11548_v29 = vor.u32 %v12445_v47, %v11547_v30 }
 0x468   : > { %6536 = vmatpush.bf16.msrb.mxu2 %v11388_v61  ;;  %v12429_v30 = vld [vmem:[#allocation17 + $0x65c] sm:$0xf0] }
 0x469   : > { %v14123_v55 = vpack.c.bf16 %v4240_v58, %v4238_v62  ;;  %v11644_v62 = vor.u32 %v12469_v35, %v11643_v14 }
 0x46b   : > { %4695 = vmatmul.bf16.gmra.mxu1 %v14123_v55  ;;  %4753 = vmatmul.bf16.gmra.mxu3 %v14123_v55 }
 0x46c   : > { %6565 = vmatpush.bf16.msrb.mxu3 %v11644_v62  ;;  %6537 = vmatpush.bf16.msrb.mxu2 %v11356_v48  ;;  %v12257_v48 = vld [vmem:[#allocation17 + $0x104] sm:$0xf] }
 0x475   : > { %4767 = vmatmul.bf16.vlgmr.msra.gmra.mxu0 %v14078_v33  ;;  %4825 = vmatmul.bf16.vlgmr.msra.gmra.mxu2 %v14078_v33  ;;  %v11163_v33 = vld [vmem:[#allocation17 + $0x3c0] sm:$0xf] }
 0x476   : > { %v11164_v8 = vor.u32 %v12349_v56, %v11163_v33  ;;  %v11611_v33 = vld [vmem:[#allocation17 + $0x740] sm:$0xf] }
 0x477   : > { %v12461_v56 = vld [vmem:[#allocation17 + $0x75c] sm:$0xf0] }
 0x478   : > { %6506 = vmatpush.bf16.msrb.mxu1 %v11164_v8  ;;  %v11612_v8 = vor.u32 %v12461_v56, %v11611_v33 }
 0x47a   : > { %6566 = vmatpush.bf16.msrb.mxu3 %v11612_v8 }
 0x47b   : > { %4796 = vmatmul.bf16.vlgmr.msra.gmra.mxu1 %v14082_v63  ;;  %4854 = vmatmul.bf16.vlgmr.msra.gmra.mxu3 %v14082_v63  ;;  %v12269_v63 = vld [vmem:[#allocation17 + $0x15c] sm:$0xf0] }
 0x47c   : > { %v10844_v25 = vor.u32 %v12269_v63, %v10843_v24 }
 0x47e   : > { %6479 = vmatpush.bf16.msrb.mxu0 %v10844_v25 }
 0x482   : > { %6480 = vmatpush.bf16.msrb.mxu0 %v10812_v57 }
 0x485   : > { %4772 = vmatmul.bf16.gmra.mxu0 %v14094_v11  ;;  %4830 = vmatmul.bf16.gmra.mxu2 %v14094_v11  ;;  %v11131_v11 = vld [vmem:[#allocation17 + $0x380] sm:$0xf] }
 0x486   : > { %v11132_v44 = vor.u32 %v12341_v5, %v11131_v11  ;;  %6481 = vmatpush.bf16.msrb.mxu0 %v10780_v51  ;;  %v11323_v51 = vld [vmem:[#allocation17 + $0x500] sm:$0xf] }
 0x487   : > { %v11324_v0 = vor.u32 %v12389_v59, %v11323_v51  ;;  %v12437_v51 = vld [vmem:[#allocation17 + $0x69c] sm:$0xf0]  ;;  %v12249_v59 = vld [vmem:[#allocation17 + $0xc4] sm:$0xf] }
 0x488   : > { %6507 = vmatpush.bf16.msrb.mxu1 %v11132_v44 }
 0x489   : > { %6538 = vmatpush.bf16.msrb.mxu2 %v11324_v0 }
 0x48a   : > { %6482 = vmatpush.bf16.msrb.mxu0 %v10748_v41  ;;  %v12281_v41 = vld [vmem:[#allocation17 + $0x1c4] sm:$0xf] }
 0x48b   : > { %4801 = vmatmul.bf16.gmra.mxu1 %v14098_v45  ;;  %4859 = vmatmul.bf16.gmra.mxu3 %v14098_v45  ;;  %v11100_v45 = vor.u32 %v12333_v21, %v11099_v9 }
 0x48d   : > { %6508 = vmatpush.bf16.msrb.mxu1 %v11100_v45 }
 0x491   : > { %6509 = vmatpush.bf16.msrb.mxu1 %v11068_v43 }
 0x495   : > { %4777 = vmatmul.bf16.gmra.mxu0 %v14107_v40  ;;  %4835 = vmatmul.bf16.gmra.mxu2 %v14107_v40  ;;  %v12237_v40 = vld [vmem:[#allocation17 + $0x5c] sm:$0xf0] }
 0x496   : > { %v10716_v38 = vor.u32 %v12237_v40, %v10715_v1  ;;  %6510 = vmatpush.bf16.msrb.mxu1 %v11036_v17  ;;  %v11580_v17 = vor.u32 %v12453_v42, %v11579_v52  ;;  %v10912_v1 = vor.u32 %v12281_v41, %v10909_v39  ;;  %v10781_v52 = vld [vmem:[#allocation17 + $0xe0] sm:$0xf0] }
 0x497   : > { %v10784_v42 = vor.u32 %v12249_v59, %v10781_v52 }
 0x498   : > { %6483 = vmatpush.bf16.msrb.mxu0 %v10716_v38  ;;  %6567 = vmatpush.bf16.msrb.mxu3 %v11580_v17  ;;  %v11069_v17 = vld [vmem:[#allocation17 + $0x320] sm:$0xf0] }
 0x49a   : > { %6511 = vmatpush.bf16.msrb.mxu1 %v11004_v3 }
 0x49b   : > { %4806 = vmatmul.bf16.gmra.mxu1 %v14111_v20  ;;  %4864 = vmatmul.bf16.gmra.mxu3 %v14111_v20  ;;  %v10972_v20 = vor.u32 %v12301_v23, %v10971_v36  ;;  %v11291_v36 = vld [vmem:[#allocation17 + $0x4c0] sm:$0xf] }
 0x49c   : > { %6484 = vmatpush.bf16.msrb.mxu0 %v10684_v60  ;;  %v12381_v23 = vld [vmem:[#allocation17 + $0x4dc] sm:$0xf0]  ;;  %6568 = vmatpush.bf16.msrb.mxu3 %v11548_v29  ;;  %v12233_v29 = vld [vmem:[#allocation17 + $0x44] sm:$0xf] }
 0x49d   : > { %v11292_v31 = vor.u32 %v12381_v23, %v11291_v36  ;;  %v12365_v36 = vld [vmem:[#allocation17 + $0x45c] sm:$0xf0] }
 0x49e   : > { %6512 = vmatpush.bf16.msrb.mxu1 %v10972_v20  ;;  %v10880_v20 = vor.u32 %v12273_v53, %v10877_v32  ;;  %v11227_v32 = vld [vmem:[#allocation17 + $0x440] sm:$0xf] }
 0x49f   : > { %6539 = vmatpush.bf16.msrb.mxu2 %v11292_v31  ;;  %v12313_v31 = vld [vmem:[#allocation17 + $0x2c4] sm:$0xf] }
 0x4a0   : > { %6593 = vmatpush.bf16.msra.mxu0 %v10912_v1 }
 0x4a2   : > { %6513 = vmatpush.bf16.msrb.mxu1 %v10940_v13  ;;  %v11165_v13 = vld [vmem:[#allocation17 + $0x3e0] sm:$0xf0] }
 0x4a3   : > { %v11168_v15 = vor.u32 %v12345_v6, %v11165_v13  ;;  %v11037_v6 = vld [vmem:[#allocation17 + $0x2e0] sm:$0xf0] }
 0x4a4   : > { %6594 = vmatpush.bf16.msra.mxu0 %v10880_v20  ;;  %v11228_v20 = vor.u32 %v12365_v36, %v11227_v32  ;;  %v11040_v47 = vor.u32 %v12313_v31, %v11037_v6  ;;  %v12473_v32 = vld [vmem:[#allocation17 + $0x7c4] sm:$0xf] }
 0x4a5   : > { %4782 = vmatmul.bf16.gmra.mxu0 %v14119_v4  ;;  %4840 = vmatmul.bf16.gmra.mxu2 %v14119_v4  ;;  %v14143_v4 = vld [vmem:[#allocation16] sm:$0xf]  ;;  %v11677_v36 = vld [vmem:[#allocation17 + $0x7e0] sm:$0xf0] }
 0x4a6   : > { %v14146_v12 = vperm.slane %v14143_v4, 0  ;;  %v14150_v25 = vperm.slane %v14143_v4, 1  ;;  %6622 = vmatpush.bf16.msra.mxu1 %v11168_v15 }
 0x4ab   : > { %4811 = vmatmul.bf16.gmra.mxu1 %v14123_v55  ;;  %4869 = vmatmul.bf16.gmra.mxu3 %v14123_v55 }
 0x4b2   : > { %v4652_v46 = vpop.f32.mrf.mxu0 }
 0x4b3   : > { %v4653_v19 = vadd.f32 %v4652_v46, %v14146_v12  ;;  %v12265_v46 = vld [vmem:[#allocation17 + $0x144] sm:$0xf] }
 0x4b4   : > { %v10848_v61 = vor.u32 %v12265_v46, %v10845_v49  ;;  %v10717_v46 = vld [vmem:[#allocation17 + $0x60] sm:$0xf0] }
 0x4b6   : > { %6595 = vmatpush.bf16.msra.mxu0 %v10848_v61 }
 0x4b8   : > { %v4681_v58 = vpop.f32.mrf.mxu1  ;;  %v4710_v55 = vpop.f32.mrf.mxu2 }
 0x4b9   : > { %v4682_v63 = vadd.f32 %v4681_v58, %v4653_v19  ;;  %v4711_v9 = vadd.f32 %v4710_v55, %v14150_v25  ;;  %v12337_v58 = vld [vmem:[#allocation17 + $0x384] sm:$0xf] }
 0x4ba   : > { %v4654_v16 = vpop.f32.mrf.mxu0  ;;  %v11133_v55 = vld [vmem:[#allocation17 + $0x3a0] sm:$0xf0] }
 0x4bb   : > { %v4655_v11 = vadd.f32 %v4654_v16, %v14146_v12  ;;  %v4875_v57 = vmax.f32 %v4682_v63, 0.0  ;;  %v11136_v34 = vor.u32 %v12337_v58, %v11133_v55  ;;  %v10813_v19 = vld [vmem:[#allocation17 + $0x120] sm:$0xf0] }
 0x4bc   : > { %v10816_v8 = vor.u32 %v12257_v48, %v10813_v19  ;;  %v12329_v63 = vld [vmem:[#allocation17 + $0x344] sm:$0xf]  ;;  %v12357_v48 = vld [vmem:[#allocation17 + $0x41c] sm:$0xf0] }
 0x4bd   : > { %6623 = vmatpush.bf16.msra.mxu1 %v11136_v34  ;;  %v11005_v58 = vld [vmem:[#allocation17 + $0x2a0] sm:$0xf0] }
 0x4be   : > { %v4739_v24 = vpop.f32.mrf.mxu3  ;;  %6596 = vmatpush.bf16.msra.mxu0 %v10816_v8  ;;  %v12225_v19 = vld [vmem:[#allocation17 + $0x4] sm:$0xf] }
 0x4bf   : > { %v4740_v45 = vadd.f32 %v4739_v24, %v4711_v9  ;;  %v11515_v9 = vld [vmem:[#allocation17 + $0x680] sm:$0xf] }
 0x4c0   : > { %v4683_v5 = vpop.f32.mrf.mxu1  ;;  %v4712_v44 = vpop.f32.mrf.mxu2  ;;  %v11516_v0 = vor.u32 %v12437_v51, %v11515_v9 }
 0x4c1   : > { %v4684_v26 = vadd.f32 %v4683_v5, %v4655_v11  ;;  %v4713_v50 = vadd.f32 %v4712_v44, %v14150_v25  ;;  %v4876_v28 = vmax.f32 %v4740_v45, 0.0  ;;  %v11101_v11 = vld [vmem:[#allocation17 + $0x360] sm:$0xf0] }
 0x4c2   : > { %v4657_v22 = vpop.f32.mrf.mxu0  ;;  %6569 = vmatpush.bf16.msrb.mxu3 %v11516_v0  ;;  %6597 = vmatpush.bf16.msra.mxu0 %v10784_v42  ;;  %v12289_v42 = vld [vmem:[#allocation17 + $0x204] sm:$0xf] }
 0x4c3   : > { %v4879_v21 = vmax.f32 %v4684_v26, 0.0  ;;  %v4658_v10 = vadd.f32 %v4657_v22, %v14146_v12  ;;  %v11259_v22 = vld [vmem:[#allocation17 + $0x480] sm:$0xf] }
 0x4c5   : > { %v14154_v27 = vpack.c.bf16 %v4879_v21, %v4875_v57  ;;  %v12373_v57 = vld [vmem:[#allocation17 + $0x49c] sm:$0xf0]  ;;  %v11104_v21 = vor.u32 %v12329_v63, %v11101_v11  ;;  %v10685_v63 = vld [vmem:[#allocation17 + $0x20] sm:$0xf0] }
 0x4c6   : > { %v4741_v43 = vpop.f32.mrf.mxu3  ;;  %v10688_v11 = vor.u32 %v12225_v19, %v10685_v63  ;;  %v14189_v19 = vperm.slane %v14143_v4, 2 }
 0x4c7   : > { %v4742_v2 = vadd.f32 %v4741_v43, %v4713_v50  ;;  %6485 = vmatmul.bf16.vlgmr.msrb.gmra.mxu0 %v14154_v27  ;;  %v11260_v50 = vor.u32 %v12373_v57, %v11259_v22  ;;  %6624 = vmatpush.bf16.msra.mxu1 %v11104_v21  ;;  %v11451_v21 = vld [vmem:[#allocation17 + $0x600] sm:$0xf] }
 0x4c8   : > { %v4686_v40 = vpop.f32.mrf.mxu1  ;;  %v4715_v38 = vpop.f32.mrf.mxu2 }
 0x4c9   : > { %v4880_v7 = vmax.f32 %v4742_v2, 0.0  ;;  %v4687_v54 = vadd.f32 %v4686_v40, %v4658_v10  ;;  %v4716_v56 = vadd.f32 %v4715_v38, %v14150_v25  ;;  %6540 = vmatpush.bf16.msrb.mxu2 %v11260_v50  ;;  %v12321_v2 = vld [vmem:[#allocation17 + $0x304] sm:$0xf]  ;;  %v11483_v10 = vld [vmem:[#allocation17 + $0x640] sm:$0xf] }
 0x4ca   : > { %v4659_v3 = vpop.f32.mrf.mxu0  ;;  %v11072_v38 = vor.u32 %v12321_v2, %v11069_v17 }
 0x4cb   : > { %v14158_v60 = vpack.c.bf16 %v4880_v7, %v4876_v28  ;;  %v4660_v14 = vadd.f32 %v4659_v3, %v14146_v12  ;;  %v4883_v33 = vmax.f32 %v4687_v54, 0.0  ;;  %v12241_v7 = vld [vmem:[#allocation17 + $0x84] sm:$0xf] }
 0x4cc   : > { %v10749_v3 = vld [vmem:[#allocation17 + $0xa0] sm:$0xf0]  ;;  %6625 = vmatpush.bf16.msra.mxu1 %v11072_v38 }
 0x4cd   : > { %6514 = vmatmul.bf16.vlgmr.msrb.gmra.mxu1 %v14158_v60  ;;  %v10752_v23 = vor.u32 %v12241_v7, %v10749_v3  ;;  %6541 = vmatpush.bf16.msrb.mxu2 %v11228_v20  ;;  %v12409_v38 = vld [vmem:[#allocation17 + $0x5c4] sm:$0xf]  ;;  %v11680_v20 = vor.u32 %v12473_v32, %v11677_v36  ;;  %v10915_v32 = vld [vmem:[#allocation17 + $0x1c8] sm:$0xf] }
 0x4ce   : > { %v4744_v37 = vpop.f32.mrf.mxu3  ;;  %v12286_v36 = vld [vmem:[#allocation17 + $0x1e4] sm:$0xf0] }
 0x4cf   : > { %v4745_v5 = vadd.f32 %v4744_v37, %v4716_v56  ;;  %6598 = vmatpush.bf16.msra.mxu0 %v10752_v23  ;;  %v11484_v37 = vor.u32 %v12429_v30, %v11483_v10 }
 0x4d0   : > { %v4688_v35 = vpop.f32.mrf.mxu1  ;;  %v4717_v62 = vpop.f32.mrf.mxu2  ;;  %6626 = vmatpush.bf16.msra.mxu1 %v11040_v47 }
 0x4d1   : > { %v4689_v16 = vadd.f32 %v4688_v35, %v4660_v14  ;;  %v4718_v26 = vadd.f32 %v4717_v62, %v14150_v25  ;;  %v4884_v1 = vmax.f32 %v4745_v5, 0.0  ;;  %v10720_v14 = vor.u32 %v12233_v29, %v10717_v46  ;;  %6570 = vmatpush.bf16.msrb.mxu3 %v11484_v37  ;;  %v12305_v62 = vld [vmem:[#allocation17 + $0x284] sm:$0xf] }
 0x4d2   : > { %v4662_v18 = vpop.f32.mrf.mxu0  ;;  %v12297_v5 = vld [vmem:[#allocation17 + $0x244] sm:$0xf] }
 0x4d3   : > { %v4887_v24 = vmax.f32 %v4689_v16, 0.0  ;;  %v4663_v13 = vadd.f32 %v4662_v18, %v14146_v12  ;;  %6599 = vmatpush.bf16.msra.mxu0 %v10720_v14  ;;  %v11008_v16 = vor.u32 %v12305_v62, %v11005_v58  ;;  %v11195_v18 = vld [vmem:[#allocation17 + $0x400] sm:$0xf]  ;;  %v12401_v14 = vld [vmem:[#allocation17 + $0x584] sm:$0xf] }
 0x4d4   : > { %v11196_v8 = vor.u32 %v12357_v48, %v11195_v18 }
 0x4d5   : > { %v14164_v44 = vpack.c.bf16 %v4887_v24, %v4883_v33  ;;  %6627 = vmatpush.bf16.msra.mxu1 %v11008_v16 }
 0x4d6   : > { %v4746_v45 = vpop.f32.mrf.mxu3  ;;  %6542 = vmatpush.bf16.msrb.mxu2 %v11196_v8  ;;  %v11357_v8 = vld [vmem:[#allocation17 + $0x560] sm:$0xf0] }
 0x4d7   : > { %v4747_v43 = vadd.f32 %v4746_v45, %v4718_v26  ;;  %6490 = vmatmul.bf16.gmra.mxu0 %v14164_v44  ;;  %v10973_v26 = vld [vmem:[#allocation17 + $0x260] sm:$0xf0]  ;;  %v12421_v45 = vld [vmem:[#allocation17 + $0x61c] sm:$0xf0] }
 0x4d8   : > { %v4691_v41 = vpop.f32.mrf.mxu1  ;;  %v4720_v39 = vpop.f32.mrf.mxu2  ;;  %v10976_v50 = vor.u32 %v12297_v5, %v10973_v26  ;;  %6600 = vmatpush.bf16.msra.mxu0 %v10688_v11  ;;  %v11452_v59 = vor.u32 %v12421_v45, %v11451_v21  ;;  %v12457_v5 = vld [vmem:[#allocation17 + $0x744] sm:$0xf]  ;;  %v14196_v45 = vperm.slane %v14143_v4, 3 }
 0x4d9   : > { %v4888_v40 = vmax.f32 %v4747_v43, 0.0  ;;  %v4692_v49 = vadd.f32 %v4691_v41, %v4663_v13  ;;  %v4721_v56 = vadd.f32 %v4720_v39, %v14150_v25  ;;  %v10941_v41 = vld [vmem:[#allocation17 + $0x220] sm:$0xf0] }
 0x4da   : > { %v4664_v28 = vpop.f32.mrf.mxu0  ;;  %6628 = vmatpush.bf16.msra.mxu1 %v10976_v50  ;;  %6571 = vmatpush.bf16.msrb.mxu3 %v11452_v59  ;;  %v10944_v17 = vor.u32 %v12289_v42, %v10941_v41  ;;  %v11613_v26 = vld [vmem:[#allocation17 + $0x760] sm:$0xf0] }
 0x4db   : > { %v14168_v53 = vpack.c.bf16 %v4888_v40, %v4884_v1  ;;  %v4665_v54 = vadd.f32 %v4664_v28, %v14146_v12  ;;  %v4891_v33 = vmax.f32 %v4692_v49, 0.0  ;;  %v11421_v28 = vld [vmem:[#allocation17 + $0x5e0] sm:$0xf0] }
 0x4dc   : > { %v11424_v7 = vor.u32 %v12409_v38, %v11421_v28  ;;  %v11325_v38 = vld [vmem:[#allocation17 + $0x520] sm:$0xf0] }
 0x4dd   : > { %6519 = vmatmul.bf16.gmra.mxu1 %v14168_v53  ;;  %v12449_v4 = vld [vmem:[#allocation17 + $0x704] sm:$0xf] }
 0x4de   : > { %v4749_v15 = vpop.f32.mrf.mxu3  ;;  %6629 = vmatpush.bf16.msra.mxu1 %v10944_v17  ;;  %6651 = vmatpush.bf16.msra.mxu2 %v11424_v7 }
 0x4df   : > { %v4750_v22 = vadd.f32 %v4749_v15, %v4721_v56  ;;  %6680 = vmatpush.bf16.msra.mxu3 %v11680_v20 }
 0x4e0   : > { %v4693_v61 = vpop.f32.mrf.mxu1  ;;  %v4722_v35 = vpop.f32.mrf.mxu2 }
 0x4e1   : > { %v4694_v55 = vadd.f32 %v4693_v61, %v4665_v54  ;;  %v4723_v9 = vadd.f32 %v4722_v35, %v14150_v25  ;;  %v4892_v39 = vmax.f32 %v4750_v22, 0.0  ;;  %v11389_v61 = vld [vmem:[#allocation17 + $0x5a0] sm:$0xf0] }
 0x4e2   : > { %v4667_v34 = vpop.f32.mrf.mxu0  ;;  %v12465_v35 = vld [vmem:[#allocation17 + $0x784] sm:$0xf]  ;;  %v11392_v58 = vor.u32 %v12401_v14, %v11389_v61 }
 0x4e3   : > { %v4895_v24 = vmax.f32 %v4694_v55, 0.0  ;;  %v4668_v3 = vadd.f32 %v4667_v34, %v14146_v12 }
 0x4e4   : > { %6652 = vmatpush.bf16.msra.mxu2 %v11392_v58 }
 0x4e5   : > { %v14174_v57 = vpack.c.bf16 %v4895_v24, %v4891_v33  ;;  %v12393_v24 = vld [vmem:[#allocation17 + $0x544] sm:$0xf] }
 0x4e6   : > { %v4751_v51 = vpop.f32.mrf.mxu3  ;;  %v11360_v63 = vor.u32 %v12393_v24, %v11357_v8 }
 0x4e7   : > { %v4752_v52 = vadd.f32 %v4751_v51, %v4723_v9  ;;  %6495 = vmatmul.bf16.gmra.mxu0 %v14174_v57  ;;  %v11616_v9 = vor.u32 %v12457_v5, %v11613_v26  ;;  %v11139_v5 = vld [vmem:[#allocation17 + $0x388] sm:$0xf] }
 0x4e8   : > { %v4696_v43 = vpop.f32.mrf.mxu1  ;;  %v4725_v0 = vpop.f32.mrf.mxu2  ;;  %6653 = vmatpush.bf16.msra.mxu2 %v11360_v63  ;;  %v12342_v26 = vld [vmem:[#allocation17 + $0x3a4] sm:$0xf0] }
 0x4e9   : > { %v4896_v2 = vmax.f32 %v4752_v52, 0.0  ;;  %v4697_v31 = vadd.f32 %v4696_v43, %v4668_v3  ;;  %v4726_v37 = vadd.f32 %v4725_v0, %v14150_v25  ;;  %v11581_v3 = vld [vmem:[#allocation17 + $0x720] sm:$0xf0] }
 0x4ea   : > { %v4669_v1 = vpop.f32.mrf.mxu0  ;;  %v11584_v20 = vor.u32 %v12449_v4, %v11581_v3  ;;  %v11261_v4 = vld [vmem:[#allocation17 + $0x4a0] sm:$0xf0] }
 0x4eb   : > { %v14178_v40 = vpack.c.bf16 %v4896_v2, %v4892_v39  ;;  %v4670_v6 = vadd.f32 %v4669_v1, %v14146_v12  ;;  %v4899_v15 = vmax.f32 %v4697_v31, 0.0  ;;  %v11645_v12 = vld [vmem:[#allocation17 + $0x7a0] sm:$0xf0]  ;;  %v10916_v31 = vor.u32 %v12286_v36, %v10915_v32 }
 0x4ec   : > { %v11648_v16 = vor.u32 %v12465_v35, %v11645_v12  ;;  %v12385_v1 = vld [vmem:[#allocation17 + $0x504] sm:$0xf]  ;;  %v11171_v35 = vld [vmem:[#allocation17 + $0x3c8] sm:$0xf] }
 0x4ed   : > { %6524 = vmatmul.bf16.gmra.mxu1 %v14178_v40  ;;  %v11328_v7 = vor.u32 %v12385_v1, %v11325_v38  ;;  %6709 = vmatpush.bf16.msrb.mxu0 %v10916_v31  ;;  %v12441_v12 = vld [vmem:[#allocation17 + $0x6c4] sm:$0xf] }
 0x4ee   : > { %v4754_v23 = vpop.f32.mrf.mxu3  ;;  %6681 = vmatpush.bf16.msra.mxu3 %v11648_v16  ;;  %v12369_v38 = vld [vmem:[#allocation17 + $0x484] sm:$0xf] }
 0x4ef   : > { %v4755_v46 = vadd.f32 %v4754_v23, %v4726_v37  ;;  %6654 = vmatpush.bf16.msra.mxu2 %v11328_v7  ;;  %v12278_v37 = vld [vmem:[#allocation17 + $0x1a4] sm:$0xf0]  ;;  %v11264_v32 = vor.u32 %v12369_v38, %v11261_v4  ;;  %v11517_v36 = vld [vmem:[#allocation17 + $0x6a0] sm:$0xf0] }
 0x4f0   : > { %v4698_v13 = vpop.f32.mrf.mxu1  ;;  %v4727_v10 = vpop.f32.mrf.mxu2  ;;  %v12230_v38 = vld [vmem:[#allocation17 + $0x24] sm:$0xf0] }
 0x4f1   : > { %v4699_v30 = vadd.f32 %v4698_v13, %v4670_v6  ;;  %v4728_v54 = vadd.f32 %v4727_v10, %v14150_v25  ;;  %v4900_v48 = vmax.f32 %v4755_v46, 0.0  ;;  %v12377_v46 = vld [vmem:[#allocation17 + $0x4c4] sm:$0xf] }
 0x4f2   : > { %v4768_v47 = vpop.f32.mrf.mxu0  ;;  %6682 = vmatpush.bf16.msra.mxu3 %v11616_v9  ;;  %v11140_v9 = vor.u32 %v12342_v26, %v11139_v5  ;;  %v12238_v5 = vld [vmem:[#allocation17 + $0x64] sm:$0xf0] }
 0x4f3   : > { %v4903_v29 = vmax.f32 %v4699_v30, 0.0  ;;  %v4769_v11 = vadd.f32 %v4768_v47, %v14189_v19  ;;  %v11011_v26 = vld [vmem:[#allocation17 + $0x288] sm:$0xf] }
 0x4f5   : > { %v14184_v49 = vpack.c.bf16 %v4903_v29, %v4899_v15  ;;  %v10883_v15 = vld [vmem:[#allocation17 + $0x188] sm:$0xf] }
 0x4f6   : > { %v4756_v62 = vpop.f32.mrf.mxu3  ;;  %6683 = vmatpush.bf16.msra.mxu3 %v11584_v20  ;;  %v10884_v14 = vor.u32 %v12278_v37, %v10883_v15  ;;  %v12254_v20 = vld [vmem:[#allocation17 + $0xe4] sm:$0xf0] }
 0x4f7   : > { %v4757_v55 = vadd.f32 %v4756_v62, %v4728_v54  ;;  %6500 = vmatmul.bf16.gmra.mxu0 %v14184_v49  ;;  %v11293_v54 = vld [vmem:[#allocation17 + $0x4e0] sm:$0xf0]  ;;  %v12350_v62 = vld [vmem:[#allocation17 + $0x3e4] sm:$0xf0] }
 0x4f8   : > { %v4797_v34 = vpop.f32.mrf.mxu1  ;;  %v4826_v18 = vpop.f32.mrf.mxu2  ;;  %v11296_v61 = vor.u32 %v12377_v46, %v11293_v54  ;;  %v11172_v16 = vor.u32 %v12350_v62, %v11171_v35  ;;  %6710 = vmatpush.bf16.msrb.mxu0 %v10884_v14  ;;  %v12326_v15 = vld [vmem:[#allocation17 + $0x324] sm:$0xf0] }
 0x4f9   : > { %v4904_v33 = vmax.f32 %v4757_v55, 0.0  ;;  %v4798_v21 = vadd.f32 %v4797_v34, %v4769_v11  ;;  %v4827_v42 = vadd.f32 %v4826_v18, %v14196_v45  ;;  %v11549_v55 = vld [vmem:[#allocation17 + $0x6e0] sm:$0xf0]  ;;  %v12246_v35 = vld [vmem:[#allocation17 + $0xa4] sm:$0xf0] }
 0x4fa   : > { %v4770_v25 = vpop.f32.mrf.mxu0  ;;  %6655 = vmatpush.bf16.msra.mxu2 %v11296_v61  ;;  %v11552_v18 = vor.u32 %v12441_v12, %v11549_v55  ;;  %6738 = vmatpush.bf16.msrb.mxu1 %v11172_v16  ;;  %v10755_v61 = vld [vmem:[#allocation17 + $0x88] sm:$0xf]  ;;  %v11229_v12 = vld [vmem:[#allocation17 + $0x460] sm:$0xf0] }
 0x4fb   : > { %v14191_v56 = vpack.c.bf16 %v4904_v33, %v4900_v48  ;;  %v4771_v50 = vadd.f32 %v4770_v25, %v14189_v19  ;;  %v4877_v0 = vmax.f32 %v4798_v21, 0.0  ;;  %v10851_v48 = vld [vmem:[#allocation17 + $0x148] sm:$0xf]  ;;  %v10756_v55 = vor.u32 %v12246_v35, %v10755_v61 }
 0x4fc   : > { %v12270_v33 = vld [vmem:[#allocation17 + $0x164] sm:$0xf0]  ;;  %6684 = vmatpush.bf16.msra.mxu3 %v11552_v18 }
 0x4fd   : > { %6529 = vmatmul.bf16.gmra.mxu1 %v14191_v56  ;;  %v10852_v8 = vor.u32 %v12270_v33, %v10851_v48  ;;  %v12318_v18 = vld [vmem:[#allocation17 + $0x2e4] sm:$0xf0]  ;;  %v12425_v33 = vld [vmem:[#allocation17 + $0x644] sm:$0xf] }
 0x4fe   : > { %v4855_v22 = vpop.f32.mrf.mxu3  ;;  %6739 = vmatpush.bf16.msrb.mxu1 %v11140_v9  ;;  %6656 = vmatpush.bf16.msra.mxu2 %v11264_v32  ;;  %v10979_v32 = vld [vmem:[#allocation17 + $0x248] sm:$0xf] }
 0x4ff   : > { %v4856_v39 = vadd.f32 %v4855_v22, %v4827_v42  ;;  %6711 = vmatpush.bf16.msrb.mxu0 %v10852_v8  ;;  %v11107_v42 = vld [vmem:[#allocation17 + $0x348] sm:$0xf] }
 0x500   : > { %v4799_v51 = vpop.f32.mrf.mxu1  ;;  %v4828_v59 = vpop.f32.mrf.mxu2  ;;  %v10723_v8 = vld [vmem:[#allocation17 + $0x48] sm:$0xf] }
 0x501   : > { %v4800_v52 = vadd.f32 %v4799_v51, %v4771_v50  ;;  %v4829_v17 = vadd.f32 %v4828_v59, %v14196_v45  ;;  %v4878_v10 = vmax.f32 %v4856_v39, 0.0  ;;  %v10819_v50 = vld [vmem:[#allocation17 + $0x108] sm:$0xf] }
 0x502   : > { %v4773_v43 = vpop.f32.mrf.mxu0  ;;  %v12262_v51 = vld [vmem:[#allocation17 + $0x124] sm:$0xf0] }
 0x503   : > { %v4881_v41 = vmax.f32 %v4800_v52, 0.0  ;;  %v4774_v58 = vadd.f32 %v4773_v43, %v14189_v19 }
 0x505   : > { %v14200_v2 = vpack.c.bf16 %v4881_v41, %v4877_v0  ;;  %v10820_v0 = vor.u32 %v12262_v51, %v10819_v50  ;;  %v12334_v41 = vld [vmem:[#allocation17 + $0x364] sm:$0xf0]  ;;  %v10724_v51 = vor.u32 %v12238_v5, %v10723_v8 }
 0x506   : > { %v4857_v28 = vpop.f32.mrf.mxu3  ;;  %v11108_v7 = vor.u32 %v12334_v41, %v11107_v42 }
 0x507   : > { %v4858_v23 = vadd.f32 %v4857_v28, %v4829_v17  ;;  %6543 = vmatmul.bf16.vlgmr.msrb.gmra.mxu2 %v14200_v2  ;;  %6601 = vmatmul.bf16.vlgmr.msra.gmra.mxu0 %v14154_v27  ;;  %v12433_v28 = vld [vmem:[#allocation17 + $0x684] sm:$0xf] }
 0x508   : > { %v4802_v6 = vpop.f32.mrf.mxu1  ;;  %v4831_v13 = vpop.f32.mrf.mxu2  ;;  %6712 = vmatpush.bf16.msrb.mxu0 %v10820_v0  ;;  %6740 = vmatpush.bf16.msrb.mxu1 %v11108_v7 }
 0x509   : > { %v4882_v30 = vmax.f32 %v4858_v23, 0.0  ;;  %v4803_v25 = vadd.f32 %v4802_v6, %v4774_v58  ;;  %v4832_v52 = vadd.f32 %v4831_v13, %v14196_v45  ;;  %v10787_v23 = vld [vmem:[#allocation17 + $0xc8] sm:$0xf]  ;;  %v11520_v6 = vor.u32 %v12433_v28, %v11517_v36  ;;  %v12361_v58 = vld [vmem:[#allocation17 + $0x444] sm:$0xf] }
 0x50a   : > { %v4775_v47 = vpop.f32.mrf.mxu0  ;;  %v10788_v13 = vor.u32 %v12254_v20, %v10787_v23  ;;  %v11232_v16 = vor.u32 %v12361_v58, %v11229_v12  ;;  %v12302_v36 = vld [vmem:[#allocation17 + $0x264] sm:$0xf0] }
 0x50b   : > { %v14205_v29 = vpack.c.bf16 %v4882_v30, %v4878_v10  ;;  %v4776_v24 = vadd.f32 %v4775_v47, %v14189_v19  ;;  %v4885_v59 = vmax.f32 %v4803_v25, 0.0  ;;  %v11075_v47 = vld [vmem:[#allocation17 + $0x308] sm:$0xf]  ;;  %6685 = vmatpush.bf16.msra.mxu3 %v11520_v6  ;;  %v11485_v25 = vld [vmem:[#allocation17 + $0x660] sm:$0xf0] }
 0x50c   : > { %v11076_v54 = vor.u32 %v12326_v15, %v11075_v47  ;;  %6713 = vmatpush.bf16.msrb.mxu0 %v10788_v13  ;;  %6657 = vmatpush.bf16.msra.mxu2 %v11232_v16  ;;  %v12417_v6 = vld [vmem:[#allocation17 + $0x604] sm:$0xf]  ;;  %v12414_v16 = vld [vmem:[#allocation17 + $0x5e4] sm:$0xf0] }
 0x50d   : > { %6572 = vmatmul.bf16.vlgmr.msrb.gmra.mxu3 %v14205_v29  ;;  %6630 = vmatmul.bf16.vlgmr.msra.gmra.mxu1 %v14158_v60  ;;  %v11453_v13 = vld [vmem:[#allocation17 + $0x620] sm:$0xf0] }
 0x50e   : > { %v4860_v34 = vpop.f32.mrf.mxu3  ;;  %6741 = vmatpush.bf16.msrb.mxu1 %v11076_v54  ;;  %v11456_v15 = vor.u32 %v12417_v6, %v11453_v13  ;;  %v10947_v54 = vld [vmem:[#allocation17 + $0x208] sm:$0xf] }
 0x50f   : > { %v4861_v39 = vadd.f32 %v4860_v34, %v4832_v52  ;;  %v11043_v34 = vld [vmem:[#allocation17 + $0x2c8] sm:$0xf] }
 0x510   : > { %v4804_v63 = vpop.f32.mrf.mxu1  ;;  %v4833_v11 = vpop.f32.mrf.mxu2  ;;  %6714 = vmatpush.bf16.msrb.mxu0 %v10756_v55  ;;  %v11427_v55 = vld [vmem:[#allocation17 + $0x5c8] sm:$0xf] }
 0x511   : > { %v4805_v22 = vadd.f32 %v4804_v63, %v4776_v24  ;;  %v4834_v1 = vadd.f32 %v4833_v11, %v14196_v45  ;;  %v4886_v37 = vmax.f32 %v4861_v39, 0.0  ;;  %v11044_v24 = vor.u32 %v12318_v18, %v11043_v34  ;;  %v11331_v6 = vld [vmem:[#allocation17 + $0x508] sm:$0xf] }
 0x512   : > { %v4778_v21 = vpop.f32.mrf.mxu0  ;;  %v11488_v11 = vor.u32 %v12425_v33, %v11485_v25  ;;  %v11428_v18 = vor.u32 %v12414_v16, %v11427_v55  ;;  %v11683_v33 = vld [vmem:[#allocation17 + $0x7c8] sm:$0xf] }
 0x513   : > { %v4889_v43 = vmax.f32 %v4805_v22, 0.0  ;;  %v4779_v48 = vadd.f32 %v4778_v21, %v14189_v19  ;;  %v12310_v22 = vld [vmem:[#allocation17 + $0x2a4] sm:$0xf0]  ;;  %v12353_v21 = vld [vmem:[#allocation17 + $0x404] sm:$0xf]  ;;  %6742 = vmatpush.bf16.msrb.mxu1 %v11044_v24 }
 0x514   : > { %6686 = vmatpush.bf16.msra.mxu3 %v11488_v11  ;;  %v11012_v0 = vor.u32 %v12310_v22, %v11011_v26  ;;  %6715 = vmatpush.bf16.msrb.mxu0 %v10724_v51  ;;  %v12478_v25 = vld [vmem:[#allocation17 + $0x7e4] sm:$0xf0] }
 0x515   : > { %v14212_v17 = vpack.c.bf16 %v4889_v43, %v4885_v59  ;;  %v11197_v59 = vld [vmem:[#allocation17 + $0x420] sm:$0xf0]  ;;  %v11684_v8 = vor.u32 %v12478_v25, %v11683_v33  ;;  %v12390_v13 = vld [vmem:[#allocation17 + $0x524] sm:$0xf0]  ;;  %v12346_v33 = vld [vmem:[#allocation17 + $0x3cc] sm:$0xf] }
 0x516   : > { %v4862_v3 = vpop.f32.mrf.mxu3  ;;  %v11200_v42 = vor.u32 %v12353_v21, %v11197_v59  ;;  %v11395_v21 = vld [vmem:[#allocation17 + $0x588] sm:$0xf]  ;;  %v11173_v25 = vld [vmem:[#allocation17 + $0x3e8] sm:$0xf0] }
 0x517   : > { %v4863_v31 = vadd.f32 %v4862_v3, %v4834_v1  ;;  %6548 = vmatmul.bf16.gmra.mxu2 %v14212_v17  ;;  %6606 = vmatmul.bf16.gmra.mxu0 %v14164_v44  ;;  %v10691_v1 = vld [vmem:[#allocation17 + $0x8] sm:$0xf] }
 0x518   : > { %v4807_v10 = vpop.f32.mrf.mxu1  ;;  %v4836_v30 = vpop.f32.mrf.mxu2  ;;  %6658 = vmatpush.bf16.msra.mxu2 %v11200_v42  ;;  %v10692_v3 = vor.u32 %v12230_v38, %v10691_v1  ;;  %6743 = vmatpush.bf16.msrb.mxu1 %v11012_v0  ;;  %v12406_v59 = vld [vmem:[#allocation17 + $0x5a4] sm:$0xf0] }
 0x519   : > { %v4890_v46 = vmax.f32 %v4863_v31, 0.0  ;;  %v4808_v9 = vadd.f32 %v4807_v10, %v4779_v48  ;;  %v4837_v28 = vadd.f32 %v4836_v30, %v14196_v45  ;;  %v10980_v10 = vor.u32 %v12302_v36, %v10979_v32  ;;  %6687 = vmatpush.bf16.msra.mxu3 %v11456_v15  ;;  %v12398_v32 = vld [vmem:[#allocation17 + $0x564] sm:$0xf0] }
 0x51a   : > { %v4780_v14 = vpop.f32.mrf.mxu0  ;;  %6716 = vmatpush.bf16.msrb.mxu0 %v10692_v3  ;;  %v11363_v3 = vld [vmem:[#allocation17 + $0x548] sm:$0xf] }
 0x51b   : > { %v14217_v62 = vpack.c.bf16 %v4890_v46, %v4886_v37  ;;  %v4781_v50 = vadd.f32 %v4780_v14, %v14189_v19  ;;  %v4893_v4 = vmax.f32 %v4808_v9, 0.0  ;;  %v12294_v14 = vld [vmem:[#allocation17 + $0x224] sm:$0xf0]  ;;  %v11364_v36 = vor.u32 %v12398_v32, %v11363_v3 }
 0x51c   : > { %6744 = vmatpush.bf16.msrb.mxu1 %v10980_v10  ;;  %v10948_v58 = vor.u32 %v12294_v14, %v10947_v54  ;;  %6767 = vmatpush.bf16.msrb.mxu2 %v11428_v18  ;;  %v11587_v15 = vld [vmem:[#allocation17 + $0x708] sm:$0xf]  ;;  %v10917_v54 = vld [vmem:[#allocation17 + $0x1e8] sm:$0xf0] }
 0x51d   : > { %6577 = vmatmul.bf16.gmra.mxu3 %v14217_v62  ;;  %6635 = vmatmul.bf16.gmra.mxu1 %v14168_v53  ;;  %v11299_v55 = vld [vmem:[#allocation17 + $0x4c8] sm:$0xf] }
 0x51e   : > { %v4865_v63 = vpop.f32.mrf.mxu3  ;;  %6796 = vmatpush.bf16.msrb.mxu3 %v11684_v8  ;;  %v12382_v16 = vld [vmem:[#allocation17 + $0x4e4] sm:$0xf0] }
 0x51f   : > { %v4866_v23 = vadd.f32 %v4865_v63, %v4837_v28  ;;  %v12446_v8 = vld [vmem:[#allocation17 + $0x6e4] sm:$0xf0] }
 0x520   : > { %v4809_v52 = vpop.f32.mrf.mxu1  ;;  %v4838_v43 = vpop.f32.mrf.mxu2  ;;  %6745 = vmatpush.bf16.msrb.mxu1 %v10948_v58  ;;  %v10885_v58 = vld [vmem:[#allocation17 + $0x1a8] sm:$0xf0] }
 0x521   : > { %v4810_v41 = vadd.f32 %v4809_v52, %v4781_v50  ;;  %v4839_v31 = vadd.f32 %v4838_v43, %v14196_v45  ;;  %v4894_v61 = vmax.f32 %v4866_v23, 0.0  ;;  %v11396_v52 = vor.u32 %v12406_v59, %v11395_v21  ;;  %v12462_v23 = vld [vmem:[#allocation17 + $0x764] sm:$0xf0]  ;;  %v12258_v59 = vld [vmem:[#allocation17 + $0x10c] sm:$0xf] }
 0x522   : > { %v4783_v39 = vpop.f32.mrf.mxu0 }
 0x523   : > { %v4897_v7 = vmax.f32 %v4810_v41, 0.0  ;;  %v4784_v48 = vadd.f32 %v4783_v39, %v14189_v19  ;;  %v11651_v41 = vld [vmem:[#allocation17 + $0x788] sm:$0xf]  ;;  %6768 = vmatpush.bf16.msrb.mxu2 %v11396_v52  ;;  %v10821_v52 = vld [vmem:[#allocation17 + $0x128] sm:$0xf0] }
 0x524   : > { %v12470_v39 = vld [vmem:[#allocation17 + $0x7a4] sm:$0xf0] }
 0x525   : > { %v14224_v20 = vpack.c.bf16 %v4897_v7, %v4893_v4 }
 0x526   : > { %v4867_v47 = vpop.f32.mrf.mxu3 }
 0x527   : > { %v4868_v37 = vadd.f32 %v4867_v47, %v4839_v31  ;;  %6553 = vmatmul.bf16.gmra.mxu2 %v14224_v20  ;;  %6611 = vmatmul.bf16.gmra.mxu0 %v14174_v57  ;;  %v11332_v47 = vor.u32 %v12390_v13, %v11331_v6  ;;  %v11077_v6 = vld [vmem:[#allocation17 + $0x328] sm:$0xf0] }
 0x528   : > { %v4812_v30 = vpop.f32.mrf.mxu1  ;;  %v4841_v46 = vpop.f32.mrf.mxu2  ;;  %6769 = vmatpush.bf16.msrb.mxu2 %v11364_v36  ;;  %v12250_v36 = vld [vmem:[#allocation17 + $0xcc] sm:$0xf] }
 0x529   : > { %v4898_v35 = vmax.f32 %v4868_v37, 0.0  ;;  %v4813_v63 = vadd.f32 %v4812_v30, %v4784_v48  ;;  %v4842_v50 = vadd.f32 %v4841_v46, %v14196_v45  ;;  %v12454_v37 = vld [vmem:[#allocation17 + $0x724] sm:$0xf0]  ;;  %v12282_v46 = vld [vmem:[#allocation17 + $0x1cc] sm:$0xf]  ;;  %v11300_v48 = vor.u32 %v12382_v16, %v11299_v55 }
 0x52a   : > { %v4785_v34 = vpop.f32.mrf.mxu0  ;;  %v11588_v30 = vor.u32 %v12454_v37, %v11587_v15  ;;  %v10920_v14 = vor.u32 %v12282_v46, %v10917_v54  ;;  %v12242_v15 = vld [vmem:[#allocation17 + $0x8c] sm:$0xf]  ;;  %v12366_v46 = vld [vmem:[#allocation17 + $0x464] sm:$0xf0] }
 0x52b   : > { %v14229_v12 = vpack.c.bf16 %v4898_v35, %v4894_v61  ;;  %v4786_v11 = vadd.f32 %v4785_v34, %v14189_v19  ;;  %v4901_v9 = vmax.f32 %v4813_v63, 0.0  ;;  %v11652_v19 = vor.u32 %v12470_v39, %v11651_v41  ;;  %v12274_v35 = vld [vmem:[#allocation17 + $0x18c] sm:$0xf]  ;;  %v11491_v16 = vld [vmem:[#allocation17 + $0x648] sm:$0xf] }
 0x52c   : > { %6770 = vmatpush.bf16.msrb.mxu2 %v11332_v47  ;;  %6825 = vmatpush.bf16.msra.mxu0 %v10920_v14  ;;  %v10888_v34 = vor.u32 %v12274_v35, %v10885_v58  ;;  %v11176_v63 = vor.u32 %v12346_v33, %v11173_v25  ;;  %v10824_v41 = vor.u32 %v12258_v59, %v10821_v52  ;;  %v10757_v37 = vld [vmem:[#allocation17 + $0xa8] sm:$0xf0] }
 0x52d   : > { %6582 = vmatmul.bf16.gmra.mxu3 %v14229_v12  ;;  %6640 = vmatmul.bf16.gmra.mxu1 %v14178_v40  ;;  %v10760_v54 = vor.u32 %v12242_v15, %v10757_v37  ;;  %v12314_v58 = vld [vmem:[#allocation17 + $0x2cc] sm:$0xf] }
 0x52e   : > { %v4870_v24 = vpop.f32.mrf.mxu3  ;;  %6797 = vmatpush.bf16.msrb.mxu3 %v11652_v19  ;;  %6854 = vmatpush.bf16.msra.mxu1 %v11176_v63  ;;  %v12330_v19 = vld [vmem:[#allocation17 + $0x34c] sm:$0xf] }
 0x52f   : > { %v4871_v43 = vadd.f32 %v4870_v24, %v4842_v50  ;;  %v11555_v24 = vld [vmem:[#allocation17 + $0x6c8] sm:$0xf]  ;;  %v11141_v50 = vld [vmem:[#allocation17 + $0x3a8] sm:$0xf0] }
 0x530   : > { %v4814_v5 = vpop.f32.mrf.mxu1  ;;  %v4843_v22 = vpop.f32.mrf.mxu2  ;;  %6771 = vmatpush.bf16.msrb.mxu2 %v11300_v48  ;;  %6826 = vmatpush.bf16.msra.mxu0 %v10888_v34  ;;  %v11045_v55 = vld [vmem:[#allocation17 + $0x2e8] sm:$0xf0]  ;;  %v12430_v34 = vld [vmem:[#allocation17 + $0x664] sm:$0xf0] }
 0x531   : > { %v4815_v26 = vadd.f32 %v4814_v5, %v4786_v11  ;;  %v4844_v42 = vadd.f32 %v4843_v22, %v14196_v45  ;;  %v4902_v4 = vmax.f32 %v4871_v43, 0.0  ;;  %v11619_v45 = vld [vmem:[#allocation17 + $0x748] sm:$0xf]  ;;  %v12266_v11 = vld [vmem:[#allocation17 + $0x14c] sm:$0xf]  ;;  %v11556_v5 = vor.u32 %v12446_v8, %v11555_v24 }
 0x532   : > { %v11620_v31 = vor.u32 %v12462_v23, %v11619_v45  ;;  %v11267_v43 = vld [vmem:[#allocation17 + $0x488] sm:$0xf]  ;;  %v10789_v45 = vld [vmem:[#allocation17 + $0xe8] sm:$0xf0]  ;;  %v11048_v48 = vor.u32 %v12314_v58, %v11045_v55  ;;  %v11492_v25 = vor.u32 %v12430_v34, %v11491_v16  ;;  %v14296_v55 = vld [vmem:[%s15449_s11] sm:$0xff] }
 0x533   : > { %v4905_v51 = vmax.f32 %v4815_v26, 0.0  ;;  %v10853_v26 = vld [vmem:[#allocation17 + $0x168] sm:$0xf0]  ;;  %v10792_v23 = vor.u32 %v12250_v36, %v10789_v45  ;;  %v10923_v34 = vld [vmem:[#allocation17 + $0x1d0] sm:$0xf] }
 0x534   : > { %6798 = vmatpush.bf16.msrb.mxu3 %v11620_v31  ;;  %v10856_v22 = vor.u32 %v12266_v11, %v10853_v26  ;;  %v12322_v31 = vld [vmem:[#allocation17 + $0x30c] sm:$0xf] }
 0x535   : > { %v14236_v0 = vpack.c.bf16 %v4905_v51, %v4901_v9  ;;  %v12338_v9 = vld [vmem:[#allocation17 + $0x38c] sm:$0xf]  ;;  %v11080_v13 = vor.u32 %v12322_v31, %v11077_v6 }
 0x536   : > { %v4872_v1 = vpop.f32.mrf.mxu3  ;;  %v11144_v51 = vor.u32 %v12338_v9, %v11141_v50  ;;  %6827 = vmatpush.bf16.msra.mxu0 %v10856_v22  ;;  %v12234_v33 = vld [vmem:[#allocation17 + $0x4c] sm:$0xf]  ;;  %v11203_v22 = vld [vmem:[#allocation17 + $0x408] sm:$0xf] }
 0x537   : > { %v4873_v38 = vadd.f32 %v4872_v1, %v4844_v42  ;;  %6558 = vmatmul.bf16.gmra.mxu2 %v14236_v0  ;;  %6616 = vmatmul.bf16.gmra.mxu0 %v14184_v49  ;;  %v12374_v42 = vld [vmem:[#allocation17 + $0x4a4] sm:$0xf0]  ;;  %v10725_v24 = vld [vmem:[#allocation17 + $0x68] sm:$0xf0] }
 0x538   : > { %6799 = vmatpush.bf16.msrb.mxu3 %v11588_v30  ;;  %6855 = vmatpush.bf16.msra.mxu1 %v11144_v51  ;;  %v11268_v1 = vor.u32 %v12374_v42, %v11267_v43  ;;  %v11235_v30 = vld [vmem:[#allocation17 + $0x448] sm:$0xf]  ;;  %v10728_v8 = vor.u32 %v12234_v33, %v10725_v24  ;;  %v12306_v63 = vld [vmem:[#allocation17 + $0x28c] sm:$0xf]  ;;  %v14301_v33 = vperm.slane %v14296_v55, 0 }
 0x539   : > { %v4906_v28 = vmax.f32 %v4873_v38, 0.0  ;;  %v11109_v38 = vld [vmem:[#allocation17 + $0x368] sm:$0xf0]  ;;  %v11236_v35 = vor.u32 %v12366_v46, %v11235_v30  ;;  %v12358_v9 = vld [vmem:[#allocation17 + $0x424] sm:$0xf0] }
 0x53a   : > { %v11112_v3 = vor.u32 %v12330_v19, %v11109_v38  ;;  %6772 = vmatpush.bf16.msrb.mxu2 %v11268_v1  ;;  %6828 = vmatpush.bf16.msra.mxu0 %v10824_v41  ;;  %v11013_v11 = vld [vmem:[#allocation17 + $0x2a8] sm:$0xf0]  ;;  %v11204_v51 = vor.u32 %v12358_v9, %v11203_v22  ;;  %v11459_v1 = vld [vmem:[#allocation17 + $0x608] sm:$0xf]  ;;  %v10891_v9 = vld [vmem:[#allocation17 + $0x190] sm:$0xf] }
 0x53b   : > { %v14241_v7 = vpack.c.bf16 %v4906_v28, %v4902_v4  ;;  %v11523_v4 = vld [vmem:[#allocation17 + $0x688] sm:$0xf]  ;;  %v12226_v50 = vld [vmem:[#allocation17 + $0xc] sm:$0xf] }
 0x53c   : > { %6800 = vmatpush.bf16.msrb.mxu3 %v11556_v5  ;;  %v12438_v28 = vld [vmem:[#allocation17 + $0x6a4] sm:$0xf0]  ;;  %6856 = vmatpush.bf16.msra.mxu1 %v11112_v3  ;;  %v11016_v5 = vor.u32 %v12306_v63, %v11013_v11  ;;  %v10693_v59 = vld [vmem:[#allocation17 + $0x28] sm:$0xf0] }
 0x53d   : > { %6587 = vmatmul.bf16.gmra.mxu3 %v14241_v7  ;;  %6645 = vmatmul.bf16.gmra.mxu1 %v14191_v56  ;;  %v11524_v32 = vor.u32 %v12438_v28, %v11523_v4  ;;  %v10696_v43 = vor.u32 %v12226_v50, %v10693_v59  ;;  %v12298_v42 = vld [vmem:[#allocation17 + $0x24c] sm:$0xf]  ;;  %v12422_v19 = vld [vmem:[#allocation17 + $0x624] sm:$0xf0]  ;;  %v12279_v50 = vld [vmem:[#allocation17 + $0x1ac] sm:$0xf0] }
 0x53e   : > { %6829 = vmatpush.bf16.msra.mxu0 %v10792_v23  ;;  %6773 = vmatpush.bf16.msrb.mxu2 %v11236_v35  ;;  %v10981_v41 = vld [vmem:[#allocation17 + $0x268] sm:$0xf0]  ;;  %v11460_v4 = vor.u32 %v12422_v19, %v11459_v1  ;;  %v10892_v59 = vor.u32 %v12279_v50, %v10891_v9  ;;  %v10827_v9 = vld [vmem:[#allocation17 + $0x110] sm:$0xf] }
 0x53f   : > { %v10984_v38 = vor.u32 %v12298_v42, %v10981_v41  ;;  %v12290_v28 = vld [vmem:[#allocation17 + $0x20c] sm:$0xf]  ;;  %v11179_v42 = vld [vmem:[#allocation17 + $0x3d0] sm:$0xf] }
 0x540   : > { %6801 = vmatpush.bf16.msrb.mxu3 %v11524_v32  ;;  %6857 = vmatpush.bf16.msra.mxu1 %v11080_v13  ;;  %v10949_v3 = vld [vmem:[#allocation17 + $0x228] sm:$0xf0]  ;;  %v12351_v41 = vld [vmem:[#allocation17 + $0x3ec] sm:$0xf0] }
 0x541   : > { %v10952_v32 = vor.u32 %v12290_v28, %v10949_v3  ;;  %v12410_v45 = vld [vmem:[#allocation17 + $0x5cc] sm:$0xf]  ;;  %v12263_v50 = vld [vmem:[#allocation17 + $0x12c] sm:$0xf0] }
 0x542   : > { %6830 = vmatpush.bf16.msra.mxu0 %v10760_v54  ;;  %6774 = vmatpush.bf16.msrb.mxu2 %v11204_v51  ;;  %v11429_v23 = vld [vmem:[#allocation17 + $0x5e8] sm:$0xf0] }
 0x543   : > { %v11432_v6 = vor.u32 %v12410_v45, %v11429_v23  ;;  %v12474_v13 = vld [vmem:[#allocation17 + $0x7cc] sm:$0xf] }
 0x544   : > { %v14245_v10 = vpop.f32.mrf.mxu0  ;;  %6802 = vmatpush.bf16.msrb.mxu3 %v11492_v25  ;;  %6858 = vmatpush.bf16.msra.mxu1 %v11048_v48  ;;  %v11685_v15 = vld [vmem:[#allocation17 + $0x7e8] sm:$0xf0]  ;;  %v12287_v48 = vld [vmem:[#allocation17 + $0x1ec] sm:$0xf0] }
 0x545   : > { %v11688_v37 = vor.u32 %v12474_v13, %v11685_v15  ;;  %v10924_v25 = vor.u32 %v12287_v48, %v10923_v34  ;;  %v12402_v63 = vld [vmem:[#allocation17 + $0x58c] sm:$0xf]  ;;  %v11147_v15 = vld [vmem:[#allocation17 + $0x390] sm:$0xf] }
 0x546   : > { %6831 = vmatpush.bf16.msra.mxu0 %v10728_v8  ;;  %v11397_v11 = vld [vmem:[#allocation17 + $0x5a8] sm:$0xf0] }
 0x547   : > { %6659 = vmatmul.bf16.vlgmr.msra.gmra.mxu2 %v14200_v2  ;;  %6717 = vmatmul.bf16.vlgmr.msrb.gmra.mxu0 %v14154_v27  ;;  %v11400_v22 = vor.u32 %v12402_v63, %v11397_v11  ;;  %v12394_v1 = vld [vmem:[#allocation17 + $0x54c] sm:$0xf] }
 0x548   : > { %6859 = vmatpush.bf16.msra.mxu1 %v11016_v5  ;;  %6803 = vmatpush.bf16.msrb.mxu3 %v11460_v4  ;;  %v6487_v5 = vadd.f32 %v14245_v10, %v14301_v33  ;;  %v11365_v19 = vld [vmem:[#allocation17 + $0x568] sm:$0xf0] }
 0x549   : > { %6883 = vmatpush.bf16.msra.mxu2 %v11432_v6  ;;  %v12466_v4 = vld [vmem:[#allocation17 + $0x78c] sm:$0xf]  ;;  %v11368_v3 = vor.u32 %v12394_v1, %v11365_v19 }
 0x54a   : > { %v14249_v61 = vpop.f32.mrf.mxu1  ;;  %6832 = vmatpush.bf16.msra.mxu0 %v10696_v43  ;;  %v11653_v28 = vld [vmem:[#allocation17 + $0x7a8] sm:$0xf0] }
 0x54b   : > { %v6516_v43 = vadd.f32 %v14249_v61, %v6487_v5  ;;  %v11656_v23 = vor.u32 %v12466_v4, %v11653_v28  ;;  %v12271_v61 = vld [vmem:[#allocation17 + $0x16c] sm:$0xf0]  ;;  %v11333_v63 = vld [vmem:[#allocation17 + $0x528] sm:$0xf0] }
 0x54c   : > { %v14251_v18 = vpop.f32.mrf.mxu0  ;;  %6860 = vmatpush.bf16.msra.mxu1 %v10984_v38  ;;  %v11180_v38 = vor.u32 %v12351_v41, %v11179_v42  ;;  %v11621_v42 = vld [vmem:[#allocation17 + $0x768] sm:$0xf0]  ;;  %v10828_v41 = vor.u32 %v12263_v50, %v10827_v9 }
 0x54d   : > { %6688 = vmatmul.bf16.vlgmr.msra.gmra.mxu3 %v14205_v29  ;;  %6746 = vmatmul.bf16.vlgmr.msrb.gmra.mxu1 %v14158_v60  ;;  %v6489_v11 = vadd.f32 %v14251_v18, %v14301_v33  ;;  %v12378_v4 = vld [vmem:[#allocation17 + $0x4cc] sm:$0xf] }
 0x54e   : > { %6912 = vmatpush.bf16.msra.mxu3 %v11688_v37  ;;  %6941 = vmatpush.bf16.msrb.mxu0 %v10924_v25  ;;  %v12343_v37 = vld [vmem:[#allocation17 + $0x3ac] sm:$0xf0]  ;;  %v12386_v25 = vld [vmem:[#allocation17 + $0x50c] sm:$0xf] }
 0x54f   : > { %6884 = vmatpush.bf16.msra.mxu2 %v11400_v22  ;;  %v11336_v22 = vor.u32 %v12386_v25, %v11333_v63  ;;  %v11301_v18 = vld [vmem:[#allocation17 + $0x4e8] sm:$0xf0]  ;;  %v11083_v25 = vld [vmem:[#allocation17 + $0x310] sm:$0xf] }
 0x550   : > { %6861 = vmatpush.bf16.msra.mxu1 %v10952_v32  ;;  %v10859_v32 = vld [vmem:[#allocation17 + $0x150] sm:$0xf]  ;;  %v12370_v50 = vld [vmem:[#allocation17 + $0x48c] sm:$0xf] }
 0x551   : > { %v10860_v13 = vor.u32 %v12271_v61, %v10859_v32  ;;  %v11304_v32 = vor.u32 %v12378_v4, %v11301_v18  ;;  %v12327_v63 = vld [vmem:[#allocation17 + $0x32c] sm:$0xf0]  ;;  %v11557_v4 = vld [vmem:[#allocation17 + $0x6e8] sm:$0xf0] }
 0x552   : > { %v14255_v21 = vpop.f32.mrf.mxu1  ;;  %6942 = vmatpush.bf16.msrb.mxu0 %v10892_v59  ;;  %6913 = vmatpush.bf16.msra.mxu3 %v11656_v23  ;;  %v12255_v23 = vld [vmem:[#allocation17 + $0xec] sm:$0xf0] }
 0x553   : > { %6885 = vmatpush.bf16.msra.mxu2 %v11368_v3  ;;  %v6518_v1 = vadd.f32 %v14255_v21, %v6489_v11  ;;  %v11589_v21 = vld [vmem:[#allocation17 + $0x728] sm:$0xf0]  ;;  %v11084_v11 = vor.u32 %v12327_v63, %v11083_v25 }
 0x554   : > { %v14257_v39 = vpop.f32.mrf.mxu0  ;;  %6970 = vmatpush.bf16.msrb.mxu1 %v11180_v38  ;;  %v11115_v38 = vld [vmem:[#allocation17 + $0x350] sm:$0xf]  ;;  %v12434_v25 = vld [vmem:[#allocation17 + $0x68c] sm:$0xf] }
 0x555   : > { %v11525_v63 = vld [vmem:[#allocation17 + $0x6a8] sm:$0xf0] }
 0x556   : > { %6943 = vmatpush.bf16.msrb.mxu0 %v10860_v13 }
 0x557   : > { %6664 = vmatmul.bf16.gmra.mxu2 %v14212_v17  ;;  %6722 = vmatmul.bf16.gmra.mxu0 %v14164_v44 }
 0x558   : > { %6886 = vmatpush.bf16.msra.mxu2 %v11336_v22  ;;  %v6492_v22 = vadd.f32 %v14257_v39, %v14301_v33  ;;  %v12442_v39 = vld [vmem:[#allocation17 + $0x6cc] sm:$0xf] }
 0x55a   : > { %v14261_v47 = vpop.f32.mrf.mxu1  ;;  %6944 = vmatpush.bf16.msrb.mxu0 %v10828_v41 }
 0x55c   : > { %v14263_v14 = vpop.f32.mrf.mxu0  ;;  %6887 = vmatpush.bf16.msra.mxu2 %v11304_v32 }
 0x55d   : > { %6693 = vmatmul.bf16.gmra.mxu3 %v14217_v62  ;;  %6751 = vmatmul.bf16.gmra.mxu1 %v14168_v53 }
 0x562   : > { %v14267_v26 = vpop.f32.mrf.mxu1 }
 0x564   : > { %v14269_v52 = vpop.f32.mrf.mxu0 }
 0x567   : > { %6669 = vmatmul.bf16.gmra.mxu2 %v14224_v20  ;;  %6727 = vmatmul.bf16.gmra.mxu0 %v14174_v57 }
 0x56a   : > { %v14273_v36 = vpop.f32.mrf.mxu1 }
 0x56c   : > { %v14275_v31 = vpop.f32.mrf.mxu0 }
 0x56d   : > { %6698 = vmatmul.bf16.gmra.mxu3 %v14229_v12  ;;  %6756 = vmatmul.bf16.gmra.mxu1 %v14178_v40 }
 0x572   : > { %v14279_v30 = vpop.f32.mrf.mxu1 }
 0x574   : > { %v14281_v46 = vpop.f32.mrf.mxu0 }
 0x577   : > { %6674 = vmatmul.bf16.gmra.mxu2 %v14236_v0  ;;  %6732 = vmatmul.bf16.gmra.mxu0 %v14184_v49 }
 0x57a   : > { %v14285_v54 = vpop.f32.mrf.mxu1 }
 0x57c   : > { %v14287_v35 = vpop.f32.mrf.mxu0 }
 0x57d   : > { %6703 = vmatmul.bf16.gmra.mxu3 %v14241_v7  ;;  %6761 = vmatmul.bf16.gmra.mxu1 %v14191_v56 }
 0x582   : > { %v14291_v58 = vpop.f32.mrf.mxu1 }
 0x584   : > { %v14298_v16 = vpop.f32.mrf.mxu0 }
 0x587   : > { %6775 = vmatmul.bf16.vlgmr.msrb.gmra.mxu2 %v14200_v2  ;;  %6833 = vmatmul.bf16.vlgmr.msra.gmra.mxu0 %v14154_v27 }
 0x58a   : > { %v6544_v24 = vpop.f32.mrf.mxu2  ;;  %v14305_v8 = vpop.f32.mrf.mxu1 }
 0x58b   : > { %v6545_v10 = vadd.f32 %v6544_v24, %v6516_v43  ;;  %v11148_v24 = vor.u32 %v12343_v37, %v11147_v15  ;;  %v12458_v43 = vld [vmem:[#allocation17 + $0x74c] sm:$0xf] }
 0x58c   : > { %v14309_v51 = vpop.f32.mrf.mxu0  ;;  %v11624_v19 = vor.u32 %v12458_v43, %v11621_v42  ;;  %v11269_v43 = vld [vmem:[#allocation17 + $0x4a8] sm:$0xf0] }
 0x58d   : > { %6804 = vmatmul.bf16.vlgmr.msrb.gmra.mxu3 %v14205_v29  ;;  %6862 = vmatmul.bf16.vlgmr.msra.gmra.mxu1 %v14158_v60 }
 0x58e   : > { %6971 = vmatpush.bf16.msrb.mxu1 %v11148_v24  ;;  %6914 = vmatpush.bf16.msra.mxu3 %v11624_v19  ;;  %v10763_v19 = vld [vmem:[#allocation17 + $0x90] sm:$0xf] }
 0x590   : > { %v6573_v45 = vpop.f32.mrf.mxu3 }
 0x591   : > { %v6574_v6 = vadd.f32 %v6573_v45, %v6545_v10  ;;  %v12335_v10 = vld [vmem:[#allocation17 + $0x36c] sm:$0xf0] }
 0x592   : > { %v6546_v34 = vpop.f32.mrf.mxu2  ;;  %v14314_v48 = vpop.f32.mrf.mxu1  ;;  %v11116_v28 = vor.u32 %v12335_v10, %v11115_v38  ;;  %v10795_v45 = vld [vmem:[#allocation17 + $0xd0] sm:$0xf]  ;;  %v6521_v10 = vadd.f32 %v14261_v47, %v6492_v22 }
 0x593   : > { %v11705_v5 = vmul.f32 -1.442695, %v6574_v6  ;;  %v6547_v3 = vadd.f32 %v6546_v34, %v6518_v1  ;;  %v12450_v6 = vld [vmem:[#allocation17 + $0x70c] sm:$0xf]  ;;  %v10796_v13 = vor.u32 %v12255_v23, %v10795_v45  ;;  %v11272_v1 = vor.u32 %v12370_v50, %v11269_v43  ;;  %v12247_v38 = vld [vmem:[#allocation17 + $0xac] sm:$0xf0] }
 0x594   : > { %v14318_v59 = vpop.f32.mrf.mxu0  ;;  %v11592_v37 = vor.u32 %v12450_v6, %v11589_v21  ;;  %6972 = vmatpush.bf16.msrb.mxu1 %v11116_v28  ;;  %v10764_v18 = vor.u32 %v12247_v38, %v10763_v19  ;;  %v11051_v28 = vld [vmem:[#allocation17 + $0x2d0] sm:$0xf]  ;;  %v11560_v45 = vor.u32 %v12442_v39, %v11557_v4  ;;  %v12362_v23 = vld [vmem:[#allocation17 + $0x44c] sm:$0xf] }
 0x595   : > { %12628 = vpow2.f32 %v11705_v5  ;;  %6945 = vmatpush.bf16.msrb.mxu0 %v10796_v13  ;;  %6888 = vmatpush.bf16.msra.mxu2 %v11272_v1  ;;  %v10731_v47 = vld [vmem:[#allocation17 + $0x50] sm:$0xf]  ;;  %v6494_v1 = vadd.f32 %v14263_v14, %v14301_v33  ;;  %v11205_v39 = vld [vmem:[#allocation17 + $0x428] sm:$0xf0] }
 0x596   : > { %6915 = vmatpush.bf16.msra.mxu3 %v11592_v37  ;;  %v11019_v22 = vld [vmem:[#allocation17 + $0x290] sm:$0xf]  ;;  %v12426_v14 = vld [vmem:[#allocation17 + $0x64c] sm:$0xf] }
 0x597   : > { %6780 = vmatmul.bf16.gmra.mxu2 %v14212_v17  ;;  %6838 = vmatmul.bf16.gmra.mxu0 %v14164_v44 }
 0x598   : > { %v6575_v61 = vpop.f32.mrf.mxu3  ;;  %6973 = vmatpush.bf16.msrb.mxu1 %v11084_v11  ;;  %v11528_v11 = vor.u32 %v12434_v25, %v11525_v63 }
 0x599   : > { %v6576_v15 = vadd.f32 %v6575_v61, %v6547_v3  ;;  %v12319_v3 = vld [vmem:[#allocation17 + $0x2ec] sm:$0xf0]  ;;  %v11237_v61 = vld [vmem:[#allocation17 + $0x468] sm:$0xf0]  ;;  %6946 = vmatpush.bf16.msrb.mxu0 %v10764_v18 }
 0x59a   : > { %v6549_v24 = vpop.f32.mrf.mxu2  ;;  %v14323_v34 = vpop.f32.mrf.mxu1  ;;  %v11052_v6 = vor.u32 %v12319_v3, %v11051_v28  ;;  %v11240_v13 = vor.u32 %v12362_v23, %v11237_v61  ;;  %6916 = vmatpush.bf16.msra.mxu3 %v11560_v45  ;;  %v12231_v45 = vld [vmem:[#allocation17 + $0x2c] sm:$0xf0]  ;;  %v6523_v23 = vadd.f32 %v14267_v26, %v6494_v1 }
 0x59b   : > { %v12629_v5 = vpop.eup %12628  ;;  %v11713_v9 = vmul.f32 -1.442695, %v6576_v15  ;;  %v6550_v32 = vadd.f32 %v6549_v24, %v6521_v10  ;;  %v12239_v15 = vld [vmem:[#allocation17 + $0x6c] sm:$0xf0]  ;;  %v12354_v10 = vld [vmem:[#allocation17 + $0x40c] sm:$0xf] }
 0x59c   : > { %v14327_v42 = vadd.f32 1.0, %v12629_v5  ;;  %v14329_v41 = vpop.f32.mrf.mxu0  ;;  %v10732_v5 = vor.u32 %v12239_v15, %v10731_v47  ;;  %6889 = vmatpush.bf16.msra.mxu2 %v11240_v13  ;;  %6974 = vmatpush.bf16.msrb.mxu1 %v11052_v6  ;;  %v12311_v24 = vld [vmem:[#allocation17 + $0x2ac] sm:$0xf0]  ;;  %v11208_v3 = vor.u32 %v12354_v10, %v11205_v39  ;;  %v11493_v6 = vld [vmem:[#allocation17 + $0x668] sm:$0xf0] }
 0x59d   : > { %12630 = vpow2.f32 %v11713_v9  ;;  %6809 = vmatmul.bf16.gmra.mxu3 %v14217_v62  ;;  %6867 = vmatmul.bf16.gmra.mxu1 %v14168_v53  ;;  %v11020_v38 = vor.u32 %v12311_v24, %v11019_v22  ;;  %v10987_v47 = vld [vmem:[#allocation17 + $0x250] sm:$0xf]  ;;  %v11496_v26 = vor.u32 %v12426_v14, %v11493_v6 }
 0x59e   : > { %12632 = vrcp.f32 %v14327_v42  ;;  %6947 = vmatpush.bf16.msrb.mxu0 %v10732_v5  ;;  %6917 = vmatpush.bf16.msra.mxu3 %v11528_v11  ;;  %v7670_v25 = vand.u32 2147483647, %v14327_v42  ;;  %v7672_v63 = vand.u32 2147483648, %v14327_v42  ;;  %v10955_v1 = vld [vmem:[#allocation17 + $0x210] sm:$0xf]  ;;  %vm7666_vm1 = vweird.f32 %v14327_v42 }
 0x5a0   : > { %v6578_v21 = vpop.f32.mrf.mxu3  ;;  %6975 = vmatpush.bf16.msrb.mxu1 %v11020_v38  ;;  %6890 = vmatpush.bf16.msra.mxu2 %v11208_v3  ;;  %v12295_v3 = vld [vmem:[#allocation17 + $0x22c] sm:$0xf0]  ;;  %v7673_v6 = vor.u32 1.1754944e-38, %v7672_v63  ;;  %vm7671_vm3 = vcmp.eq.f32.partialorder %v7670_v25, 8.507059e+37 }
 0x5a1   : > { %v6579_v37 = vadd.f32 %v6578_v21, %v6550_v32  ;;  %v10699_v32 = vld [vmem:[#allocation17 + $0x10] sm:$0xf] }
 0x5a2   : > { %v6551_v9 = vpop.f32.mrf.mxu2  ;;  %v14335_v50 = vpop.f32.mrf.mxu1  ;;  %v12303_v21 = vld [vmem:[#allocation17 + $0x26c] sm:$0xf0]  ;;  %6918 = vmatpush.bf16.msra.mxu3 %v11496_v26 }
 0x5a3   : > { %v12631_v43 = vpop.eup %12630  ;;  %v11721_v19 = vmul.f32 -1.442695, %v6579_v37  ;;  %v6552_v15 = vadd.f32 %v6551_v9, %v6523_v23  ;;  %v10700_v37 = vor.u32 %v12231_v45, %v10699_v32  ;;  %v10988_v22 = vor.u32 %v12303_v21, %v10987_v47  ;;  %v11461_v9 = vld [vmem:[#allocation17 + $0x628] sm:$0xf0] }
 0x5a4   : > { %v12633_v4 = vpop.eup %12632  ;;  %v14339_v18 = vadd.f32 1.0, %v12631_v43  ;;  %v14341_v28 = vpop.f32.mrf.mxu0  ;;  %v12418_v43 = vld [vmem:[#allocation17 + $0x60c] sm:$0xf]  ;;  %v10956_v21 = vor.u32 %v12295_v3, %v10955_v1 }
 0x5a5   : > { %v7662_v61 = vmul.f32 %v12633_v4, %v14327_v42  ;;  %12634 = vpow2.f32 %v11721_v19  ;;  %vm7667_vm0 = vweird.f32 %v12633_v4  ;;  %6948 = vmatpush.bf16.msrb.mxu0 %v10700_v37  ;;  %v6497_v19 = vadd.f32 %v14269_v52, %v14301_v33  ;;  %6976 = vmatpush.bf16.msrb.mxu1 %v10988_v22 }
 0x5a6   : > { %12636 = vrcp.f32 %v14339_v18  ;;  %v11464_v39 = vor.u32 %v12418_v43, %v11461_v9  ;;  %vm7668_vm2 = vmor %vm7666_vm1, %vm7667_vm0  ;;  %v7792_v26 = vand.u32 2147483648, %v14339_v18  ;;  %v7790_v63 = vand.u32 2147483647, %v14339_v18 }
 0x5a7   : > { %v7663_v13 = vsub.f32 1.0, %v7662_v61  ;;  %6785 = vmatmul.bf16.gmra.mxu2 %v14224_v20  ;;  %6843 = vmatmul.bf16.gmra.mxu0 %v14174_v57  ;;  %v6526_v14 = vadd.f32 %v14273_v36, %v6497_v19  ;;  %v6499_v22 = vadd.f32 %v14275_v31, %v14301_v33  ;;  %vm7786_vm5 = vweird.f32 %v14339_v18 }
 0x5a8   : > { %v6580_v5 = vpop.f32.mrf.mxu3  ;;  %6919 = vmatpush.bf16.msra.mxu3 %v11464_v39  ;;  %v7793_v39 = vor.u32 1.1754944e-38, %v7792_v26  ;;  %vm7791_vm7 = vcmp.eq.f32.partialorder %v7790_v63, 8.507059e+37 }
 0x5a9   : > { %v7664_v11 = vmul.f32 %v12633_v4, %v7663_v13  ;;  %v6581_v24 = vadd.f32 %v6580_v5, %v6552_v15  ;;  %6977 = vmatpush.bf16.msrb.mxu1 %v10956_v21 }
 0x5aa   : > { %v6554_v38 = vpop.f32.mrf.mxu2  ;;  %v14353_v10 = vpop.f32.mrf.mxu1 }
 0x5ab   : > { %v12635_v32 = vpop.eup %12634  ;;  %v7665_v45 = vadd.f32 %v12633_v4, %v7664_v11  ;;  %v11729_v23 = vmul.f32 -1.442695, %v6581_v24 }
 0x5ac   : > { %v12637_v61 = vpop.eup %12636  ;;  %v14358_v47 = vadd.f32 1.0, %v12635_v32  ;;  %v14360_v52 = vpop.f32.mrf.mxu0 }
 0x5ad   : > { %v7669_v13 = vsel %vm7668_vm2, %v12633_v4, %v7665_v45  ;;  %v7782_v15 = vmul.f32 %v12637_v61, %v14339_v18  ;;  %12638 = vpow2.f32 %v11729_v23  ;;  %6814 = vmatmul.bf16.gmra.mxu3 %v14229_v12  ;;  %6872 = vmatmul.bf16.gmra.mxu1 %v14178_v40  ;;  %v6555_v4 = vadd.f32 %v6554_v38, %v6526_v14 }
 0x5ae   : > { %v7674_v42 = vsel %vm7671_vm3, %v7673_v6, %v7669_v13  ;;  %12640 = vrcp.f32 %v14358_v47  ;;  %vm7787_vm4 = vweird.f32 %v12637_v61  ;;  %v6528_v38 = vadd.f32 %v14279_v30, %v6499_v22 }
 0x5af   : > { %8621 = vst [vmem:[%s14368_s25] sm:$0xff] %v7674_v42  ;;  %v7783_v36 = vsub.f32 1.0, %v7782_v15  ;;  %vm7788_vm6 = vmor %vm7786_vm5, %vm7787_vm4  ;;  %v7912_v30 = vand.u32 2147483648, %v14358_v47  ;;  %v6502_v15 = vadd.f32 %v14281_v46, %v14301_v33  ;;  %vm7906_vm9 = vweird.f32 %v14358_v47 }
 0x5b0   : > { %v6583_v37 = vpop.f32.mrf.mxu3 }
 0x5b1   : > { %v7784_v25 = vmul.f32 %v12637_v61, %v7783_v36  ;;  %v6584_v5 = vadd.f32 %v6583_v37, %v6555_v4  ;;  %v6531_v63 = vadd.f32 %v14285_v54, %v6502_v15 }
 0x5b2   : > { %v6556_v11 = vpop.f32.mrf.mxu2  ;;  %v14375_v24 = vpop.f32.mrf.mxu1 }
 0x5b3   : > { %v12639_v43 = vpop.eup %12638  ;;  %v7785_v9 = vadd.f32 %v12637_v61, %v7784_v25  ;;  %v11737_v1 = vmul.f32 -1.442695, %v6584_v5  ;;  %v6557_v14 = vadd.f32 %v6556_v11, %v6528_v38  ;;  %v7913_v5 = vor.u32 1.1754944e-38, %v7912_v30 }
 0x5b4   : > { %v12641_v19 = vpop.eup %12640  ;;  %v14379_v3 = vadd.f32 1.0, %v12639_v43  ;;  %v14381_v32 = vpop.f32.mrf.mxu0 }
 0x5b5   : > { %v7789_v45 = vsel %vm7788_vm6, %v12637_v61, %v7785_v9  ;;  %v7902_v31 = vmul.f32 %v12641_v19, %v14358_v47  ;;  %12642 = vpow2.f32 %v11737_v1  ;;  %vm7907_vm8 = vweird.f32 %v12641_v19 }
 0x5b6   : > { %v7794_v23 = vsel %vm7791_vm7, %v7793_v39, %v7789_v45  ;;  %12644 = vrcp.f32 %v14379_v3  ;;  %v7910_v61 = vand.u32 2147483647, %v14358_v47  ;;  %vm7908_vm10 = vmor %vm7906_vm9, %vm7907_vm8  ;;  %v8032_v1 = vand.u32 2147483648, %v14379_v3 }
 0x5b7   : > { %8629 = vst [vmem:[%s14368_s25 + $0x40] sm:$0xff] %v7794_v23  ;;  %v7903_v18 = vsub.f32 1.0, %v7902_v31  ;;  %6790 = vmatmul.bf16.gmra.mxu2 %v14236_v0  ;;  %6848 = vmatmul.bf16.gmra.mxu0 %v14184_v49  ;;  %v6504_v31 = vadd.f32 %v14287_v35, %v14301_v33  ;;  %vm8026_vm13 = vweird.f32 %v14379_v3 }
 0x5b8   : > { %v6585_v6 = vpop.f32.mrf.mxu3  ;;  %vm7911_vm11 = vcmp.eq.f32.partialorder %v7910_v61, 8.507059e+37  ;;  %v8033_v15 = vor.u32 1.1754944e-38, %v8032_v1  ;;  %v12479_v1 = vld [vmem:[#allocation17 + $0x7ec] sm:$0xf0] }
 0x5b9   : > { %v7904_v21 = vmul.f32 %v12641_v19, %v7903_v18  ;;  %v6586_v13 = vadd.f32 %v6585_v6, %v6557_v14  ;;  %v6533_v61 = vadd.f32 %v14291_v58, %v6504_v31 }
 0x5ba   : > { %v6559_v42 = vpop.f32.mrf.mxu2  ;;  %v14392_v36 = vpop.f32.mrf.mxu1 }
 0x5bb   : > { %v12643_v4 = vpop.eup %12642  ;;  %v7905_v26 = vadd.f32 %v12641_v19, %v7904_v21  ;;  %v11745_v37 = vmul.f32 -1.442695, %v6586_v13  ;;  %v6560_v9 = vadd.f32 %v6559_v42, %v6531_v63  ;;  %v14416_v13 = vperm.slane %v14296_v55, 1 }
 0x5bc   : > { %v12645_v25 = vpop.eup %12644  ;;  %v14396_v22 = vadd.f32 1.0, %v12643_v4  ;;  %v14398_v11 = vpop.f32.mrf.mxu0 }
 0x5bd   : > { %v7909_v43 = vsel %vm7908_vm10, %v12641_v19, %v7905_v26  ;;  %v8022_v46 = vmul.f32 %v12645_v25, %v14379_v3  ;;  %12646 = vpow2.f32 %v11745_v37  ;;  %6819 = vmatmul.bf16.gmra.mxu3 %v14241_v7  ;;  %6877 = vmatmul.bf16.gmra.mxu1 %v14191_v56  ;;  %vm8027_vm12 = vweird.f32 %v12645_v25  ;;  %v11435_v37 = vld [vmem:[#allocation17 + $0x5d0] sm:$0xf] }
 0x5be   : > { %v7914_v47 = vsel %vm7911_vm11, %v7913_v5, %v7909_v43  ;;  %12648 = vrcp.f32 %v14396_v22  ;;  %v8030_v19 = vand.u32 2147483647, %v14379_v3  ;;  %vm8028_vm14 = vmor %vm8026_vm13, %vm8027_vm12  ;;  %v8150_v55 = vand.u32 2147483647, %v14396_v22  ;;  %v12415_v43 = vld [vmem:[#allocation17 + $0x5ec] sm:$0xf0] }
 0x5bf   : > { %8637 = vst [vmem:[%s14368_s25 + $0x80] sm:$0xff] %v7914_v47  ;;  %v8023_v54 = vsub.f32 1.0, %v8022_v46  ;;  %v8152_v63 = vand.u32 2147483648, %v14396_v22  ;;  %v11691_v46 = vld [vmem:[#allocation17 + $0x7d0] sm:$0xf]  ;;  %vm8146_vm1 = vweird.f32 %v14396_v22 }
 0x5c0   : > { %v6588_v38 = vpop.f32.mrf.mxu3  ;;  %vm8031_vm15 = vcmp.eq.f32.partialorder %v8030_v19, 8.507059e+37  ;;  %vm8151_vm3 = vcmp.eq.f32.partialorder %v8150_v55, 8.507059e+37 }
 0x5c1   : > { %v8024_v39 = vmul.f32 %v12645_v25, %v8023_v54  ;;  %v6589_v45 = vadd.f32 %v6588_v38, %v6560_v9  ;;  %v11436_v9 = vor.u32 %v12415_v43, %v11435_v37  ;;  %v12283_v38 = vld [vmem:[#allocation17 + $0x1d4] sm:$0xf] }
 0x5c2   : > { %v6561_v23 = vpop.f32.mrf.mxu2  ;;  %v14409_v18 = vpop.f32.mrf.mxu1 }
 0x5c3   : > { %v12647_v14 = vpop.eup %12646  ;;  %v8025_v30 = vadd.f32 %v12645_v25, %v8024_v39  ;;  %v11753_v6 = vmul.f32 -1.442695, %v6589_v45  ;;  %v6562_v26 = vadd.f32 %v6561_v23, %v6533_v61  ;;  %v10925_v23 = vld [vmem:[#allocation17 + $0x1f0] sm:$0xf0]  ;;  %6999 = vmatpush.bf16.msrb.mxu2 %v11436_v9  ;;  %v11307_v9 = vld [vmem:[#allocation17 + $0x4d0] sm:$0xf] }
 0x5c4   : > { %v14412_v21 = vpop.eup %12648  ;;  %v14418_v42 = vadd.f32 1.0, %v12647_v14  ;;  %v14420_v35 = vpop.f32.mrf.mxu0 }
 0x5c5   : > { %v8029_v33 = vsel %vm8028_vm14, %v12645_v25, %v8025_v30  ;;  %v8142_v4 = vmul.f32 %v14412_v21, %v14396_v22  ;;  %12650 = vpow2.f32 %v11753_v6  ;;  %v6603_v25 = vadd.f32 %v14298_v16, %v14416_v13 }
 0x5c6   : > { %v8034_v3 = vsel %vm8031_vm15, %v8033_v15, %v8029_v33  ;;  %12652 = vrcp.f32 %v14418_v42  ;;  %vm8147_vm0 = vweird.f32 %v14412_v21  ;;  %v8270_v39 = vand.u32 2147483647, %v14418_v42  ;;  %v11403_v15 = vld [vmem:[#allocation17 + $0x590] sm:$0xf] }
 0x5c7   : > { %8645 = vst [vmem:[%s14368_s25 + $0xc0] sm:$0xff] %v8034_v3  ;;  %v8143_v58 = vsub.f32 1.0, %v8142_v4  ;;  %6891 = vmatmul.bf16.vlgmr.msra.gmra.mxu2 %v14200_v2  ;;  %6949 = vmatmul.bf16.vlgmr.msrb.gmra.mxu0 %v14154_v27  ;;  %v8272_v19 = vand.u32 2147483648, %v14418_v42  ;;  %v11692_v16 = vor.u32 %v12479_v1, %v11691_v46  ;;  %v6632_v30 = vadd.f32 %v14305_v8, %v6603_v25  ;;  %v12407_v33 = vld [vmem:[#allocation17 + $0x5ac] sm:$0xf0]  ;;  %vm14445_vm2 = vmor %vm8146_vm1, %vm8147_vm0 }
 0x5c8   : > { %v6590_v5 = vpop.f32.mrf.mxu3  ;;  %v11404_v37 = vor.u32 %v12407_v33, %v11403_v15  ;;  %v10928_v22 = vor.u32 %v12283_v38, %v10925_v23  ;;  %v12275_v25 = vld [vmem:[#allocation17 + $0x194] sm:$0xf]  ;;  %vm14460_vm4 = vcmp.eq.f32.partialorder %v8270_v39, 8.507059e+37  ;;  %v11659_v38 = vld [vmem:[#allocation17 + $0x790] sm:$0xf]  ;;  %vm8266_vm6 = vweird.f32 %v14418_v42 }
 0x5c9   : > { %v8144_v47 = vmul.f32 %v14412_v21, %v8143_v58  ;;  %v6591_v54 = vadd.f32 %v6590_v5, %v6562_v26  ;;  %v8153_v58 = vor.u32 1.1754944e-38, %v8152_v63  ;;  %7028 = vmatpush.bf16.msrb.mxu3 %v11692_v16  ;;  %v10893_v5 = vld [vmem:[#allocation17 + $0x1b0] sm:$0xf0]  ;;  %v8273_v55 = vor.u32 1.1754944e-38, %v8272_v19  ;;  %v11371_v39 = vld [vmem:[#allocation17 + $0x550] sm:$0xf] }
 0x5ca   : > { %v6660_v45 = vpop.f32.mrf.mxu2  ;;  %v14436_v31 = vpop.f32.mrf.mxu1  ;;  %v12347_v63 = vld [vmem:[#allocation17 + $0x3d4] sm:$0xf]  ;;  %7057 = vmatpush.bf16.msra.mxu0 %v10928_v22  ;;  %7000 = vmatpush.bf16.msrb.mxu2 %v11404_v37  ;;  %v10896_v16 = vor.u32 %v12275_v25, %v10893_v5  ;;  %v12399_v22 = vld [vmem:[#allocation17 + $0x56c] sm:$0xf0] }
 0x5cb   : > { %v12651_v14 = vpop.eup %12650  ;;  %v8145_v6 = vadd.f32 %v14412_v21, %v8144_v47  ;;  %v11761_v61 = vmul.f32 -1.442695, %v6591_v54  ;;  %v11181_v47 = vld [vmem:[#allocation17 + $0x3f0] sm:$0xf0]  ;;  %v6661_v1 = vadd.f32 %v6660_v45, %v6632_v30  ;;  %v11372_v37 = vor.u32 %v12399_v22, %v11371_v39 }
 0x5cc   : > { %v14441_v4 = vpop.eup %12652  ;;  %v14449_v26 = vadd.f32 1.0, %v12651_v14  ;;  %v14451_v8 = vpop.f32.mrf.mxu0  ;;  %v12267_v19 = vld [vmem:[#allocation17 + $0x154] sm:$0xf] }
 0x5cd   : > { %v8149_v43 = vsel %vm14445_vm2, %v14412_v21, %v8145_v6  ;;  %v8262_v46 = vmul.f32 %v14441_v4, %v14418_v42  ;;  %12654 = vpow2.f32 %v11761_v61  ;;  %6920 = vmatmul.bf16.vlgmr.msra.gmra.mxu3 %v14205_v29  ;;  %6978 = vmatmul.bf16.vlgmr.msrb.gmra.mxu1 %v14158_v60  ;;  %vm8267_vm5 = vweird.f32 %v14441_v4  ;;  %v12471_v6 = vld [vmem:[#allocation17 + $0x7ac] sm:$0xf0]  ;;  %v10861_v25 = vld [vmem:[#allocation17 + $0x170] sm:$0xf0] }
 0x5ce   : > { %v8154_v54 = vsel %vm8151_vm3, %v8153_v58, %v8149_v43  ;;  %12656 = vrcp.f32 %v14449_v26  ;;  %v8390_v23 = vand.u32 2147483647, %v14449_v26  ;;  %v11184_v61 = vor.u32 %v12347_v63, %v11181_v47  ;;  %7058 = vmatpush.bf16.msra.mxu0 %v10896_v16  ;;  %v12339_v5 = vld [vmem:[#allocation17 + $0x394] sm:$0xf]  ;;  %vm14480_vm7 = vmor %vm8266_vm6, %vm8267_vm5  ;;  %7001 = vmatpush.bf16.msrb.mxu2 %v11372_v37  ;;  %v12455_v16 = vld [vmem:[#allocation17 + $0x72c] sm:$0xf0] }
 0x5cf   : > { %8653 = vst [vmem:[%s14368_s25 + $0x100] sm:$0xff] %v8154_v54  ;;  %v8263_v21 = vsub.f32 1.0, %v8262_v46  ;;  %v8392_v33 = vand.u32 2147483648, %v14449_v26  ;;  %v11660_v58 = vor.u32 %v12471_v6, %v11659_v38  ;;  %v11149_v43 = vld [vmem:[#allocation17 + $0x3b0] sm:$0xf0]  ;;  %v6605_v63 = vadd.f32 %v14309_v51, %v14416_v13 }
 0x5d0   : > { %v6689_v14 = vpop.f32.mrf.mxu3  ;;  %7086 = vmatpush.bf16.msra.mxu1 %v11184_v61  ;;  %v10864_v39 = vor.u32 %v12267_v19, %v10861_v25  ;;  %v11152_v42 = vor.u32 %v12339_v5, %v11149_v43  ;;  %v12259_v61 = vld [vmem:[#allocation17 + $0x114] sm:$0xf]  ;;  %vm14496_vm8 = vcmp.eq.f32.partialorder %v8390_v23, 8.507059e+37  ;;  %vm8386_vm10 = vweird.f32 %v14449_v26  ;;  %v12367_v37 = vld [vmem:[#allocation17 + $0x46c] sm:$0xf0] }
 0x5d1   : > { %v8264_v15 = vmul.f32 %v14441_v4, %v8263_v21  ;;  %v6690_v3 = vadd.f32 %v6689_v14, %v6661_v1  ;;  %7029 = vmatpush.bf16.msrb.mxu3 %v11660_v58  ;;  %v11339_v21 = vld [vmem:[#allocation17 + $0x510] sm:$0xf]  ;;  %v8393_v25 = vor.u32 1.1754944e-38, %v8392_v33 }
 0x5d2   : > { %v6662_v45 = vpop.f32.mrf.mxu2  ;;  %v14470_v30 = vpop.f32.mrf.mxu1  ;;  %v12391_v1 = vld [vmem:[#allocation17 + $0x52c] sm:$0xf0]  ;;  %7059 = vmatpush.bf16.msra.mxu0 %v10864_v39 }
 0x5d3   : > { %15454 = vst [vmem:[#allocation28_spill] sm:$0xff] %v14470_v30  ;;  %v12655_v46 = vpop.eup %12654  ;;  %v8265_v47 = vadd.f32 %v14441_v4, %v8264_v15  ;;  %v11706_v54 = vmul.f32 -1.442695, %v6690_v3  ;;  %v11340_v51 = vor.u32 %v12391_v1, %v11339_v21  ;;  %v10829_v15 = vld [vmem:[#allocation17 + $0x130] sm:$0xf0]  ;;  %v6634_v3 = vadd.f32 %v14314_v48, %v6605_v63 }
 0x5d4   : > { %v14476_v38 = vpop.eup %12656  ;;  %v14484_v14 = vadd.f32 1.0, %v12655_v46  ;;  %v14486_v6 = vpop.f32.mrf.mxu0  ;;  %v11627_v46 = vld [vmem:[#allocation17 + $0x750] sm:$0xf]  ;;  %7087 = vmatpush.bf16.msra.mxu1 %v11152_v42  ;;  %v11117_v48 = vld [vmem:[#allocation17 + $0x370] sm:$0xf0] }
 0x5d5   : > { %15457 = vst [vmem:[#allocation29_spill] sm:$0xff] %v14486_v6  ;;  %v8269_v58 = vsel %vm14480_vm7, %v14441_v4, %v8265_v47  ;;  %v8382_v22 = vmul.f32 %v14476_v38, %v14449_v26  ;;  %12658 = vpow2.f32 %v11706_v54  ;;  %v12463_v30 = vld [vmem:[#allocation17 + $0x76c] sm:$0xf0]  ;;  %v12331_v6 = vld [vmem:[#allocation17 + $0x354] sm:$0xf]  ;;  %v6663_v5 = vadd.f32 %v6662_v45, %v6634_v3  ;;  %7002 = vmatpush.bf16.msrb.mxu2 %v11340_v51 }
 0x5d6   : > { %v8274_v19 = vsel %vm14460_vm4, %v8273_v55, %v8269_v58  ;;  %12660 = vrcp.f32 %v14484_v14  ;;  %v11628_v43 = vor.u32 %v12463_v30, %v11627_v46  ;;  %v8510_v55 = vand.u32 2147483647, %v14484_v14  ;;  %v12383_v47 = vld [vmem:[#allocation17 + $0x4ec] sm:$0xf0]  ;;  %v12251_v30 = vld [vmem:[#allocation17 + $0xd4] sm:$0xf] }
 0x5d7   : > { %8661 = vst [vmem:[%s14368_s25 + $0x140] sm:$0xff] %v8274_v19  ;;  %v8383_v4 = vsub.f32 1.0, %v8382_v22  ;;  %6896 = vmatmul.bf16.gmra.mxu2 %v14212_v17  ;;  %6954 = vmatmul.bf16.gmra.mxu0 %v14164_v44  ;;  %v8512_v23 = vand.u32 2147483648, %v14484_v14  ;;  %v10832_v54 = vor.u32 %v12259_v61, %v10829_v15  ;;  %v11120_v21 = vor.u32 %v12331_v6, %v11117_v48  ;;  %v11595_v45 = vld [vmem:[#allocation17 + $0x710] sm:$0xf] }
 0x5d8   : > { %v6691_v63 = vpop.f32.mrf.mxu3  ;;  %vm8387_vm9 = vweird.f32 %v14476_v38  ;;  %7030 = vmatpush.bf16.msrb.mxu3 %v11628_v43  ;;  %v11308_v39 = vor.u32 %v12383_v47, %v11307_v9  ;;  %v11596_v58 = vor.u32 %v12455_v16, %v11595_v45  ;;  %v10797_v51 = vld [vmem:[#allocation17 + $0xf0] sm:$0xf0]  ;;  %v6608_v15 = vadd.f32 %v14318_v59, %v14416_v13  ;;  %v11275_v48 = vld [vmem:[#allocation17 + $0x490] sm:$0xf] }
 0x5d9   : > { %v8384_v1 = vmul.f32 %v14476_v38, %v8383_v4  ;;  %v6692_v33 = vadd.f32 %v6691_v63, %v6663_v5  ;;  %7060 = vmatpush.bf16.msra.mxu0 %v10832_v54  ;;  %7088 = vmatpush.bf16.msra.mxu1 %v11120_v21  ;;  %v12323_v22 = vld [vmem:[#allocation17 + $0x314] sm:$0xf]  ;;  %v12375_v4 = vld [vmem:[#allocation17 + $0x4ac] sm:$0xf0]  ;;  %vm14518_vm11 = vmor %vm8386_vm10, %vm8387_vm9  ;;  %v10800_v47 = vor.u32 %v12251_v30, %v10797_v51  ;;  %vm14538_vm12 = vcmp.eq.f32.partialorder %v8510_v55, 8.507059e+37 }
 0x5da   : > { %v6665_v42 = vpop.f32.mrf.mxu2  ;;  %v14508_v3 = vpop.f32.mrf.mxu1  ;;  %v11085_v61 = vld [vmem:[#allocation17 + $0x330] sm:$0xf0]  ;;  %7003 = vmatpush.bf16.msrb.mxu2 %v11308_v39  ;;  %v11276_v59 = vor.u32 %v12375_v4, %v11275_v48  ;;  %v11563_v16 = vld [vmem:[#allocation17 + $0x6d0] sm:$0xf]  ;;  %vm8506_vm14 = vweird.f32 %v14484_v14 }
 0x5db   : > { %v12659_v6 = vpop.eup %12658  ;;  %v8385_v46 = vadd.f32 %v14476_v38, %v8384_v1  ;;  %v11714_v19 = vmul.f32 -1.442695, %v6692_v33  ;;  %v11088_v54 = vor.u32 %v12323_v22, %v11085_v61  ;;  %v12243_v26 = vld [vmem:[#allocation17 + $0x94] sm:$0xf]  ;;  %v6637_v1 = vadd.f32 %v14323_v34, %v6608_v15  ;;  %v12447_v39 = vld [vmem:[#allocation17 + $0x6ec] sm:$0xf0] }
 0x5dc   : > { %v14514_v5 = vpop.eup %12660  ;;  %v14522_v9 = vadd.f32 1.0, %v12659_v6  ;;  %v14524_v63 = vpop.f32.mrf.mxu0  ;;  %v10765_v21 = vld [vmem:[#allocation17 + $0xb0] sm:$0xf0]  ;;  %7031 = vmatpush.bf16.msrb.mxu3 %v11596_v58  ;;  %v11564_v61 = vor.u32 %v12447_v39, %v11563_v16  ;;  %v11243_v6 = vld [vmem:[#allocation17 + $0x450] sm:$0xf] }
 0x5dd   : > { %v8389_v33 = vsel %vm14518_vm11, %v14476_v38, %v8385_v46  ;;  %v8502_v45 = vmul.f32 %v14514_v5, %v14484_v14  ;;  %12662 = vpow2.f32 %v11714_v19  ;;  %6925 = vmatmul.bf16.gmra.mxu3 %v14217_v62  ;;  %6983 = vmatmul.bf16.gmra.mxu1 %v14168_v53  ;;  %v12315_v30 = vld [vmem:[#allocation17 + $0x2d4] sm:$0xf]  ;;  %v6666_v22 = vadd.f32 %v6665_v42, %v6637_v1  ;;  %v11531_v43 = vld [vmem:[#allocation17 + $0x690] sm:$0xf] }
 0x5de   : > { %v8394_v51 = vsel %vm14496_vm8, %v8393_v25, %v8389_v33  ;;  %12664 = vrcp.f32 %v14522_v9  ;;  %7061 = vmatpush.bf16.msra.mxu0 %v10800_v47  ;;  %v11053_v34 = vld [vmem:[#allocation17 + $0x2f0] sm:$0xf0]  ;;  %7089 = vmatpush.bf16.msra.mxu1 %v11088_v54  ;;  %v8513_v46 = vor.u32 1.1754944e-38, %v8512_v23  ;;  %v10768_v25 = vor.u32 %v12243_v26, %v10765_v21  ;;  %v12439_v42 = vld [vmem:[#allocation17 + $0x6ac] sm:$0xf0] }
 0x5df   : > { %8669 = vst [vmem:[%s14368_s25 + $0x180] sm:$0xff] %v8394_v51  ;;  %v8503_v38 = vsub.f32 1.0, %v8502_v45  ;;  %7004 = vmatpush.bf16.msrb.mxu2 %v11276_v59  ;;  %v11056_v48 = vor.u32 %v12315_v30, %v11053_v34  ;;  %vm8507_vm13 = vweird.f32 %v14514_v5  ;;  %v11244_v47 = vor.u32 %v12367_v37, %v11243_v6  ;;  %v12235_v54 = vld [vmem:[#allocation17 + $0x54] sm:$0xf]  ;;  %v11211_v30 = vld [vmem:[#allocation17 + $0x410] sm:$0xf] }
 0x5e0   : > { %v6694_v19 = vpop.f32.mrf.mxu3  ;;  %7032 = vmatpush.bf16.msrb.mxu3 %v11564_v61  ;;  %v11532_v33 = vor.u32 %v12439_v42, %v11531_v43  ;;  %v10733_v23 = vld [vmem:[#allocation17 + $0x70] sm:$0xf0]  ;;  %v6610_v21 = vadd.f32 %v14329_v41, %v14416_v13  ;;  %v12359_v51 = vld [vmem:[#allocation17 + $0x42c] sm:$0xf0]  ;;  %vm14554_vm15 = vmor %vm8506_vm14, %vm8507_vm13  ;;  %vm7681_vm1 = vweird.f32 %v14522_v9 }
 0x5e1   : > { %v8504_v58 = vmul.f32 %v14514_v5, %v8503_v38  ;;  %v6695_v4 = vadd.f32 %v6694_v19, %v6666_v22  ;;  %v12307_v59 = vld [vmem:[#allocation17 + $0x294] sm:$0xf]  ;;  %v10736_v41 = vor.u32 %v12235_v54, %v10733_v23  ;;  %v11212_v14 = vor.u32 %v12359_v51, %v11211_v30  ;;  %v12431_v43 = vld [vmem:[#allocation17 + $0x66c] sm:$0xf0] }
 0x5e2   : > { %v6667_v1 = vpop.f32.mrf.mxu2  ;;  %v14544_v55 = vpop.f32.mrf.mxu1  ;;  %7062 = vmatpush.bf16.msra.mxu0 %v10768_v25  ;;  %v11021_v45 = vld [vmem:[#allocation17 + $0x2b0] sm:$0xf0]  ;;  %7090 = vmatpush.bf16.msra.mxu1 %v11056_v48  ;;  %v6639_v25 = vadd.f32 %v14335_v50, %v6610_v21 }
 0x5e3   : > { %v12663_v26 = vpop.eup %12662  ;;  %v8505_v16 = vadd.f32 %v14514_v5, %v8504_v58  ;;  %v11722_v39 = vmul.f32 -1.442695, %v6695_v4  ;;  %7005 = vmatpush.bf16.msrb.mxu2 %v11244_v47  ;;  %v11024_v6 = vor.u32 %v12307_v59, %v11021_v45  ;;  %v12227_v19 = vld [vmem:[#allocation17 + $0x14] sm:$0xf]  ;;  %v11499_v4 = vld [vmem:[#allocation17 + $0x650] sm:$0xf] }
 0x5e4   : > { %v14550_v34 = vpop.eup %12664  ;;  %v14558_v22 = vadd.f32 1.0, %v12663_v26  ;;  %v14560_v61 = vpop.f32.mrf.mxu0  ;;  %v10701_v37 = vld [vmem:[#allocation17 + $0x30] sm:$0xf0]  ;;  %7033 = vmatpush.bf16.msrb.mxu3 %v11532_v33  ;;  %v6668_v23 = vadd.f32 %v6667_v1, %v6639_v25  ;;  %v7687_v59 = vand.u32 2147483648, %v14522_v9  ;;  %v7685_v33 = vand.u32 2147483647, %v14522_v9 }
 0x5e5   : > { %v8509_v48 = vsel %vm14554_vm15, %v14514_v5, %v8505_v16  ;;  %v7677_v58 = vmul.f32 %v14550_v34, %v14522_v9  ;;  %12666 = vpow2.f32 %v11722_v39  ;;  %v12299_v42 = vld [vmem:[#allocation17 + $0x254] sm:$0xf]  ;;  %v11500_v5 = vor.u32 %v12431_v43, %v11499_v4  ;;  %v11467_v1 = vld [vmem:[#allocation17 + $0x610] sm:$0xf] }
 0x5e6   : > { %v8514_v47 = vsel %vm14538_vm12, %v8513_v46, %v8509_v48  ;;  %12668 = vrcp.f32 %v14558_v22  ;;  %7063 = vmatpush.bf16.msra.mxu0 %v10736_v41  ;;  %v10989_v54 = vld [vmem:[#allocation17 + $0x270] sm:$0xf0]  ;;  %7091 = vmatpush.bf16.msra.mxu1 %v11024_v6  ;;  %v10704_v15 = vor.u32 %v12227_v19, %v10701_v37  ;;  %vm7682_vm0 = vweird.f32 %v14550_v34  ;;  %v12423_v16 = vld [vmem:[#allocation17 + $0x62c] sm:$0xf0] }
 0x5e7   : > { %8677 = vst [vmem:[%s14368_s25 + $0x1c0] sm:$0xff] %v8514_v47  ;;  %v7678_v50 = vsub.f32 1.0, %v7677_v58  ;;  %6901 = vmatmul.bf16.gmra.mxu2 %v14224_v20  ;;  %6959 = vmatmul.bf16.gmra.mxu0 %v14174_v57  ;;  %v10992_v46 = vor.u32 %v12299_v42, %v10989_v54  ;;  %v6613_v39 = vadd.f32 %v14341_v28, %v14416_v13  ;;  %v12291_v41 = vld [vmem:[#allocation17 + $0x214] sm:$0xf]  ;;  %vm7683_vm2 = vmor %vm7681_vm1, %vm7682_vm0  ;;  %v7688_v28 = vor.u32 1.1754944e-38, %v7687_v59 }
 0x5e8   : > { %v6696_v45 = vpop.f32.mrf.mxu3  ;;  %7006 = vmatpush.bf16.msrb.mxu2 %v11212_v14  ;;  %7034 = vmatpush.bf16.msrb.mxu3 %v11500_v5  ;;  %v11468_v38 = vor.u32 %v12423_v16, %v11467_v1  ;;  %v10957_v6 = vld [vmem:[#allocation17 + $0x230] sm:$0xf0]  ;;  %vm7686_vm3 = vcmp.eq.f32.partialorder %v7685_v33, 8.507059e+37  ;;  %v7805_v5 = vand.u32 2147483647, %v14558_v22  ;;  %vm7801_vm5 = vweird.f32 %v14558_v22 }
 0x5e9   : > { %v7679_v26 = vmul.f32 %v14550_v34, %v7678_v50  ;;  %v6697_v21 = vadd.f32 %v6696_v45, %v6668_v23  ;;  %v6642_v48 = vadd.f32 %v14353_v10, %v6613_v39  ;;  %v10960_v43 = vor.u32 %v12291_v41, %v10957_v6 }
 0x5ea   : > { %v6670_v30 = vpop.f32.mrf.mxu2  ;;  %v14580_v51 = vpop.f32.mrf.mxu1  ;;  %7064 = vmatpush.bf16.msra.mxu0 %v10704_v15  ;;  %7092 = vmatpush.bf16.msra.mxu1 %v10992_v46  ;;  %v7807_v50 = vand.u32 2147483648, %v14558_v22  ;;  %v6615_v45 = vadd.f32 %v14360_v52, %v14416_v13  ;;  %vm7806_vm7 = vcmp.eq.f32.partialorder %v7805_v5, 8.507059e+37 }
 0x5eb   : > { %v12667_v14 = vpop.eup %12666  ;;  %v7680_v19 = vadd.f32 %v14550_v34, %v7679_v26  ;;  %v11730_v37 = vmul.f32 -1.442695, %v6697_v21  ;;  %v6671_v54 = vadd.f32 %v6670_v30, %v6642_v48 }
 0x5ec   : > { %v12669_v25 = vpop.eup %12668  ;;  %v14587_v58 = vadd.f32 1.0, %v12667_v14  ;;  %v14589_v4 = vpop.f32.mrf.mxu0  ;;  %7035 = vmatpush.bf16.msrb.mxu3 %v11468_v38  ;;  %v6644_v16 = vadd.f32 %v14375_v24, %v6615_v45  ;;  %v7808_v39 = vor.u32 1.1754944e-38, %v7807_v50 }
 0x5ed   : > { %v7684_v42 = vsel %vm7683_vm2, %v14550_v34, %v7680_v19  ;;  %v7797_v9 = vmul.f32 %v12669_v25, %v14558_v22  ;;  %12670 = vpow2.f32 %v11730_v37  ;;  %6930 = vmatmul.bf16.gmra.mxu3 %v14229_v12  ;;  %6988 = vmatmul.bf16.gmra.mxu1 %v14178_v40  ;;  %vm7802_vm4 = vweird.f32 %v12669_v25 }
 0x5ee   : > { %v7689_v10 = vsel %vm7686_vm3, %v7688_v28, %v7684_v42  ;;  %12672 = vrcp.f32 %v14587_v58  ;;  %7093 = vmatpush.bf16.msra.mxu1 %v10960_v43  ;;  %vm7803_vm6 = vmor %vm7801_vm5, %vm7802_vm4  ;;  %v7927_v24 = vand.u32 2147483648, %v14587_v58  ;;  %v6618_v28 = vadd.f32 %v14381_v32, %v14416_v13 }
 0x5ef   : > { %8622 = vst [vmem:[%s14368_s25 + $0x8] sm:$0xff] %v7689_v10  ;;  %v7798_v47 = vsub.f32 1.0, %v7797_v9  ;;  %vm7921_vm9 = vweird.f32 %v14587_v58 }
 0x5f0   : > { %v6699_v23 = vpop.f32.mrf.mxu3  ;;  %v6647_v50 = vadd.f32 %v14392_v36, %v6618_v28 }
 0x5f1   : > { %v7799_v34 = vmul.f32 %v12669_v25, %v7798_v47  ;;  %v6700_v59 = vadd.f32 %v6699_v23, %v6671_v54  ;;  %v7928_v23 = vor.u32 1.1754944e-38, %v7927_v24 }
 0x5f2   : > { %v6672_v15 = vpop.f32.mrf.mxu2  ;;  %v14601_v46 = vpop.f32.mrf.mxu1 }
 0x5f3   : > { %v12671_v26 = vpop.eup %12670  ;;  %v7800_v33 = vadd.f32 %v12669_v25, %v7799_v34  ;;  %v11738_v21 = vmul.f32 -1.442695, %v6700_v59  ;;  %v6673_v14 = vadd.f32 %v6672_v15, %v6644_v16  ;;  %v6620_v16 = vadd.f32 %v14398_v11, %v14416_v13 }
 0x5f4   : > { %v12673_v1 = vpop.eup %12672  ;;  %v14605_v30 = vadd.f32 1.0, %v12671_v26  ;;  %v14607_v38 = vpop.f32.mrf.mxu0 }
 0x5f5   : > { %v7804_v41 = vsel %vm7803_vm6, %v12669_v25, %v7800_v33  ;;  %v7917_v52 = vmul.f32 %v12673_v1, %v14587_v58  ;;  %12674 = vpow2.f32 %v11738_v21  ;;  %vm7922_vm8 = vweird.f32 %v12673_v1 }
 0x5f6   : > { %v7809_v6 = vsel %vm7806_vm7, %v7808_v39, %v7804_v41  ;;  %12676 = vrcp.f32 %v14605_v30  ;;  %v7925_v25 = vand.u32 2147483647, %v14587_v58  ;;  %vm7923_vm10 = vmor %vm7921_vm9, %vm7922_vm8  ;;  %v8047_v15 = vand.u32 2147483648, %v14605_v30 }
 0x5f7   : > { %8630 = vst [vmem:[%s14368_s25 + $0x48] sm:$0xff] %v7809_v6  ;;  %v7918_v22 = vsub.f32 1.0, %v7917_v52  ;;  %6906 = vmatmul.bf16.gmra.mxu2 %v14236_v0  ;;  %6964 = vmatmul.bf16.gmra.mxu0 %v14184_v49  ;;  %v8045_v21 = vand.u32 2147483647, %v14605_v30  ;;  %vm8041_vm13 = vweird.f32 %v14605_v30  ;;  %v6649_v24 = vadd.f32 %v14409_v18, %v6620_v16  ;;  %v12288_v16 = vld [vmem:[#allocation17 + $0x1f4] sm:$0xf0] }
 0x5f8   : > { %v6701_v19 = vpop.f32.mrf.mxu3  ;;  %vm7926_vm11 = vcmp.eq.f32.partialorder %v7925_v25, 8.507059e+37  ;;  %v8048_v13 = vor.u32 1.1754944e-38, %v8047_v15  ;;  %v10931_v15 = vld [vmem:[#allocation17 + $0x1d8] sm:$0xf] }
 0x5f9   : > { %v7919_v37 = vmul.f32 %v12673_v1, %v7918_v22  ;;  %v6702_v48 = vadd.f32 %v6701_v19, %v6673_v14  ;;  %v14644_v19 = vld [vmem:[%s15449_s11] sm:$0xff]  ;;  %vm8046_vm15 = vcmp.eq.f32.partialorder %v8045_v21, 8.507059e+37 }
 0x5fa   : > { %v6675_v43 = vpop.f32.mrf.mxu2  ;;  %v14618_v42 = vpop.f32.mrf.mxu1  ;;  %v14647_v11 = vperm.slane %v14644_v19, 2 }
 0x5fb   : > { %v12675_v9 = vpop.eup %12674  ;;  %v7920_v10 = vadd.f32 %v12673_v1, %v7919_v37  ;;  %v11746_v47 = vmul.f32 -1.442695, %v6702_v48  ;;  %v6676_v45 = vadd.f32 %v6675_v43, %v6647_v50 }
 0x5fc   : > { %v12677_v54 = vpop.eup %12676  ;;  %v14622_v34 = vadd.f32 1.0, %v12675_v9  ;;  %v14624_v5 = vpop.f32.mrf.mxu0 }
 0x5fd   : > { %v7924_v59 = vsel %vm7923_vm10, %v12673_v1, %v7920_v10  ;;  %v8037_v32 = vmul.f32 %v12677_v54, %v14605_v30  ;;  %12678 = vpow2.f32 %v11746_v47  ;;  %6935 = vmatmul.bf16.gmra.mxu3 %v14241_v7  ;;  %6993 = vmatmul.bf16.gmra.mxu1 %v14191_v56  ;;  %vm8042_vm12 = vweird.f32 %v12677_v54  ;;  %v12411_v10 = vld [vmem:[#allocation17 + $0x5d4] sm:$0xf] }
 0x5fe   : > { %v7929_v58 = vsel %vm7926_vm11, %v7928_v23, %v7924_v59  ;;  %12680 = vrcp.f32 %v14622_v34  ;;  %vm8043_vm14 = vmor %vm8041_vm13, %vm8042_vm12  ;;  %v8165_v43 = vand.u32 2147483647, %v14622_v34  ;;  %v6719_v47 = vadd.f32 %v14420_v35, %v14647_v11  ;;  %v11437_v23 = vld [vmem:[#allocation17 + $0x5f0] sm:$0xf0] }
 0x5ff   : > { %8638 = vst [vmem:[%s14368_s25 + $0x88] sm:$0xff] %v7929_v58  ;;  %v8038_v36 = vsub.f32 1.0, %v8037_v32  ;;  %v12475_v59 = vld [vmem:[#allocation17 + $0x7d4] sm:$0xf]  ;;  %vm8161_vm1 = vweird.f32 %v14622_v34 }
 0x600   : > { %v6704_v26 = vpop.f32.mrf.mxu3  ;;  %vm8166_vm3 = vcmp.eq.f32.partialorder %v8165_v43, 8.507059e+37 }
 0x601   : > { %v8039_v33 = vmul.f32 %v12677_v54, %v8038_v36  ;;  %v6705_v1 = vadd.f32 %v6704_v26, %v6676_v45  ;;  %v11440_v36 = vor.u32 %v12411_v10, %v11437_v23  ;;  %v11693_v45 = vld [vmem:[#allocation17 + $0x7f0] sm:$0xf0]  ;;  %v10899_v10 = vld [vmem:[#allocation17 + $0x198] sm:$0xf] }
 0x602   : > { %v6677_v39 = vpop.f32.mrf.mxu2  ;;  %v14635_v41 = vpop.f32.mrf.mxu1  ;;  %v11696_v35 = vor.u32 %v12475_v59, %v11693_v45  ;;  %v12352_v59 = vld [vmem:[#allocation17 + $0x3f4] sm:$0xf0]  ;;  %v12467_v45 = vld [vmem:[#allocation17 + $0x794] sm:$0xf] }
 0x603   : > { %v12679_v52 = vpop.eup %12678  ;;  %v8040_v6 = vadd.f32 %v12677_v54, %v8039_v33  ;;  %v11754_v22 = vmul.f32 -1.442695, %v6705_v1  ;;  %v6678_v9 = vadd.f32 %v6677_v39, %v6649_v24  ;;  %7115 = vmatpush.bf16.msra.mxu2 %v11440_v36  ;;  %v12403_v24 = vld [vmem:[#allocation17 + $0x594] sm:$0xf] }
 0x604   : > { %v14638_v14 = vpop.eup %12680  ;;  %v14649_v37 = vadd.f32 1.0, %v12679_v52  ;;  %v14651_v25 = vpop.f32.mrf.mxu0  ;;  %v6748_v52 = vadd.f32 %v14436_v31, %v6719_v47  ;;  %7144 = vmatpush.bf16.msra.mxu3 %v11696_v35  ;;  %v12280_v47 = vld [vmem:[#allocation17 + $0x1b4] sm:$0xf0] }
 0x605   : > { %v8044_v30 = vsel %vm8043_vm14, %v12677_v54, %v8040_v6  ;;  %v8157_v48 = vmul.f32 %v14638_v14, %v14622_v34  ;;  %12682 = vpow2.f32 %v11754_v22  ;;  %v8167_v54 = vand.u32 2147483648, %v14622_v34 }
 0x606   : > { %v8049_v18 = vsel %vm8046_vm15, %v8048_v13, %v8044_v30  ;;  %12684 = vrcp.f32 %v14649_v37  ;;  %vm8162_vm0 = vweird.f32 %v14638_v14  ;;  %v8285_v26 = vand.u32 2147483647, %v14649_v37  ;;  %v11405_v13 = vld [vmem:[#allocation17 + $0x5b0] sm:$0xf0] }
 0x607   : > { %8646 = vst [vmem:[%s14368_s25 + $0xc8] sm:$0xff] %v8049_v18  ;;  %v8158_v28 = vsub.f32 1.0, %v8157_v48  ;;  %7007 = vmatmul.bf16.vlgmr.msrb.gmra.mxu2 %v14200_v2  ;;  %7065 = vmatmul.bf16.vlgmr.msra.gmra.mxu0 %v14154_v27  ;;  %v8287_v33 = vand.u32 2147483648, %v14649_v37  ;;  %vm14676_vm2 = vmor %vm8161_vm1, %vm8162_vm0  ;;  %v8168_v18 = vor.u32 1.1754944e-38, %v8167_v54  ;;  %v10932_v34 = vor.u32 %v12288_v16, %v10931_v15  ;;  %v11187_v54 = vld [vmem:[#allocation17 + $0x3d8] sm:$0xf] }
 0x608   : > { %v6706_v50 = vpop.f32.mrf.mxu3  ;;  %vm14691_vm4 = vcmp.eq.f32.partialorder %v8285_v26, 8.507059e+37  ;;  %v10900_v15 = vor.u32 %v12280_v47, %v10899_v10  ;;  %v12395_v26 = vld [vmem:[#allocation17 + $0x554] sm:$0xf]  ;;  %v11155_v10 = vld [vmem:[#allocation17 + $0x398] sm:$0xf]  ;;  %vm8281_vm6 = vweird.f32 %v14649_v37 }
 0x609   : > { %v8159_v32 = vmul.f32 %v14638_v14, %v8158_v28  ;;  %v6707_v58 = vadd.f32 %v6706_v50, %v6678_v9  ;;  %v11408_v9 = vor.u32 %v12403_v24, %v11405_v13  ;;  %7173 = vmatpush.bf16.msrb.mxu0 %v10932_v34  ;;  %v8288_v43 = vor.u32 1.1754944e-38, %v8287_v33  ;;  %v10867_v33 = vld [vmem:[#allocation17 + $0x158] sm:$0xf] }
 0x60a   : > { %v6776_v21 = vpop.f32.mrf.mxu2  ;;  %v14667_v1 = vpop.f32.mrf.mxu1  ;;  %v12272_v34 = vld [vmem:[#allocation17 + $0x174] sm:$0xf0] }
 0x60b   : > { %v12683_v39 = vpop.eup %12682  ;;  %v8160_v6 = vadd.f32 %v14638_v14, %v8159_v32  ;;  %v11762_v22 = vmul.f32 -1.442695, %v6707_v58  ;;  %v6777_v36 = vadd.f32 %v6776_v21, %v6748_v52  ;;  %7116 = vmatpush.bf16.msra.mxu2 %v11408_v9  ;;  %v12344_v47 = vld [vmem:[#allocation17 + $0x3b4] sm:$0xf0]  ;;  %v12379_v58 = vld [vmem:[#allocation17 + $0x4d4] sm:$0xf] }
 0x60c   : > { %v14672_v30 = vpop.eup %12684  ;;  %v14680_v28 = vadd.f32 1.0, %v12683_v39  ;;  %v14682_v31 = vpop.f32.mrf.mxu0  ;;  %v11661_v39 = vld [vmem:[#allocation17 + $0x7b0] sm:$0xf0] }
 0x60d   : > { %v8164_v50 = vsel %vm14676_vm2, %v14638_v14, %v8160_v6  ;;  %v8277_v23 = vmul.f32 %v14672_v30, %v14649_v37  ;;  %12686 = vpow2.f32 %v11762_v22  ;;  %7036 = vmatmul.bf16.vlgmr.msrb.gmra.mxu3 %v14205_v29  ;;  %7094 = vmatmul.bf16.vlgmr.msra.gmra.mxu1 %v14158_v60  ;;  %vm8282_vm5 = vweird.f32 %v14672_v30 }
 0x60e   : > { %v8169_v32 = vsel %vm8166_vm3, %v8168_v18, %v8164_v50  ;;  %12688 = vrcp.f32 %v14680_v28  ;;  %v8405_v35 = vand.u32 2147483647, %v14680_v28  ;;  %v11188_v6 = vor.u32 %v12352_v59, %v11187_v54  ;;  %v11373_v18 = vld [vmem:[#allocation17 + $0x570] sm:$0xf0]  ;;  %7174 = vmatpush.bf16.msrb.mxu0 %v10900_v15  ;;  %vm14711_vm7 = vmor %vm8281_vm6, %vm8282_vm5 }
 0x60f   : > { %8654 = vst [vmem:[%s14368_s25 + $0x108] sm:$0xff] %v8169_v32  ;;  %v8278_v14 = vsub.f32 1.0, %v8277_v23  ;;  %v8407_v24 = vand.u32 2147483648, %v14680_v28  ;;  %v11664_v48 = vor.u32 %v12467_v45, %v11661_v39  ;;  %v11376_v9 = vor.u32 %v12395_v26, %v11373_v18  ;;  %v12387_v32 = vld [vmem:[#allocation17 + $0x514] sm:$0xf] }
 0x610   : > { %v6805_v16 = vpop.f32.mrf.mxu3  ;;  %7202 = vmatpush.bf16.msrb.mxu1 %v11188_v6  ;;  %v6721_v23 = vadd.f32 %v14451_v8, %v14647_v11  ;;  %v10868_v39 = vor.u32 %v12272_v34, %v10867_v33  ;;  %v11156_v37 = vor.u32 %v12344_v47, %v11155_v10  ;;  %v10835_v26 = vld [vmem:[#allocation17 + $0x118] sm:$0xf]  ;;  %vm14727_vm8 = vcmp.eq.f32.partialorder %v8405_v35, 8.507059e+37 }
 0x611   : > { %v8279_v22 = vmul.f32 %v14672_v30, %v8278_v14  ;;  %v6806_v13 = vadd.f32 %v6805_v16, %v6777_v36  ;;  %7145 = vmatpush.bf16.msra.mxu3 %v11664_v48  ;;  %v11341_v14 = vld [vmem:[#allocation17 + $0x530] sm:$0xf0]  ;;  %7117 = vmatpush.bf16.msra.mxu2 %v11376_v9  ;;  %v12264_v6 = vld [vmem:[#allocation17 + $0x134] sm:$0xf0]  ;;  %v8408_v10 = vor.u32 1.1754944e-38, %v8407_v24  ;;  %vm8401_vm10 = vweird.f32 %v14680_v28 }
 0x612   : > { %v6778_v21 = vpop.f32.mrf.mxu2  ;;  %v14701_v52 = vpop.f32.mrf.mxu1  ;;  %v11344_v8 = vor.u32 %v12387_v32, %v11341_v14  ;;  %7175 = vmatpush.bf16.msrb.mxu0 %v10868_v39  ;;  %v12336_v34 = vld [vmem:[#allocation17 + $0x374] sm:$0xf0]  ;;  %v10836_v32 = vor.u32 %v12264_v6, %v10835_v26  ;;  %v11597_v39 = vld [vmem:[#allocation17 + $0x730] sm:$0xf0]  ;;  %v15477_v6 = vld [vmem:[#allocation29_spill] sm:$0xff] }
 0x613   : > { %15470 = vst [vmem:[#allocation30_spill] sm:$0xff] %v14701_v52  ;;  %v12687_v50 = vpop.eup %12686  ;;  %v8280_v54 = vadd.f32 %v14672_v30, %v8279_v22  ;;  %v11707_v59 = vmul.f32 -1.442695, %v6806_v13  ;;  %v15474_v22 = vld [vmem:[#allocation28_spill] sm:$0xff]  ;;  %v11629_v52 = vld [vmem:[#allocation17 + $0x770] sm:$0xf0] }
 0x614   : > { %v14707_v36 = vpop.eup %12688  ;;  %v14715_v15 = vadd.f32 1.0, %v12687_v50  ;;  %v14717_v16 = vpop.f32.mrf.mxu0  ;;  %v6750_v13 = vadd.f32 %v15474_v22, %v6721_v23  ;;  %v12459_v50 = vld [vmem:[#allocation17 + $0x754] sm:$0xf]  ;;  %7203 = vmatpush.bf16.msrb.mxu1 %v11156_v37  ;;  %v12328_v26 = vld [vmem:[#allocation17 + $0x334] sm:$0xf0] }
 0x615   : > { %15473 = vst [vmem:[#allocation31_spill] sm:$0xff] %v14717_v16  ;;  %v8284_v48 = vsel %vm14711_vm7, %v14672_v30, %v8280_v54  ;;  %v8397_v18 = vmul.f32 %v14707_v36, %v14680_v28  ;;  %12690 = vpow2.f32 %v11707_v59  ;;  %v11123_v16 = vld [vmem:[#allocation17 + $0x358] sm:$0xf]  ;;  %v11632_v23 = vor.u32 %v12459_v50, %v11629_v52  ;;  %7118 = vmatpush.bf16.msra.mxu2 %v11344_v8  ;;  %v11309_v59 = vld [vmem:[#allocation17 + $0x4f0] sm:$0xf0] }
 0x616   : > { %v8289_v33 = vsel %vm14691_vm4, %v8288_v43, %v8284_v48  ;;  %12692 = vrcp.f32 %v14715_v15  ;;  %v6779_v47 = vadd.f32 %v6778_v21, %v6750_v13  ;;  %v8525_v43 = vand.u32 2147483647, %v14715_v15  ;;  %v12451_v21 = vld [vmem:[#allocation17 + $0x714] sm:$0xf]  ;;  %v10803_v52 = vld [vmem:[#allocation17 + $0xd8] sm:$0xf]  ;;  %7176 = vmatpush.bf16.msrb.mxu0 %v10836_v32 }
 0x617   : > { %8662 = vst [vmem:[%s14368_s25 + $0x148] sm:$0xff] %v8289_v33  ;;  %v8398_v30 = vsub.f32 1.0, %v8397_v18  ;;  %7012 = vmatmul.bf16.gmra.mxu2 %v14212_v17  ;;  %7070 = vmatmul.bf16.gmra.mxu0 %v14164_v44  ;;  %v8527_v35 = vand.u32 2147483648, %v14715_v15  ;;  %v11124_v14 = vor.u32 %v12336_v34, %v11123_v16  ;;  %vm8402_vm9 = vweird.f32 %v14707_v36  ;;  %v12256_v8 = vld [vmem:[#allocation17 + $0xf4] sm:$0xf0] }
 0x618   : > { %v6807_v54 = vpop.f32.mrf.mxu3  ;;  %7146 = vmatpush.bf16.msra.mxu3 %v11632_v23  ;;  %v11312_v37 = vor.u32 %v12379_v58, %v11309_v59  ;;  %v11600_v48 = vor.u32 %v12451_v21, %v11597_v39  ;;  %v11091_v18 = vld [vmem:[#allocation17 + $0x318] sm:$0xf]  ;;  %v6724_v50 = vadd.f32 %v15477_v6, %v14647_v11  ;;  %vm14749_vm11 = vmor %vm8401_vm10, %vm8402_vm9  ;;  %vm14769_vm12 = vcmp.eq.f32.partialorder %v8525_v43, 8.507059e+37  ;;  %v11245_v9 = vld [vmem:[#allocation17 + $0x470] sm:$0xf0] }
 0x619   : > { %v8399_v45 = vmul.f32 %v14707_v36, %v8398_v30  ;;  %v6808_v24 = vadd.f32 %v6807_v54, %v6779_v47  ;;  %7204 = vmatpush.bf16.msrb.mxu1 %v11124_v14  ;;  %v12371_v30 = vld [vmem:[#allocation17 + $0x494] sm:$0xf]  ;;  %v10804_v14 = vor.u32 %v12256_v8, %v10803_v52  ;;  %v10771_v28 = vld [vmem:[#allocation17 + $0x98] sm:$0xf]  ;;  %vm8521_vm14 = vweird.f32 %v14715_v15 }
 0x61a   : > { %v6781_v22 = vpop.f32.mrf.mxu2  ;;  %v14739_v13 = vpop.f32.mrf.mxu1  ;;  %v11277_v47 = vld [vmem:[#allocation17 + $0x4b0] sm:$0xf0]  ;;  %7119 = vmatpush.bf16.msra.mxu2 %v11312_v37  ;;  %v6753_v21 = vadd.f32 %v14508_v3, %v6724_v50  ;;  %v11059_v8 = vld [vmem:[#allocation17 + $0x2d8] sm:$0xf] }
 0x61b   : > { %v12691_v16 = vpop.eup %12690  ;;  %v8400_v33 = vadd.f32 %v14707_v36, %v8399_v45  ;;  %v11715_v34 = vmul.f32 -1.442695, %v6808_v24  ;;  %v11280_v32 = vor.u32 %v12371_v30, %v11277_v47  ;;  %v11092_v45 = vor.u32 %v12328_v26, %v11091_v18  ;;  %v12248_v24 = vld [vmem:[#allocation17 + $0xb4] sm:$0xf0]  ;;  %v12443_v37 = vld [vmem:[#allocation17 + $0x6d4] sm:$0xf]  ;;  %7177 = vmatpush.bf16.msrb.mxu0 %v10804_v14 }
 0x61c   : > { %v14745_v23 = vpop.eup %12692  ;;  %v14753_v54 = vadd.f32 1.0, %v12691_v16  ;;  %v14755_v59 = vpop.f32.mrf.mxu0  ;;  %v11565_v52 = vld [vmem:[#allocation17 + $0x6f0] sm:$0xf0]  ;;  %7147 = vmatpush.bf16.msra.mxu3 %v11600_v48  ;;  %v12320_v3 = vld [vmem:[#allocation17 + $0x2f4] sm:$0xf0]  ;;  %v6782_v26 = vadd.f32 %v6781_v22, %v6753_v21 }
 0x61d   : > { %v8404_v39 = vsel %vm14749_vm11, %v14707_v36, %v8400_v33  ;;  %v8517_v6 = vmul.f32 %v14745_v23, %v14715_v15  ;;  %12694 = vpow2.f32 %v11715_v34  ;;  %7041 = vmatmul.bf16.gmra.mxu3 %v14217_v62  ;;  %7099 = vmatmul.bf16.gmra.mxu1 %v14168_v53  ;;  %v11568_v16 = vor.u32 %v12443_v37, %v11565_v52  ;;  %v12363_v50 = vld [vmem:[#allocation17 + $0x454] sm:$0xf]  ;;  %v12312_v37 = vld [vmem:[#allocation17 + $0x2b4] sm:$0xf0] }
 0x61e   : > { %v8409_v18 = vsel %vm14727_vm8, %v8408_v10, %v8404_v39  ;;  %12696 = vrcp.f32 %v14753_v54  ;;  %7205 = vmatpush.bf16.msrb.mxu1 %v11092_v45  ;;  %v8528_v34 = vor.u32 1.1754944e-38, %v8527_v35  ;;  %7120 = vmatpush.bf16.msra.mxu2 %v11280_v32  ;;  %v10772_v10 = vor.u32 %v12248_v24, %v10771_v28  ;;  %v12435_v14 = vld [vmem:[#allocation17 + $0x694] sm:$0xf]  ;;  %v10739_v45 = vld [vmem:[#allocation17 + $0x58] sm:$0xf] }
 0x61f   : > { %8670 = vst [vmem:[%s14368_s25 + $0x188] sm:$0xff] %v8409_v18  ;;  %v8518_v36 = vsub.f32 1.0, %v8517_v6  ;;  %v11060_v47 = vor.u32 %v12320_v3, %v11059_v8  ;;  %vm8522_vm13 = vweird.f32 %v14745_v23  ;;  %v11533_v22 = vld [vmem:[#allocation17 + $0x6b0] sm:$0xf0]  ;;  %v11248_v21 = vor.u32 %v12363_v50, %v11245_v9  ;;  %v12240_v35 = vld [vmem:[#allocation17 + $0x74] sm:$0xf0] }
 0x620   : > { %v6810_v30 = vpop.f32.mrf.mxu3  ;;  %7148 = vmatpush.bf16.msra.mxu3 %v11568_v16  ;;  %v11536_v6 = vor.u32 %v12435_v14, %v11533_v22  ;;  %7178 = vmatpush.bf16.msrb.mxu0 %v10772_v10  ;;  %v11027_v32 = vld [vmem:[#allocation17 + $0x298] sm:$0xf]  ;;  %v6726_v24 = vadd.f32 %v14524_v63, %v14647_v11  ;;  %v12355_v18 = vld [vmem:[#allocation17 + $0x414] sm:$0xf]  ;;  %vm14785_vm15 = vmor %vm8521_vm14, %vm8522_vm13  ;;  %v10740_v63 = vor.u32 %v12240_v35, %v10739_v45  ;;  %vm7696_vm1 = vweird.f32 %v14753_v54 }
 0x621   : > { %v8519_v48 = vmul.f32 %v14745_v23, %v8518_v36  ;;  %v6811_v58 = vadd.f32 %v6810_v30, %v6782_v26  ;;  %v11213_v3 = vld [vmem:[#allocation17 + $0x430] sm:$0xf0]  ;;  %v11028_v30 = vor.u32 %v12312_v37, %v11027_v32  ;;  %v10707_v9 = vld [vmem:[#allocation17 + $0x18] sm:$0xf]  ;;  %v7702_v32 = vand.u32 2147483648, %v14753_v54 }
 0x622   : > { %v6783_v39 = vpop.f32.mrf.mxu2  ;;  %v14775_v43 = vpop.f32.mrf.mxu1  ;;  %7206 = vmatpush.bf16.msrb.mxu1 %v11060_v47  ;;  %7121 = vmatpush.bf16.msra.mxu2 %v11248_v21  ;;  %v11216_v15 = vor.u32 %v12355_v18, %v11213_v3  ;;  %v12232_v10 = vld [vmem:[#allocation17 + $0x34] sm:$0xf0]  ;;  %v6755_v47 = vadd.f32 %v14544_v55, %v6726_v24  ;;  %v12427_v14 = vld [vmem:[#allocation17 + $0x654] sm:$0xf]  ;;  %v6729_v18 = vadd.f32 %v14560_v61, %v14647_v11 }
 0x623   : > { %v12695_v28 = vpop.eup %12694  ;;  %v8520_v52 = vadd.f32 %v14745_v23, %v8519_v48  ;;  %v11723_v8 = vmul.f32 -1.442695, %v6811_v58  ;;  %v11501_v22 = vld [vmem:[#allocation17 + $0x670] sm:$0xf0]  ;;  %v12304_v45 = vld [vmem:[#allocation17 + $0x274] sm:$0xf0]  ;;  %v10708_v33 = vor.u32 %v12232_v10, %v10707_v9 }
 0x624   : > { %v14781_v36 = vpop.eup %12696  ;;  %v14789_v16 = vadd.f32 1.0, %v12695_v28  ;;  %v14791_v50 = vpop.f32.mrf.mxu0  ;;  %v10995_v28 = vld [vmem:[#allocation17 + $0x258] sm:$0xf]  ;;  %7149 = vmatpush.bf16.msra.mxu3 %v11536_v6  ;;  %7179 = vmatpush.bf16.msrb.mxu0 %v10740_v63  ;;  %v6784_v35 = vadd.f32 %v6783_v39, %v6755_v47  ;;  %v7700_v6 = vand.u32 2147483647, %v14753_v54  ;;  %v7703_v61 = vor.u32 1.1754944e-38, %v7702_v32 }
 0x625   : > { %v8524_v48 = vsel %vm14785_vm15, %v14745_v23, %v8520_v52  ;;  %v7692_v58 = vmul.f32 %v14781_v36, %v14753_v54  ;;  %12698 = vpow2.f32 %v11723_v8  ;;  %v11504_v23 = vor.u32 %v12427_v14, %v11501_v22  ;;  %v12419_v39 = vld [vmem:[#allocation17 + $0x614] sm:$0xf] }
 0x626   : > { %v8529_v21 = vsel %vm14769_vm12, %v8528_v34, %v8524_v48  ;;  %12700 = vrcp.f32 %v14789_v16  ;;  %7207 = vmatpush.bf16.msrb.mxu1 %v11028_v30  ;;  %7122 = vmatpush.bf16.msra.mxu2 %v11216_v15  ;;  %v10996_v34 = vor.u32 %v12304_v45, %v10995_v28  ;;  %vm7697_vm0 = vweird.f32 %v14781_v36  ;;  %v11469_v8 = vld [vmem:[#allocation17 + $0x630] sm:$0xf0]  ;;  %v10963_v30 = vld [vmem:[#allocation17 + $0x218] sm:$0xf] }
 0x627   : > { %8678 = vst [vmem:[%s14368_s25 + $0x1c8] sm:$0xff] %v8529_v21  ;;  %v7693_v55 = vsub.f32 1.0, %v7692_v58  ;;  %7017 = vmatmul.bf16.gmra.mxu2 %v14224_v20  ;;  %7075 = vmatmul.bf16.gmra.mxu0 %v14174_v57  ;;  %v11472_v63 = vor.u32 %v12419_v39, %v11469_v8  ;;  %v12296_v15 = vld [vmem:[#allocation17 + $0x234] sm:$0xf0]  ;;  %v6758_v58 = vadd.f32 %v14580_v51, %v6729_v18  ;;  %vm7698_vm2 = vmor %vm7696_vm1, %vm7697_vm0  ;;  %vm7701_vm3 = vcmp.eq.f32.partialorder %v7700_v6, 8.507059e+37 }
 0x628   : > { %v6812_v37 = vpop.f32.mrf.mxu3  ;;  %7150 = vmatpush.bf16.msra.mxu3 %v11504_v23  ;;  %7180 = vmatpush.bf16.msrb.mxu0 %v10708_v33  ;;  %v10964_v28 = vor.u32 %v12296_v15, %v10963_v30  ;;  %v7820_v32 = vand.u32 2147483647, %v14789_v16  ;;  %v6731_v33 = vadd.f32 %v14589_v4, %v14647_v11  ;;  %vm7816_vm5 = vweird.f32 %v14789_v16 }
 0x629   : > { %v7694_v24 = vmul.f32 %v14781_v36, %v7693_v55  ;;  %v6813_v52 = vadd.f32 %v6812_v37, %v6784_v35  ;;  %v7822_v35 = vand.u32 2147483648, %v14789_v16 }
 0x62a   : > { %v6786_v3 = vpop.f32.mrf.mxu2  ;;  %v14811_v26 = vpop.f32.mrf.mxu1  ;;  %7208 = vmatpush.bf16.msrb.mxu1 %v10996_v34  ;;  %v6760_v18 = vadd.f32 %v14601_v46, %v6731_v33  ;;  %vm7821_vm7 = vcmp.eq.f32.partialorder %v7820_v32, 8.507059e+37 }
 0x62b   : > { %v12699_v9 = vpop.eup %12698  ;;  %v7695_v10 = vadd.f32 %v14781_v36, %v7694_v24  ;;  %v11731_v47 = vmul.f32 -1.442695, %v6813_v52  ;;  %v6787_v55 = vadd.f32 %v6786_v3, %v6758_v58  ;;  %v7823_v3 = vor.u32 1.1754944e-38, %v7822_v35 }
 0x62c   : > { %v12701_v48 = vpop.eup %12700  ;;  %v14818_v14 = vadd.f32 1.0, %v12699_v9  ;;  %v14820_v22 = vpop.f32.mrf.mxu0  ;;  %7151 = vmatpush.bf16.msra.mxu3 %v11472_v63 }
 0x62d   : > { %v7699_v21 = vsel %vm7698_vm2, %v14781_v36, %v7695_v10  ;;  %v7812_v54 = vmul.f32 %v12701_v48, %v14789_v16  ;;  %12702 = vpow2.f32 %v11731_v47  ;;  %7046 = vmatmul.bf16.gmra.mxu3 %v14229_v12  ;;  %7104 = vmatmul.bf16.gmra.mxu1 %v14178_v40  ;;  %vm7817_vm4 = vweird.f32 %v12701_v48 }
 0x62e   : > { %v7704_v51 = vsel %vm7701_vm3, %v7703_v61, %v7699_v21  ;;  %12704 = vrcp.f32 %v14818_v14  ;;  %7209 = vmatpush.bf16.msrb.mxu1 %v10964_v28  ;;  %vm7818_vm6 = vmor %vm7816_vm5, %vm7817_vm4  ;;  %v7942_v46 = vand.u32 2147483648, %v14818_v14  ;;  %v7940_v58 = vand.u32 2147483647, %v14818_v14 }
 0x62f   : > { %8623 = vst [vmem:[%s14368_s25 + $0x10] sm:$0xff] %v7704_v51  ;;  %v7813_v45 = vsub.f32 1.0, %v7812_v54  ;;  %v6734_v28 = vadd.f32 %v14607_v38, %v14647_v11  ;;  %vm7936_vm9 = vweird.f32 %v14818_v14 }
 0x630   : > { %v6815_v23 = vpop.f32.mrf.mxu3  ;;  %vm7941_vm11 = vcmp.eq.f32.partialorder %v7940_v58, 8.507059e+37 }
 0x631   : > { %v7814_v36 = vmul.f32 %v12701_v48, %v7813_v45  ;;  %v6816_v37 = vadd.f32 %v6815_v23, %v6787_v55  ;;  %v6763_v23 = vadd.f32 %v14618_v42, %v6734_v28 }
 0x632   : > { %v6788_v34 = vpop.f32.mrf.mxu2  ;;  %v14832_v24 = vpop.f32.mrf.mxu1 }
 0x633   : > { %v12703_v6 = vpop.eup %12702  ;;  %v7815_v52 = vadd.f32 %v12701_v48, %v7814_v36  ;;  %v11739_v39 = vmul.f32 -1.442695, %v6816_v37  ;;  %v6789_v10 = vadd.f32 %v6788_v34, %v6760_v18  ;;  %v7943_v36 = vor.u32 1.1754944e-38, %v7942_v46 }
 0x634   : > { %v12705_v8 = vpop.eup %12704  ;;  %v14836_v63 = vadd.f32 1.0, %v12703_v6  ;;  %v14839_v15 = vpop.f32.mrf.mxu0 }
 0x635   : > { %v7819_v30 = vsel %vm7818_vm6, %v12701_v48, %v7815_v52  ;;  %v7932_v4 = vmul.f32 %v12705_v8, %v14818_v14  ;;  %12706 = vpow2.f32 %v11739_v39  ;;  %vm7937_vm8 = vweird.f32 %v12705_v8 }
 0x636   : > { %v7824_v9 = vsel %vm7821_vm7, %v7823_v3, %v7819_v30  ;;  %12708 = vrcp.f32 %v14836_v63  ;;  %vm7938_vm10 = vmor %vm7936_vm9, %vm7937_vm8  ;;  %v8062_v6 = vand.u32 2147483648, %v14836_v63  ;;  %v6736_v3 = vadd.f32 %v14624_v5, %v14647_v11 }
 0x637   : > { %8631 = vst [vmem:[%s14368_s25 + $0x50] sm:$0xff] %v7824_v9  ;;  %v7933_v16 = vsub.f32 1.0, %v7932_v4  ;;  %7022 = vmatmul.bf16.gmra.mxu2 %v14236_v0  ;;  %7080 = vmatmul.bf16.gmra.mxu0 %v14184_v49  ;;  %vm8056_vm13 = vweird.f32 %v14836_v63 }
 0x638   : > { %v6817_v47 = vpop.f32.mrf.mxu3  ;;  %v8063_v58 = vor.u32 1.1754944e-38, %v8062_v6 }
 0x639   : > { %v7934_v48 = vmul.f32 %v12705_v8, %v7933_v16  ;;  %v6818_v61 = vadd.f32 %v6817_v47, %v6789_v10  ;;  %v6765_v47 = vadd.f32 %v14635_v41, %v6736_v3 }
 0x63a   : > { %v6791_v21 = vpop.f32.mrf.mxu2  ;;  %v14849_v54 = vpop.f32.mrf.mxu1 }
 0x63b   : > { %v12707_v51 = vpop.eup %12706  ;;  %v7935_v45 = vadd.f32 %v12705_v8, %v7934_v48  ;;  %v11747_v55 = vmul.f32 -1.442695, %v6818_v61  ;;  %v6792_v34 = vadd.f32 %v6791_v21, %v6763_v23  ;;  %v14873_v48 = vperm.slane %v14644_v19, 3  ;;  %v11443_v19 = vld [vmem:[#allocation17 + $0x5d8] sm:$0xf] }
 0x63c   : > { %v12709_v35 = vpop.eup %12708  ;;  %v14853_v32 = vadd.f32 1.0, %v12707_v51  ;;  %v14860_v42 = vpop.f32.mrf.mxu0  ;;  %v11699_v23 = vld [vmem:[#allocation17 + $0x7d8] sm:$0xf] }
 0x63d   : > { %v7939_v37 = vsel %vm7938_vm10, %v12705_v8, %v7935_v45  ;;  %v8052_v38 = vmul.f32 %v12709_v35, %v14836_v63  ;;  %12710 = vpow2.f32 %v11747_v55  ;;  %7051 = vmatmul.bf16.gmra.mxu3 %v14241_v7  ;;  %7109 = vmatmul.bf16.gmra.mxu1 %v14191_v56  ;;  %vm8057_vm12 = vweird.f32 %v12709_v35 }
 0x63e   : > { %v7944_v33 = vsel %vm7941_vm11, %v7943_v36, %v7939_v37  ;;  %12712 = vrcp.f32 %v14853_v32  ;;  %v8060_v8 = vand.u32 2147483647, %v14836_v63  ;;  %vm8058_vm14 = vmor %vm8056_vm13, %vm8057_vm12  ;;  %v8180_v41 = vand.u32 2147483647, %v14853_v32 }
 0x63f   : > { %8639 = vst [vmem:[%s14368_s25 + $0x90] sm:$0xff] %v7944_v33  ;;  %v8053_v14 = vsub.f32 1.0, %v8052_v38  ;;  %v6835_v51 = vadd.f32 %v14651_v25, %v14873_v48  ;;  %v8182_v45 = vand.u32 2147483648, %v14853_v32  ;;  %vm8176_vm1 = vweird.f32 %v14853_v32 }
 0x640   : > { %v6820_v52 = vpop.f32.mrf.mxu3  ;;  %vm8061_vm15 = vcmp.eq.f32.partialorder %v8060_v8, 8.507059e+37  ;;  %v10933_v8 = vld [vmem:[#allocation17 + $0x1f8] sm:$0xf0]  ;;  %vm8181_vm3 = vcmp.eq.f32.partialorder %v8180_v41, 8.507059e+37 }
 0x641   : > { %v8054_v39 = vmul.f32 %v12709_v35, %v8053_v14  ;;  %v6821_v18 = vadd.f32 %v6820_v52, %v6792_v34  ;;  %v12480_v14 = vld [vmem:[#allocation17 + $0x7f4] sm:$0xf0]  ;;  %v12284_v34 = vld [vmem:[#allocation17 + $0x1dc] sm:$0xf]  ;;  %v6864_v3 = vadd.f32 %v14667_v1, %v6835_v51 }
 0x642   : > { %v6793_v30 = vpop.f32.mrf.mxu2  ;;  %v14866_v4 = vpop.f32.mrf.mxu1 }
 0x643   : > { %v12711_v9 = vpop.eup %12710  ;;  %v8055_v16 = vadd.f32 %v12709_v35, %v8054_v39  ;;  %v11755_v10 = vmul.f32 -1.442695, %v6821_v18  ;;  %v6794_v21 = vadd.f32 %v6793_v30, %v6765_v47  ;;  %v11700_v39 = vor.u32 %v12480_v14, %v11699_v23  ;;  %v12408_v47 = vld [vmem:[#allocation17 + $0x5b4] sm:$0xf0] }
 0x644   : > { %v14869_v46 = vpop.eup %12712  ;;  %v14875_v61 = vadd.f32 1.0, %v12711_v9  ;;  %v14889_v37 = vpop.f32.mrf.mxu0  ;;  %v11315_v23 = vld [vmem:[#allocation17 + $0x4d8] sm:$0xf] }
 0x645   : > { %v8059_v5 = vsel %vm8058_vm14, %v12709_v35, %v8055_v16  ;;  %v8172_v11 = vmul.f32 %v14869_v46, %v14853_v32  ;;  %12714 = vpow2.f32 %v11755_v10  ;;  %v12416_v35 = vld [vmem:[#allocation17 + $0x5f4] sm:$0xf0]  ;;  %vm8177_vm0 = vweird.f32 %v14869_v46  ;;  %7260 = vmatpush.bf16.msrb.mxu3 %v11700_v39 }
 0x646   : > { %v8064_v28 = vsel %vm8061_vm15, %v8063_v58, %v8059_v5  ;;  %12716 = vrcp.f32 %v14875_v61  ;;  %v11444_v33 = vor.u32 %v12416_v35, %v11443_v19  ;;  %v8300_v6 = vand.u32 2147483647, %v14875_v61  ;;  %v11411_v10 = vld [vmem:[#allocation17 + $0x598] sm:$0xf]  ;;  %vm14902_vm2 = vmor %vm8176_vm1, %vm8177_vm0  ;;  %v10869_v5 = vld [vmem:[#allocation17 + $0x178] sm:$0xf0] }
 0x647   : > { %8647 = vst [vmem:[%s14368_s25 + $0xd0] sm:$0xff] %v8064_v28  ;;  %v8173_v63 = vsub.f32 1.0, %v8172_v11  ;;  %7123 = vmatmul.bf16.vlgmr.msra.gmra.mxu2 %v14200_v2  ;;  %7181 = vmatmul.bf16.vlgmr.msrb.gmra.mxu0 %v14154_v27  ;;  %v8302_v52 = vand.u32 2147483648, %v14875_v61  ;;  %v8183_v11 = vor.u32 1.1754944e-38, %v8182_v45  ;;  %v11412_v28 = vor.u32 %v12408_v47, %v11411_v10  ;;  %v12348_v45 = vld [vmem:[#allocation17 + $0x3dc] sm:$0xf] }
 0x648   : > { %v6822_v55 = vpop.f32.mrf.mxu3  ;;  %7231 = vmatpush.bf16.msrb.mxu2 %v11444_v33  ;;  %v10936_v32 = vor.u32 %v12284_v34, %v10933_v8  ;;  %vm14915_vm4 = vcmp.eq.f32.partialorder %v8300_v6, 8.507059e+37  ;;  %v12472_v39 = vld [vmem:[#allocation17 + $0x7b4] sm:$0xf0]  ;;  %vm8296_vm6 = vweird.f32 %v14875_v61 }
 0x649   : > { %v8174_v36 = vmul.f32 %v14869_v46, %v8173_v63  ;;  %v6823_v38 = vadd.f32 %v6822_v55, %v6794_v21  ;;  %v12276_v63 = vld [vmem:[#allocation17 + $0x19c] sm:$0xf]  ;;  %v8303_v41 = vor.u32 1.1754944e-38, %v8302_v52  ;;  %v11379_v6 = vld [vmem:[#allocation17 + $0x558] sm:$0xf] }
 0x64a   : > { %v6892_v25 = vpop.f32.mrf.mxu2  ;;  %v14896_v16 = vpop.f32.mrf.mxu1  ;;  %v10901_v21 = vld [vmem:[#allocation17 + $0x1b8] sm:$0xf0]  ;;  %7289 = vmatpush.bf16.msra.mxu0 %v10936_v32  ;;  %v12400_v47 = vld [vmem:[#allocation17 + $0x574] sm:$0xf0] }
 0x64b   : > { %v12715_v18 = vpop.eup %12714  ;;  %v8175_v30 = vadd.f32 %v14869_v46, %v8174_v36  ;;  %v11763_v9 = vmul.f32 -1.442695, %v6823_v38  ;;  %v11189_v55 = vld [vmem:[#allocation17 + $0x3f8] sm:$0xf0]  ;;  %v6893_v36 = vadd.f32 %v6892_v25, %v6864_v3  ;;  %v11667_v38 = vld [vmem:[#allocation17 + $0x798] sm:$0xf]  ;;  %v10904_v33 = vor.u32 %v12276_v63, %v10901_v21 }
 0x64c   : > { %v14898_v58 = vpop.eup %12716  ;;  %v14906_v1 = vadd.f32 1.0, %v12715_v18  ;;  %7232 = vmatpush.bf16.msrb.mxu2 %v11412_v28  ;;  %v11192_v8 = vor.u32 %v12348_v45, %v11189_v55  ;;  %v11668_v10 = vor.u32 %v12472_v39, %v11667_v38  ;;  %v12268_v52 = vld [vmem:[#allocation17 + $0x15c] sm:$0xf]  ;;  %v11380_v3 = vor.u32 %v12400_v47, %v11379_v6  ;;  %v11347_v45 = vld [vmem:[#allocation17 + $0x518] sm:$0xf]  ;;  %v15490_v39 = vld [vmem:[#allocation30_spill] sm:$0xff] }
 0x64d   : > { %v8179_v19 = vsel %vm14902_vm2, %v14869_v46, %v8175_v30  ;;  %v8292_v51 = vmul.f32 %v14898_v58, %v14875_v61  ;;  %12718 = vpow2.f32 %v11763_v9  ;;  %7152 = vmatmul.bf16.vlgmr.msra.gmra.mxu3 %v14205_v29  ;;  %7210 = vmatmul.bf16.vlgmr.msrb.gmra.mxu1 %v14158_v60  ;;  %vm8297_vm5 = vweird.f32 %v14898_v58  ;;  %v11157_v28 = vld [vmem:[#allocation17 + $0x3b8] sm:$0xf0]  ;;  %v12392_v55 = vld [vmem:[#allocation17 + $0x534] sm:$0xf0] }
 0x64e   : > { %v8184_v35 = vsel %vm8181_vm3, %v8183_v11, %v8179_v19  ;;  %12720 = vrcp.f32 %v14906_v1  ;;  %v8420_v14 = vand.u32 2147483647, %v14906_v1  ;;  %v8422_v30 = vand.u32 2147483648, %v14906_v1  ;;  %7290 = vmatpush.bf16.msra.mxu0 %v10904_v33  ;;  %7318 = vmatpush.bf16.msra.mxu1 %v11192_v8  ;;  %v12340_v11 = vld [vmem:[#allocation17 + $0x39c] sm:$0xf]  ;;  %v14929_v19 = vpop.f32.mrf.mxu0  ;;  %vm14935_vm7 = vmor %vm8296_vm6, %vm8297_vm5 }
 0x64f   : > { %8655 = vst [vmem:[%s14368_s25 + $0x110] sm:$0xff] %v8184_v35  ;;  %v8293_v46 = vsub.f32 1.0, %v8292_v51  ;;  %v6837_v63 = vadd.f32 %v14682_v31, %v14873_v48  ;;  %7261 = vmatpush.bf16.msrb.mxu3 %v11668_v10  ;;  %v11348_v31 = vor.u32 %v12392_v55, %v11347_v45  ;;  %v10872_v38 = vor.u32 %v12268_v52, %v10869_v5  ;;  %v12260_v33 = vld [vmem:[#allocation17 + $0x11c] sm:$0xf]  ;;  %v11635_v10 = vld [vmem:[#allocation17 + $0x758] sm:$0xf] }
 0x650   : > { %v6921_v34 = vpop.f32.mrf.mxu3  ;;  %7233 = vmatpush.bf16.msrb.mxu2 %v11380_v3  ;;  %v11160_v61 = vor.u32 %v12340_v11, %v11157_v28  ;;  %v12464_v47 = vld [vmem:[#allocation17 + $0x774] sm:$0xf0]  ;;  %v12332_v3 = vld [vmem:[#allocation17 + $0x35c] sm:$0xf]  ;;  %vm14951_vm8 = vcmp.eq.f32.partialorder %v8420_v14, 8.507059e+37  ;;  %v8423_v28 = vor.u32 1.1754944e-38, %v8422_v30  ;;  %vm8416_vm10 = vweird.f32 %v14906_v1 }
 0x651   : > { %v8294_v18 = vmul.f32 %v14898_v58, %v8293_v46  ;;  %v6922_v9 = vadd.f32 %v6921_v34, %v6893_v36  ;;  %v10837_v34 = vld [vmem:[#allocation17 + $0x138] sm:$0xf0]  ;;  %v6866_v6 = vadd.f32 %v15490_v39, %v6837_v63  ;;  %v11636_v63 = vor.u32 %v12464_v47, %v11635_v10 }
 0x652   : > { %v6894_v25 = vpop.f32.mrf.mxu2  ;;  %7291 = vmatpush.bf16.msra.mxu0 %v10872_v38  ;;  %7319 = vmatpush.bf16.msra.mxu1 %v11160_v61  ;;  %v10840_v45 = vor.u32 %v12260_v33, %v10837_v34  ;;  %v12456_v38 = vld [vmem:[#allocation17 + $0x734] sm:$0xf0]  ;;  %v12252_v39 = vld [vmem:[#allocation17 + $0xdc] sm:$0xf] }
 0x653   : > { %v12719_v32 = vpop.eup %12718  ;;  %v8295_v21 = vadd.f32 %v14898_v58, %v8294_v18  ;;  %v11708_v51 = vmul.f32 -1.442695, %v6922_v9  ;;  %v14947_v9 = vpop.f32.mrf.mxu1  ;;  %7262 = vmatpush.bf16.msrb.mxu3 %v11636_v63  ;;  %v12324_v10 = vld [vmem:[#allocation17 + $0x31c] sm:$0xf]  ;;  %v11539_v63 = vld [vmem:[#allocation17 + $0x698] sm:$0xf] }
 0x654   : > { %v14931_v35 = vpop.eup %12720  ;;  %v14939_v36 = vadd.f32 1.0, %v12719_v32  ;;  %v6895_v32 = vadd.f32 %v6894_v25, %v6866_v6  ;;  %7234 = vmatpush.bf16.msrb.mxu2 %v11348_v31  ;;  %v11603_v25 = vld [vmem:[#allocation17 + $0x718] sm:$0xf]  ;;  %v11093_v31 = vld [vmem:[#allocation17 + $0x338] sm:$0xf0] }
 0x655   : > { %v8299_v8 = vsel %vm14935_vm7, %v14898_v58, %v8295_v21  ;;  %v8412_v18 = vmul.f32 %v14931_v35, %v14906_v1  ;;  %12722 = vpow2.f32 %v11708_v51  ;;  %v11125_v58 = vld [vmem:[#allocation17 + $0x378] sm:$0xf0]  ;;  %v12384_v51 = vld [vmem:[#allocation17 + $0x4f4] sm:$0xf0]  ;;  %vm8417_vm9 = vweird.f32 %v14931_v35 }
 0x656   : > { %v8304_v52 = vsel %vm14915_vm4, %v8303_v41, %v8299_v8  ;;  %12724 = vrcp.f32 %v14939_v36  ;;  %v8540_v41 = vand.u32 2147483647, %v14939_v36  ;;  %v8542_v14 = vand.u32 2147483648, %v14939_v36  ;;  %7292 = vmatpush.bf16.msra.mxu0 %v10840_v45  ;;  %v15493_v33 = vld [vmem:[#allocation31_spill] sm:$0xff]  ;;  %vm14971_vm11 = vmor %vm8416_vm10, %vm8417_vm9 }
 0x657   : > { %8663 = vst [vmem:[%s14368_s25 + $0x150] sm:$0xff] %v8304_v52  ;;  %v8413_v11 = vsub.f32 1.0, %v8412_v18  ;;  %7128 = vmatmul.bf16.gmra.mxu2 %v14212_v17  ;;  %7186 = vmatmul.bf16.gmra.mxu0 %v14164_v44  ;;  %v11128_v55 = vor.u32 %v12332_v3, %v11125_v58  ;;  %v11316_v61 = vor.u32 %v12384_v51, %v11315_v23  ;;  %v10805_v18 = vld [vmem:[#allocation17 + $0xf8] sm:$0xf0]  ;;  %v11283_v58 = vld [vmem:[#allocation17 + $0x498] sm:$0xf]  ;;  %vm8536_vm14 = vweird.f32 %v14939_v36 }
 0x658   : > { %v6923_v21 = vpop.f32.mrf.mxu3  ;;  %v11604_v8 = vor.u32 %v12456_v38, %v11603_v25  ;;  %v6840_v34 = vadd.f32 %v15493_v33, %v14873_v48  ;;  %v10808_v51 = vor.u32 %v12252_v39, %v10805_v18  ;;  %v11096_v45 = vor.u32 %v12324_v10, %v11093_v31  ;;  %v14983_v38 = vpop.f32.mrf.mxu0  ;;  %v12448_v39 = vld [vmem:[#allocation17 + $0x6f4] sm:$0xf0]  ;;  %v12316_v18 = vld [vmem:[#allocation17 + $0x2dc] sm:$0xf] }
 0x659   : > { %v8414_v46 = vmul.f32 %v14931_v35, %v8413_v11  ;;  %v6924_v30 = vadd.f32 %v6923_v21, %v6895_v32  ;;  %7320 = vmatpush.bf16.msra.mxu1 %v11128_v55  ;;  %v12376_v11 = vld [vmem:[#allocation17 + $0x4b4] sm:$0xf0]  ;;  %7235 = vmatpush.bf16.msrb.mxu2 %v11316_v61  ;;  %v12244_v55 = vld [vmem:[#allocation17 + $0x9c] sm:$0xf]  ;;  %vm14993_vm12 = vcmp.eq.f32.partialorder %v8540_v41, 8.507059e+37 }
 0x65a   : > { %v6897_v6 = vpop.f32.mrf.mxu2  ;;  %v11284_v21 = vor.u32 %v12376_v11, %v11283_v58  ;;  %v6869_v1 = vadd.f32 %v14739_v13, %v6840_v34  ;;  %v11571_v61 = vld [vmem:[#allocation17 + $0x6d8] sm:$0xf]  ;;  %7263 = vmatpush.bf16.msrb.mxu3 %v11604_v8  ;;  %7293 = vmatpush.bf16.msra.mxu0 %v10808_v51 }
 0x65b   : > { %v12723_v47 = vpop.eup %12722  ;;  %v8415_v3 = vadd.f32 %v14931_v35, %v8414_v46  ;;  %v11716_v52 = vmul.f32 -1.442695, %v6924_v30  ;;  %v10773_v46 = vld [vmem:[#allocation17 + $0xb8] sm:$0xf0]  ;;  %v11572_v33 = vor.u32 %v12448_v39, %v11571_v61  ;;  %v11251_v34 = vld [vmem:[#allocation17 + $0x458] sm:$0xf] }
 0x65c   : > { %v14967_v32 = vpop.eup %12724  ;;  %v14975_v23 = vadd.f32 1.0, %v12723_v47  ;;  %v6898_v31 = vadd.f32 %v6897_v6, %v6869_v1  ;;  %v14991_v47 = vpop.f32.mrf.mxu1  ;;  %v10776_v58 = vor.u32 %v12244_v55, %v10773_v46  ;;  %v12440_v51 = vld [vmem:[#allocation17 + $0x6b4] sm:$0xf0]  ;;  %v11029_v61 = vld [vmem:[#allocation17 + $0x2b8] sm:$0xf0]  ;;  %v6842_v55 = vadd.f32 %v14755_v59, %v14873_v48 }
 0x65d   : > { %v8419_v30 = vsel %vm14971_vm11, %v14931_v35, %v8415_v3  ;;  %v8532_v25 = vmul.f32 %v14967_v32, %v14939_v36  ;;  %12726 = vpow2.f32 %v11716_v52  ;;  %7157 = vmatmul.bf16.gmra.mxu3 %v14217_v62  ;;  %7215 = vmatmul.bf16.gmra.mxu1 %v14168_v53  ;;  %v11061_v35 = vld [vmem:[#allocation17 + $0x2f8] sm:$0xf0]  ;;  %v8543_v52 = vor.u32 1.1754944e-38, %v8542_v14 }
 0x65e   : > { %v8424_v13 = vsel %vm14951_vm8, %v8423_v28, %v8419_v30  ;;  %12728 = vrcp.f32 %v14975_v23  ;;  %7321 = vmatpush.bf16.msra.mxu1 %v11096_v45  ;;  %7236 = vmatpush.bf16.msrb.mxu2 %v11284_v21  ;;  %v12368_v28 = vld [vmem:[#allocation17 + $0x474] sm:$0xf0]  ;;  %v11064_v8 = vor.u32 %v12316_v18, %v11061_v35  ;;  %vm8537_vm13 = vweird.f32 %v14967_v32  ;;  %v12236_v45 = vld [vmem:[#allocation17 + $0x5c] sm:$0xf] }
 0x65f   : > { %8671 = vst [vmem:[%s14368_s25 + $0x190] sm:$0xff] %v8424_v13  ;;  %v8533_v10 = vsub.f32 1.0, %v8532_v25  ;;  %v11252_v1 = vor.u32 %v12368_v28, %v11251_v34  ;;  %7264 = vmatpush.bf16.msrb.mxu3 %v11572_v33  ;;  %v11540_v41 = vor.u32 %v12440_v51, %v11539_v63  ;;  %7294 = vmatpush.bf16.msra.mxu0 %v10776_v58  ;;  %v10741_v25 = vld [vmem:[#allocation17 + $0x78] sm:$0xf0]  ;;  %v11219_v18 = vld [vmem:[#allocation17 + $0x418] sm:$0xf]  ;;  %vm15007_vm15 = vmor %vm8536_vm14, %vm8537_vm13  ;;  %vm7711_vm1 = vweird.f32 %v14975_v23 }
 0x660   : > { %v6926_v5 = vpop.f32.mrf.mxu3  ;;  %v12308_v14 = vld [vmem:[#allocation17 + $0x29c] sm:$0xf]  ;;  %v12360_v13 = vld [vmem:[#allocation17 + $0x434] sm:$0xf0]  ;;  %v10744_v59 = vor.u32 %v12236_v45, %v10741_v25  ;;  %v6871_v28 = vadd.f32 %v14775_v43, %v6842_v55  ;;  %v15023_v45 = vpop.f32.mrf.mxu0 }
 0x661   : > { %v8534_v11 = vmul.f32 %v14967_v32, %v8533_v10  ;;  %v6927_v6 = vadd.f32 %v6926_v5, %v6898_v31  ;;  %v11032_v33 = vor.u32 %v12308_v14, %v11029_v61  ;;  %v11220_v34 = vor.u32 %v12360_v13, %v11219_v18  ;;  %v12228_v36 = vld [vmem:[#allocation17 + $0x1c] sm:$0xf] }
 0x662   : > { %v6899_v30 = vpop.f32.mrf.mxu2  ;;  %7322 = vmatpush.bf16.msra.mxu1 %v11064_v8  ;;  %7237 = vmatpush.bf16.msrb.mxu2 %v11252_v1  ;;  %v10709_v5 = vld [vmem:[#allocation17 + $0x38] sm:$0xf0]  ;;  %v7717_v14 = vand.u32 2147483648, %v14975_v23  ;;  %v6845_v18 = vadd.f32 %v14791_v50, %v14873_v48 }
 0x663   : > { %v12727_v21 = vpop.eup %12726  ;;  %v8535_v46 = vadd.f32 %v14967_v32, %v8534_v11  ;;  %v11724_v39 = vmul.f32 -1.442695, %v6927_v6  ;;  %v11507_v11 = vld [vmem:[#allocation17 + $0x658] sm:$0xf]  ;;  %v12300_v63 = vld [vmem:[#allocation17 + $0x25c] sm:$0xf]  ;;  %7265 = vmatpush.bf16.msrb.mxu3 %v11540_v41  ;;  %7295 = vmatpush.bf16.msra.mxu0 %v10744_v59  ;;  %v10712_v3 = vor.u32 %v12228_v36, %v10709_v5 }
 0x664   : > { %v15003_v35 = vpop.eup %12728  ;;  %v15011_v31 = vadd.f32 1.0, %v12727_v21  ;;  %v12432_v6 = vld [vmem:[#allocation17 + $0x674] sm:$0xf0]  ;;  %v10997_v1 = vld [vmem:[#allocation17 + $0x278] sm:$0xf0]  ;;  %v15031_v55 = vpop.f32.mrf.mxu1  ;;  %v7718_v50 = vor.u32 1.1754944e-38, %v7717_v14 }
 0x665   : > { %v8539_v58 = vsel %vm15007_vm15, %v14967_v32, %v8535_v46  ;;  %v7707_v8 = vmul.f32 %v15003_v35, %v14975_v23  ;;  %12730 = vpow2.f32 %v11724_v39  ;;  %v6900_v32 = vadd.f32 %v6899_v30, %v6871_v28  ;;  %v11475_v46 = vld [vmem:[#allocation17 + $0x618] sm:$0xf]  ;;  %v12292_v59 = vld [vmem:[#allocation17 + $0x21c] sm:$0xf] }
 0x666   : > { %v8544_v51 = vsel %vm14993_vm12, %v8543_v52, %v8539_v58  ;;  %12732 = vrcp.f32 %v15011_v31  ;;  %v11508_v25 = vor.u32 %v12432_v6, %v11507_v11  ;;  %7323 = vmatpush.bf16.msra.mxu1 %v11032_v33  ;;  %7238 = vmatpush.bf16.msrb.mxu2 %v11220_v34  ;;  %v11000_v52 = vor.u32 %v12300_v63, %v10997_v1  ;;  %v12424_v39 = vld [vmem:[#allocation17 + $0x634] sm:$0xf0]  ;;  %v10965_v33 = vld [vmem:[#allocation17 + $0x238] sm:$0xf0] }
 0x667   : > { %8679 = vst [vmem:[%s14368_s25 + $0x1d0] sm:$0xff] %v8544_v51  ;;  %v7708_v43 = vsub.f32 1.0, %v7707_v8  ;;  %7133 = vmatmul.bf16.gmra.mxu2 %v14224_v20  ;;  %7191 = vmatmul.bf16.gmra.mxu0 %v14174_v57  ;;  %vm7712_vm0 = vweird.f32 %v15003_v35  ;;  %v7715_v21 = vand.u32 2147483647, %v14975_v23  ;;  %v11476_v10 = vor.u32 %v12424_v39, %v11475_v46 }
 0x668   : > { %v6928_v61 = vpop.f32.mrf.mxu3  ;;  %7266 = vmatpush.bf16.msrb.mxu3 %v11508_v25  ;;  %7296 = vmatpush.bf16.msra.mxu0 %v10712_v3  ;;  %v6874_v58 = vadd.f32 %v14811_v26, %v6845_v18  ;;  %vm7713_vm2 = vmor %vm7711_vm1, %vm7712_vm0  ;;  %v10968_v11 = vor.u32 %v12292_v59, %v10965_v33  ;;  %v7837_v1 = vand.u32 2147483648, %v15011_v31  ;;  %v15050_v25 = vpop.f32.mrf.mxu0  ;;  %vm7831_vm5 = vweird.f32 %v15011_v31 }
 0x669   : > { %v7709_v41 = vmul.f32 %v15003_v35, %v7708_v43  ;;  %v6929_v30 = vadd.f32 %v6928_v61, %v6900_v32  ;;  %vm7716_vm3 = vcmp.eq.f32.partialorder %v7715_v21, 8.507059e+37  ;;  %v7835_v32 = vand.u32 2147483647, %v15011_v31 }
 0x66a   : > { %v6902_v13 = vpop.f32.mrf.mxu2  ;;  %7324 = vmatpush.bf16.msra.mxu1 %v11000_v52  ;;  %v6847_v61 = vadd.f32 %v14820_v22, %v14873_v48  ;;  %v7838_v18 = vor.u32 1.1754944e-38, %v7837_v1 }
 0x66b   : > { %v12731_v34 = vpop.eup %12730  ;;  %v7710_v36 = vadd.f32 %v15003_v35, %v7709_v41  ;;  %v11732_v5 = vmul.f32 -1.442695, %v6929_v30  ;;  %v6903_v51 = vadd.f32 %v6902_v13, %v6874_v58  ;;  %vm7836_vm7 = vcmp.eq.f32.partialorder %v7835_v32, 8.507059e+37 }
 0x66c   : > { %v12733_v28 = vpop.eup %12732  ;;  %v15040_v8 = vadd.f32 1.0, %v12731_v34  ;;  %7267 = vmatpush.bf16.msrb.mxu3 %v11476_v10  ;;  %v15055_v21 = vpop.f32.mrf.mxu1  ;;  %v6876_v39 = vadd.f32 %v14832_v24, %v6847_v61  ;;  %v6850_v58 = vadd.f32 %v14839_v15, %v14873_v48 }
 0x66d   : > { %v7714_v6 = vsel %vm7713_vm2, %v15003_v35, %v7710_v36  ;;  %v7827_v63 = vmul.f32 %v12733_v28, %v15011_v31  ;;  %12734 = vpow2.f32 %v11732_v5  ;;  %7162 = vmatmul.bf16.gmra.mxu3 %v14229_v12  ;;  %7220 = vmatmul.bf16.gmra.mxu1 %v14178_v40  ;;  %vm7832_vm4 = vweird.f32 %v12733_v28 }
 0x66e   : > { %v7719_v23 = vsel %vm7716_vm3, %v7718_v50, %v7714_v6  ;;  %12736 = vrcp.f32 %v15040_v8  ;;  %7325 = vmatpush.bf16.msra.mxu1 %v10968_v11  ;;  %vm7833_vm6 = vmor %vm7831_vm5, %vm7832_vm4  ;;  %v7957_v31 = vand.u32 2147483648, %v15040_v8  ;;  %v7955_v5 = vand.u32 2147483647, %v15040_v8 }
 0x66f   : > { %8624 = vst [vmem:[%s14368_s25 + $0x18] sm:$0xff] %v7719_v23  ;;  %v7828_v26 = vsub.f32 1.0, %v7827_v63  ;;  %vm7951_vm9 = vweird.f32 %v15040_v8 }
 0x670   : > { %v6931_v43 = vpop.f32.mrf.mxu3  ;;  %v15067_v63 = vpop.f32.mrf.mxu0  ;;  %v7958_v1 = vor.u32 1.1754944e-38, %v7957_v31  ;;  %vm7956_vm11 = vcmp.eq.f32.partialorder %v7955_v5, 8.507059e+37 }
 0x671   : > { %v7829_v35 = vmul.f32 %v12733_v28, %v7828_v26  ;;  %v6932_v14 = vadd.f32 %v6931_v43, %v6903_v51  ;;  %v6879_v51 = vadd.f32 %v14849_v54, %v6850_v58 }
 0x672   : > { %v6904_v3 = vpop.f32.mrf.mxu2 }
 0x673   : > { %v12735_v52 = vpop.eup %12734  ;;  %v7830_v41 = vadd.f32 %v12733_v28, %v7829_v35  ;;  %v11740_v30 = vmul.f32 -1.442695, %v6932_v14  ;;  %v6905_v34 = vadd.f32 %v6904_v3, %v6876_v39 }
 0x674   : > { %v12737_v46 = vpop.eup %12736  ;;  %v7624_v13 = vadd.f32 1.0, %v12735_v52  ;;  %v15072_v15 = vpop.f32.mrf.mxu1 }
 0x675   : > { %v7834_v10 = vsel %vm7833_vm6, %v12733_v28, %v7830_v41  ;;  %v7947_v59 = vmul.f32 %v12737_v46, %v15040_v8  ;;  %12738 = vpow2.f32 %v11740_v30  ;;  %vm7952_vm8 = vweird.f32 %v12737_v46 }
 0x676   : > { %v7839_v22 = vsel %vm7836_vm7, %v7838_v18, %v7834_v10  ;;  %12740 = vrcp.f32 %v7624_v13  ;;  %vm7953_vm10 = vmor %vm7951_vm9, %vm7952_vm8  ;;  %v8077_v61 = vand.u32 2147483648, %v7624_v13  ;;  %v8075_v41 = vand.u32 2147483647, %v7624_v13 }
 0x677   : > { %8632 = vst [vmem:[%s14368_s25 + $0x58] sm:$0xff] %v7839_v22  ;;  %v7948_v33 = vsub.f32 1.0, %v7947_v59  ;;  %7138 = vmatmul.bf16.gmra.mxu2 %v14236_v0  ;;  %7196 = vmatmul.bf16.gmra.mxu0 %v14184_v49  ;;  %vm8071_vm13 = vweird.f32 %v7624_v13 }
 0x678   : > { %v6933_v24 = vpop.f32.mrf.mxu3  ;;  %vm8076_vm15 = vcmp.eq.f32.partialorder %v8075_v41, 8.507059e+37  ;;  %v15084_v5 = vpop.f32.mrf.mxu0  ;;  %v12404_v41 = vld [vmem:[#allocation17 + $0x59c] sm:$0xf] }
 0x679   : > { %v7949_v36 = vmul.f32 %v12737_v46, %v7948_v33  ;;  %v6934_v28 = vadd.f32 %v6933_v24, %v6905_v34  ;;  %v8078_v34 = vor.u32 1.1754944e-38, %v8077_v61 }
 0x67a   : > { %v6907_v50 = vpop.f32.mrf.mxu2 }
 0x67b   : > { %v12739_v11 = vpop.eup %12738  ;;  %v7950_v6 = vadd.f32 %v12737_v46, %v7949_v36  ;;  %v11748_v23 = vmul.f32 -1.442695, %v6934_v28  ;;  %v6908_v54 = vadd.f32 %v6907_v50, %v6879_v51  ;;  %v12476_v51 = vld [vmem:[#allocation17 + $0x7dc] sm:$0xf] }
 0x67c   : > { %v12741_v26 = vpop.eup %12740  ;;  %v15070_v43 = vadd.f32 1.0, %v12739_v11  ;;  %v15097_v58 = vpop.f32.mrf.mxu1  ;;  %v12412_v11 = vld [vmem:[#allocation17 + $0x5dc] sm:$0xf] }
 0x67d   : > { %v7954_v35 = vsel %vm7953_vm10, %v12737_v46, %v7950_v6  ;;  %v8067_v32 = vmul.f32 %v12741_v26, %v7624_v13  ;;  %12742 = vpow2.f32 %v11748_v23  ;;  %7167 = vmatmul.bf16.gmra.mxu3 %v14241_v7  ;;  %7225 = vmatmul.bf16.gmra.mxu1 %v14191_v56  ;;  %vm8072_vm12 = vweird.f32 %v12741_v26 }
 0x67e   : > { %v7959_v8 = vsel %vm7956_vm11, %v7958_v1, %v7954_v35  ;;  %12744 = vrcp.f32 %v15070_v43  ;;  %v6852_v46 = vadd.f32 %v14860_v42, %v14873_v48  ;;  %vm8073_vm14 = vmor %vm8071_vm13, %vm8072_vm12  ;;  %v15089_v42 = vld [vmem:[%s15449_s11] sm:$0xff]  ;;  %v8195_v28 = vand.u32 2147483647, %v15070_v43 }
 0x67f   : > { %8640 = vst [vmem:[%s14368_s25 + $0x98] sm:$0xff] %v7959_v8  ;;  %v8068_v14 = vsub.f32 1.0, %v8067_v32  ;;  %v15092_v48 = vperm.slane %v15089_v42, 4  ;;  %v8197_v6 = vand.u32 2147483648, %v15070_v43  ;;  %v11701_v8 = vld [vmem:[#allocation17 + $0x7f8] sm:$0xf0]  ;;  %vm8191_vm1 = vweird.f32 %v15070_v43 }
 0x680   : > { %v6936_v3 = vpop.f32.mrf.mxu3  ;;  %v6881_v33 = vadd.f32 %v14866_v4, %v6852_v46  ;;  %v11704_v61 = vor.u32 %v12476_v51, %v11701_v8  ;;  %vm8196_vm3 = vcmp.eq.f32.partialorder %v8195_v28, 8.507059e+37  ;;  %v11669_v28 = vld [vmem:[#allocation17 + $0x7b8] sm:$0xf0] }
 0x681   : > { %v8069_v52 = vmul.f32 %v12741_v26, %v8068_v14  ;;  %v6937_v30 = vadd.f32 %v6936_v3, %v6908_v54  ;;  %v6951_v14 = vadd.f32 %v14889_v37, %v15092_v48  ;;  %v6953_v51 = vadd.f32 %v14929_v19, %v15092_v48 }
 0x682   : > { %v6909_v39 = vpop.f32.mrf.mxu2  ;;  %7376 = vmatpush.bf16.msra.mxu3 %v11704_v61  ;;  %v11349_v61 = vld [vmem:[#allocation17 + $0x538] sm:$0xf0] }
 0x683   : > { %v12743_v18 = vpop.eup %12742  ;;  %v8070_v10 = vadd.f32 %v12741_v26, %v8069_v52  ;;  %v11756_v59 = vmul.f32 -1.442695, %v6937_v30  ;;  %v6910_v50 = vadd.f32 %v6909_v39, %v6881_v33  ;;  %v11413_v30 = vld [vmem:[#allocation17 + $0x5b8] sm:$0xf0]  ;;  %v6980_v39 = vadd.f32 %v14896_v16, %v6951_v14 }
 0x684   : > { %v12745_v22 = vpop.eup %12744  ;;  %v15081_v31 = vadd.f32 1.0, %v12743_v18  ;;  %v8198_v18 = vor.u32 1.1754944e-38, %v8197_v6  ;;  %v11416_v37 = vor.u32 %v12404_v41, %v11413_v30 }
 0x685   : > { %v8074_v24 = vsel %vm8073_vm14, %v12741_v26, %v8070_v10  ;;  %v8187_v36 = vmul.f32 %v12745_v22, %v15070_v43  ;;  %12746 = vpow2.f32 %v11756_v59  ;;  %v11445_v26 = vld [vmem:[#allocation17 + $0x5f8] sm:$0xf0]  ;;  %vm8192_vm0 = vweird.f32 %v12745_v22 }
 0x686   : > { %v8079_v4 = vsel %vm8076_vm15, %v8078_v34, %v8074_v24  ;;  %12748 = vrcp.f32 %v15081_v31  ;;  %v11448_v32 = vor.u32 %v12412_v11, %v11445_v26  ;;  %vm8193_vm2 = vmor %vm8191_vm1, %vm8192_vm0  ;;  %v8315_v34 = vand.u32 2147483647, %v15081_v31  ;;  %v15115_v24 = vpop.f32.mrf.mxu0  ;;  %v11381_v26 = vld [vmem:[#allocation17 + $0x578] sm:$0xf0] }
 0x687   : > { %8648 = vst [vmem:[%s14368_s25 + $0xd8] sm:$0xff] %v8079_v4  ;;  %v8188_v13 = vsub.f32 1.0, %v8187_v36  ;;  %7239 = vmatmul.bf16.vlgmr.msrb.gmra.mxu2 %v14200_v2  ;;  %7297 = vmatmul.bf16.vlgmr.msra.gmra.mxu0 %v14154_v27  ;;  %v8317_v4 = vand.u32 2147483648, %v15081_v31  ;;  %vm8311_vm5 = vweird.f32 %v15081_v31 }
 0x688   : > { %v6938_v23 = vpop.f32.mrf.mxu3  ;;  %7347 = vmatpush.bf16.msra.mxu2 %v11448_v32  ;;  %vm8316_vm7 = vcmp.eq.f32.partialorder %v8315_v34, 8.507059e+37 }
 0x689   : > { %v8189_v1 = vmul.f32 %v12745_v22, %v8188_v13  ;;  %v6939_v35 = vadd.f32 %v6938_v23, %v6910_v50  ;;  %v12396_v50 = vld [vmem:[#allocation17 + $0x55c] sm:$0xf] }
 0x68a   : > { %v7008_v54 = vpop.f32.mrf.mxu2 }
 0x68b   : > { %v12747_v3 = vpop.eup %12746  ;;  %v8190_v52 = vadd.f32 %v12745_v22, %v8189_v1  ;;  %v11764_v27 = vmul.f32 -1.442695, %v6939_v35  ;;  %v7009_v36 = vadd.f32 %v7008_v54, %v6980_v39  ;;  %v11384_v35 = vor.u32 %v12396_v50, %v11381_v26  ;;  %v12388_v54 = vld [vmem:[#allocation17 + $0x51c] sm:$0xf] }
 0x68c   : > { %v12749_v46 = vpop.eup %12748  ;;  %v15107_v10 = vadd.f32 1.0, %v12747_v3  ;;  %7348 = vmatpush.bf16.msra.mxu2 %v11416_v37  ;;  %v11352_v19 = vor.u32 %v12388_v54, %v11349_v61  ;;  %v11605_v50 = vld [vmem:[#allocation17 + $0x738] sm:$0xf0] }
 0x68d   : > { %v8194_v59 = vsel %vm8193_vm2, %v12745_v22, %v8190_v52  ;;  %v8307_v33 = vmul.f32 %v12749_v46, %v15081_v31  ;;  %12750 = vpow2.f32 %v11764_v27  ;;  %7268 = vmatmul.bf16.vlgmr.msrb.gmra.mxu3 %v14205_v29  ;;  %7326 = vmatmul.bf16.vlgmr.msra.gmra.mxu1 %v14158_v60  ;;  %v12468_v22 = vld [vmem:[#allocation17 + $0x79c] sm:$0xf]  ;;  %vm8312_vm4 = vweird.f32 %v12749_v46  ;;  %v15118_v60 = vpop.f32.mrf.mxu1 }
 0x68e   : > { %v8199_v43 = vsel %vm8196_vm3, %v8198_v18, %v8194_v59  ;;  %12752 = vrcp.f32 %v15107_v10  ;;  %v11672_v23 = vor.u32 %v12468_v22, %v11669_v28  ;;  %v6982_v52 = vadd.f32 %v14947_v9, %v6953_v51  ;;  %vm8313_vm6 = vmor %vm8311_vm5, %vm8312_vm4  ;;  %v12460_v31 = vld [vmem:[#allocation17 + $0x75c] sm:$0xf] }
 0x68f   : > { %8656 = vst [vmem:[%s14368_s25 + $0x118] sm:$0xff] %v8199_v43  ;;  %v8308_v16 = vsub.f32 1.0, %v8307_v33  ;;  %v8318_v27 = vor.u32 1.1754944e-38, %v8317_v4  ;;  %v11637_v18 = vld [vmem:[#allocation17 + $0x778] sm:$0xf0]  ;;  %v15134_v4 = vpop.f32.mrf.mxu0  ;;  %vm8431_vm9 = vweird.f32 %v15107_v10 }
 0x690   : > { %v7037_v13 = vpop.f32.mrf.mxu3  ;;  %7377 = vmatpush.bf16.msra.mxu3 %v11672_v23  ;;  %7349 = vmatpush.bf16.msra.mxu2 %v11384_v35  ;;  %v11640_v33 = vor.u32 %v12460_v31, %v11637_v18  ;;  %v12380_v43 = vld [vmem:[#allocation17 + $0x4dc] sm:$0xf] }
 0x691   : > { %v8309_v11 = vmul.f32 %v12749_v46, %v8308_v16  ;;  %v7038_v6 = vadd.f32 %v7037_v13, %v7009_v36  ;;  %v8437_v16 = vand.u32 2147483648, %v15107_v10  ;;  %v11317_v36 = vld [vmem:[#allocation17 + $0x4f8] sm:$0xf0] }
 0x692   : > { %v7010_v1 = vpop.f32.mrf.mxu2  ;;  %v12452_v28 = vld [vmem:[#allocation17 + $0x71c] sm:$0xf] }
 0x693   : > { %v12751_v32 = vpop.eup %12750  ;;  %v8310_v8 = vadd.f32 %v12749_v46, %v8309_v11  ;;  %v11709_v14 = vmul.f32 -1.442695, %v7038_v6  ;;  %v7011_v9 = vadd.f32 %v7010_v1, %v6982_v52  ;;  %v11320_v11 = vor.u32 %v12380_v43, %v11317_v36 }
 0x694   : > { %v12753_v3 = vpop.eup %12752  ;;  %v15125_v41 = vadd.f32 1.0, %v12751_v32  ;;  %7350 = vmatpush.bf16.msra.mxu2 %v11352_v19  ;;  %7378 = vmatpush.bf16.msra.mxu3 %v11640_v33  ;;  %v11608_v23 = vor.u32 %v12452_v28, %v11605_v50  ;;  %v12372_v32 = vld [vmem:[#allocation17 + $0x49c] sm:$0xf]  ;;  %v8438_v61 = vor.u32 1.1754944e-38, %v8437_v16  ;;  %v6958_v36 = vadd.f32 %v15023_v45, %v15092_v48 }
 0x695   : > { %v8314_v30 = vsel %vm8313_vm6, %v12749_v46, %v8310_v8  ;;  %v8427_v39 = vmul.f32 %v12753_v3, %v15107_v10  ;;  %12754 = vpow2.f32 %v11709_v14  ;;  %v8435_v46 = vand.u32 2147483647, %v15107_v10  ;;  %v15139_v1 = vpop.f32.mrf.mxu1  ;;  %v11285_v8 = vld [vmem:[#allocation17 + $0x4b8] sm:$0xf0] }
 0x696   : > { %v8319_v37 = vsel %vm8316_vm7, %v8318_v27, %v8314_v30  ;;  %12756 = vrcp.f32 %v15125_v41  ;;  %vm8432_vm8 = vweird.f32 %v12753_v3  ;;  %v12444_v19 = vld [vmem:[#allocation17 + $0x6dc] sm:$0xf]  ;;  %vm8551_vm13 = vweird.f32 %v15125_v41 }
 0x697   : > { %8664 = vst [vmem:[%s14368_s25 + $0x158] sm:$0xff] %v8319_v37  ;;  %v8428_v59 = vsub.f32 1.0, %v8427_v39  ;;  %7244 = vmatmul.bf16.gmra.mxu2 %v14212_v17  ;;  %7302 = vmatmul.bf16.gmra.mxu0 %v14164_v44  ;;  %v6956_v44 = vadd.f32 %v14983_v38, %v15092_v48  ;;  %vm8433_vm10 = vmor %vm8431_vm9, %vm8432_vm8  ;;  %v11288_v38 = vor.u32 %v12372_v32, %v11285_v8  ;;  %vm8436_vm11 = vcmp.eq.f32.partialorder %v8435_v46, 8.507059e+37  ;;  %v11573_v30 = vld [vmem:[#allocation17 + $0x6f8] sm:$0xf0] }
 0x698   : > { %v7039_v34 = vpop.f32.mrf.mxu3  ;;  %7351 = vmatpush.bf16.msra.mxu2 %v11320_v11  ;;  %7379 = vmatpush.bf16.msra.mxu3 %v11608_v23  ;;  %v11576_v18 = vor.u32 %v12444_v19, %v11573_v30  ;;  %v12364_v37 = vld [vmem:[#allocation17 + $0x45c] sm:$0xf]  ;;  %v15155_v11 = vpop.f32.mrf.mxu0 }
 0x699   : > { %v8429_v22 = vmul.f32 %v12753_v3, %v8428_v59  ;;  %v7040_v13 = vadd.f32 %v7039_v34, %v7011_v9  ;;  %v6985_v54 = vadd.f32 %v14991_v47, %v6956_v44  ;;  %v8557_v59 = vand.u32 2147483648, %v15125_v41  ;;  %v11253_v33 = vld [vmem:[#allocation17 + $0x478] sm:$0xf0] }
 0x69a   : > { %v7013_v6 = vpop.f32.mrf.mxu2  ;;  %v12436_v46 = vld [vmem:[#allocation17 + $0x69c] sm:$0xf]  ;;  %v11256_v34 = vor.u32 %v12364_v37, %v11253_v33 }
 0x69b   : > { %v12755_v26 = vpop.eup %12754  ;;  %v8430_v51 = vadd.f32 %v12753_v3, %v8429_v22  ;;  %v11717_v35 = vmul.f32 -1.442695, %v7040_v13  ;;  %v7014_v31 = vadd.f32 %v7013_v6, %v6985_v54  ;;  %v11541_v16 = vld [vmem:[#allocation17 + $0x6b8] sm:$0xf0] }
 0x69c   : > { %v12757_v14 = vpop.eup %12756  ;;  %v15143_v52 = vadd.f32 1.0, %v12755_v26  ;;  %7352 = vmatpush.bf16.msra.mxu2 %v11288_v38  ;;  %7380 = vmatpush.bf16.msra.mxu3 %v11576_v18  ;;  %v11544_v13 = vor.u32 %v12436_v46, %v11541_v16  ;;  %v12356_v6 = vld [vmem:[#allocation17 + $0x41c] sm:$0xf] }
 0x69d   : > { %v8434_v27 = vsel %vm8433_vm10, %v12753_v3, %v8430_v51  ;;  %v8547_v10 = vmul.f32 %v12757_v14, %v15125_v41  ;;  %12758 = vpow2.f32 %v11717_v35  ;;  %7273 = vmatmul.bf16.gmra.mxu3 %v14217_v62  ;;  %7331 = vmatmul.bf16.gmra.mxu1 %v14168_v53  ;;  %v8555_v3 = vand.u32 2147483647, %v15125_v41  ;;  %v11221_v23 = vld [vmem:[#allocation17 + $0x438] sm:$0xf0]  ;;  %v15162_v54 = vpop.f32.mrf.mxu1 }
 0x69e   : > { %v8439_v47 = vsel %vm8436_vm11, %v8438_v61, %v8434_v27  ;;  %12760 = vrcp.f32 %v15143_v52  ;;  %vm8552_vm12 = vweird.f32 %v12757_v14  ;;  %v6987_v51 = vadd.f32 %v15031_v55, %v6958_v36  ;;  %v12428_v61 = vld [vmem:[#allocation17 + $0x65c] sm:$0xf] }
 0x69f   : > { %8672 = vst [vmem:[%s14368_s25 + $0x198] sm:$0xff] %v8439_v47  ;;  %v8548_v39 = vsub.f32 1.0, %v8547_v10  ;;  %vm8553_vm14 = vmor %vm8551_vm13, %vm8552_vm12  ;;  %v8558_v35 = vor.u32 1.1754944e-38, %v8557_v59  ;;  %v11224_v32 = vor.u32 %v12356_v6, %v11221_v23  ;;  %vm8556_vm15 = vcmp.eq.f32.partialorder %v8555_v3, 8.507059e+37  ;;  %v11509_v38 = vld [vmem:[#allocation17 + $0x678] sm:$0xf0] }
 0x6a0   : > { %v7042_v9 = vpop.f32.mrf.mxu3  ;;  %7353 = vmatpush.bf16.msra.mxu2 %v11256_v34  ;;  %7381 = vmatpush.bf16.msra.mxu3 %v11544_v13  ;;  %v7732_v19 = vand.u32 2147483648, %v15143_v52  ;;  %v12420_v18 = vld [vmem:[#allocation17 + $0x61c] sm:$0xf]  ;;  %v6961_v3 = vadd.f32 %v15050_v25, %v15092_v48  ;;  %vm7726_vm1 = vweird.f32 %v15143_v52  ;;  %v15177_v25 = vpop.f32.mrf.mxu0 }
 0x6a1   : > { %v8549_v43 = vmul.f32 %v12757_v14, %v8548_v39  ;;  %v7043_v53 = vadd.f32 %v7042_v9, %v7014_v31  ;;  %v7730_v39 = vand.u32 2147483647, %v15143_v52  ;;  %v11477_v37 = vld [vmem:[#allocation17 + $0x638] sm:$0xf0] }
 0x6a2   : > { %v7015_v22 = vpop.f32.mrf.mxu2  ;;  %v11480_v9 = vor.u32 %v12420_v18, %v11477_v37  ;;  %v6990_v46 = vadd.f32 %v15055_v21, %v6961_v3  ;;  %v7733_v16 = vor.u32 1.1754944e-38, %v7732_v19  ;;  %v6966_v37 = vadd.f32 %v15084_v5, %v15092_v48 }
 0x6a3   : > { %v12759_v28 = vpop.eup %12758  ;;  %v8550_v50 = vadd.f32 %v12757_v14, %v8549_v43  ;;  %v11725_v44 = vmul.f32 -1.442695, %v7043_v53  ;;  %v7016_v10 = vadd.f32 %v7015_v22, %v6987_v51  ;;  %vm7731_vm3 = vcmp.eq.f32.partialorder %v7730_v39, 8.507059e+37 }
 0x6a4   : > { %v12761_v26 = vpop.eup %12760  ;;  %v15159_v45 = vadd.f32 1.0, %v12759_v28  ;;  %7354 = vmatpush.bf16.msra.mxu2 %v11224_v32 }
 0x6a5   : > { %v8554_v8 = vsel %vm8553_vm14, %v12757_v14, %v8550_v50  ;;  %v7722_v41 = vmul.f32 %v12761_v26, %v15143_v52  ;;  %12762 = vpow2.f32 %v11725_v44  ;;  %v11512_v14 = vor.u32 %v12428_v61, %v11509_v38  ;;  %v15184_v13 = vpop.f32.mrf.mxu1 }
 0x6a6   : > { %v8559_v27 = vsel %vm8556_vm15, %v8558_v35, %v8554_v8  ;;  %12764 = vrcp.f32 %v15159_v45  ;;  %vm7727_vm0 = vweird.f32 %v12761_v26  ;;  %v7852_v50 = vand.u32 2147483648, %v15159_v45 }
 0x6a7   : > { %8680 = vst [vmem:[%s14368_s25 + $0x1d8] sm:$0xff] %v8559_v27  ;;  %v7723_v55 = vsub.f32 1.0, %v7722_v41  ;;  %7249 = vmatmul.bf16.gmra.mxu2 %v14224_v20  ;;  %7307 = vmatmul.bf16.gmra.mxu0 %v14174_v57  ;;  %vm7728_vm2 = vmor %vm7726_vm1, %vm7727_vm0  ;;  %v7850_v23 = vand.u32 2147483647, %v15159_v45  ;;  %vm7846_vm5 = vweird.f32 %v15159_v45 }
 0x6a8   : > { %v7044_v30 = vpop.f32.mrf.mxu3  ;;  %7382 = vmatpush.bf16.msra.mxu3 %v11512_v14  ;;  %v7853_v38 = vor.u32 1.1754944e-38, %v7852_v50  ;;  %v15197_v14 = vpop.f32.mrf.mxu0 }
 0x6a9   : > { %v7724_v47 = vmul.f32 %v12761_v26, %v7723_v55  ;;  %v7045_v31 = vadd.f32 %v7044_v30, %v7016_v10  ;;  %vm7851_vm7 = vcmp.eq.f32.partialorder %v7850_v23, 8.507059e+37 }
 0x6aa   : > { %v7018_v59 = vpop.f32.mrf.mxu2 }
 0x6ab   : > { %v12763_v33 = vpop.eup %12762  ;;  %v7725_v57 = vadd.f32 %v12761_v26, %v7724_v47  ;;  %v11733_v43 = vmul.f32 -1.442695, %v7045_v31  ;;  %v7019_v28 = vadd.f32 %v7018_v59, %v6990_v46 }
 0x6ac   : > { %v12765_v53 = vpop.eup %12764  ;;  %v15175_v34 = vadd.f32 1.0, %v12763_v33  ;;  %7383 = vmatpush.bf16.msra.mxu3 %v11480_v9 }
 0x6ad   : > { %v7729_v36 = vsel %vm7728_vm2, %v12761_v26, %v7725_v57  ;;  %v7842_v22 = vmul.f32 %v12765_v53, %v15159_v45  ;;  %12766 = vpow2.f32 %v11733_v43  ;;  %7278 = vmatmul.bf16.gmra.mxu3 %v14229_v12  ;;  %7336 = vmatmul.bf16.gmra.mxu1 %v14178_v40  ;;  %vm7847_vm4 = vweird.f32 %v12765_v53  ;;  %v15203_v31 = vpop.f32.mrf.mxu1 }
 0x6ae   : > { %v7734_v52 = vsel %vm7731_vm3, %v7733_v16, %v7729_v36  ;;  %12768 = vrcp.f32 %v15175_v34  ;;  %v6963_v40 = vadd.f32 %v15067_v63, %v15092_v48  ;;  %vm7848_vm6 = vmor %vm7846_vm5, %vm7847_vm4  ;;  %v7970_v39 = vand.u32 2147483647, %v15175_v34 }
 0x6af   : > { %8625 = vst [vmem:[%s14368_s25 + $0x20] sm:$0xff] %v7734_v52  ;;  %v7843_v21 = vsub.f32 1.0, %v7842_v22  ;;  %vm7966_vm9 = vweird.f32 %v15175_v34  ;;  %v6995_v57 = vadd.f32 %v15097_v58, %v6966_v37 }
 0x6b0   : > { %v7047_v44 = vpop.f32.mrf.mxu3  ;;  %v6992_v61 = vadd.f32 %v15072_v15, %v6963_v40  ;;  %v7972_v15 = vand.u32 2147483648, %v15175_v34  ;;  %vm7971_vm11 = vcmp.eq.f32.partialorder %v7970_v39, 8.507059e+37  ;;  %v15214_v52 = vpop.f32.mrf.mxu0 }
 0x6b1   : > { %v7844_v6 = vmul.f32 %v12765_v53, %v7843_v21  ;;  %v7048_v26 = vadd.f32 %v7047_v44, %v7019_v28  ;;  %v6968_v44 = vadd.f32 %v15115_v24, %v15092_v48  ;;  %v15224_v48 = vperm.slane %v15089_v42, 5 }
 0x6b2   : > { %v7020_v51 = vpop.f32.mrf.mxu2  ;;  %v7973_v43 = vor.u32 1.1754944e-38, %v7972_v15 }
 0x6b3   : > { %v12767_v35 = vpop.eup %12766  ;;  %v7845_v32 = vadd.f32 %v12765_v53, %v7844_v6  ;;  %v11741_v8 = vmul.f32 -1.442695, %v7048_v26  ;;  %v7021_v19 = vadd.f32 %v7020_v51, %v6992_v61 }
 0x6b4   : > { %v12769_v41 = vpop.eup %12768  ;;  %v15192_v27 = vadd.f32 1.0, %v12767_v35  ;;  %v6997_v35 = vadd.f32 %v15118_v60, %v6968_v44 }
 0x6b5   : > { %v7849_v55 = vsel %vm7848_vm6, %v12765_v53, %v7845_v32  ;;  %v7962_v10 = vmul.f32 %v12769_v41, %v15175_v34  ;;  %12770 = vpow2.f32 %v11741_v8  ;;  %vm7967_vm8 = vweird.f32 %v12769_v41  ;;  %v15220_v26 = vpop.f32.mrf.mxu1 }
 0x6b6   : > { %v7854_v63 = vsel %vm7851_vm7, %v7853_v38, %v7849_v55  ;;  %12772 = vrcp.f32 %v15192_v27  ;;  %vm7968_vm10 = vmor %vm7966_vm9, %vm7967_vm8  ;;  %v8092_v22 = vand.u32 2147483648, %v15192_v27  ;;  %v8090_v28 = vand.u32 2147483647, %v15192_v27 }
 0x6b7   : > { %8633 = vst [vmem:[%s14368_s25 + $0x60] sm:$0xff] %v7854_v63  ;;  %v7963_v45 = vsub.f32 1.0, %v7962_v10  ;;  %7254 = vmatmul.bf16.gmra.mxu2 %v14236_v0  ;;  %7312 = vmatmul.bf16.gmra.mxu0 %v14184_v49  ;;  %vm8086_vm13 = vweird.f32 %v15192_v27 }
 0x6b8   : > { %v7049_v30 = vpop.f32.mrf.mxu3  ;;  %v8093_v32 = vor.u32 1.1754944e-38, %v8092_v22  ;;  %vm8091_vm15 = vcmp.eq.f32.partialorder %v8090_v28, 8.507059e+37  ;;  %v15230_v42 = vpop.f32.mrf.mxu0 }
 0x6b9   : > { %v7964_v47 = vmul.f32 %v12769_v41, %v7963_v45  ;;  %v7050_v18 = vadd.f32 %v7049_v30, %v7021_v19  ;;  %v7067_v19 = vadd.f32 %v15134_v4, %v15224_v48 }
 0x6ba   : > { %v7023_v3 = vpop.f32.mrf.mxu2 }
 0x6bb   : > { %v12771_v59 = vpop.eup %12770  ;;  %v7965_v9 = vadd.f32 %v12769_v41, %v7964_v47  ;;  %v11749_v49 = vmul.f32 -1.442695, %v7050_v18  ;;  %v7024_v36 = vadd.f32 %v7023_v3, %v6995_v57 }
 0x6bc   : > { %v12773_v33 = vpop.eup %12772  ;;  %v7633_v53 = vadd.f32 1.0, %v12771_v59 }
 0x6bd   : > { %v7969_v46 = vsel %vm7968_vm10, %v12769_v41, %v7965_v9  ;;  %v8082_v16 = vmul.f32 %v12773_v33, %v15192_v27  ;;  %12774 = vpow2.f32 %v11749_v49  ;;  %7283 = vmatmul.bf16.gmra.mxu3 %v14241_v7  ;;  %7341 = vmatmul.bf16.gmra.mxu1 %v14191_v56  ;;  %vm8087_vm12 = vweird.f32 %v12773_v33  ;;  %v15233_v9 = vpop.f32.mrf.mxu1 }
 0x6be   : > { %v7974_v5 = vsel %vm7971_vm11, %v7973_v43, %v7969_v46  ;;  %12776 = vrcp.f32 %v7633_v53  ;;  %vm8088_vm14 = vmor %vm8086_vm13, %vm8087_vm12  ;;  %v8212_v55 = vand.u32 2147483648, %v7633_v53  ;;  %v8210_v63 = vand.u32 2147483647, %v7633_v53 }
 0x6bf   : > { %8641 = vst [vmem:[%s14368_s25 + $0xa0] sm:$0xff] %v7974_v5  ;;  %v8083_v34 = vsub.f32 1.0, %v8082_v16  ;;  %vm8206_vm1 = vweird.f32 %v7633_v53  ;;  %v7069_v5 = vadd.f32 %v15155_v11, %v15224_v48 }
 0x6c0   : > { %v7052_v58 = vpop.f32.mrf.mxu3  ;;  %v8213_v37 = vor.u32 1.1754944e-38, %v8212_v55  ;;  %vm8211_vm3 = vcmp.eq.f32.partialorder %v8210_v63, 8.507059e+37  ;;  %v15240_v44 = vpop.f32.mrf.mxu0 }
 0x6c1   : > { %v8084_v21 = vmul.f32 %v12773_v33, %v8083_v34  ;;  %v7053_v50 = vadd.f32 %v7052_v58, %v7024_v36 }
 0x6c2   : > { %v7025_v6 = vpop.f32.mrf.mxu2 }
 0x6c3   : > { %v12775_v56 = vpop.eup %12774  ;;  %v8085_v23 = vadd.f32 %v12773_v33, %v8084_v21  ;;  %v11757_v40 = vmul.f32 -1.442695, %v7053_v50  ;;  %v7026_v27 = vadd.f32 %v7025_v6, %v6997_v35  ;;  %v7098_v21 = vadd.f32 %v15162_v54, %v7069_v5 }
 0x6c4   : > { %v12777_v51 = vpop.eup %12776  ;;  %v7641_v8 = vadd.f32 1.0, %v12775_v56 }
 0x6c5   : > { %v8089_v41 = vsel %vm8088_vm14, %v12773_v33, %v8085_v23  ;;  %v8202_v61 = vmul.f32 %v12777_v51, %v7633_v53  ;;  %12778 = vpow2.f32 %v11757_v40  ;;  %vm8207_vm0 = vweird.f32 %v12777_v51  ;;  %v15243_v11 = vpop.f32.mrf.mxu1 }
 0x6c6   : > { %v8094_v24 = vsel %vm8091_vm15, %v8093_v32, %v8089_v41  ;;  %12780 = vrcp.f32 %v7641_v8  ;;  %vm8208_vm2 = vmor %vm8206_vm1, %vm8207_vm0  ;;  %v8332_v43 = vand.u32 2147483648, %v7641_v8  ;;  %vm8326_vm5 = vweird.f32 %v7641_v8 }
 0x6c7   : > { %8649 = vst [vmem:[%s14368_s25 + $0xe0] sm:$0xff] %v8094_v24  ;;  %v8203_v38 = vsub.f32 1.0, %v8202_v61  ;;  %7355 = vmatmul.bf16.vlgmr.msra.gmra.mxu2 %v14200_v2  ;;  %v7096_v2 = vadd.f32 %v15139_v1, %v7067_v19  ;;  %v8330_v1 = vand.u32 2147483647, %v7641_v8  ;;  %v7072_v61 = vadd.f32 %v15177_v25, %v15224_v48 }
 0x6c8   : > { %v7054_v10 = vpop.f32.mrf.mxu3  ;;  %v8333_v28 = vor.u32 1.1754944e-38, %v8332_v43  ;;  %v15250_v25 = vpop.f32.mrf.mxu0 }
 0x6c9   : > { %v8204_v60 = vmul.f32 %v12777_v51, %v8203_v38  ;;  %v7055_v45 = vadd.f32 %v7054_v10, %v7026_v27  ;;  %vm8331_vm7 = vcmp.eq.f32.partialorder %v8330_v1, 8.507059e+37 }
 0x6ca   : > { %v7124_v15 = vpop.f32.mrf.mxu2 }
 0x6cb   : > { %v12779_v30 = vpop.eup %12778  ;;  %v8205_v47 = vadd.f32 %v12777_v51, %v8204_v60  ;;  %v11765_v39 = vmul.f32 -1.442695, %v7055_v45  ;;  %v7125_v57 = vadd.f32 %v7124_v15, %v7096_v2  ;;  %v7101_v60 = vadd.f32 %v15184_v13, %v7072_v61 }
 0x6cc   : > { %v12781_v18 = vpop.eup %12780  ;;  %v7649_v3 = vadd.f32 1.0, %v12779_v30 }
 0x6cd   : > { %v8209_v59 = vsel %vm8208_vm2, %v12777_v51, %v8205_v47  ;;  %v8322_v49 = vmul.f32 %v12781_v18, %v7641_v8  ;;  %12782 = vpow2.f32 %v11765_v39  ;;  %7384 = vmatmul.bf16.vlgmr.msra.gmra.mxu3 %v14205_v29  ;;  %vm8327_vm4 = vweird.f32 %v12781_v18  ;;  %v15253_v2 = vpop.f32.mrf.mxu1 }
 0x6ce   : > { %v8214_v4 = vsel %vm8211_vm3, %v8213_v37, %v8209_v59  ;;  %12784 = vrcp.f32 %v7649_v3  ;;  %vm8328_vm6 = vmor %vm8326_vm5, %vm8327_vm4  ;;  %v8452_v35 = vand.u32 2147483648, %v7649_v3  ;;  %v8450_v8 = vand.u32 2147483647, %v7649_v3 }
 0x6cf   : > { %8657 = vst [vmem:[%s14368_s25 + $0x120] sm:$0xff] %v8214_v4  ;;  %v8323_v33 = vsub.f32 1.0, %v8322_v49  ;;  %vm8446_vm9 = vweird.f32 %v7649_v3  ;;  %v7074_v59 = vadd.f32 %v15197_v14, %v15224_v48 }
 0x6d0   : > { %v7153_v53 = vpop.f32.mrf.mxu3  ;;  %vm8451_vm11 = vcmp.eq.f32.partialorder %v8450_v8, 8.507059e+37 }
 0x6d1   : > { %v8324_v46 = vmul.f32 %v12781_v18, %v8323_v33  ;;  %v7154_v16 = vadd.f32 %v7153_v53, %v7125_v57  ;;  %v7103_v43 = vadd.f32 %v15203_v31, %v7074_v59 }
 0x6d2   : > { %v7126_v34 = vpop.f32.mrf.mxu2 }
 0x6d3   : > { %v12783_v36 = vpop.eup %12782  ;;  %v8325_v22 = vadd.f32 %v12781_v18, %v8324_v46  ;;  %v11710_v29 = vmul.f32 -1.442695, %v7154_v16  ;;  %v7127_v51 = vadd.f32 %v7126_v34, %v7098_v21 }
 0x6d4   : > { %v12785_v58 = vpop.eup %12784  ;;  %v7657_v50 = vadd.f32 1.0, %v12783_v36 }
 0x6d5   : > { %v8329_v6 = vsel %vm8328_vm6, %v12781_v18, %v8325_v22  ;;  %v8442_v56 = vmul.f32 %v12785_v58, %v7649_v3  ;;  %12786 = vpow2.f32 %v11710_v29  ;;  %vm8447_vm8 = vweird.f32 %v12785_v58  ;;  %v15260_v29 = vpop.f32.mrf.mxu0 }
 0x6d6   : > { %v8334_v23 = vsel %vm8331_vm7, %v8333_v28, %v8329_v6  ;;  %12788 = vrcp.f32 %v7657_v50  ;;  %vm8448_vm10 = vmor %vm8446_vm9, %vm8447_vm8  ;;  %v8572_v39 = vand.u32 2147483648, %v7657_v50  ;;  %v8570_v37 = vand.u32 2147483647, %v7657_v50 }
 0x6d7   : > { %8665 = vst [vmem:[%s14368_s25 + $0x160] sm:$0xff] %v8334_v23  ;;  %v8443_v40 = vsub.f32 1.0, %v8442_v56  ;;  %7360 = vmatmul.bf16.gmra.mxu2 %v14212_v17  ;;  %v8453_v17 = vor.u32 1.1754944e-38, %v8452_v35  ;;  %vm8566_vm13 = vweird.f32 %v7657_v50  ;;  %v7077_v28 = vadd.f32 %v15214_v52, %v15224_v48  ;;  %v15264_v56 = vpop.f32.mrf.mxu1 }
 0x6d8   : > { %v7155_v54 = vpop.f32.mrf.mxu3  ;;  %v8573_v53 = vor.u32 1.1754944e-38, %v8572_v39  ;;  %vm8571_vm15 = vcmp.eq.f32.partialorder %v8570_v37, 8.507059e+37 }
 0x6d9   : > { %v8444_v32 = vmul.f32 %v12785_v58, %v8443_v40  ;;  %v7156_v41 = vadd.f32 %v7155_v54, %v7127_v51  ;;  %v7106_v51 = vadd.f32 %v15220_v26, %v7077_v28 }
 0x6da   : > { %v7129_v24 = vpop.f32.mrf.mxu2 }
 0x6db   : > { %v12787_v38 = vpop.eup %12786  ;;  %v8445_v27 = vadd.f32 %v12785_v58, %v8444_v32  ;;  %v11718_v55 = vmul.f32 -1.442695, %v7156_v41  ;;  %v7130_v47 = vadd.f32 %v7129_v24, %v7101_v60 }
 0x6dc   : > { %v12789_v10 = vpop.eup %12788  ;;  %v7602_v63 = vadd.f32 1.0, %v12787_v38 }
 0x6dd   : > { %v8449_v45 = vsel %vm8448_vm10, %v12785_v58, %v8445_v27  ;;  %v8562_v19 = vmul.f32 %v12789_v10, %v7657_v50  ;;  %12790 = vpow2.f32 %v11718_v55  ;;  %7389 = vmatmul.bf16.gmra.mxu3 %v14217_v62  ;;  %vm8567_vm12 = vweird.f32 %v12789_v10 }
 0x6de   : > { %v8454_v15 = vsel %vm8451_vm11, %v8453_v17, %v8449_v45  ;;  %12792 = vrcp.f32 %v7602_v63  ;;  %vm8568_vm14 = vmor %vm8566_vm13, %vm8567_vm12  ;;  %v7747_v36 = vand.u32 2147483648, %v7602_v63  ;;  %v7745_v31 = vand.u32 2147483647, %v7602_v63 }
 0x6df   : > { %8673 = vst [vmem:[%s14368_s25 + $0x1a0] sm:$0xff] %v8454_v15  ;;  %v8563_v30 = vsub.f32 1.0, %v8562_v19  ;;  %vm7741_vm1 = vweird.f32 %v7602_v63  ;;  %v15274_v39 = vpop.f32.mrf.mxu1 }
 0x6e0   : > { %v7158_v18 = vpop.f32.mrf.mxu3  ;;  %v7748_v35 = vor.u32 1.1754944e-38, %v7747_v36  ;;  %vm7746_vm3 = vcmp.eq.f32.partialorder %v7745_v31, 8.507059e+37 }
 0x6e1   : > { %v8564_v13 = vmul.f32 %v12789_v10, %v8563_v30  ;;  %v7159_v3 = vadd.f32 %v7158_v18, %v7130_v47 }
 0x6e2   : > { %v7131_v49 = vpop.f32.mrf.mxu2 }
 0x6e3   : > { %v12791_v62 = vpop.eup %12790  ;;  %v8565_v4 = vadd.f32 %v12789_v10, %v8564_v13  ;;  %v11726_v33 = vmul.f32 -1.442695, %v7159_v3  ;;  %v7132_v34 = vadd.f32 %v7131_v49, %v7103_v43 }
 0x6e4   : > { %v12793_v57 = vpop.eup %12792  ;;  %v7610_v46 = vadd.f32 1.0, %v12791_v62 }
 0x6e5   : > { %v8569_v1 = vsel %vm8568_vm14, %v12789_v10, %v8565_v4  ;;  %v7737_v16 = vmul.f32 %v12793_v57, %v7602_v63  ;;  %12794 = vpow2.f32 %v11726_v33  ;;  %vm7742_vm0 = vweird.f32 %v12793_v57  ;;  %v15271_v63 = vpop.f32.mrf.mxu0 }
 0x6e6   : > { %v8574_v5 = vsel %vm8571_vm15, %v8573_v53, %v8569_v1  ;;  %12796 = vrcp.f32 %v7610_v46  ;;  %vm7743_vm2 = vmor %vm7741_vm1, %vm7742_vm0  ;;  %v7867_v24 = vand.u32 2147483648, %v7610_v46  ;;  %v7865_v55 = vand.u32 2147483647, %v7610_v46 }
 0x6e7   : > { %8681 = vst [vmem:[%s14368_s25 + $0x1e0] sm:$0xff] %v8574_v5  ;;  %v7738_v14 = vsub.f32 1.0, %v7737_v16  ;;  %7365 = vmatmul.bf16.gmra.mxu2 %v14224_v20  ;;  %v7079_v10 = vadd.f32 %v15230_v42, %v15224_v48  ;;  %vm7861_vm5 = vweird.f32 %v7610_v46  ;;  %v7082_v33 = vadd.f32 %v15240_v44, %v15224_v48 }
 0x6e8   : > { %v7160_v22 = vpop.f32.mrf.mxu3  ;;  %v7868_v30 = vor.u32 1.1754944e-38, %v7867_v24  ;;  %vm7866_vm7 = vcmp.eq.f32.partialorder %v7865_v55, 8.507059e+37 }
 0x6e9   : > { %v7739_v58 = vmul.f32 %v12793_v57, %v7738_v14  ;;  %v7161_v21 = vadd.f32 %v7160_v22, %v7132_v34  ;;  %v7108_v15 = vadd.f32 %v15233_v9, %v7079_v10  ;;  %v7111_v16 = vadd.f32 %v15243_v11, %v7082_v33  ;;  %v15284_v22 = vpop.f32.mrf.mxu1 }
 0x6ea   : > { %v7134_v50 = vpop.f32.mrf.mxu2 }
 0x6eb   : > { %v12795_v6 = vpop.eup %12794  ;;  %v7740_v23 = vadd.f32 %v12793_v57, %v7739_v58  ;;  %v11734_v40 = vmul.f32 -1.442695, %v7161_v21  ;;  %v7135_v61 = vadd.f32 %v7134_v50, %v7106_v51 }
 0x6ec   : > { %v12797_v20 = vpop.eup %12796  ;;  %v7618_v54 = vadd.f32 1.0, %v12795_v6 }
 0x6ed   : > { %v7744_v32 = vsel %vm7743_vm2, %v12793_v57, %v7740_v23  ;;  %v7857_v8 = vmul.f32 %v12797_v20, %v7610_v46  ;;  %12798 = vpow2.f32 %v11734_v40  ;;  %7394 = vmatmul.bf16.gmra.mxu3 %v14229_v12  ;;  %vm7862_vm4 = vweird.f32 %v12797_v20  ;;  %v15281_v14 = vpop.f32.mrf.mxu0 }
 0x6ee   : > { %v7749_v52 = vsel %vm7746_vm3, %v7748_v35, %v7744_v32  ;;  %12800 = vrcp.f32 %v7618_v54  ;;  %vm7863_vm6 = vmor %vm7861_vm5, %vm7862_vm4  ;;  %v7987_v59 = vand.u32 2147483648, %v7618_v54  ;;  %v7985_v9 = vand.u32 2147483647, %v7618_v54 }
 0x6ef   : > { %8626 = vst [vmem:[%s14368_s25 + $0x28] sm:$0xff] %v7749_v52  ;;  %v7858_v41 = vsub.f32 1.0, %v7857_v8  ;;  %vm7981_vm9 = vweird.f32 %v7618_v54  ;;  %v7084_v23 = vadd.f32 %v15250_v25, %v15224_v48  ;;  %v15293_v48 = vld [vmem:[%s15449_s11] sm:$0xff] }
 0x6f0   : > { %v7163_v38 = vpop.f32.mrf.mxu3  ;;  %vm7986_vm11 = vcmp.eq.f32.partialorder %v7985_v9, 8.507059e+37  ;;  %v15296_v25 = vperm.slane %v15293_v48, 6 }
 0x6f1   : > { %v7859_v27 = vmul.f32 %v12797_v20, %v7858_v41  ;;  %v7164_v26 = vadd.f32 %v7163_v38, %v7135_v61 }
 0x6f2   : > { %v7136_v60 = vpop.f32.mrf.mxu2 }
 0x6f3   : > { %v12799_v17 = vpop.eup %12798  ;;  %v7860_v12 = vadd.f32 %v12797_v20, %v7859_v27  ;;  %v11742_v45 = vmul.f32 -1.442695, %v7164_v26  ;;  %v7137_v3 = vadd.f32 %v7136_v60, %v7108_v15  ;;  %v15301_v26 = vpop.f32.mrf.mxu1 }
 0x6f4   : > { %v12801_v19 = vpop.eup %12800  ;;  %v7626_v47 = vadd.f32 1.0, %v12799_v17 }
 0x6f5   : > { %v7864_v18 = vsel %vm7863_vm6, %v12797_v20, %v7860_v12  ;;  %v7977_v13 = vmul.f32 %v12801_v19, %v7618_v54  ;;  %12802 = vpow2.f32 %v11742_v45  ;;  %vm7982_vm8 = vweird.f32 %v12801_v19  ;;  %v15298_v24 = vpop.f32.mrf.mxu0 }
 0x6f6   : > { %v7869_v42 = vsel %vm7866_vm7, %v7868_v30, %v7864_v18  ;;  %12804 = vrcp.f32 %v7626_v47  ;;  %vm7983_vm10 = vmor %vm7981_vm9, %vm7982_vm8  ;;  %v8107_v21 = vand.u32 2147483648, %v7626_v47  ;;  %v8105_v50 = vand.u32 2147483647, %v7626_v47 }
 0x6f7   : > { %8634 = vst [vmem:[%s14368_s25 + $0x68] sm:$0xff] %v7869_v42  ;;  %v7978_v37 = vsub.f32 1.0, %v7977_v13  ;;  %7370 = vmatmul.bf16.gmra.mxu2 %v14236_v0  ;;  %v7988_v0 = vor.u32 1.1754944e-38, %v7987_v59  ;;  %vm8101_vm13 = vweird.f32 %v7626_v47  ;;  %v7113_v54 = vadd.f32 %v15253_v2, %v7084_v23 }
 0x6f8   : > { %v7165_v49 = vpop.f32.mrf.mxu3  ;;  %v8108_v32 = vor.u32 1.1754944e-38, %v8107_v21  ;;  %vm8106_vm15 = vcmp.eq.f32.partialorder %v8105_v50, 8.507059e+37  ;;  %v7183_v12 = vadd.f32 %v15260_v29, %v15296_v25 }
 0x6f9   : > { %v7979_v62 = vmul.f32 %v12801_v19, %v7978_v37  ;;  %v7166_v4 = vadd.f32 %v7165_v49, %v7137_v3 }
 0x6fa   : > { %v7139_v57 = vpop.f32.mrf.mxu2  ;;  %v7212_v18 = vadd.f32 %v15264_v56, %v7183_v12 }
 0x6fb   : > { %v12803_v43 = vpop.eup %12802  ;;  %v7980_v53 = vadd.f32 %v12801_v19, %v7979_v62  ;;  %v11750_v46 = vmul.f32 -1.442695, %v7166_v4  ;;  %v7140_v31 = vadd.f32 %v7139_v57, %v7111_v16 }
 0x6fc   : > { %v12805_v1 = vpop.eup %12804  ;;  %v7634_v5 = vadd.f32 1.0, %v12803_v43  ;;  %v7185_v43 = vadd.f32 %v15271_v63, %v15296_v25 }
 0x6fd   : > { %v7984_v34 = vsel %vm7983_vm10, %v12801_v19, %v7980_v53  ;;  %v8097_v36 = vmul.f32 %v12805_v1, %v7626_v47  ;;  %12806 = vpow2.f32 %v11750_v46  ;;  %7399 = vmatmul.bf16.gmra.mxu3 %v14241_v7  ;;  %vm8102_vm12 = vweird.f32 %v12805_v1  ;;  %v15307_v4 = vpop.f32.mrf.mxu0 }
 0x6fe   : > { %v7989_v44 = vsel %vm7986_vm11, %v7988_v0, %v7984_v34  ;;  %12808 = vrcp.f32 %v7634_v5  ;;  %vm8103_vm14 = vmor %vm8101_vm13, %vm8102_vm12  ;;  %v8227_v27 = vand.u32 2147483648, %v7634_v5  ;;  %v8225_v60 = vand.u32 2147483647, %v7634_v5 }
 0x6ff   : > { %8642 = vst [vmem:[%s14368_s25 + $0xa8] sm:$0xff] %v7989_v44  ;;  %v8098_v58 = vsub.f32 1.0, %v8097_v36  ;;  %vm8221_vm1 = vweird.f32 %v7634_v5  ;;  %v7214_v34 = vadd.f32 %v15274_v39, %v7185_v43  ;;  %v7188_v39 = vadd.f32 %v15281_v14, %v15296_v25 }
 0x700   : > { %v7168_v11 = vpop.f32.mrf.mxu3  ;;  %v8228_v13 = vor.u32 1.1754944e-38, %v8227_v27  ;;  %vm8226_vm3 = vcmp.eq.f32.partialorder %v8225_v60, 8.507059e+37 }
 0x701   : > { %v8099_v28 = vmul.f32 %v12805_v1, %v8098_v58  ;;  %v7169_v6 = vadd.f32 %v7168_v11, %v7140_v31 }
 0x702   : > { %v7141_v40 = vpop.f32.mrf.mxu2 }
 0x703   : > { %v12807_v20 = vpop.eup %12806  ;;  %v8100_v51 = vadd.f32 %v12805_v1, %v8099_v28  ;;  %v11758_v7 = vmul.f32 -1.442695, %v7169_v6  ;;  %v7142_v38 = vadd.f32 %v7141_v40, %v7113_v54 }
 0x704   : > { %v12809_v35 = vpop.eup %12808  ;;  %v7642_v8 = vadd.f32 1.0, %v12807_v20 }
 0x705   : > { %v8104_v52 = vsel %vm8103_vm14, %v12805_v1, %v8100_v51  ;;  %v8217_v41 = vmul.f32 %v12809_v35, %v7634_v5  ;;  %12810 = vpow2.f32 %v11758_v7  ;;  %vm8222_vm0 = vweird.f32 %v12809_v35  ;;  %v15311_v1 = vpop.f32.mrf.mxu1  ;;  %v15317_v7 = vpop.f32.mrf.mxu0 }
 0x706   : > { %v8109_v61 = vsel %vm8106_vm15, %v8108_v32, %v8104_v52  ;;  %12812 = vrcp.f32 %v7642_v8  ;;  %vm8223_vm2 = vmor %vm8221_vm1, %vm8222_vm0  ;;  %v8347_v62 = vand.u32 2147483648, %v7642_v8  ;;  %v8345_v57 = vand.u32 2147483647, %v7642_v8 }
 0x707   : > { %8650 = vst [vmem:[%s14368_s25 + $0xe8] sm:$0xff] %v8109_v61  ;;  %v8218_v2 = vsub.f32 1.0, %v8217_v41  ;;  %vm8341_vm5 = vweird.f32 %v7642_v8 }
 0x708   : > { %v7170_v55 = vpop.f32.mrf.mxu3  ;;  %v8348_v36 = vor.u32 1.1754944e-38, %v8347_v62  ;;  %vm8346_vm7 = vcmp.eq.f32.partialorder %v8345_v57, 8.507059e+37 }
 0x709   : > { %v8219_v10 = vmul.f32 %v12809_v35, %v8218_v2  ;;  %v7171_v17 = vadd.f32 %v7170_v55, %v7142_v38 }
 0x70a   : > { %v7240_v45 = vpop.f32.mrf.mxu2 }
 0x70b   : > { %v12811_v19 = vpop.eup %12810  ;;  %v8220_v15 = vadd.f32 %v12809_v35, %v8219_v10  ;;  %v11766_v30 = vmul.f32 -1.442695, %v7171_v17  ;;  %v7241_v49 = vadd.f32 %v7240_v45, %v7212_v18  ;;  %v7190_v45 = vadd.f32 %v15298_v24, %v15296_v25 }
 0x70c   : > { %v12813_v47 = vpop.eup %12812  ;;  %v7650_v42 = vadd.f32 1.0, %v12811_v19 }
 0x70d   : > { %v8224_v37 = vsel %vm8223_vm2, %v12809_v35, %v8220_v15  ;;  %v8337_v3 = vmul.f32 %v12813_v47, %v7642_v8  ;;  %12814 = vpow2.f32 %v11766_v30  ;;  %vm8342_vm4 = vweird.f32 %v12813_v47  ;;  %v15320_v61 = vpop.f32.mrf.mxu1 }
 0x70e   : > { %v8229_v59 = vsel %vm8226_vm3, %v8228_v13, %v8224_v37  ;;  %12816 = vrcp.f32 %v7650_v42  ;;  %vm8343_vm6 = vmor %vm8341_vm5, %vm8342_vm4  ;;  %v8467_v28 = vand.u32 2147483648, %v7650_v42  ;;  %v8465_v23 = vand.u32 2147483647, %v7650_v42 }
 0x70f   : > { %8658 = vst [vmem:[%s14368_s25 + $0x128] sm:$0xff] %v8229_v59  ;;  %v8338_v29 = vsub.f32 1.0, %v8337_v3  ;;  %vm8461_vm9 = vweird.f32 %v7650_v42  ;;  %v7217_v8 = vadd.f32 %v15284_v22, %v7188_v39  ;;  %v7219_v13 = vadd.f32 %v15301_v26, %v7190_v45  ;;  %v15326_v3 = vpop.f32.mrf.mxu0 }
 0x710   : > { %v7269_v9 = vpop.f32.mrf.mxu3  ;;  %v8468_v52 = vor.u32 1.1754944e-38, %v8467_v28  ;;  %vm8466_vm11 = vcmp.eq.f32.partialorder %v8465_v23, 8.507059e+37 }
 0x711   : > { %v8339_v33 = vmul.f32 %v12813_v47, %v8338_v29  ;;  %v7270_v56 = vadd.f32 %v7269_v9, %v7241_v49 }
 0x712   : > { %v7242_v53 = vpop.f32.mrf.mxu2 }
 0x713   : > { %v12815_v46 = vpop.eup %12814  ;;  %v8340_v16 = vadd.f32 %v12813_v47, %v8339_v33  ;;  %v11711_v0 = vmul.f32 -1.442695, %v7270_v56  ;;  %v7243_v11 = vadd.f32 %v7242_v53, %v7214_v34  ;;  %v7193_v53 = vadd.f32 %v15307_v4, %v15296_v25 }
 0x714   : > { %v12817_v5 = vpop.eup %12816  ;;  %v7658_v44 = vadd.f32 1.0, %v12815_v46 }
 0x715   : > { %v8344_v58 = vsel %vm8343_vm6, %v12813_v47, %v8340_v16  ;;  %v8457_v31 = vmul.f32 %v12817_v5, %v7650_v42  ;;  %12818 = vpow2.f32 %v11711_v0  ;;  %vm8462_vm8 = vweird.f32 %v12817_v5  ;;  %v15328_v24 = vpop.f32.mrf.mxu1 }
 0x716   : > { %v8349_v21 = vsel %vm8346_vm7, %v8348_v36, %v8344_v58  ;;  %12820 = vrcp.f32 %v7658_v44  ;;  %vm8463_vm10 = vmor %vm8461_vm9, %vm8462_vm8  ;;  %v8587_v10 = vand.u32 2147483648, %v7658_v44  ;;  %v8585_v12 = vand.u32 2147483647, %v7658_v44 }
 0x717   : > { %8666 = vst [vmem:[%s14368_s25 + $0x168] sm:$0xff] %v8349_v21  ;;  %v8458_v63 = vsub.f32 1.0, %v8457_v31  ;;  %vm8581_vm13 = vweird.f32 %v7658_v44  ;;  %v7222_v36 = vadd.f32 %v15311_v1, %v7193_v53 }
 0x718   : > { %v7271_v50 = vpop.f32.mrf.mxu3  ;;  %v8588_v42 = vor.u32 1.1754944e-38, %v8587_v10  ;;  %vm8586_vm15 = vcmp.eq.f32.partialorder %v8585_v12, 8.507059e+37 }
 0x719   : > { %v8459_v6 = vmul.f32 %v12817_v5, %v8458_v63  ;;  %v7272_v40 = vadd.f32 %v7271_v50, %v7243_v11  ;;  %v15334_v11 = vpop.f32.mrf.mxu0 }
 0x71a   : > { %v7245_v20 = vpop.f32.mrf.mxu2 }
 0x71b   : > { %v12819_v51 = vpop.eup %12818  ;;  %v8460_v35 = vadd.f32 %v12817_v5, %v8459_v6  ;;  %v11719_v54 = vmul.f32 -1.442695, %v7272_v40  ;;  %v7246_v55 = vadd.f32 %v7245_v20, %v7217_v8  ;;  %v7195_v20 = vadd.f32 %v15317_v7, %v15296_v25 }
 0x71c   : > { %v12821_v32 = vpop.eup %12820  ;;  %v7603_v41 = vadd.f32 1.0, %v12819_v51 }
 0x71d   : > { %v8464_v2 = vsel %vm8463_vm10, %v12817_v5, %v8460_v35  ;;  %v8577_v38 = vmul.f32 %v12821_v32, %v7658_v44  ;;  %12822 = vpow2.f32 %v11719_v54  ;;  %vm8582_vm12 = vweird.f32 %v12821_v32  ;;  %v15337_v23 = vpop.f32.mrf.mxu1 }
 0x71e   : > { %v8469_v14 = vsel %vm8466_vm11, %v8468_v52, %v8464_v2  ;;  %12824 = vrcp.f32 %v7603_v41  ;;  %vm8583_vm14 = vmor %vm8581_vm13, %vm8582_vm12  ;;  %v7762_v33 = vand.u32 2147483648, %v7603_v41  ;;  %v7760_v26 = vand.u32 2147483647, %v7603_v41 }
 0x71f   : > { %8674 = vst [vmem:[%s14368_s25 + $0x1a8] sm:$0xff] %v8469_v14  ;;  %v8578_v27 = vsub.f32 1.0, %v8577_v38  ;;  %vm7756_vm1 = vweird.f32 %v7603_v41  ;;  %v7224_v52 = vadd.f32 %v15320_v61, %v7195_v20  ;;  %v7198_v61 = vadd.f32 %v15326_v3, %v15296_v25 }
 0x720   : > { %v7274_v60 = vpop.f32.mrf.mxu3  ;;  %v7763_v44 = vor.u32 1.1754944e-38, %v7762_v33  ;;  %vm7761_vm3 = vcmp.eq.f32.partialorder %v7760_v26, 8.507059e+37 }
 0x721   : > { %v8579_v17 = vmul.f32 %v12821_v32, %v8578_v27  ;;  %v7275_v22 = vadd.f32 %v7274_v60, %v7246_v55 }
 0x722   : > { %v7247_v19 = vpop.f32.mrf.mxu2 }
 0x723   : > { %v12823_v15 = vpop.eup %12822  ;;  %v8580_v30 = vadd.f32 %v12821_v32, %v8579_v17  ;;  %v11727_v47 = vmul.f32 -1.442695, %v7275_v22  ;;  %v7248_v9 = vadd.f32 %v7247_v19, %v7219_v13  ;;  %v7298_v17 = vpop.f32.mrf.mxu0 }
 0x724   : > { %v12825_v18 = vpop.eup %12824  ;;  %v7611_v37 = vadd.f32 1.0, %v12823_v15 }
 0x725   : > { %v8584_v59 = vsel %vm8583_vm14, %v12821_v32, %v8580_v30  ;;  %v7752_v29 = vmul.f32 %v12825_v18, %v7603_v41  ;;  %12826 = vpow2.f32 %v11727_v47  ;;  %vm7757_vm0 = vweird.f32 %v12825_v18  ;;  %v7327_v30 = vpop.f32.mrf.mxu1 }
 0x726   : > { %v8589_v49 = vsel %vm8586_vm15, %v8588_v42, %v8584_v59  ;;  %12828 = vrcp.f32 %v7611_v37  ;;  %vm7758_vm2 = vmor %vm7756_vm1, %vm7757_vm0  ;;  %v7882_v50 = vand.u32 2147483648, %v7611_v37  ;;  %v7880_v1 = vand.u32 2147483647, %v7611_v37 }
 0x727   : > { %8682 = vst [vmem:[%s14368_s25 + $0x1e8] sm:$0xff] %v8589_v49  ;;  %v7753_v62 = vsub.f32 1.0, %v7752_v29  ;;  %vm7876_vm5 = vweird.f32 %v7611_v37  ;;  %v7227_v42 = vadd.f32 %v15328_v24, %v7198_v61  ;;  %v7200_v24 = vadd.f32 %v15334_v11, %v15296_v25 }
 0x728   : > { %v7276_v57 = vpop.f32.mrf.mxu3  ;;  %v7883_v41 = vor.u32 1.1754944e-38, %v7882_v50  ;;  %vm7881_vm7 = vcmp.eq.f32.partialorder %v7880_v1, 8.507059e+37  ;;  %v15351_v25 = vperm.slane %v15293_v48, 7 }
 0x729   : > { %v7754_v56 = vmul.f32 %v12825_v18, %v7753_v62  ;;  %v7277_v43 = vadd.f32 %v7276_v57, %v7248_v9 }
 0x72a   : > { %v7250_v46 = vpop.f32.mrf.mxu2 }
 0x72b   : > { %v12827_v16 = vpop.eup %12826  ;;  %v7755_v0 = vadd.f32 %v12825_v18, %v7754_v56  ;;  %v11735_v5 = vmul.f32 -1.442695, %v7277_v43  ;;  %v7251_v28 = vadd.f32 %v7250_v46, %v7222_v36  ;;  %v7229_v36 = vadd.f32 %v15337_v23, %v7200_v24 }
 0x72c   : > { %v12829_v34 = vpop.eup %12828  ;;  %v7619_v58 = vadd.f32 1.0, %v12827_v16  ;;  %v7300_v16 = vpop.f32.mrf.mxu0 }
 0x72d   : > { %v7759_v31 = vsel %vm7758_vm2, %v12825_v18, %v7755_v0  ;;  %v7872_v21 = vmul.f32 %v12829_v34, %v7611_v37  ;;  %12830 = vpow2.f32 %v11735_v5  ;;  %vm7877_vm4 = vweird.f32 %v12829_v34 }
 0x72e   : > { %v7764_v63 = vsel %vm7761_vm3, %v7763_v44, %v7759_v31  ;;  %12832 = vrcp.f32 %v7619_v58  ;;  %vm7878_vm6 = vmor %vm7876_vm5, %vm7877_vm4  ;;  %v8002_v10 = vand.u32 2147483648, %v7619_v58  ;;  %v8000_v22 = vand.u32 2147483647, %v7619_v58  ;;  %v7329_v31 = vpop.f32.mrf.mxu1 }
 0x72f   : > { %8627 = vst [vmem:[%s14368_s25 + $0x30] sm:$0xff] %v7764_v63  ;;  %v7873_v4 = vsub.f32 1.0, %v7872_v21  ;;  %vm7996_vm9 = vweird.f32 %v7619_v58 }
 0x730   : > { %v7279_v6 = vpop.f32.mrf.mxu3  ;;  %v8003_v37 = vor.u32 1.1754944e-38, %v8002_v10  ;;  %vm8001_vm11 = vcmp.eq.f32.partialorder %v8000_v22, 8.507059e+37 }
 0x731   : > { %v7874_v40 = vmul.f32 %v12829_v34, %v7873_v4  ;;  %v7280_v39 = vadd.f32 %v7279_v6, %v7251_v28 }
 0x732   : > { %v7252_v51 = vpop.f32.mrf.mxu2 }
 0x733   : > { %v12831_v35 = vpop.eup %12830  ;;  %v7875_v54 = vadd.f32 %v12829_v34, %v7874_v40  ;;  %v11743_v32 = vmul.f32 -1.442695, %v7280_v39  ;;  %v7253_v55 = vadd.f32 %v7252_v51, %v7224_v52  ;;  %v7299_v39 = vadd.f32 %v7298_v17, %v15351_v25 }
 0x734   : > { %v12833_v8 = vpop.eup %12832  ;;  %v7627_v2 = vadd.f32 1.0, %v12831_v35 }
 0x735   : > { %v7879_v38 = vsel %vm7878_vm6, %v12829_v34, %v7875_v54  ;;  %v7992_v14 = vmul.f32 %v12833_v8, %v7619_v58  ;;  %12834 = vpow2.f32 %v11743_v32  ;;  %vm7997_vm8 = vweird.f32 %v12833_v8 }
 0x736   : > { %v7884_v27 = vsel %vm7881_vm7, %v7883_v41, %v7879_v38  ;;  %12836 = vrcp.f32 %v7627_v2  ;;  %vm7998_vm10 = vmor %vm7996_vm9, %vm7997_vm8  ;;  %v8122_v33 = vand.u32 2147483648, %v7627_v2  ;;  %v8120_v26 = vand.u32 2147483647, %v7627_v2  ;;  %v7303_v41 = vpop.f32.mrf.mxu0 }
 0x737   : > { %8635 = vst [vmem:[%s14368_s25 + $0x70] sm:$0xff] %v7884_v27  ;;  %v7993_v7 = vsub.f32 1.0, %v7992_v14  ;;  %vm8116_vm13 = vweird.f32 %v7627_v2  ;;  %v7328_v32 = vadd.f32 %v7327_v30, %v7299_v39  ;;  %v7332_v27 = vpop.f32.mrf.mxu1  ;;  %v7304_v24 = vadd.f32 %v7303_v41, %v15351_v25 }
 0x738   : > { %v7281_v60 = vpop.f32.mrf.mxu3  ;;  %v8123_v44 = vor.u32 1.1754944e-38, %v8122_v33  ;;  %vm8121_vm15 = vcmp.eq.f32.partialorder %v8120_v26, 8.507059e+37 }
 0x739   : > { %v7994_v12 = vmul.f32 %v12833_v8, %v7993_v7  ;;  %v7282_v45 = vadd.f32 %v7281_v60, %v7253_v55 }
 0x73a   : > { %v7255_v19 = vpop.f32.mrf.mxu2 }
 0x73b   : > { %v12835_v15 = vpop.eup %12834  ;;  %v7995_v47 = vadd.f32 %v12833_v8, %v7994_v12  ;;  %v11751_v18 = vmul.f32 -1.442695, %v7282_v45  ;;  %v7256_v9 = vadd.f32 %v7255_v19, %v7227_v42  ;;  %v7301_v45 = vadd.f32 %v7300_v16, %v15351_v25 }
 0x73c   : > { %v12837_v13 = vpop.eup %12836  ;;  %v7635_v59 = vadd.f32 1.0, %v12835_v15 }
 0x73d   : > { %v7999_v29 = vsel %vm7998_vm10, %v12833_v8, %v7995_v47  ;;  %v8112_v49 = vmul.f32 %v12837_v13, %v7627_v2  ;;  %12838 = vpow2.f32 %v11751_v18  ;;  %vm8117_vm12 = vweird.f32 %v12837_v13 }
 0x73e   : > { %v8004_v62 = vsel %vm8001_vm11, %v8003_v37, %v7999_v29  ;;  %12840 = vrcp.f32 %v7635_v59  ;;  %vm8118_vm14 = vmor %vm8116_vm13, %vm8117_vm12  ;;  %v8242_v50 = vand.u32 2147483648, %v7635_v59  ;;  %v8240_v23 = vand.u32 2147483647, %v7635_v59 }
 0x73f   : > { %8643 = vst [vmem:[%s14368_s25 + $0xb0] sm:$0xff] %v8004_v62  ;;  %v8113_v3 = vsub.f32 1.0, %v8112_v49  ;;  %vm8236_vm1 = vweird.f32 %v7635_v59  ;;  %v7330_v18 = vadd.f32 %v7329_v31, %v7301_v45  ;;  %v7305_v49 = vpop.f32.mrf.mxu0 }
 0x740   : > { %v7284_v57 = vpop.f32.mrf.mxu3  ;;  %v8243_v8 = vor.u32 1.1754944e-38, %v8242_v50  ;;  %vm8241_vm3 = vcmp.eq.f32.partialorder %v8240_v23, 8.507059e+37 }
 0x741   : > { %v8114_v56 = vmul.f32 %v12837_v13, %v8113_v3  ;;  %v7285_v43 = vadd.f32 %v7284_v57, %v7256_v9  ;;  %v7334_v57 = vpop.f32.mrf.mxu1 }
 0x742   : > { %v7257_v53 = vpop.f32.mrf.mxu2 }
 0x743   : > { %v12839_v46 = vpop.eup %12838  ;;  %v8115_v0 = vadd.f32 %v12837_v13, %v8114_v56  ;;  %v11759_v5 = vmul.f32 -1.442695, %v7285_v43  ;;  %v7258_v28 = vadd.f32 %v7257_v53, %v7229_v36 }
 0x744   : > { %v12841_v34 = vpop.eup %12840  ;;  %v7643_v58 = vadd.f32 1.0, %v12839_v46 }
 0x745   : > { %v8119_v21 = vsel %vm8118_vm14, %v12837_v13, %v8115_v0  ;;  %v8232_v63 = vmul.f32 %v12841_v34, %v7635_v59  ;;  %12842 = vpow2.f32 %v11759_v5  ;;  %vm8237_vm0 = vweird.f32 %v12841_v34 }
 0x746   : > { %v8124_v11 = vsel %vm8121_vm15, %v8123_v44, %v8119_v21  ;;  %12844 = vrcp.f32 %v7643_v58  ;;  %vm8238_vm2 = vmor %vm8236_vm1, %vm8237_vm0  ;;  %v8362_v10 = vand.u32 2147483648, %v7643_v58  ;;  %v8360_v12 = vand.u32 2147483647, %v7643_v58 }
 0x747   : > { %8651 = vst [vmem:[%s14368_s25 + $0xf0] sm:$0xff] %v8124_v11  ;;  %v8233_v4 = vsub.f32 1.0, %v8232_v63  ;;  %vm8356_vm5 = vweird.f32 %v7643_v58  ;;  %v7308_v50 = vpop.f32.mrf.mxu0 }
 0x748   : > { %v7286_v6 = vpop.f32.mrf.mxu3  ;;  %v8363_v13 = vor.u32 1.1754944e-38, %v8362_v10  ;;  %vm8361_vm7 = vcmp.eq.f32.partialorder %v8360_v12, 8.507059e+37  ;;  %v7309_v12 = vadd.f32 %v7308_v50, %v15351_v25 }
 0x749   : > { %v8234_v40 = vmul.f32 %v12841_v34, %v8233_v4  ;;  %v7287_v1 = vadd.f32 %v7286_v6, %v7258_v28 }
 0x74a   : > { %v7356_v20 = vpop.f32.mrf.mxu2 }
 0x74b   : > { %v12843_v51 = vpop.eup %12842  ;;  %v8235_v35 = vadd.f32 %v12841_v34, %v8234_v40  ;;  %v11767_v48 = vmul.f32 -1.442695, %v7287_v1  ;;  %v7357_v55 = vadd.f32 %v7356_v20, %v7328_v32  ;;  %v7306_v1 = vadd.f32 %v7305_v49, %v15351_v25 }
 0x74c   : > { %v12845_v54 = vpop.eup %12844  ;;  %v7651_v52 = vadd.f32 1.0, %v12843_v51  ;;  %v7337_v51 = vpop.f32.mrf.mxu1 }
 0x74d   : > { %v8239_v2 = vsel %vm8238_vm2, %v12841_v34, %v8235_v35  ;;  %v8352_v38 = vmul.f32 %v12845_v54, %v7643_v58  ;;  %12846 = vpow2.f32 %v11767_v48  ;;  %vm8357_vm4 = vweird.f32 %v12845_v54 }
 0x74e   : > { %v8244_v14 = vsel %vm8241_vm3, %v8243_v8, %v8239_v2  ;;  %12848 = vrcp.f32 %v7651_v52  ;;  %vm8358_vm6 = vmor %vm8356_vm5, %vm8357_vm4  ;;  %v8482_v9 = vand.u32 2147483648, %v7651_v52  ;;  %v8480_v26 = vand.u32 2147483647, %v7651_v52 }
 0x74f   : > { %8659 = vst [vmem:[%s14368_s25 + $0x130] sm:$0xff] %v8244_v14  ;;  %v8353_v7 = vsub.f32 1.0, %v8352_v38  ;;  %vm8476_vm9 = vweird.f32 %v7651_v52  ;;  %v7333_v34 = vadd.f32 %v7332_v27, %v7304_v24  ;;  %v7335_v32 = vadd.f32 %v7334_v57, %v7306_v1 }
 0x750   : > { %v7385_v60 = vpop.f32.mrf.mxu3  ;;  %v8483_v36 = vor.u32 1.1754944e-38, %v8482_v9  ;;  %vm8481_vm11 = vcmp.eq.f32.partialorder %v8480_v26, 8.507059e+37 }
 0x751   : > { %v8354_v17 = vmul.f32 %v12845_v54, %v8353_v7  ;;  %v7386_v22 = vadd.f32 %v7385_v60, %v7357_v55 }
 0x752   : > { %v7358_v61 = vpop.f32.mrf.mxu2 }
 0x753   : > { %v12847_v19 = vpop.eup %12846  ;;  %v8355_v15 = vadd.f32 %v12845_v54, %v8354_v17  ;;  %v11712_v30 = vmul.f32 -1.442695, %v7386_v22  ;;  %v7359_v3 = vadd.f32 %v7358_v61, %v7330_v18  ;;  %v7310_v61 = vpop.f32.mrf.mxu0 }
 0x754   : > { %v12849_v47 = vpop.eup %12848  ;;  %v7659_v42 = vadd.f32 1.0, %v12847_v19  ;;  %v7311_v26 = vadd.f32 %v7310_v61, %v15351_v25 }
 0x755   : > { %v8359_v37 = vsel %vm8358_vm6, %v12845_v54, %v8355_v15  ;;  %v8472_v59 = vmul.f32 %v12849_v47, %v7651_v52  ;;  %12850 = vpow2.f32 %v11712_v30  ;;  %vm8477_vm8 = vweird.f32 %v12849_v47 }
 0x756   : > { %v8364_v29 = vsel %vm8361_vm7, %v8363_v13, %v8359_v37  ;;  %12852 = vrcp.f32 %v7659_v42  ;;  %vm8478_vm10 = vmor %vm8476_vm9, %vm8477_vm8  ;;  %v8602_v4 = vand.u32 2147483648, %v7659_v42  ;;  %v8600_v40 = vand.u32 2147483647, %v7659_v42 }
 0x757   : > { %8667 = vst [vmem:[%s14368_s25 + $0x170] sm:$0xff] %v8364_v29  ;;  %v8473_v62 = vsub.f32 1.0, %v8472_v59  ;;  %vm8596_vm13 = vweird.f32 %v7659_v42 }
 0x758   : > { %v7387_v33 = vpop.f32.mrf.mxu3  ;;  %v8603_v8 = vor.u32 1.1754944e-38, %v8602_v4  ;;  %vm8601_vm15 = vcmp.eq.f32.partialorder %v8600_v40, 8.507059e+37 }
 0x759   : > { %v8474_v56 = vmul.f32 %v12849_v47, %v8473_v62  ;;  %v7388_v43 = vadd.f32 %v7387_v33, %v7359_v3 }
 0x75a   : > { %v7361_v53 = vpop.f32.mrf.mxu2 }
 0x75b   : > { %v12851_v46 = vpop.eup %12850  ;;  %v8475_v16 = vadd.f32 %v12849_v47, %v8474_v56  ;;  %v11720_v0 = vmul.f32 -1.442695, %v7388_v43  ;;  %v7362_v11 = vadd.f32 %v7361_v53, %v7333_v34 }
 0x75c   : > { %v12853_v5 = vpop.eup %12852  ;;  %v7604_v44 = vadd.f32 1.0, %v12851_v46 }
 0x75d   : > { %v8479_v58 = vsel %vm8478_vm10, %v12849_v47, %v8475_v16  ;;  %v8592_v31 = vmul.f32 %v12853_v5, %v7659_v42  ;;  %12854 = vpow2.f32 %v11720_v0  ;;  %vm8597_vm12 = vweird.f32 %v12853_v5  ;;  %v7339_v42 = vpop.f32.mrf.mxu1 }
 0x75e   : > { %v8484_v21 = vsel %vm8481_vm11, %v8483_v36, %v8479_v58  ;;  %12856 = vrcp.f32 %v7604_v44  ;;  %vm8598_vm14 = vmor %vm8596_vm13, %vm8597_vm12  ;;  %v7777_v7 = vand.u32 2147483648, %v7604_v44  ;;  %v7775_v60 = vand.u32 2147483647, %v7604_v44  ;;  %v7313_v36 = vpop.f32.mrf.mxu0 }
 0x75f   : > { %8675 = vst [vmem:[%s14368_s25 + $0x1b0] sm:$0xff] %v8484_v21  ;;  %v8593_v63 = vsub.f32 1.0, %v8592_v31  ;;  %vm7771_vm1 = vweird.f32 %v7604_v44  ;;  %v7338_v47 = vadd.f32 %v7337_v51, %v7309_v12  ;;  %v7340_v0 = vadd.f32 %v7339_v42, %v7311_v26 }
 0x760   : > { %v7390_v28 = vpop.f32.mrf.mxu3  ;;  %v7778_v18 = vor.u32 1.1754944e-38, %v7777_v7  ;;  %vm7776_vm3 = vcmp.eq.f32.partialorder %v7775_v60, 8.507059e+37 }
 0x761   : > { %v8594_v6 = vmul.f32 %v12853_v5, %v8593_v63  ;;  %v7391_v23 = vadd.f32 %v7390_v28, %v7362_v11 }
 0x762   : > { %v7363_v39 = vpop.f32.mrf.mxu2 }
 0x763   : > { %v12855_v20 = vpop.eup %12854  ;;  %v8595_v35 = vadd.f32 %v12853_v5, %v8594_v6  ;;  %v11728_v48 = vmul.f32 -1.442695, %v7391_v23  ;;  %v7364_v27 = vadd.f32 %v7363_v39, %v7335_v32  ;;  %v7314_v23 = vadd.f32 %v7313_v36, %v15351_v25 }
 0x764   : > { %v12857_v54 = vpop.eup %12856  ;;  %v7612_v52 = vadd.f32 1.0, %v12855_v20 }
 0x765   : > { %v8599_v41 = vsel %vm8598_vm14, %v12853_v5, %v8595_v35  ;;  %v7767_v2 = vmul.f32 %v12857_v54, %v7604_v44  ;;  %12858 = vpow2.f32 %v11728_v48  ;;  %vm7772_vm0 = vweird.f32 %v12857_v54  ;;  %v7342_v21 = vpop.f32.mrf.mxu1 }
 0x766   : > { %v8604_v38 = vsel %vm8601_vm15, %v8603_v8, %v8599_v41  ;;  %12860 = vrcp.f32 %v7612_v52  ;;  %vm7773_vm2 = vmor %vm7771_vm1, %vm7772_vm0  ;;  %v7897_v3 = vand.u32 2147483648, %v7612_v52  ;;  %v7895_v57 = vand.u32 2147483647, %v7612_v52 }
 0x767   : > { %8683 = vst [vmem:[%s14368_s25 + $0x1f0] sm:$0xff] %v8604_v38  ;;  %v7768_v14 = vsub.f32 1.0, %v7767_v2  ;;  %vm7891_vm5 = vweird.f32 %v7612_v52  ;;  %v7343_v48 = vadd.f32 %v7342_v21, %v7314_v23  ;;  %v7315_v2 = vpop.f32.mrf.mxu0 }
 0x768   : > { %v7392_v55 = vpop.f32.mrf.mxu3  ;;  %v7898_v5 = vor.u32 1.1754944e-38, %v7897_v3  ;;  %vm7896_vm7 = vcmp.eq.f32.partialorder %v7895_v57, 8.507059e+37  ;;  %v7316_v12 = vadd.f32 %v7315_v2, %v15351_v25 }
 0x769   : > { %v7769_v10 = vmul.f32 %v12857_v54, %v7768_v14  ;;  %v7393_v17 = vadd.f32 %v7392_v55, %v7364_v27 }
 0x76a   : > { %v7366_v22 = vpop.f32.mrf.mxu2 }
 0x76b   : > { %v12859_v45 = vpop.eup %12858  ;;  %v7770_v19 = vadd.f32 %v12857_v54, %v7769_v10  ;;  %v11736_v15 = vmul.f32 -1.442695, %v7393_v17  ;;  %v7367_v62 = vadd.f32 %v7366_v22, %v7338_v47 }
 0x76c   : > { %v12861_v30 = vpop.eup %12860  ;;  %v7620_v13 = vadd.f32 1.0, %v12859_v45 }
 0x76d   : > { %v7774_v37 = vsel %vm7773_vm2, %v12857_v54, %v7770_v19  ;;  %v7887_v59 = vmul.f32 %v12861_v30, %v7612_v52  ;;  %12862 = vpow2.f32 %v11736_v15  ;;  %vm7892_vm4 = vweird.f32 %v12861_v30  ;;  %v7344_v55 = vpop.f32.mrf.mxu1 }
 0x76e   : > { %v7779_v29 = vsel %vm7776_vm3, %v7778_v18, %v7774_v37  ;;  %12864 = vrcp.f32 %v7620_v13  ;;  %vm7893_vm6 = vmor %vm7891_vm5, %vm7892_vm4  ;;  %v8017_v4 = vand.u32 2147483648, %v7620_v13  ;;  %v8015_v6 = vand.u32 2147483647, %v7620_v13 }
 0x76f   : > { %8628 = vst [vmem:[%s14368_s25 + $0x38] sm:$0xff] %v7779_v29  ;;  %v7888_v49 = vsub.f32 1.0, %v7887_v59  ;;  %vm8011_vm9 = vweird.f32 %v7620_v13  ;;  %v7345_v15 = vadd.f32 %v7344_v55, %v7316_v12 }
 0x770   : > { %v7395_v9 = vpop.f32.mrf.mxu3  ;;  %v8018_v54 = vor.u32 1.1754944e-38, %v8017_v4  ;;  %vm8016_vm11 = vcmp.eq.f32.partialorder %v8015_v6, 8.507059e+37 }
 0x771   : > { %v7889_v33 = vmul.f32 %v12861_v30, %v7888_v49  ;;  %v7396_v56 = vadd.f32 %v7395_v9, %v7367_v62 }
 0x772   : > { %v7368_v43 = vpop.f32.mrf.mxu2 }
 0x773   : > { %v12863_v24 = vpop.eup %12862  ;;  %v7890_v53 = vadd.f32 %v12861_v30, %v7889_v33  ;;  %v11744_v46 = vmul.f32 -1.442695, %v7396_v56  ;;  %v7369_v11 = vadd.f32 %v7368_v43, %v7340_v0 }
 0x774   : > { %v12865_v16 = vpop.eup %12864  ;;  %v7628_v34 = vadd.f32 1.0, %v12863_v24 }
 0x775   : > { %v7894_v44 = vsel %vm7893_vm6, %v12861_v30, %v7890_v53  ;;  %v8007_v58 = vmul.f32 %v12865_v16, %v7620_v13  ;;  %12866 = vpow2.f32 %v11744_v46  ;;  %vm8012_vm8 = vweird.f32 %v12865_v16 }
 0x776   : > { %v7899_v31 = vsel %vm7896_vm7, %v7898_v5, %v7894_v44  ;;  %12868 = vrcp.f32 %v7628_v34  ;;  %vm8013_vm10 = vmor %vm8011_vm9, %vm8012_vm8  ;;  %v8137_v27 = vand.u32 2147483648, %v7628_v34  ;;  %v8135_v60 = vand.u32 2147483647, %v7628_v34 }
 0x777   : > { %8636 = vst [vmem:[%s14368_s25 + $0x78] sm:$0xff] %v7899_v31  ;;  %v8008_v63 = vsub.f32 1.0, %v8007_v58  ;;  %vm8131_vm13 = vweird.f32 %v7628_v34 }
 0x778   : > { %v7397_v28 = vpop.f32.mrf.mxu3  ;;  %v8138_v30 = vor.u32 1.1754944e-38, %v8137_v27  ;;  %vm8136_vm15 = vcmp.eq.f32.partialorder %v8135_v60, 8.507059e+37 }
 0x779   : > { %v8009_v50 = vmul.f32 %v12865_v16, %v8008_v63  ;;  %v7398_v40 = vadd.f32 %v7397_v28, %v7369_v11 }
 0x77a   : > { %v7371_v1 = vpop.f32.mrf.mxu2 }
 0x77b   : > { %v12867_v39 = vpop.eup %12866  ;;  %v8010_v20 = vadd.f32 %v12865_v16, %v8009_v50  ;;  %v11752_v51 = vmul.f32 -1.442695, %v7398_v40  ;;  %v7372_v14 = vadd.f32 %v7371_v1, %v7343_v48 }
 0x77c   : > { %v12869_v35 = vpop.eup %12868  ;;  %v7636_v32 = vadd.f32 1.0, %v12867_v39 }
 0x77d   : > { %v8014_v8 = vsel %vm8013_vm10, %v12865_v16, %v8010_v20  ;;  %v8127_v52 = vmul.f32 %v12869_v35, %v7628_v34  ;;  %12870 = vpow2.f32 %v11752_v51  ;;  %vm8132_vm12 = vweird.f32 %v12869_v35 }
 0x77e   : > { %v8019_v41 = vsel %vm8016_vm11, %v8018_v54, %v8014_v8  ;;  %12872 = vrcp.f32 %v7636_v32  ;;  %vm8133_vm14 = vmor %vm8131_vm13, %vm8132_vm12  ;;  %v8257_v29 = vand.u32 2147483648, %v7636_v32  ;;  %v8255_v3 = vand.u32 2147483647, %v7636_v32 }
 0x77f   : > { %8644 = vst [vmem:[%s14368_s25 + $0xb8] sm:$0xff] %v8019_v41  ;;  %v8128_v38 = vsub.f32 1.0, %v8127_v52  ;;  %vm8251_vm1 = vweird.f32 %v7636_v32 }
 0x780   : > { %v7400_v7 = vpop.f32.mrf.mxu3  ;;  %v8258_v43 = vor.u32 1.1754944e-38, %v8257_v29  ;;  %vm8256_vm3 = vcmp.eq.f32.partialorder %v8255_v3, 8.507059e+37 }
 0x781   : > { %v8129_v10 = vmul.f32 %v12869_v35, %v8128_v38  ;;  %v7401_v17 = vadd.f32 %v7400_v7, %v7372_v14 }
 0x782   : > { %v7373_v18 = vpop.f32.mrf.mxu2 }
 0x783   : > { %v12871_v22 = vpop.eup %12870  ;;  %v8130_v45 = vadd.f32 %v12869_v35, %v8129_v10  ;;  %v11760_v61 = vmul.f32 -1.442695, %v7401_v17  ;;  %v7374_v25 = vadd.f32 %v7373_v18, %v7345_v15 }
 0x784   : > { %v12873_v19 = vpop.eup %12872  ;;  %v7644_v47 = vadd.f32 1.0, %v12871_v22 }
 0x785   : > { %v8134_v13 = vsel %vm8133_vm14, %v12869_v35, %v8130_v45  ;;  %v8247_v42 = vmul.f32 %v12873_v19, %v7636_v32  ;;  %12874 = vpow2.f32 %v11760_v61  ;;  %vm8252_vm0 = vweird.f32 %v12873_v19 }
 0x786   : > { %v8139_v37 = vsel %vm8136_vm15, %v8138_v30, %v8134_v13  ;;  %12876 = vrcp.f32 %v7644_v47  ;;  %vm8253_vm2 = vmor %vm8251_vm1, %vm8252_vm0  ;;  %v8377_v5 = vand.u32 2147483648, %v7644_v47  ;;  %v8375_v36 = vand.u32 2147483647, %v7644_v47 }
 0x787   : > { %8652 = vst [vmem:[%s14368_s25 + $0xf8] sm:$0xff] %v8139_v37  ;;  %v8248_v59 = vsub.f32 1.0, %v8247_v42  ;;  %vm8371_vm5 = vweird.f32 %v7644_v47 }
 0x788   : > { %v7402_v49 = vpop.f32.mrf.mxu3  ;;  %v8378_v21 = vor.u32 1.1754944e-38, %v8377_v5  ;;  %vm8376_vm7 = vcmp.eq.f32.partialorder %v8375_v36, 8.507059e+37 }
 0x789   : > { %v8249_v62 = vmul.f32 %v12873_v19, %v8248_v59  ;;  %v7403_v9 = vadd.f32 %v7402_v49, %v7374_v25 }
 0x78b   : > { %v12875_v33 = vpop.eup %12874  ;;  %v8250_v57 = vadd.f32 %v12873_v19, %v8249_v62  ;;  %v11768_v56 = vmul.f32 -1.442695, %v7403_v9 }
 0x78c   : > { %v12877_v26 = vpop.eup %12876  ;;  %v7652_v24 = vadd.f32 1.0, %v12875_v33 }
 0x78d   : > { %v8254_v53 = vsel %vm8253_vm2, %v12873_v19, %v8250_v57  ;;  %v8367_v46 = vmul.f32 %v12877_v26, %v7644_v47  ;;  %12878 = vpow2.f32 %v11768_v56  ;;  %vm8372_vm4 = vweird.f32 %v12877_v26 }
 0x78e   : > { %v8259_v16 = vsel %vm8256_vm3, %v8258_v43, %v8254_v53  ;;  %12880 = vrcp.f32 %v7652_v24  ;;  %vm8373_vm6 = vmor %vm8371_vm5, %vm8372_vm4  ;;  %v8497_v6 = vand.u32 2147483648, %v7652_v24  ;;  %v8495_v23 = vand.u32 2147483647, %v7652_v24 }
 0x78f   : > { %8660 = vst [vmem:[%s14368_s25 + $0x138] sm:$0xff] %v8259_v16  ;;  %v8368_v0 = vsub.f32 1.0, %v8367_v46  ;;  %vm8491_vm9 = vweird.f32 %v7652_v24 }
 0x790   : > { %v8498_v20 = vor.u32 1.1754944e-38, %v8497_v6  ;;  %vm8496_vm11 = vcmp.eq.f32.partialorder %v8495_v23, 8.507059e+37 }
 0x791   : > { %v8369_v34 = vmul.f32 %v12877_v26, %v8368_v0 }
 0x793   : > { %v12879_v44 = vpop.eup %12878  ;;  %v8370_v58 = vadd.f32 %v12877_v26, %v8369_v34 }
 0x794   : > { %v12881_v31 = vpop.eup %12880  ;;  %v7660_v63 = vadd.f32 1.0, %v12879_v44 }
 0x795   : > { %v8374_v11 = vsel %vm8373_vm6, %v12877_v26, %v8370_v58  ;;  %v8487_v4 = vmul.f32 %v12881_v31, %v7652_v24  ;;  %vm8492_vm8 = vweird.f32 %v12881_v31 }
 0x796   : > { %v8379_v28 = vsel %vm8376_vm7, %v8378_v21, %v8374_v11  ;;  %12882 = vrcp.f32 %v7660_v63  ;;  %vm8493_vm10 = vmor %vm8491_vm9, %vm8492_vm8  ;;  %v8617_v32 = vand.u32 2147483648, %v7660_v63  ;;  %v8615_v52 = vand.u32 2147483647, %v7660_v63 }
 0x797   : > { %8668 = vst [vmem:[%s14368_s25 + $0x178] sm:$0xff] %v8379_v28  ;;  %v8488_v50 = vsub.f32 1.0, %v8487_v4  ;;  %vm8611_vm13 = vweird.f32 %v7660_v63 }
 0x798   : > { %v8618_v2 = vor.u32 1.1754944e-38, %v8617_v32  ;;  %vm8616_vm15 = vcmp.eq.f32.partialorder %v8615_v52, 8.507059e+37 }
 0x799   : > { %v8489_v40 = vmul.f32 %v12881_v31, %v8488_v50 }
 0x79b   : > { %v8490_v1 = vadd.f32 %v12881_v31, %v8489_v40 }
 0x79c   : > { %v12883_v39 = vpop.eup %12882 }
 0x79d   : > { %v8494_v51 = vsel %vm8493_vm10, %v12881_v31, %v8490_v1  ;;  %v8607_v35 = vmul.f32 %v12883_v39, %v7660_v63  ;;  %vm8612_vm12 = vweird.f32 %v12883_v39 }
 0x79e   : > { %v8499_v48 = vsel %vm8496_vm11, %v8498_v20, %v8494_v51  ;;  %vm8613_vm14 = vmor %vm8611_vm13, %vm8612_vm12 }
 0x79f   : > { %8676 = vst [vmem:[%s14368_s25 + $0x1b8] sm:$0xff] %v8499_v48  ;;  %v8608_v54 = vsub.f32 1.0, %v8607_v35 }
 0x7a1   : > { %v8609_v8 = vmul.f32 %v12883_v39, %v8608_v54 }
 0x7a3   : > { %v8610_v41 = vadd.f32 %v12883_v39, %v8609_v8 }
 0x7a5   : > { %v8614_v38 = vsel %vm8613_vm14, %v12883_v39, %v8610_v41 }
 0x7a6   : > { %v8619_v14 = vsel %vm8616_vm15, %v8618_v2, %v8614_v38 }
 0x7a7   : > { %8684 = vst [vmem:[%s14368_s25 + $0x1f8] sm:$0xff] %v8619_v14 }
 0x7a8   : > { %13215 = shalt.err (!%p13212_p9)
}
 0x7a9   : > { %s13291_s14 = smov 1024   ;;  %s13292_s25 = smov 64  }
 0x7aa   : > { %12521 = dma.vmem_to_hbm [thread:$0]  (%p13462_p13), %s8700_s24, 8192, %s8702_s29, %s8686_s10, %s13291_s14, %s13291_s14, %s13292_s25  }
 0x7ab PF: > { %s8716_s1 = sand.u32 1, %s13262_s17   ;;  %p15501_p10 = scmp.ge.s32.totalorder %s13274_s20, 2 }
 0x7ac   : > { %s8717_s12 = scalar_lea.sflag [#allocation4], %s8716_s1 }
 0x7ad   : > { %p12556_p11 = pnand %p15501_p10, %p13467_p4 }
 0x7af   : > { %p12557_p0 = pneg %p12556_p11 }
 0x7b1   : > { %13257 = dma.done.wait (%p12557_p0), %s8717_s12, 8192  }
 0x7b2   : > { %13259 = vsyncadd (%p12557_p0), %s8717_s12, 4294959104  ;;  %p29_p2 = scmp.ge.s32.totalorder %s13442_s22, 4   ;;  %s15502_s17 = smov %s13266_s18 }
 0x7b3   : > { %s15503_s18 = smov %s13270_s19  ;;  %s15504_s19 = smov %s13454_s15 }
 0x7b4   : > { %s15505_s20 = smov %s13442_s22  ;;  %31 = sbr.rel (!%p29_p2) target bundleno = 16 (0x10), region = 145 }
 0x7b9   :  { %8723 = vsyncpa [#allocation3], 1 }
 0x7ba   :  { %8725 = vsyncpa [#allocation3 + $0x1], 1 }
 0x7bb   :  { %8726 = vsyncpa [#allocation6], 1 }
 0x7bc   :  { %8727 = vsyncpa [#allocation9], 1 }
 0x7bd   :  { %8728 = vsyncpa [#allocation12], 1 }
 0x7be   :  { %8729 = vsyncpa [#allocation15], 1 }
 0x7bf   :  { %8730 = vsyncpa [#allocation18], 1 }
 0x7c0   :  { %8731 = vsyncpa [#allocation4], 1 }
 0x7c1   :  { %8733 = vsyncpa [#allocation4 + $0x1], 1 }

</bundles_post_ra>
